<compile_context>
chip_gen: v7x
topology: tpu7x:2x2x1
jax: 0.10.0
libtpu: 0.0.40
codegen_flags: <defaults>
</compile_context>

<pallas_src>
import functools

import jax
import jax.numpy as jnp
from jax.experimental import pallas as pl
from jax.experimental.pallas import tpu as pltpu


def smallmnist_kernel(x_ref, w1_ref, b1_ref, w2_ref, b2_ref, o_ref):
    # x_ref : (NB, H, W)         fp32   (Cin == 1, squeezed)
    # w1_ref: (25, 10)           compute dtype, K ordered (kh, kw, cin)
    # b1_ref: (1, 10)            fp32
    # w2_ref: (250, 20)          compute dtype, K ordered (kh, kw, cin)
    # b2_ref: (1, 20)            fp32
    # o_ref : (C2, NB*OH2*OW2)   fp32, lane-dense (channels x flattened (n, oh, ow))
    x = x_ref[...]
    w1 = w1_ref[...]
    w2 = w2_ref[...]
    b1 = b1_ref[...]
    b2 = b2_ref[...]

    NB, H, W = x.shape
    KH = KW = 5
    C1 = w1.shape[1]
    OH1, OW1 = H - KH + 1, W - KW + 1          # 12, 12 for a 16x16 input
    OH2, OW2 = OH1 - KH + 1, OW1 - KW + 1      # 8, 8
    M1 = NB * OH1 * OW1
    M2 = NB * OH2 * OW2
    cdt = w1.dtype                             # MXU input dtype (fp32 or bf16)

    # ---- conv1 as one im2col matmul on the MXU (+ fused bias & ReLU) ----
    cols1 = [x[:, kh:kh + OH1, kw:kw + OW1][..., None]             # (NB, OH1, OW1, 1)
             for kh in range(KH) for kw in range(KW)]
    p1 = jnp.concatenate(cols1, axis=-1).reshape(M1, KH * KW)      # (M1, 25)
    y1 = jnp.dot(p1.astype(cdt), w1,
                 preferred_element_type=jnp.float32,
                 precision=jax.lax.Precision.HIGHEST)              # (M1, 10) fp32 acc
    h = jnp.maximum(y1 + b1, 0.0).reshape(NB, OH1, OW1, C1)        # NHWC hidden

    # ---- conv2 as one im2col matmul on the MXU (+ fused bias) ----
    cols2 = [h[:, kh:kh + OH2, kw:kw + OW2, :]                     # (NB, OH2, OW2, C1)
             for kh in range(KH) for kw in range(KW)]
    p2 = jnp.concatenate(cols2, axis=-1).reshape(M2, KH * KW * C1)  # (M2, 250)
    y2 = jnp.dot(p2.astype(cdt), w2,
                 preferred_element_type=jnp.float32,
                 precision=jax.lax.Precision.HIGHEST)              # (M2, 20) fp32 acc
    y2 = y2 + b2

    # Lane-dense store: last dim M2 is a multiple of 128 -> unmasked full-lane vst.
    o_ref[...] = y2.T


def small_mnist_forward(x_nchw, w1_oihw, b1, w2_oihw, b2, *,
                        block_n=2, compute_dtype=jnp.float32):
    """SmallMnist forward.

    x_nchw: (N, 1, H, W) fp32; PyTorch-layout params: w1 (10,1,5,5), b1 (10,),
    w2 (20,10,5,5), b2 (20,).  Returns (N, 20, H-8, W-8) fp32.
    """
    N, cin, H, W = x_nchw.shape
    assert cin == 1
    KH = KW = 5
    C1 = w1_oihw.shape[0]
    C2 = w2_oihw.shape[0]
    OH1, OW1 = H - KH + 1, W - KW + 1
    OH2, OW2 = OH1 - KH + 1, OW1 - KW + 1

    assert N % block_n == 0, "batch must be divisible by block_n"
    m_blk = block_n * OH2 * OW2
    assert m_blk % 128 == 0, "per-step output columns must be a multiple of 128"

    x = x_nchw[:, 0]  # (N, H, W); single input channel squeezed

    # Wrapper-side layout plumbing (free): PyTorch OIHW -> im2col matmul layout,
    # K ordered (kh, kw, cin) to match the kernel's patch construction.
    w1_mat = jnp.transpose(w1_oihw, (2, 3, 1, 0)).reshape(KH * KW * cin, C1).astype(compute_dtype)
    w2_mat = jnp.transpose(w2_oihw, (2, 3, 1, 0)).reshape(KH * KW * C1, C2).astype(compute_dtype)
    b1_row = b1.reshape(1, C1).astype(jnp.float32)
    b2_row = b2.reshape(1, C2).astype(jnp.float32)

    grid = (N // block_n,)
    out_cm = pl.pallas_call(
        smallmnist_kernel,
        out_shape=jax.ShapeDtypeStruct((C2, N * OH2 * OW2), jnp.float32),
        grid_spec=pltpu.PrefetchScalarGridSpec(
            num_scalar_prefetch=0,
            grid=grid,
            in_specs=[
                pl.BlockSpec((block_n, H, W), lambda i: (i, 0, 0)),
                pl.BlockSpec((KH * KW * cin, C1), lambda i: (0, 0)),
                pl.BlockSpec((1, C1), lambda i: (0, 0)),
                pl.BlockSpec((KH * KW * C1, C2), lambda i: (0, 0)),
                pl.BlockSpec((1, C2), lambda i: (0, 0)),
            ],
            out_specs=pl.BlockSpec((C2, m_blk), lambda i: (0, i)),
        ),
        compiler_params=pltpu.CompilerParams(
            dimension_semantics=("parallel",)),   # shard batch blocks across TCs (v7x)
    )(x, w1_mat, b1_row, w2_mat, b2_row)

    # (C2, N*OH2*OW2) -> (N, C2, OH2, OW2)  (NCHW, PyTorch convention)
    return out_cm.reshape(C2, N, OH2, OW2).transpose(1, 0, 2, 3)


def ref_forward(x_nchw, w1_oihw, b1, w2_oihw, b2):
    """Pure-JAX reference matching PyTorch nn.Conv2d (valid, stride 1)."""
    dn = ("NCHW", "OIHW", "NCHW")
    hp = jax.lax.Precision.HIGHEST
    y = jax.lax.conv_general_dilated(x_nchw, w1_oihw, (1, 1), "VALID",
                                     dimension_numbers=dn, precision=hp)
    y = jnp.maximum(y + b1.reshape(1, -1, 1, 1), 0.0)
    y = jax.lax.conv_general_dilated(y, w2_oihw, (1, 1), "VALID",
                                     dimension_numbers=dn, precision=hp)
    return y + b2.reshape(1, -1, 1, 1)


if __name__ == "__main__":
    key = jax.random.PRNGKey(0)
    kx, k1, k2, k3, k4 = jax.random.split(key, 5)

    # Deterministic synthetic parameters in PyTorch layout (SmallMnist.__init__ shapes).
    w1 = jax.random.normal(k1, (10, 1, 5, 5), jnp.float32) * 0.2      # ~1/sqrt(25)
    b1 = jax.random.normal(k2, (10,), jnp.float32) * 0.1
    w2 = jax.random.normal(k3, (20, 10, 5, 5), jnp.float32) * 0.063   # ~1/sqrt(250)
    b2 = jax.random.normal(k4, (20,), jnp.float32) * 0.05

    # Small NCHW input consistent with the module: (batch=2, Cin=1, 16, 16).
    x = jax.random.normal(kx, (2, 1, 16, 16), jnp.float32)

    ref = ref_forward(x, w1, b1, w2, b2)

    # fp32 path (default): preserves module numerics; checked tight.
    out = jax.jit(small_mnist_forward)(x, w1, b1, w2, b2)
    out = jax.block_until_ready(out)
    assert out.shape == (2, 20, 8, 8), out.shape
    assert jnp.allclose(out, ref, rtol=1e-4, atol=1e-4), \
        float(jnp.max(jnp.abs(out - ref)))

    # bf16-input MXU path (v5e/v6e/v7x throughput knob), fp32 accumulation;
    # checked at a bf16-appropriate tolerance.
    fwd_bf16 = jax.jit(functools.partial(small_mnist_forward,
                                         compute_dtype=jnp.bfloat16))
    out_bf16 = jax.block_until_ready(fwd_bf16(x, w1, b1, w2, b2))
    assert jnp.allclose(out_bf16, ref, rtol=3e-2, atol=3e-2), \
        float(jnp.max(jnp.abs(out_bf16 - ref)))

    print("KERNEL_OK")
</pallas_src>

<mosaic_0001>
module attributes {stable_mosaic.version = 11 : i64} {
  func.func @smallmnist_kernel(%arg0: i32, %arg1: memref<2x16x16xf32, #tpu.memory_space<vmem>>, %arg2: memref<25x10xf32, #tpu.memory_space<vmem>>, %arg3: memref<1x10xf32, #tpu.memory_space<vmem>>, %arg4: memref<250x20xf32, #tpu.memory_space<vmem>>, %arg5: memref<1x20xf32, #tpu.memory_space<vmem>>, %arg6: memref<20x128xf32, #tpu.memory_space<vmem>>) attributes {dimension_semantics = [#tpu.dimension_semantics<parallel>], iteration_bounds = array<i64: 1>, scalar_prefetch = 0 : i64, scratch_operands = 0 : i64, tpu.core_type = #tpu.core_type<tc>, window_params = [{transform_indices = @transform_0, window_bounds = array<i64: 2, 16, 16>}, {pipeline_mode = #tpu.pipeline_mode<synchronous>, transform_indices = @transform_1, window_bounds = array<i64: 25, 10>}, {pipeline_mode = #tpu.pipeline_mode<synchronous>, transform_indices = @transform_2, window_bounds = array<i64: 1, 10>}, {pipeline_mode = #tpu.pipeline_mode<synchronous>, transform_indices = @transform_3, window_bounds = array<i64: 250, 20>}, {pipeline_mode = #tpu.pipeline_mode<synchronous>, transform_indices = @transform_4, window_bounds = array<i64: 1, 20>}, {transform_indices = @transform_5, window_bounds = array<i64: 20, 128>}]} {
    %c0 = arith.constant 0 : index
    %c0_0 = arith.constant 0 : index
    %c0_1 = arith.constant 0 : index
    %0 = vector.load %arg1[%c0, %c0_0, %c0_1] : memref<2x16x16xf32, #tpu.memory_space<vmem>>, vector<2x16x16xf32>
    %c0_2 = arith.constant 0 : index
    %c0_3 = arith.constant 0 : index
    %1 = vector.load %arg2[%c0_2, %c0_3] : memref<25x10xf32, #tpu.memory_space<vmem>>, vector<25x10xf32>
    %c0_4 = arith.constant 0 : index
    %c0_5 = arith.constant 0 : index
    %2 = vector.load %arg4[%c0_4, %c0_5] : memref<250x20xf32, #tpu.memory_space<vmem>>, vector<250x20xf32>
    %c0_6 = arith.constant 0 : index
    %c0_7 = arith.constant 0 : index
    %3 = vector.load %arg3[%c0_6, %c0_7] : memref<1x10xf32, #tpu.memory_space<vmem>>, vector<1x10xf32>
    %c0_8 = arith.constant 0 : index
    %c0_9 = arith.constant 0 : index
    %4 = vector.load %arg5[%c0_8, %c0_9] : memref<1x20xf32, #tpu.memory_space<vmem>>, vector<1x20xf32>
    %5 = vector.extract_strided_slice %0 {offsets = [0, 0, 0], sizes = [2, 12, 12], strides = [1, 1, 1]} : vector<2x16x16xf32> to vector<2x12x12xf32>
    %6 = vector.shape_cast %5 : vector<2x12x12xf32> to vector<2x12x12x1xf32>
    %7 = vector.extract_strided_slice %0 {offsets = [0, 0, 1], sizes = [2, 12, 12], strides = [1, 1, 1]} : vector<2x16x16xf32> to vector<2x12x12xf32>
    %8 = vector.shape_cast %7 : vector<2x12x12xf32> to vector<2x12x12x1xf32>
    %9 = vector.extract_strided_slice %0 {offsets = [0, 0, 2], sizes = [2, 12, 12], strides = [1, 1, 1]} : vector<2x16x16xf32> to vector<2x12x12xf32>
    %10 = vector.shape_cast %9 : vector<2x12x12xf32> to vector<2x12x12x1xf32>
    %11 = vector.extract_strided_slice %0 {offsets = [0, 0, 3], sizes = [2, 12, 12], strides = [1, 1, 1]} : vector<2x16x16xf32> to vector<2x12x12xf32>
    %12 = vector.shape_cast %11 : vector<2x12x12xf32> to vector<2x12x12x1xf32>
    %13 = vector.extract_strided_slice %0 {offsets = [0, 0, 4], sizes = [2, 12, 12], strides = [1, 1, 1]} : vector<2x16x16xf32> to vector<2x12x12xf32>
    %14 = vector.shape_cast %13 : vector<2x12x12xf32> to vector<2x12x12x1xf32>
    %15 = vector.extract_strided_slice %0 {offsets = [0, 1, 0], sizes = [2, 12, 12], strides = [1, 1, 1]} : vector<2x16x16xf32> to vector<2x12x12xf32>
    %16 = vector.shape_cast %15 : vector<2x12x12xf32> to vector<2x12x12x1xf32>
    %17 = vector.extract_strided_slice %0 {offsets = [0, 1, 1], sizes = [2, 12, 12], strides = [1, 1, 1]} : vector<2x16x16xf32> to vector<2x12x12xf32>
    %18 = vector.shape_cast %17 : vector<2x12x12xf32> to vector<2x12x12x1xf32>
    %19 = vector.extract_strided_slice %0 {offsets = [0, 1, 2], sizes = [2, 12, 12], strides = [1, 1, 1]} : vector<2x16x16xf32> to vector<2x12x12xf32>
    %20 = vector.shape_cast %19 : vector<2x12x12xf32> to vector<2x12x12x1xf32>
    %21 = vector.extract_strided_slice %0 {offsets = [0, 1, 3], sizes = [2, 12, 12], strides = [1, 1, 1]} : vector<2x16x16xf32> to vector<2x12x12xf32>
    %22 = vector.shape_cast %21 : vector<2x12x12xf32> to vector<2x12x12x1xf32>
    %23 = vector.extract_strided_slice %0 {offsets = [0, 1, 4], sizes = [2, 12, 12], strides = [1, 1, 1]} : vector<2x16x16xf32> to vector<2x12x12xf32>
    %24 = vector.shape_cast %23 : vector<2x12x12xf32> to vector<2x12x12x1xf32>
    %25 = vector.extract_strided_slice %0 {offsets = [0, 2, 0], sizes = [2, 12, 12], strides = [1, 1, 1]} : vector<2x16x16xf32> to vector<2x12x12xf32>
    %26 = vector.shape_cast %25 : vector<2x12x12xf32> to vector<2x12x12x1xf32>
    %27 = vector.extract_strided_slice %0 {offsets = [0, 2, 1], sizes = [2, 12, 12], strides = [1, 1, 1]} : vector<2x16x16xf32> to vector<2x12x12xf32>
    %28 = vector.shape_cast %27 : vector<2x12x12xf32> to vector<2x12x12x1xf32>
    %29 = vector.extract_strided_slice %0 {offsets = [0, 2, 2], sizes = [2, 12, 12], strides = [1, 1, 1]} : vector<2x16x16xf32> to vector<2x12x12xf32>
    %30 = vector.shape_cast %29 : vector<2x12x12xf32> to vector<2x12x12x1xf32>
    %31 = vector.extract_strided_slice %0 {offsets = [0, 2, 3], sizes = [2, 12, 12], strides = [1, 1, 1]} : vector<2x16x16xf32> to vector<2x12x12xf32>
    %32 = vector.shape_cast %31 : vector<2x12x12xf32> to vector<2x12x12x1xf32>
    %33 = vector.extract_strided_slice %0 {offsets = [0, 2, 4], sizes = [2, 12, 12], strides = [1, 1, 1]} : vector<2x16x16xf32> to vector<2x12x12xf32>
    %34 = vector.shape_cast %33 : vector<2x12x12xf32> to vector<2x12x12x1xf32>
    %35 = vector.extract_strided_slice %0 {offsets = [0, 3, 0], sizes = [2, 12, 12], strides = [1, 1, 1]} : vector<2x16x16xf32> to vector<2x12x12xf32>
    %36 = vector.shape_cast %35 : vector<2x12x12xf32> to vector<2x12x12x1xf32>
    %37 = vector.extract_strided_slice %0 {offsets = [0, 3, 1], sizes = [2, 12, 12], strides = [1, 1, 1]} : vector<2x16x16xf32> to vector<2x12x12xf32>
    %38 = vector.shape_cast %37 : vector<2x12x12xf32> to vector<2x12x12x1xf32>
    %39 = vector.extract_strided_slice %0 {offsets = [0, 3, 2], sizes = [2, 12, 12], strides = [1, 1, 1]} : vector<2x16x16xf32> to vector<2x12x12xf32>
    %40 = vector.shape_cast %39 : vector<2x12x12xf32> to vector<2x12x12x1xf32>
    %41 = vector.extract_strided_slice %0 {offsets = [0, 3, 3], sizes = [2, 12, 12], strides = [1, 1, 1]} : vector<2x16x16xf32> to vector<2x12x12xf32>
    %42 = vector.shape_cast %41 : vector<2x12x12xf32> to vector<2x12x12x1xf32>
    %43 = vector.extract_strided_slice %0 {offsets = [0, 3, 4], sizes = [2, 12, 12], strides = [1, 1, 1]} : vector<2x16x16xf32> to vector<2x12x12xf32>
    %44 = vector.shape_cast %43 : vector<2x12x12xf32> to vector<2x12x12x1xf32>
    %45 = vector.extract_strided_slice %0 {offsets = [0, 4, 0], sizes = [2, 12, 12], strides = [1, 1, 1]} : vector<2x16x16xf32> to vector<2x12x12xf32>
    %46 = vector.shape_cast %45 : vector<2x12x12xf32> to vector<2x12x12x1xf32>
    %47 = vector.extract_strided_slice %0 {offsets = [0, 4, 1], sizes = [2, 12, 12], strides = [1, 1, 1]} : vector<2x16x16xf32> to vector<2x12x12xf32>
    %48 = vector.shape_cast %47 : vector<2x12x12xf32> to vector<2x12x12x1xf32>
    %49 = vector.extract_strided_slice %0 {offsets = [0, 4, 2], sizes = [2, 12, 12], strides = [1, 1, 1]} : vector<2x16x16xf32> to vector<2x12x12xf32>
    %50 = vector.shape_cast %49 : vector<2x12x12xf32> to vector<2x12x12x1xf32>
    %51 = vector.extract_strided_slice %0 {offsets = [0, 4, 3], sizes = [2, 12, 12], strides = [1, 1, 1]} : vector<2x16x16xf32> to vector<2x12x12xf32>
    %52 = vector.shape_cast %51 : vector<2x12x12xf32> to vector<2x12x12x1xf32>
    %53 = vector.extract_strided_slice %0 {offsets = [0, 4, 4], sizes = [2, 12, 12], strides = [1, 1, 1]} : vector<2x16x16xf32> to vector<2x12x12xf32>
    %54 = vector.shape_cast %53 : vector<2x12x12xf32> to vector<2x12x12x1xf32>
    %55 = tpu.concatenate %6, %8, %10, %12, %14, %16, %18, %20, %22, %24, %26, %28, %30, %32, %34, %36 in 3 : vector<2x12x12x1xf32>, vector<2x12x12x1xf32>, vector<2x12x12x1xf32>, vector<2x12x12x1xf32>, vector<2x12x12x1xf32>, vector<2x12x12x1xf32>, vector<2x12x12x1xf32>, vector<2x12x12x1xf32>, vector<2x12x12x1xf32>, vector<2x12x12x1xf32>, vector<2x12x12x1xf32>, vector<2x12x12x1xf32>, vector<2x12x12x1xf32>, vector<2x12x12x1xf32>, vector<2x12x12x1xf32>, vector<2x12x12x1xf32> -> vector<2x12x12x16xf32>
    %56 = tpu.concatenate %38, %40, %42, %44, %46, %48, %50, %52, %54 in 3 : vector<2x12x12x1xf32>, vector<2x12x12x1xf32>, vector<2x12x12x1xf32>, vector<2x12x12x1xf32>, vector<2x12x12x1xf32>, vector<2x12x12x1xf32>, vector<2x12x12x1xf32>, vector<2x12x12x1xf32>, vector<2x12x12x1xf32> -> vector<2x12x12x9xf32>
    %57 = tpu.concatenate %55, %56 in 3 : vector<2x12x12x16xf32>, vector<2x12x12x9xf32> -> vector<2x12x12x25xf32>
    %58 = vector.shape_cast %57 : vector<2x12x12x25xf32> to vector<288x25xf32>
    %cst = arith.constant dense<0.000000e+00> : vector<288x10xf32>
    %59 = tpu.matmul %58, %1, %cst {dimension_numbers = #tpu.dot_dimension_numbers<[1], [0], [0], [1], [0, 0, 1, 1], [], []>, precision = #tpu.contract_precision<fp32>} : vector<288x25xf32>, vector<25x10xf32>, vector<288x10xf32> -> vector<288x10xf32>
    %60 = vector.broadcast %3 : vector<1x10xf32> to vector<288x10xf32>
    %61 = arith.addf %59, %60 : vector<288x10xf32>
    %cst_10 = arith.constant 0.000000e+00 : f32
    %62 = vector.broadcast %cst_10 : f32 to vector<288x10xf32>
    %63 = arith.maximumf %61, %62 : vector<288x10xf32>
    %64 = vector.shape_cast %63 : vector<288x10xf32> to vector<2x12x12x10xf32>
    %65 = vector.extract_strided_slice %64 {offsets = [0, 0, 0, 0], sizes = [2, 8, 8, 10], strides = [1, 1, 1, 1]} : vector<2x12x12x10xf32> to vector<2x8x8x10xf32>
    %66 = vector.extract_strided_slice %64 {offsets = [0, 0, 1, 0], sizes = [2, 8, 8, 10], strides = [1, 1, 1, 1]} : vector<2x12x12x10xf32> to vector<2x8x8x10xf32>
    %67 = vector.extract_strided_slice %64 {offsets = [0, 0, 2, 0], sizes = [2, 8, 8, 10], strides = [1, 1, 1, 1]} : vector<2x12x12x10xf32> to vector<2x8x8x10xf32>
    %68 = vector.extract_strided_slice %64 {offsets = [0, 0, 3, 0], sizes = [2, 8, 8, 10], strides = [1, 1, 1, 1]} : vector<2x12x12x10xf32> to vector<2x8x8x10xf32>
    %69 = vector.extract_strided_slice %64 {offsets = [0, 0, 4, 0], sizes = [2, 8, 8, 10], strides = [1, 1, 1, 1]} : vector<2x12x12x10xf32> to vector<2x8x8x10xf32>
    %70 = vector.extract_strided_slice %64 {offsets = [0, 1, 0, 0], sizes = [2, 8, 8, 10], strides = [1, 1, 1, 1]} : vector<2x12x12x10xf32> to vector<2x8x8x10xf32>
    %71 = vector.extract_strided_slice %64 {offsets = [0, 1, 1, 0], sizes = [2, 8, 8, 10], strides = [1, 1, 1, 1]} : vector<2x12x12x10xf32> to vector<2x8x8x10xf32>
    %72 = vector.extract_strided_slice %64 {offsets = [0, 1, 2, 0], sizes = [2, 8, 8, 10], strides = [1, 1, 1, 1]} : vector<2x12x12x10xf32> to vector<2x8x8x10xf32>
    %73 = vector.extract_strided_slice %64 {offsets = [0, 1, 3, 0], sizes = [2, 8, 8, 10], strides = [1, 1, 1, 1]} : vector<2x12x12x10xf32> to vector<2x8x8x10xf32>
    %74 = vector.extract_strided_slice %64 {offsets = [0, 1, 4, 0], sizes = [2, 8, 8, 10], strides = [1, 1, 1, 1]} : vector<2x12x12x10xf32> to vector<2x8x8x10xf32>
    %75 = vector.extract_strided_slice %64 {offsets = [0, 2, 0, 0], sizes = [2, 8, 8, 10], strides = [1, 1, 1, 1]} : vector<2x12x12x10xf32> to vector<2x8x8x10xf32>
    %76 = vector.extract_strided_slice %64 {offsets = [0, 2, 1, 0], sizes = [2, 8, 8, 10], strides = [1, 1, 1, 1]} : vector<2x12x12x10xf32> to vector<2x8x8x10xf32>
    %77 = vector.extract_strided_slice %64 {offsets = [0, 2, 2, 0], sizes = [2, 8, 8, 10], strides = [1, 1, 1, 1]} : vector<2x12x12x10xf32> to vector<2x8x8x10xf32>
    %78 = vector.extract_strided_slice %64 {offsets = [0, 2, 3, 0], sizes = [2, 8, 8, 10], strides = [1, 1, 1, 1]} : vector<2x12x12x10xf32> to vector<2x8x8x10xf32>
    %79 = vector.extract_strided_slice %64 {offsets = [0, 2, 4, 0], sizes = [2, 8, 8, 10], strides = [1, 1, 1, 1]} : vector<2x12x12x10xf32> to vector<2x8x8x10xf32>
    %80 = vector.extract_strided_slice %64 {offsets = [0, 3, 0, 0], sizes = [2, 8, 8, 10], strides = [1, 1, 1, 1]} : vector<2x12x12x10xf32> to vector<2x8x8x10xf32>
    %81 = vector.extract_strided_slice %64 {offsets = [0, 3, 1, 0], sizes = [2, 8, 8, 10], strides = [1, 1, 1, 1]} : vector<2x12x12x10xf32> to vector<2x8x8x10xf32>
    %82 = vector.extract_strided_slice %64 {offsets = [0, 3, 2, 0], sizes = [2, 8, 8, 10], strides = [1, 1, 1, 1]} : vector<2x12x12x10xf32> to vector<2x8x8x10xf32>
    %83 = vector.extract_strided_slice %64 {offsets = [0, 3, 3, 0], sizes = [2, 8, 8, 10], strides = [1, 1, 1, 1]} : vector<2x12x12x10xf32> to vector<2x8x8x10xf32>
    %84 = vector.extract_strided_slice %64 {offsets = [0, 3, 4, 0], sizes = [2, 8, 8, 10], strides = [1, 1, 1, 1]} : vector<2x12x12x10xf32> to vector<2x8x8x10xf32>
    %85 = vector.extract_strided_slice %64 {offsets = [0, 4, 0, 0], sizes = [2, 8, 8, 10], strides = [1, 1, 1, 1]} : vector<2x12x12x10xf32> to vector<2x8x8x10xf32>
    %86 = vector.extract_strided_slice %64 {offsets = [0, 4, 1, 0], sizes = [2, 8, 8, 10], strides = [1, 1, 1, 1]} : vector<2x12x12x10xf32> to vector<2x8x8x10xf32>
    %87 = vector.extract_strided_slice %64 {offsets = [0, 4, 2, 0], sizes = [2, 8, 8, 10], strides = [1, 1, 1, 1]} : vector<2x12x12x10xf32> to vector<2x8x8x10xf32>
    %88 = vector.extract_strided_slice %64 {offsets = [0, 4, 3, 0], sizes = [2, 8, 8, 10], strides = [1, 1, 1, 1]} : vector<2x12x12x10xf32> to vector<2x8x8x10xf32>
    %89 = vector.extract_strided_slice %64 {offsets = [0, 4, 4, 0], sizes = [2, 8, 8, 10], strides = [1, 1, 1, 1]} : vector<2x12x12x10xf32> to vector<2x8x8x10xf32>
    %90 = tpu.concatenate %65, %66, %67, %68, %69, %70, %71, %72, %73, %74, %75, %76, %77, %78, %79, %80 in 3 : vector<2x8x8x10xf32>, vector<2x8x8x10xf32>, vector<2x8x8x10xf32>, vector<2x8x8x10xf32>, vector<2x8x8x10xf32>, vector<2x8x8x10xf32>, vector<2x8x8x10xf32>, vector<2x8x8x10xf32>, vector<2x8x8x10xf32>, vector<2x8x8x10xf32>, vector<2x8x8x10xf32>, vector<2x8x8x10xf32>, vector<2x8x8x10xf32>, vector<2x8x8x10xf32>, vector<2x8x8x10xf32>, vector<2x8x8x10xf32> -> vector<2x8x8x160xf32>
    %91 = tpu.concatenate %81, %82, %83, %84, %85, %86, %87, %88, %89 in 3 : vector<2x8x8x10xf32>, vector<2x8x8x10xf32>, vector<2x8x8x10xf32>, vector<2x8x8x10xf32>, vector<2x8x8x10xf32>, vector<2x8x8x10xf32>, vector<2x8x8x10xf32>, vector<2x8x8x10xf32>, vector<2x8x8x10xf32> -> vector<2x8x8x90xf32>
    %92 = tpu.concatenate %90, %91 in 3 : vector<2x8x8x160xf32>, vector<2x8x8x90xf32> -> vector<2x8x8x250xf32>
    %93 = vector.shape_cast %92 : vector<2x8x8x250xf32> to vector<128x250xf32>
    %cst_11 = arith.constant dense<0.000000e+00> : vector<128x20xf32>
    %94 = tpu.matmul %93, %2, %cst_11 {dimension_numbers = #tpu.dot_dimension_numbers<[1], [0], [0], [1], [0, 0, 1, 1], [], []>, precision = #tpu.contract_precision<fp32>} : vector<128x250xf32>, vector<250x20xf32>, vector<128x20xf32> -> vector<128x20xf32>
    %95 = vector.broadcast %4 : vector<1x20xf32> to vector<128x20xf32>
    %96 = arith.addf %94, %95 : vector<128x20xf32>
    %97 = tpu.transpose %96, [1, 0] : vector<128x20xf32> -> vector<20x128xf32>
    %c0_12 = arith.constant 0 : index
    %c0_13 = arith.constant 0 : index
    %98 = vector.load %arg6[%c0_12, %c0_13] : memref<20x128xf32, #tpu.memory_space<vmem>>, vector<20x128xf32>
    tpu.vector_store %arg6[%c0_12, %c0_13], %97 {strides = array<i32>} : memref<20x128xf32, #tpu.memory_space<vmem>>, vector<20x128xf32>,
    return
  }
  func.func @transform_0(%arg0: i32) -> (i32, i32, i32) {
    %c0_i32 = arith.constant 0 : i32
    %c0_i32_0 = arith.constant 0 : i32
    %c0_i32_1 = arith.constant 0 : i32
    return %arg0, %c0_i32, %c0_i32_0 : i32, i32, i32
  }
  func.func @transform_1(%arg0: i32) -> (i32, i32) {
    %c0_i32 = arith.constant 0 : i32
    %c0_i32_0 = arith.constant 0 : i32
    %c0_i32_1 = arith.constant 0 : i32
    return %c0_i32, %c0_i32_0 : i32, i32
  }
  func.func @transform_2(%arg0: i32) -> (i32, i32) {
    %c0_i32 = arith.constant 0 : i32
    %c0_i32_0 = arith.constant 0 : i32
    %c0_i32_1 = arith.constant 0 : i32
    return %c0_i32, %c0_i32_0 : i32, i32
  }
  func.func @transform_3(%arg0: i32) -> (i32, i32) {
    %c0_i32 = arith.constant 0 : i32
    %c0_i32_0 = arith.constant 0 : i32
    %c0_i32_1 = arith.constant 0 : i32
    return %c0_i32, %c0_i32_0 : i32, i32
  }
  func.func @transform_4(%arg0: i32) -> (i32, i32) {
    %c0_i32 = arith.constant 0 : i32
    %c0_i32_0 = arith.constant 0 : i32
    %c0_i32_1 = arith.constant 0 : i32
    return %c0_i32, %c0_i32_0 : i32, i32
  }
  func.func @transform_5(%arg0: i32) -> (i32, i32) {
    %c0_i32 = arith.constant 0 : i32
    %c0_i32_0 = arith.constant 0 : i32
    return %c0_i32, %arg0 : i32, i32
  }
}

</mosaic_0001>

<bundles_post_ra>
// kernel: small_mnist_forward.1
= control target key start
LH: loop header
LB: loop body
LE: loop exit
PB: predicated region body
PF: predicated region fallthrough
CT: control target
= control target key end

     0   :  { %v62_v0 = vlaneseq  ;;  %vm1438_vm0 = vcmask 7168   ;;  %vm1487_vm1 = vcmask 15360   ;;  %vm19492_vm2 = vcmask 23552   ;;  %s10606_s18 = smov 40   ;;  %s10607_s19 = smov 10   ;;  %s19237_s0 = inlined_call_operand.vmem [shape: f32[2,16,16], index: 0, kind: input, shape index: {}]   ;;  %s19238_s1 = inlined_call_operand.vmem [shape: f32[25,10], index: 1, kind: input, shape index: {}]   ;;  %s19239_s2 = inlined_call_operand.vmem [shape: f32[1,10], index: 2, kind: input, shape index: {}]   ;;  %s19240_s3 = inlined_call_operand.vmem [shape: f32[250,20], index: 3, kind: input, shape index: {}]   ;;  %s19241_s4 = inlined_call_operand.vmem [shape: f32[1,20], index: 4, kind: input, shape index: {}]   ;;  %s19242_s5 = inlined_call_operand.vmem [shape: f32[20,128], index: 5, kind: output, shape index: {}]  }
   0x1   :  { %v20_v2 = vld [vmem:[%s19237_s0] sm:$0xff]  ;;  %v10712_v19 = vld [vmem:[%s19237_s0 + $0x8] sm:$0xff]  ;;  %v22_v24 = vld [vmem:[%s19237_s0 + $0x10] sm:$0xff]  ;;  %vm19490_vm3 = vcmask 31744   ;;  %vm1634_vm4 = vcmask 39936   ;;  %vm1683_vm5 = vcmask 48128  }
   0x2   :  { %v63_v1 = vshrl.u32 %v62_v0, 7  ;;  %v10784_v33 = vld [vmem:[%s19237_s0 + $0x18] sm:$0xff]  ;;  %vm1732_vm6 = vcmask 56320   ;;  %vm1781_vm7 = vcmask 64512   ;;  %vm1830_vm8 = vcmask 72704   ;;  %s10608_s20 = smov 20  }
   0x3   :  { %vm19495_vm9 = vcmask 80896   ;;  %vm1928_vm10 = vcmask 89088   ;;  %vm19554_vm11 = vcmask 97280   ;;  %vm19553_vm12 = vcmask 105472   ;;  %s10609_s21 = smov 30   ;;  %s10610_s22 = smov 50  }
   0x4   :  { %v10655_v3 = vsub.s32 1, %v63_v1  ;;  %v10657_v4 = vsub.s32 0, %v63_v1  ;;  %v10667_v7 = vsub.s32 2, %v63_v1  ;;  %v10674_v9 = vsub.s32 3, %v63_v1  ;;  %s10611_s23 = smov 70   ;;  %s10612_s24 = smov 60  }
   0x5   :  { %v10681_v11 = vsub.s32 4, %v63_v1  ;;  %v10688_v13 = vsub.s32 5, %v63_v1  ;;  %v10695_v15 = vsub.s32 6, %v63_v1  ;;  %v10702_v17 = vsub.s32 7, %v63_v1  ;;  %s10613_s25 = smov 80   ;;  %s10614_s9 = smov 2  }
   0x6   :  { %v10660_v5 = vrot.slane %v20_v2, %v10655_v3  ;;  %v10663_v6 = vrot.slane %v20_v2, %v10657_v4  ;;  %v10672_v8 = vrot.slane %v20_v2, %v10667_v7  ;;  %v10679_v10 = vrot.slane %v20_v2, %v10674_v9  ;;  %s10615_s17 = smov 120   ;;  %s10616_s13 = smov 12  }
   0x7   :  { %v10686_v12 = vrot.slane %v20_v2, %v10681_v11  ;;  %20156 = vst [vmem:[#allocation2_spill] sm:$0xff] %v10688_v13  ;;  %v10693_v14 = vrot.slane %v20_v2, %v10688_v13  ;;  %20157 = vst [vmem:[#allocation3_spill] sm:$0xff] %v10695_v15  ;;  %v10700_v16 = vrot.slane %v20_v2, %v10695_v15  ;;  %vm2075_vm13 = vcmask 113664   ;;  %s10620_s8 = smov 100  }
   0x8   :  { %78 = vbcast.lane.b32.xlu1 %v10660_v5, 256  ;;  %67 = vbcast.lane.b32.xlu0 %v10663_v6, 256  ;;  %20158 = vst [vmem:[#allocation4_spill] sm:$0xff] %v10702_v17  ;;  %v10707_v18 = vrot.slane %v20_v2, %v10702_v17  ;;  %v10718_v20 = vrot.slane %v10712_v19, %v10657_v4  ;;  %vm19583_vm14 = vcmask 121856   ;;  %vm2985_vm15 = vcmask 1040384  }
   0x9   :  { %v10724_v21 = vrot.slane %v10712_v19, %v10655_v3  ;;  %v10730_v22 = vrot.slane %v10712_v19, %v10667_v7  ;;  %v10736_v23 = vrot.slane %v10712_v19, %v10674_v9  ;;  %v10744_v25 = vrot.slane %v22_v24, %v10657_v4 }
   0xa   :  { %v10749_v26 = vrot.slane %v22_v24, %v10655_v3  ;;  %v10754_v27 = vrot.slane %v22_v24, %v10667_v7  ;;  %v10759_v28 = vrot.slane %v22_v24, %v10674_v9  ;;  %v10764_v29 = vrot.slane %v22_v24, %v10681_v11 }
   0xb   :  { %20159 = vst [vmem:[#allocation5_spill] sm:$0xff] %v10744_v25  ;;  %v10769_v30 = vrot.slane %v22_v24, %v10688_v13  ;;  %v10774_v31 = vrot.slane %v22_v24, %v10695_v15  ;;  %v10779_v32 = vrot.slane %v22_v24, %v10702_v17  ;;  %v10790_v34 = vrot.slane %v10784_v33, %v10657_v4 }
   0xc   :  { %82 = vbcast.lane.b32.xlu1 %v10660_v5, 264  ;;  %71 = vbcast.lane.b32.xlu0 %v10663_v6, 264  ;;  %20160 = vst [vmem:[#allocation6_spill] sm:$0xff] %v10749_v26  ;;  %20161 = vst [vmem:[#allocation7_spill] sm:$0xff] %v10754_v27  ;;  %v10796_v35 = vrot.slane %v10784_v33, %v10655_v3  ;;  %v10802_v36 = vrot.slane %v10784_v33, %v10667_v7 }
   0xd   :  { %v10808_v37 = vrot.slane %v10784_v33, %v10674_v9 }
  0x10   :  { %93 = vbcast.lane.b32.xlu1 %v10672_v8, 264  ;;  %89 = vbcast.lane.b32.xlu0 %v10672_v8, 256 }
  0x14   :  { %104 = vbcast.lane.b32.xlu1 %v10679_v10, 264  ;;  %100 = vbcast.lane.b32.xlu0 %v10679_v10, 256 }
  0x18   :  { %115 = vbcast.lane.b32.xlu1 %v10686_v12, 264  ;;  %111 = vbcast.lane.b32.xlu0 %v10686_v12, 256 }
  0x1c   :  { %126 = vbcast.lane.b32.xlu1 %v10693_v14, 264  ;;  %122 = vbcast.lane.b32.xlu0 %v10693_v14, 256 }
  0x20   :  { %137 = vbcast.lane.b32.xlu1 %v10700_v16, 264  ;;  %133 = vbcast.lane.b32.xlu0 %v10700_v16, 256 }
  0x24   :  { %148 = vbcast.lane.b32.xlu1 %v10707_v18, 264  ;;  %144 = vbcast.lane.b32.xlu0 %v10707_v18, 256 }
  0x28   :  { %159 = vbcast.lane.b32.xlu1 %v10718_v20, 264  ;;  %155 = vbcast.lane.b32.xlu0 %v10718_v20, 256 }
  0x2c   :  { %170 = vbcast.lane.b32.xlu1 %v10724_v21, 264  ;;  %166 = vbcast.lane.b32.xlu0 %v10724_v21, 256 }
  0x30   :  { %181 = vbcast.lane.b32.xlu1 %v10730_v22, 264  ;;  %177 = vbcast.lane.b32.xlu0 %v10730_v22, 256 }
  0x34   :  { %192 = vbcast.lane.b32.xlu1 %v10736_v23, 264  ;;  %188 = vbcast.lane.b32.xlu0 %v10736_v23, 256 }
  0x38   :  { %203 = vbcast.lane.b32.xlu1 %v10744_v25, 264  ;;  %199 = vbcast.lane.b32.xlu0 %v10744_v25, 256 }
  0x3c   :  { %214 = vbcast.lane.b32.xlu1 %v10749_v26, 264  ;;  %210 = vbcast.lane.b32.xlu0 %v10749_v26, 256 }
  0x40   :  { %225 = vbcast.lane.b32.xlu1 %v10754_v27, 264  ;;  %221 = vbcast.lane.b32.xlu0 %v10754_v27, 256 }
  0x44   :  { %236 = vbcast.lane.b32.xlu1 %v10759_v28, 264  ;;  %232 = vbcast.lane.b32.xlu0 %v10759_v28, 256 }
  0x48   :  { %247 = vbcast.lane.b32.xlu1 %v10764_v29, 264  ;;  %243 = vbcast.lane.b32.xlu0 %v10764_v29, 256 }
  0x4c   :  { %258 = vbcast.lane.b32.xlu1 %v10769_v30, 264  ;;  %254 = vbcast.lane.b32.xlu0 %v10769_v30, 256 }
  0x50   :  { %269 = vbcast.lane.b32.xlu1 %v10774_v31, 264  ;;  %265 = vbcast.lane.b32.xlu0 %v10774_v31, 256 }
  0x54   :  { %280 = vbcast.lane.b32.xlu1 %v10779_v32, 264  ;;  %276 = vbcast.lane.b32.xlu0 %v10779_v32, 256 }
  0x58   :  { %291 = vbcast.lane.b32.xlu1 %v10790_v34, 264  ;;  %287 = vbcast.lane.b32.xlu0 %v10790_v34, 256 }
  0x5c   :  { %302 = vbcast.lane.b32.xlu1 %v10796_v35, 264  ;;  %298 = vbcast.lane.b32.xlu0 %v10796_v35, 256 }
  0x60   :  { %313 = vbcast.lane.b32.xlu1 %v10802_v36, 264  ;;  %309 = vbcast.lane.b32.xlu0 %v10802_v36, 256 }
  0x64   :  { %324 = vbcast.lane.b32.xlu1 %v10808_v37, 264  ;;  %320 = vbcast.lane.b32.xlu0 %v10808_v37, 256 }
  0x68   :  { %544 = vbcast.lane.b32.xlu1 %v10679_v10, 258  ;;  %352 = vbcast.lane.b32.xlu0 %v10679_v10, 257 }
  0x6c   :  { %928 = vbcast.lane.b32.xlu1 %v10679_v10, 260  ;;  %736 = vbcast.lane.b32.xlu0 %v10679_v10, 259 }
  0x70   :  { %360 = vbcast.lane.b32.xlu1 %v10686_v12, 257  ;;  %356 = vbcast.lane.b32.xlu0 %v10679_v10, 265 }
  0x74   :  { %552 = vbcast.lane.b32.xlu1 %v10686_v12, 258  ;;  %548 = vbcast.lane.b32.xlu0 %v10679_v10, 266 }
  0x78   :  { %744 = vbcast.lane.b32.xlu1 %v10686_v12, 259  ;;  %740 = vbcast.lane.b32.xlu0 %v10679_v10, 267 }
  0x7a   :  { %v10822_v38 = vpop.permute.xlu1 %78  ;;  %v10824_v39 = vpop.permute.xlu0 %67 }
  0x7b   :  { %20162 = vst [vmem:[#allocation8_spill] sm:$0xff] %v10822_v38  ;;  %20163 = vst [vmem:[#allocation9_spill] sm:$0xff] %v10824_v39 }
  0x7c   :  { %560 = vbcast.lane.b32.xlu1 %v10693_v14, 258  ;;  %368 = vbcast.lane.b32.xlu0 %v10693_v14, 257 }
  0x7e   :  { %v10828_v40 = vpop.permute.xlu1 %82  ;;  %v10830_v41 = vpop.permute.xlu0 %71 }
  0x7f   :  { %20164 = vst [vmem:[#allocation10_spill] sm:$0xff] %v10828_v40  ;;  %20165 = vst [vmem:[#allocation11_spill] sm:$0xff] %v10830_v41 }
  0x80   :  { %936 = vbcast.lane.b32.xlu1 %v10686_v12, 260  ;;  %932 = vbcast.lane.b32.xlu0 %v10679_v10, 268 }
  0x82   :  { %v10834_v42 = vpop.permute.xlu1 %93  ;;  %v10836_v43 = vpop.permute.xlu0 %89 }
  0x83   :  { %20166 = vst [vmem:[#allocation12_spill] sm:$0xff] %v10834_v42  ;;  %20167 = vst [vmem:[#allocation13_spill] sm:$0xff] %v10836_v43 }
  0x84   :  { %556 = vbcast.lane.b32.xlu1 %v10686_v12, 266  ;;  %364 = vbcast.lane.b32.xlu0 %v10686_v12, 265 }
  0x86   :  { %v10840_v44 = vpop.permute.xlu1 %104  ;;  %v10842_v45 = vpop.permute.xlu0 %100 }
  0x87   :  { %20168 = vst [vmem:[#allocation14_spill] sm:$0xff] %v10840_v44  ;;  %20169 = vst [vmem:[#allocation15_spill] sm:$0xff] %v10842_v45 }
  0x88   :  { %748 = vbcast.lane.b32.xlu1 %v10686_v12, 267  ;;  %752 = vbcast.lane.b32.xlu0 %v10693_v14, 259 }
  0x8a   :  { %v10846_v46 = vpop.permute.xlu1 %115  ;;  %v10848_v47 = vpop.permute.xlu0 %111 }
  0x8b   :  { %20170 = vst [vmem:[#allocation16_spill] sm:$0xff] %v10846_v46  ;;  %20171 = vst [vmem:[#allocation17_spill] sm:$0xff] %v10848_v47 }
  0x8c   :  { %940 = vbcast.lane.b32.xlu1 %v10686_v12, 268  ;;  %944 = vbcast.lane.b32.xlu0 %v10693_v14, 260 }
  0x8e   :  { %v10852_v48 = vpop.permute.xlu1 %126  ;;  %v10854_v49 = vpop.permute.xlu0 %122 }
  0x8f   :  { %20172 = vst [vmem:[#allocation18_spill] sm:$0xff] %v10852_v48  ;;  %20173 = vst [vmem:[#allocation19_spill] sm:$0xff] %v10854_v49 }
  0x90   :  { %568 = vbcast.lane.b32.xlu1 %v10700_v16, 258  ;;  %376 = vbcast.lane.b32.xlu0 %v10700_v16, 257 }
  0x92   :  { %v10858_v50 = vpop.permute.xlu1 %137  ;;  %v10860_v51 = vpop.permute.xlu0 %133 }
  0x94   :  { %564 = vbcast.lane.b32.xlu1 %v10693_v14, 266  ;;  %372 = vbcast.lane.b32.xlu0 %v10693_v14, 265 }
  0x96   :  { %v10864_v52 = vpop.permute.xlu1 %148  ;;  %v10866_v53 = vpop.permute.xlu0 %144 }
  0x97   :  { %20174 = vst [vmem:[#allocation20_spill] sm:$0xff] %v10864_v52 }
  0x98   :  { %380 = vbcast.lane.b32.xlu1 %v10700_v16, 265  ;;  %760 = vbcast.lane.b32.xlu0 %v10700_v16, 259 }
  0x9a   :  { %v10870_v54 = vpop.permute.xlu1 %159  ;;  %v10872_v55 = vpop.permute.xlu0 %155 }
  0x9b   :  { %20175 = vst [vmem:[#allocation21_spill] sm:$0xff] %v10870_v54  ;;  %20176 = vst [vmem:[#allocation22_spill] sm:$0xff] %v10872_v55 }
  0x9c   :  { %756 = vbcast.lane.b32.xlu1 %v10693_v14, 267  ;;  %572 = vbcast.lane.b32.xlu0 %v10700_v16, 266 }
  0x9e   :  { %v10876_v56 = vpop.permute.xlu1 %170  ;;  %v10878_v57 = vpop.permute.xlu0 %166 }
  0x9f   :  { %20177 = vst [vmem:[#allocation23_spill] sm:$0xff] %v10876_v56  ;;  %20178 = vst [vmem:[#allocation24_spill] sm:$0xff] %v10878_v57 }
  0xa0   :  { %384 = vbcast.lane.b32.xlu1 %v10707_v18, 257  ;;  %952 = vbcast.lane.b32.xlu0 %v10700_v16, 260 }
  0xa2   :  { %v10882_v58 = vpop.permute.xlu1 %181  ;;  %v10884_v59 = vpop.permute.xlu0 %177 }
  0xa3   :  { %20179 = vst [vmem:[#allocation25_spill] sm:$0xff] %v10882_v58  ;;  %20180 = vst [vmem:[#allocation26_spill] sm:$0xff] %v10884_v59  ;;  %v1269_v58 = vrot.slane %v10712_v19, %v10695_v15 }
  0xa4   :  { %764 = vbcast.lane.b32.xlu1 %v10700_v16, 267  ;;  %576 = vbcast.lane.b32.xlu0 %v10707_v18, 258 }
  0xa6   :  { %v10888_v60 = vpop.permute.xlu1 %192  ;;  %v10890_v61 = vpop.permute.xlu0 %188 }
  0xa7   :  { %20181 = vst [vmem:[#allocation27_spill] sm:$0xff] %v10888_v60  ;;  %20182 = vst [vmem:[#allocation28_spill] sm:$0xff] %v10890_v61 }
  0xa8   :  { %768 = vbcast.lane.b32.xlu1 %v10707_v18, 259  ;;  %948 = vbcast.lane.b32.xlu0 %v10693_v14, 268 }
  0xaa   :  { %v10894_v62 = vpop.permute.xlu1 %203  ;;  %v10896_v63 = vpop.permute.xlu0 %199 }
  0xab   :  { %20183 = vst [vmem:[#allocation29_spill] sm:$0xff] %v10894_v62  ;;  %20184 = vst [vmem:[#allocation30_spill] sm:$0xff] %v10896_v63 }
  0xac   :  { %960 = vbcast.lane.b32.xlu1 %v10707_v18, 260  ;;  %956 = vbcast.lane.b32.xlu0 %v10700_v16, 268 }
  0xae   :  { %v10900_v0 = vpop.permute.xlu1 %214  ;;  %v10902_v1 = vpop.permute.xlu0 %210 }
  0xaf   :  { %20185 = vst [vmem:[#allocation31_spill] sm:$0xff] %v10900_v0  ;;  %20186 = vst [vmem:[#allocation32_spill] sm:$0xff] %v10902_v1 }
  0xb0   :  { %392 = vbcast.lane.b32.xlu1 %v10718_v20, 257  ;;  %388 = vbcast.lane.b32.xlu0 %v10707_v18, 265 }
  0xb2   :  { %v10906_v2 = vpop.permute.xlu1 %225  ;;  %v10908_v3 = vpop.permute.xlu0 %221 }
  0xb3   :  { %20187 = vst [vmem:[#allocation33_spill] sm:$0xff] %v10906_v2  ;;  %20188 = vst [vmem:[#allocation34_spill] sm:$0xff] %v10908_v3 }
  0xb4   :  { %584 = vbcast.lane.b32.xlu1 %v10718_v20, 258  ;;  %580 = vbcast.lane.b32.xlu0 %v10707_v18, 266 }
  0xb6   :  { %v10912_v4 = vpop.permute.xlu1 %236  ;;  %v10914_v7 = vpop.permute.xlu0 %232 }
  0xb7   :  { %20189 = vst [vmem:[#allocation35_spill] sm:$0xff] %v10912_v4  ;;  %20190 = vst [vmem:[#allocation36_spill] sm:$0xff] %v10914_v7 }
  0xb8   :  { %776 = vbcast.lane.b32.xlu1 %v10718_v20, 259  ;;  %772 = vbcast.lane.b32.xlu0 %v10707_v18, 267 }
  0xba   :  { %v10918_v9 = vpop.permute.xlu1 %247  ;;  %v10920_v10 = vpop.permute.xlu0 %243 }
  0xbb   :  { %20191 = vst [vmem:[#allocation37_spill] sm:$0xff] %v10918_v9  ;;  %20192 = vst [vmem:[#allocation38_spill] sm:$0xff] %v10920_v10 }
  0xbc   :  { %592 = vbcast.lane.b32.xlu1 %v10724_v21, 258  ;;  %400 = vbcast.lane.b32.xlu0 %v10724_v21, 257 }
  0xbe   :  { %v10924_v12 = vpop.permute.xlu1 %258  ;;  %v10926_v14 = vpop.permute.xlu0 %254 }
  0xbf   :  { %20193 = vst [vmem:[#allocation39_spill] sm:$0xff] %v10924_v12  ;;  %20194 = vst [vmem:[#allocation40_spill] sm:$0xff] %v10926_v14  ;;  %v1183_v12 = vrot.slane %v10712_v19, %v10688_v13 }
  0xc0   :  { %968 = vbcast.lane.b32.xlu1 %v10718_v20, 260  ;;  %964 = vbcast.lane.b32.xlu0 %v10707_v18, 268 }
  0xc2   :  { %v10930_v16 = vpop.permute.xlu1 %269  ;;  %v10932_v24 = vpop.permute.xlu0 %265 }
  0xc3   :  { %20195 = vst [vmem:[#allocation41_spill] sm:$0xff] %v10930_v16  ;;  %20196 = vst [vmem:[#allocation42_spill] sm:$0xff] %v10932_v24 }
  0xc4   :  { %588 = vbcast.lane.b32.xlu1 %v10718_v20, 266  ;;  %396 = vbcast.lane.b32.xlu0 %v10718_v20, 265 }
  0xc6   :  { %v10936_v2 = vpop.permute.xlu1 %280  ;;  %v10938_v0 = vpop.permute.xlu0 %276 }
  0xc7   :  { %20197 = vst [vmem:[#allocation43_spill] sm:$0xff] %v10936_v2  ;;  %20198 = vst [vmem:[#allocation44_spill] sm:$0xff] %v10938_v0  ;;  %v1097_v0 = vrot.slane %v10712_v19, %v10681_v11 }
  0xc8   :  { %780 = vbcast.lane.b32.xlu1 %v10718_v20, 267  ;;  %784 = vbcast.lane.b32.xlu0 %v10724_v21, 259 }
  0xca   :  { %v10942_v62 = vpop.permute.xlu1 %291  ;;  %v10944_v3 = vpop.permute.xlu0 %287 }
  0xcb   :  { %20199 = vst [vmem:[#allocation45_spill] sm:$0xff] %v10942_v62  ;;  %20200 = vst [vmem:[#allocation46_spill] sm:$0xff] %v10944_v3 }
  0xcc   :  { %972 = vbcast.lane.b32.xlu1 %v10718_v20, 268  ;;  %976 = vbcast.lane.b32.xlu0 %v10724_v21, 260 }
  0xce   :  { %v10948_v18 = vpop.permute.xlu1 %302  ;;  %v10950_v1 = vpop.permute.xlu0 %298 }
  0xcf   :  { %20201 = vst [vmem:[#allocation47_spill] sm:$0xff] %v10948_v18  ;;  %20202 = vst [vmem:[#allocation48_spill] sm:$0xff] %v10950_v1 }
  0xd0   :  { %600 = vbcast.lane.b32.xlu1 %v10730_v22, 258  ;;  %408 = vbcast.lane.b32.xlu0 %v10730_v22, 257 }
  0xd2   :  { %v10954_v63 = vpop.permute.xlu1 %313  ;;  %v10956_v42 = vpop.permute.xlu0 %309 }
  0xd3   :  { %20203 = vst [vmem:[#allocation49_spill] sm:$0xff] %v10954_v63  ;;  %20204 = vst [vmem:[#allocation50_spill] sm:$0xff] %v10956_v42 }
  0xd4   :  { %596 = vbcast.lane.b32.xlu1 %v10724_v21, 266  ;;  %404 = vbcast.lane.b32.xlu0 %v10724_v21, 265 }
  0xd6   :  { %v10960_v62 = vpop.permute.xlu1 %324  ;;  %v10962_v20 = vpop.permute.xlu0 %320 }
  0xd7   :  { %20205 = vst [vmem:[#allocation51_spill] sm:$0xff] %v10960_v62  ;;  %20206 = vst [vmem:[#allocation52_spill] sm:$0xff] %v10962_v20 }
  0xd8   :  { %412 = vbcast.lane.b32.xlu1 %v10730_v22, 265  ;;  %792 = vbcast.lane.b32.xlu0 %v10730_v22, 259 }
  0xda   :  { %v10966_v18 = vpop.permute.xlu1 %544  ;;  %v10968_v1 = vpop.permute.xlu0 %352 }
  0xdb   :  { %20207 = vst [vmem:[#allocation53_spill] sm:$0xff] %v10966_v18  ;;  %20208 = vst [vmem:[#allocation54_spill] sm:$0xff] %v10968_v1 }
  0xdc   :  { %788 = vbcast.lane.b32.xlu1 %v10724_v21, 267  ;;  %604 = vbcast.lane.b32.xlu0 %v10730_v22, 266 }
  0xde   :  { %v10972_v63 = vpop.permute.xlu1 %928  ;;  %v10974_v42 = vpop.permute.xlu0 %736 }
  0xdf   :  { %20209 = vst [vmem:[#allocation55_spill] sm:$0xff] %v10972_v63  ;;  %20210 = vst [vmem:[#allocation56_spill] sm:$0xff] %v10974_v42 }
  0xe0   :  { %416 = vbcast.lane.b32.xlu1 %v10736_v23, 257  ;;  %984 = vbcast.lane.b32.xlu0 %v10730_v22, 260 }
  0xe2   :  { %v10978_v62 = vpop.permute.xlu1 %360  ;;  %v10980_v20 = vpop.permute.xlu0 %356 }
  0xe3   :  { %20211 = vst [vmem:[#allocation57_spill] sm:$0xff] %v10978_v62  ;;  %20212 = vst [vmem:[#allocation58_spill] sm:$0xff] %v10980_v20 }
  0xe4   :  { %796 = vbcast.lane.b32.xlu1 %v10730_v22, 267  ;;  %608 = vbcast.lane.b32.xlu0 %v10736_v23, 258 }
  0xe6   :  { %v10984_v3 = vpop.permute.xlu1 %552  ;;  %v10986_v2 = vpop.permute.xlu0 %548 }
  0xe7   :  { %20213 = vst [vmem:[#allocation59_spill] sm:$0xff] %v10984_v3  ;;  %20214 = vst [vmem:[#allocation60_spill] sm:$0xff] %v10986_v2 }
  0xe8   :  { %800 = vbcast.lane.b32.xlu1 %v10736_v23, 259  ;;  %980 = vbcast.lane.b32.xlu0 %v10724_v21, 268 }
  0xea   :  { %v10990_v40 = vpop.permute.xlu1 %744  ;;  %v10992_v41 = vpop.permute.xlu0 %740 }
  0xeb   :  { %20215 = vst [vmem:[#allocation61_spill] sm:$0xff] %v10990_v40  ;;  %20216 = vst [vmem:[#allocation62_spill] sm:$0xff] %v10992_v41 }
  0xec   :  { %992 = vbcast.lane.b32.xlu1 %v10736_v23, 260  ;;  %988 = vbcast.lane.b32.xlu0 %v10730_v22, 268 }
  0xee   :  { %v10996_v27 = vpop.permute.xlu1 %560  ;;  %v10998_v43 = vpop.permute.xlu0 %368 }
  0xf0   :  { %612 = vbcast.lane.b32.xlu1 %v10736_v23, 266  ;;  %420 = vbcast.lane.b32.xlu0 %v10736_v23, 265 }
  0xf2   :  { %v11004_v21 = vpop.permute.xlu1 %936  ;;  %v11006_v26 = vpop.permute.xlu0 %932 }
  0xf3   :  { %20217 = vst [vmem:[#allocation63_spill] sm:$0xff] %v11004_v21  ;;  %20218 = vst [vmem:[#allocation64_spill] sm:$0xff] %v11006_v26 }
  0xf4   :  { %1118 = vbcast.lane.b32.xlu1 %v1097_v0, 257  ;;  %1099 = vbcast.lane.b32.xlu0 %v1097_v0, 256 }
  0xf6   :  { %v11008_v16 = vpop.permute.xlu1 %556  ;;  %v11010_v22 = vpop.permute.xlu0 %364 }
  0xf7   :  { %20219 = vst [vmem:[#allocation65_spill] sm:$0xff] %v11008_v16  ;;  %20220 = vst [vmem:[#allocation66_spill] sm:$0xff] %v11010_v22 }
  0xf8   :  { %804 = vbcast.lane.b32.xlu1 %v10736_v23, 267  ;;  %1134 = vbcast.lane.b32.xlu0 %v1097_v0, 258 }
  0xfa   :  { %v11013_v38 = vpop.permute.xlu1 %748  ;;  %v11015_v24 = vpop.permute.xlu0 %752 }
  0xfb   :  { %20221 = vst [vmem:[#allocation67_spill] sm:$0xff] %v11013_v38 }
  0xfc   :  { %996 = vbcast.lane.b32.xlu1 %v10736_v23, 268  ;;  %1150 = vbcast.lane.b32.xlu0 %v1097_v0, 259 }
  0xfe   :  { %v11020_v39 = vpop.permute.xlu1 %940  ;;  %v11022_v25 = vpop.permute.xlu0 %944 }
  0xff   :  { %20222 = vst [vmem:[#allocation68_spill] sm:$0xff] %v11020_v39 }
 0x100   :  { %1204 = vbcast.lane.b32.xlu1 %v1183_v12, 257  ;;  %1166 = vbcast.lane.b32.xlu0 %v1097_v0, 260 }
 0x102   :  { %v11024_v9 = vpop.permute.xlu1 %568  ;;  %v11026_v14 = vpop.permute.xlu0 %376 }
 0x104   :  { %1103 = vbcast.lane.b32.xlu1 %v1097_v0, 264  ;;  %1220 = vbcast.lane.b32.xlu0 %v1183_v12, 258 }
 0x106   :  { %v11028_v4 = vpop.permute.xlu1 %564  ;;  %v11030_v10 = vpop.permute.xlu0 %372 }
 0x108   :  { %1138 = vbcast.lane.b32.xlu1 %v1097_v0, 266  ;;  %1122 = vbcast.lane.b32.xlu0 %v1097_v0, 265 }
 0x10a   :  { %v11032_v23 = vpop.permute.xlu1 %380  ;;  %v11034_v7 = vpop.permute.xlu0 %760 }
 0x10c   :  { %1236 = vbcast.lane.b32.xlu1 %v1183_v12, 259  ;;  %1185 = vbcast.lane.b32.xlu0 %v1183_v12, 256 }
 0x10e   :  { %v11036_v60 = vpop.permute.xlu1 %756  ;;  %v11038_v61 = vpop.permute.xlu0 %572 }
 0x10f   :  { %20223 = vst [vmem:[#allocation69_spill] sm:$0xff] %v11038_v61 }
 0x110   :  { %1252 = vbcast.lane.b32.xlu1 %v1183_v12, 260  ;;  %1154 = vbcast.lane.b32.xlu0 %v1097_v0, 267 }
 0x112   :  { %v11042_v59 = vpop.permute.xlu1 %384  ;;  %v11044_v56 = vpop.permute.xlu0 %952 }
 0x113   :  { %20224 = vst [vmem:[#allocation70_spill] sm:$0xff] %v11042_v59 }
 0x114   :  { %1271 = vbcast.lane.b32.xlu1 %v1269_v58, 256  ;;  %1170 = vbcast.lane.b32.xlu0 %v1097_v0, 268 }
 0x116   :  { %v11046_v54 = vpop.permute.xlu1 %764  ;;  %v11048_v57 = vpop.permute.xlu0 %576 }
 0x117   :  { %20225 = vst [vmem:[#allocation71_spill] sm:$0xff] %v11046_v54  ;;  %20226 = vst [vmem:[#allocation72_spill] sm:$0xff] %v11048_v57 }
 0x118   :  { %1290 = vbcast.lane.b32.xlu1 %v1269_v58, 257  ;;  %1189 = vbcast.lane.b32.xlu0 %v1183_v12, 264 }
 0x11a   :  { %v11050_v52 = vpop.permute.xlu1 %768  ;;  %v11052_v55 = vpop.permute.xlu0 %948 }
 0x11b   :  { %20227 = vst [vmem:[#allocation73_spill] sm:$0xff] %v11050_v52 }
 0x11c   :  { %1208 = vbcast.lane.b32.xlu1 %v1183_v12, 265  ;;  %1306 = vbcast.lane.b32.xlu0 %v1269_v58, 258 }
 0x11e   :  { %v11054_v15 = vpop.permute.xlu1 %960  ;;  %v11056_v61 = vpop.permute.xlu0 %956 }
 0x11f   :  { %20228 = vst [vmem:[#allocation74_spill] sm:$0xff] %v11056_v61 }
 0x120   :  { %1322 = vbcast.lane.b32.xlu1 %v1269_v58, 259  ;;  %1224 = vbcast.lane.b32.xlu0 %v1183_v12, 266 }
 0x122   :  { %v11058_v59 = vpop.permute.xlu1 %392  ;;  %v11060_v0 = vpop.permute.xlu0 %388 }
 0x123   :  { %20229 = vst [vmem:[#allocation75_spill] sm:$0xff] %v11058_v59  ;;  %20230 = vst [vmem:[#allocation76_spill] sm:$0xff] %v11060_v0 }
 0x124   :  { %1294 = vbcast.lane.b32.xlu1 %v1269_v58, 265  ;;  %1240 = vbcast.lane.b32.xlu0 %v1183_v12, 267 }
 0x126   :  { %v11062_v57 = vpop.permute.xlu1 %584  ;;  %v11064_v54 = vpop.permute.xlu0 %580 }
 0x127   :  { %20231 = vst [vmem:[#allocation77_spill] sm:$0xff] %v11062_v57  ;;  %20232 = vst [vmem:[#allocation78_spill] sm:$0xff] %v11064_v54  ;;  %v1355_v57 = vrot.slane %v10712_v19, %v10702_v17 }
 0x128   :  { %1338 = vbcast.lane.b32.xlu1 %v1269_v58, 260  ;;  %1310 = vbcast.lane.b32.xlu0 %v1269_v58, 266 }
 0x12a   :  { %v11066_v52 = vpop.permute.xlu1 %776  ;;  %v11068_v13 = vpop.permute.xlu0 %772 }
 0x12b   :  { %20233 = vst [vmem:[#allocation79_spill] sm:$0xff] %v11066_v52  ;;  %20234 = vst [vmem:[#allocation80_spill] sm:$0xff] %v11068_v13 }
 0x12c   :  { %640 = vbcast.lane.b32.xlu1 %v10759_v28, 258  ;;  %448 = vbcast.lane.b32.xlu0 %v10759_v28, 257 }
 0x12e   :  { %v11072_v61 = vpop.permute.xlu1 %592  ;;  %v11074_v59 = vpop.permute.xlu0 %400 }
 0x12f   :  { %20235 = vst [vmem:[#allocation81_spill] sm:$0xff] %v11072_v61  ;;  %20236 = vst [vmem:[#allocation82_spill] sm:$0xff] %v11074_v59 }
 0x130   :  { %1326 = vbcast.lane.b32.xlu1 %v1269_v58, 267  ;;  %1256 = vbcast.lane.b32.xlu0 %v1183_v12, 268 }
 0x132   :  { %v11078_v54 = vpop.permute.xlu1 %968  ;;  %v11080_v0 = vpop.permute.xlu0 %964 }
 0x134   :  { %832 = vbcast.lane.b32.xlu1 %v10759_v28, 259  ;;  %1357 = vbcast.lane.b32.xlu0 %v1355_v57, 256 }
 0x136   :  { %v11083_v13 = vpop.permute.xlu1 %588  ;;  %v11085_v52 = vpop.permute.xlu0 %396 }
 0x137   :  { %20237 = vst [vmem:[#allocation83_spill] sm:$0xff] %v11083_v13 }
 0x138   :  { %1342 = vbcast.lane.b32.xlu1 %v1269_v58, 268  ;;  %1275 = vbcast.lane.b32.xlu0 %v1269_v58, 264 }
 0x13a   :  { %v11087_v61 = vpop.permute.xlu1 %780  ;;  %v11089_v59 = vpop.permute.xlu0 %784 }
 0x13b   :  { %20238 = vst [vmem:[#allocation84_spill] sm:$0xff] %v11087_v61  ;;  %20239 = vst [vmem:[#allocation85_spill] sm:$0xff] %v11089_v59 }
 0x13c   :  { %1024 = vbcast.lane.b32.xlu1 %v10759_v28, 260  ;;  %1376 = vbcast.lane.b32.xlu0 %v1355_v57, 257 }
 0x13e   :  { %v11092_v19 = vpop.permute.xlu1 %972  ;;  %v11094_v12 = vpop.permute.xlu0 %976 }
 0x13f   :  { %20240 = vst [vmem:[#allocation86_spill] sm:$0xff] %v11092_v19  ;;  %20241 = vst [vmem:[#allocation87_spill] sm:$0xff] %v11094_v12 }
 0x140   :  { %1392 = vbcast.lane.b32.xlu1 %v1355_v57, 258  ;;  %1361 = vbcast.lane.b32.xlu0 %v1355_v57, 264 }
 0x142   :  { %v11096_v17 = vpop.permute.xlu1 %600  ;;  %v11098_v13 = vpop.permute.xlu0 %408 }
 0x143   :  { %20242 = vst [vmem:[#allocation88_spill] sm:$0xff] %v11096_v17  ;;  %20243 = vst [vmem:[#allocation89_spill] sm:$0xff] %v11098_v13 }
 0x144   :  { %456 = vbcast.lane.b32.xlu1 %v10764_v29, 257  ;;  %452 = vbcast.lane.b32.xlu0 %v10759_v28, 265 }
 0x146   :  { %v11102_v58 = vpop.permute.xlu1 %596  ;;  %v11104_v59 = vpop.permute.xlu0 %404 }
 0x147   :  { %20244 = vst [vmem:[#allocation90_spill] sm:$0xff] %v11102_v58  ;;  %20245 = vst [vmem:[#allocation91_spill] sm:$0xff] %v11104_v59 }
 0x148   :  { %648 = vbcast.lane.b32.xlu1 %v10764_v29, 258  ;;  %644 = vbcast.lane.b32.xlu0 %v10759_v28, 266 }
 0x14a   :  { %v11108_v19 = vpop.permute.xlu1 %412  ;;  %v11110_v12 = vpop.permute.xlu0 %792 }
 0x14b   :  { %20246 = vst [vmem:[#allocation92_spill] sm:$0xff] %v11108_v19  ;;  %20247 = vst [vmem:[#allocation93_spill] sm:$0xff] %v11110_v12 }
 0x14c   :  { %1408 = vbcast.lane.b32.xlu1 %v1355_v57, 259  ;;  %1380 = vbcast.lane.b32.xlu0 %v1355_v57, 265 }
 0x14e   :  { %v11112_v17 = vpop.permute.xlu1 %788  ;;  %v11114_v13 = vpop.permute.xlu0 %604 }
 0x14f   :  { %20248 = vst [vmem:[#allocation94_spill] sm:$0xff] %v11114_v13 }
 0x150   :  { %840 = vbcast.lane.b32.xlu1 %v10764_v29, 259  ;;  %836 = vbcast.lane.b32.xlu0 %v10759_v28, 267 }
 0x152   :  { %v11118_v58 = vpop.permute.xlu1 %416  ;;  %v11120_v59 = vpop.permute.xlu0 %984 }
 0x153   :  { %20249 = vst [vmem:[#allocation95_spill] sm:$0xff] %v11118_v58  ;;  %20250 = vst [vmem:[#allocation96_spill] sm:$0xff] %v11120_v59 }
 0x154   :  { %1424 = vbcast.lane.b32.xlu1 %v1355_v57, 260  ;;  %1396 = vbcast.lane.b32.xlu0 %v1355_v57, 266 }
 0x156   :  { %v11122_v61 = vpop.permute.xlu1 %796  ;;  %v11124_v19 = vpop.permute.xlu0 %608 }
 0x157   :  { %20251 = vst [vmem:[#allocation97_spill] sm:$0xff] %v11122_v61  ;;  %20252 = vst [vmem:[#allocation98_spill] sm:$0xff] %v11124_v19 }
 0x158   :  { %656 = vbcast.lane.b32.xlu1 %v10769_v30, 258  ;;  %464 = vbcast.lane.b32.xlu0 %v10769_v30, 257 }
 0x15a   :  { %v11128_v12 = vpop.permute.xlu1 %800  ;;  %v11130_v13 = vpop.permute.xlu0 %980 }
 0x15b   :  { %20253 = vst [vmem:[#allocation99_spill] sm:$0xff] %v11128_v12  ;;  %20254 = vst [vmem:[#allocation100_spill] sm:$0xff] %v11130_v13 }
 0x15c   :  { %1032 = vbcast.lane.b32.xlu1 %v10764_v29, 260  ;;  %1028 = vbcast.lane.b32.xlu0 %v10759_v28, 268 }
 0x15e   :  { %v11134_v58 = vpop.permute.xlu1 %992  ;;  %v11136_v59 = vpop.permute.xlu0 %988 }
 0x15f   :  { %20255 = vst [vmem:[#allocation101_spill] sm:$0xff] %v11134_v58 }
 0x160   :  { %460 = vbcast.lane.b32.xlu1 %v10764_v29, 265  ;;  %1412 = vbcast.lane.b32.xlu0 %v1355_v57, 267 }
 0x162   :  { %v11139_v19 = vpop.permute.xlu1 %612  ;;  %v11141_v61 = vpop.permute.xlu0 %420 }
 0x163   :  { %20256 = vst [vmem:[#allocation102_spill] sm:$0xff] %v11139_v19  ;;  %20257 = vst [vmem:[#allocation103_spill] sm:$0xff] %v11141_v61 }
 0x164   :  { %848 = vbcast.lane.b32.xlu1 %v10769_v30, 259  ;;  %652 = vbcast.lane.b32.xlu0 %v10764_v29, 266 }
 0x166   :  { %v11145_v12 = vpop.permute.xlu1 %1118  ;;  %v11147_v13 = vpop.permute.xlu0 %1099 }
 0x167   :  { %20258 = vst [vmem:[#allocation104_spill] sm:$0xff] %v11145_v12  ;;  %20259 = vst [vmem:[#allocation105_spill] sm:$0xff] %v11147_v13 }
 0x168   :  { %844 = vbcast.lane.b32.xlu1 %v10764_v29, 267  ;;  %1428 = vbcast.lane.b32.xlu0 %v1355_v57, 268 }
 0x16a   :  { %v11150_v28 = vpop.permute.xlu1 %804  ;;  %v11152_v58 = vpop.permute.xlu0 %1134 }
 0x16b   :  { %20260 = vst [vmem:[#allocation106_spill] sm:$0xff] %v11150_v28 }
 0x16c   :  { %1036 = vbcast.lane.b32.xlu1 %v10764_v29, 268  ;;  %1040 = vbcast.lane.b32.xlu0 %v10769_v30, 260 }
 0x16e   :  { %v11156_v19 = vpop.permute.xlu1 %996  ;;  %v11158_v61 = vpop.permute.xlu0 %1150 }
 0x16f   :  { %20261 = vst [vmem:[#allocation107_spill] sm:$0xff] %v11156_v19 }
 0x170   :  { %664 = vbcast.lane.b32.xlu1 %v10774_v31, 258  ;;  %472 = vbcast.lane.b32.xlu0 %v10774_v31, 257 }
 0x172   :  { %v11162_v12 = vpop.permute.xlu1 %1204  ;;  %v11164_v13 = vpop.permute.xlu0 %1166 }
 0x173   :  { %20262 = vst [vmem:[#allocation108_spill] sm:$0xff] %v11162_v12  ;;  %20263 = vst [vmem:[#allocation109_spill] sm:$0xff] %v11164_v13 }
 0x174   :  { %660 = vbcast.lane.b32.xlu1 %v10769_v30, 266  ;;  %468 = vbcast.lane.b32.xlu0 %v10769_v30, 265 }
 0x176   :  { %v11168_v57 = vpop.permute.xlu1 %1103  ;;  %v11170_v29 = vpop.permute.xlu0 %1220 }
 0x177   :  { %20264 = vst [vmem:[#allocation110_spill] sm:$0xff] %v11168_v57  ;;  %20265 = vst [vmem:[#allocation111_spill] sm:$0xff] %v11170_v29 }
 0x178   :  { %476 = vbcast.lane.b32.xlu1 %v10774_v31, 265  ;;  %856 = vbcast.lane.b32.xlu0 %v10774_v31, 259 }
 0x17a   :  { %v11174_v19 = vpop.permute.xlu1 %1138  ;;  %v11176_v28 = vpop.permute.xlu0 %1122 }
 0x17b   :  { %20266 = vst [vmem:[#allocation112_spill] sm:$0xff] %v11174_v19  ;;  %20267 = vst [vmem:[#allocation113_spill] sm:$0xff] %v11176_v28 }
 0x17c   :  { %852 = vbcast.lane.b32.xlu1 %v10769_v30, 267  ;;  %668 = vbcast.lane.b32.xlu0 %v10774_v31, 266 }
 0x17e   :  { %v11180_v12 = vpop.permute.xlu1 %1236  ;;  %v11182_v13 = vpop.permute.xlu0 %1185 }
 0x17f   :  { %20268 = vst [vmem:[#allocation114_spill] sm:$0xff] %v11180_v12  ;;  %20269 = vst [vmem:[#allocation115_spill] sm:$0xff] %v11182_v13 }
 0x180   :  { %480 = vbcast.lane.b32.xlu1 %v10779_v32, 257  ;;  %1048 = vbcast.lane.b32.xlu0 %v10774_v31, 260 }
 0x182   :  { %v11186_v29 = vpop.permute.xlu1 %1252  ;;  %v11188_v57 = vpop.permute.xlu0 %1154 }
 0x183   :  { %20270 = vst [vmem:[#allocation116_spill] sm:$0xff] %v11186_v29  ;;  %20271 = vst [vmem:[#allocation117_spill] sm:$0xff] %v11188_v57 }
 0x184   :  { %860 = vbcast.lane.b32.xlu1 %v10774_v31, 267  ;;  %672 = vbcast.lane.b32.xlu0 %v10779_v32, 258 }
 0x186   :  { %v11192_v19 = vpop.permute.xlu1 %1271  ;;  %v11194_v28 = vpop.permute.xlu0 %1170 }
 0x187   :  { %20272 = vst [vmem:[#allocation118_spill] sm:$0xff] %v11192_v19  ;;  %20273 = vst [vmem:[#allocation119_spill] sm:$0xff] %v11194_v28 }
 0x188   :  { %864 = vbcast.lane.b32.xlu1 %v10779_v32, 259  ;;  %1044 = vbcast.lane.b32.xlu0 %v10769_v30, 268 }
 0x18a   :  { %v11198_v12 = vpop.permute.xlu1 %1290  ;;  %v11200_v13 = vpop.permute.xlu0 %1189 }
 0x18b   :  { %20274 = vst [vmem:[#allocation120_spill] sm:$0xff] %v11198_v12  ;;  %20275 = vst [vmem:[#allocation121_spill] sm:$0xff] %v11200_v13 }
 0x18c   :  { %1056 = vbcast.lane.b32.xlu1 %v10779_v32, 260  ;;  %1052 = vbcast.lane.b32.xlu0 %v10774_v31, 268 }
 0x18e   :  { %v11204_v29 = vpop.permute.xlu1 %1208  ;;  %v11206_v57 = vpop.permute.xlu0 %1306 }
 0x18f   :  { %20276 = vst [vmem:[#allocation122_spill] sm:$0xff] %v11206_v57 }
 0x190   :  { %484 = vbcast.lane.b32.xlu1 %v10779_v32, 265  ;;  %328 = vbcast.lane.b32.xlu0 %v10663_v6, 257 }
 0x192   :  { %v11210_v28 = vpop.permute.xlu1 %1322  ;;  %v11212_v19 = vpop.permute.xlu0 %1224 }
 0x193   :  { %20277 = vst [vmem:[#allocation123_spill] sm:$0xff] %v11210_v28 }
 0x194   :  { %676 = vbcast.lane.b32.xlu1 %v10779_v32, 266  ;;  %488 = vbcast.lane.b32.xlu0 %v10790_v34, 257 }
 0x196   :  { %v11216_v30 = vpop.permute.xlu1 %1294  ;;  %v11218_v13 = vpop.permute.xlu0 %1240 }
 0x197   :  { %20278 = vst [vmem:[#allocation124_spill] sm:$0xff] %v11216_v30  ;;  %20279 = vst [vmem:[#allocation125_spill] sm:$0xff] %v11218_v13 }
 0x198   :  { %520 = vbcast.lane.b32.xlu1 %v10663_v6, 258  ;;  %680 = vbcast.lane.b32.xlu0 %v10790_v34, 258 }
 0x19a   :  { %v11222_v31 = vpop.permute.xlu1 %1338  ;;  %v11224_v57 = vpop.permute.xlu0 %1310 }
 0x19b   :  { %20280 = vst [vmem:[#allocation126_spill] sm:$0xff] %v11222_v31  ;;  %20281 = vst [vmem:[#allocation127_spill] sm:$0xff] %v11224_v57 }
 0x19c   :  { %872 = vbcast.lane.b32.xlu1 %v10790_v34, 259  ;;  %868 = vbcast.lane.b32.xlu0 %v10779_v32, 267 }
 0x19e   :  { %v11228_v28 = vpop.permute.xlu1 %640  ;;  %v11230_v12 = vpop.permute.xlu0 %448 }
 0x19f   :  { %20282 = vst [vmem:[#allocation128_spill] sm:$0xff] %v11228_v28  ;;  %20283 = vst [vmem:[#allocation129_spill] sm:$0xff] %v11230_v12 }
 0x1a0   :  { %688 = vbcast.lane.b32.xlu1 %v10796_v35, 258  ;;  %496 = vbcast.lane.b32.xlu0 %v10796_v35, 257 }
 0x1a2   :  { %v11234_v30 = vpop.permute.xlu1 %1326  ;;  %v11236_v13 = vpop.permute.xlu0 %1256 }
 0x1a3   :  { %20284 = vst [vmem:[#allocation130_spill] sm:$0xff] %v11234_v30 }
 0x1a4   :  { %1060 = vbcast.lane.b32.xlu1 %v10779_v32, 268  ;;  %712 = vbcast.lane.b32.xlu0 %v10663_v6, 259 }
 0x1a6   :  { %v11240_v57 = vpop.permute.xlu1 %832  ;;  %v11242_v31 = vpop.permute.xlu0 %1357 }
 0x1a7   :  { %20285 = vst [vmem:[#allocation131_spill] sm:$0xff] %v11240_v57  ;;  %20286 = vst [vmem:[#allocation132_spill] sm:$0xff] %v11242_v31 }
 0x1a8   :  { %332 = vbcast.lane.b32.xlu1 %v10663_v6, 265  ;;  %1064 = vbcast.lane.b32.xlu0 %v10790_v34, 260 }
 0x1aa   :  { %v11246_v28 = vpop.permute.xlu1 %1342  ;;  %v11248_v12 = vpop.permute.xlu0 %1275 }
 0x1ab   :  { %20287 = vst [vmem:[#allocation133_spill] sm:$0xff] %v11246_v28  ;;  %20288 = vst [vmem:[#allocation134_spill] sm:$0xff] %v11248_v12 }
 0x1ac   :  { %492 = vbcast.lane.b32.xlu1 %v10790_v34, 265  ;;  %336 = vbcast.lane.b32.xlu0 %v10660_v5, 257 }
 0x1ae   :  { %v11252_v30 = vpop.permute.xlu1 %1024  ;;  %v11254_v32 = vpop.permute.xlu0 %1376 }
 0x1af   :  { %20289 = vst [vmem:[#allocation135_spill] sm:$0xff] %v11252_v30  ;;  %20290 = vst [vmem:[#allocation136_spill] sm:$0xff] %v11254_v32 }
 0x1b0   :  { %880 = vbcast.lane.b32.xlu1 %v10796_v35, 259  ;;  %684 = vbcast.lane.b32.xlu0 %v10790_v34, 266 }
 0x1b2   :  { %v11258_v31 = vpop.permute.xlu1 %1392  ;;  %v11260_v57 = vpop.permute.xlu0 %1361 }
 0x1b3   :  { %20291 = vst [vmem:[#allocation137_spill] sm:$0xff] %v11258_v31  ;;  %20292 = vst [vmem:[#allocation138_spill] sm:$0xff] %v11260_v57 }
 0x1b4   :  { %524 = vbcast.lane.b32.xlu1 %v10663_v6, 266  ;;  %904 = vbcast.lane.b32.xlu0 %v10663_v6, 260 }
 0x1b6   :  { %v11264_v28 = vpop.permute.xlu1 %456  ;;  %v11266_v12 = vpop.permute.xlu0 %452 }
 0x1b7   :  { %20293 = vst [vmem:[#allocation139_spill] sm:$0xff] %v11264_v28  ;;  %20294 = vst [vmem:[#allocation140_spill] sm:$0xff] %v11266_v12 }
 0x1b8   :  { %876 = vbcast.lane.b32.xlu1 %v10790_v34, 267  ;;  %528 = vbcast.lane.b32.xlu0 %v10660_v5, 258 }
 0x1ba   :  { %v11270_v32 = vpop.permute.xlu1 %648  ;;  %v11272_v30 = vpop.permute.xlu0 %644 }
 0x1bb   :  { %20295 = vst [vmem:[#allocation141_spill] sm:$0xff] %v11270_v32  ;;  %20296 = vst [vmem:[#allocation142_spill] sm:$0xff] %v11272_v30 }
 0x1bc   :  { %344 = vbcast.lane.b32.xlu1 %v10672_v8, 257  ;;  %1072 = vbcast.lane.b32.xlu0 %v10796_v35, 260 }
 0x1be   :  { %v11276_v57 = vpop.permute.xlu1 %1408  ;;  %v11278_v31 = vpop.permute.xlu0 %1380 }
 0x1bf   :  { %20297 = vst [vmem:[#allocation143_spill] sm:$0xff] %v11276_v57  ;;  %20298 = vst [vmem:[#allocation144_spill] sm:$0xff] %v11278_v31 }
 0x1c0   :  { %720 = vbcast.lane.b32.xlu1 %v10660_v5, 259  ;;  %716 = vbcast.lane.b32.xlu0 %v10663_v6, 267 }
 0x1c2   :  { %v11282_v12 = vpop.permute.xlu1 %840  ;;  %v11284_v28 = vpop.permute.xlu0 %836 }
 0x1c3   :  { %20299 = vst [vmem:[#allocation145_spill] sm:$0xff] %v11282_v12  ;;  %20300 = vst [vmem:[#allocation146_spill] sm:$0xff] %v11284_v28 }
 0x1c4   :  { %340 = vbcast.lane.b32.xlu1 %v10660_v5, 265  ;;  %1068 = vbcast.lane.b32.xlu0 %v10790_v34, 268 }
 0x1c6   :  { %v11288_v30 = vpop.permute.xlu1 %1424  ;;  %v11290_v32 = vpop.permute.xlu0 %1396 }
 0x1c7   :  { %20301 = vst [vmem:[#allocation147_spill] sm:$0xff] %v11288_v30  ;;  %20302 = vst [vmem:[#allocation148_spill] sm:$0xff] %v11290_v32 }
 0x1c8   :  { %536 = vbcast.lane.b32.xlu1 %v10672_v8, 258  ;;  %504 = vbcast.lane.b32.xlu0 %v10802_v36, 257 }
 0x1ca   :  { %v11294_v31 = vpop.permute.xlu1 %656  ;;  %v11296_v57 = vpop.permute.xlu0 %464 }
 0x1cb   :  { %20303 = vst [vmem:[#allocation149_spill] sm:$0xff] %v11294_v31 }
 0x1cc   :  { %908 = vbcast.lane.b32.xlu1 %v10663_v6, 268  ;;  %696 = vbcast.lane.b32.xlu0 %v10802_v36, 258 }
 0x1ce   :  { %v11300_v28 = vpop.permute.xlu1 %1032  ;;  %v11302_v12 = vpop.permute.xlu0 %1028 }
 0x1cf   :  { %20304 = vst [vmem:[#allocation150_spill] sm:$0xff] %v11300_v28  ;;  %20305 = vst [vmem:[#allocation151_spill] sm:$0xff] %v11302_v12 }
 0x1d0   :  { %500 = vbcast.lane.b32.xlu1 %v10796_v35, 265  ;;  %912 = vbcast.lane.b32.xlu0 %v10660_v5, 260 }
 0x1d2   :  { %v11306_v34 = vpop.permute.xlu1 %460  ;;  %v11308_v32 = vpop.permute.xlu0 %1412 }
 0x1d3   :  { %20306 = vst [vmem:[#allocation152_spill] sm:$0xff] %v11306_v34  ;;  %20307 = vst [vmem:[#allocation153_spill] sm:$0xff] %v11308_v32 }
 0x1d4   :  { %692 = vbcast.lane.b32.xlu1 %v10796_v35, 266  ;;  %532 = vbcast.lane.b32.xlu0 %v10660_v5, 266 }
 0x1d6   :  { %v11312_v31 = vpop.permute.xlu1 %848  ;;  %v11314_v6 = vpop.permute.xlu0 %652 }
 0x1d7   :  { %20308 = vst [vmem:[#allocation154_spill] sm:$0xff] %v11312_v31  ;;  %20309 = vst [vmem:[#allocation155_spill] sm:$0xff] %v11314_v6 }
 0x1d8   :  { %888 = vbcast.lane.b32.xlu1 %v10802_v36, 259  ;;  %728 = vbcast.lane.b32.xlu0 %v10672_v8, 259 }
 0x1da   :  { %v11318_v30 = vpop.permute.xlu1 %844  ;;  %v11320_v12 = vpop.permute.xlu0 %1428 }
 0x1db   :  { %20310 = vst [vmem:[#allocation156_spill] sm:$0xff] %v11318_v30  ;;  %20311 = vst [vmem:[#allocation157_spill] sm:$0xff] %v11320_v12  ;;  %v1445_v12 = vsel %vm1438_vm0, %v10842_v45, %v10968_v1 }
 0x1dc   :  { %700 = vbcast.lane.b32.xlu1 %v10802_v36, 266  ;;  %508 = vbcast.lane.b32.xlu0 %v10802_v36, 265 }
 0x1de   :  { %v11324_v32 = vpop.permute.xlu1 %1036  ;;  %v11326_v34 = vpop.permute.xlu0 %1040 }
 0x1df   :  { %20312 = vst [vmem:[#allocation158_spill] sm:$0xff] %v11324_v32  ;;  %20313 = vst [vmem:[#allocation159_spill] sm:$0xff] %v11326_v34  ;;  %v1494_v32 = vsel %vm1487_vm1, %v1445_v12, %v10966_v18  ;;  %v2173_v12 = vsel %vm1438_vm0, %v10968_v1, %v10966_v18 }
 0x1e0   :  { %884 = vbcast.lane.b32.xlu1 %v10796_v35, 267  ;;  %724 = vbcast.lane.b32.xlu0 %v10660_v5, 267 }
 0x1e2   :  { %v11330_v6 = vpop.permute.xlu1 %664  ;;  %v11332_v31 = vpop.permute.xlu0 %472 }
 0x1e3   :  { %20314 = vst [vmem:[#allocation160_spill] sm:$0xff] %v11330_v6  ;;  %20315 = vst [vmem:[#allocation161_spill] sm:$0xff] %v11332_v31  ;;  %v1543_v6 = vsel %vm19492_vm2, %v1494_v32, %v10974_v42 }
 0x1e4   :  { %1080 = vbcast.lane.b32.xlu1 %v10802_v36, 260  ;;  %920 = vbcast.lane.b32.xlu0 %v10672_v8, 260  ;;  %v1592_v31 = vsel %vm19490_vm3, %v1543_v6, %v10972_v63  ;;  %v1447_v6 = vsel %vm1438_vm0, %v10848_v47, %v10978_v62 }
 0x1e5   :  { %v1641_v32 = vsel %vm1634_vm4, %v1592_v31, %v10848_v47 }
 0x1e6   :  { %v11339_v34 = vpop.permute.xlu1 %660  ;;  %v11343_v30 = vpop.permute.xlu0 %468  ;;  %v1690_v31 = vsel %vm1683_vm5, %v1641_v32, %v10978_v62 }
 0x1e7   :  { %20316 = vst [vmem:[#allocation162_spill] sm:$0xff] %v11339_v34  ;;  %20317 = vst [vmem:[#allocation163_spill] sm:$0xff] %v11343_v30 }
 0x1e8   :  { %704 = vbcast.lane.b32.xlu1 %v10808_v37, 258  ;;  %512 = vbcast.lane.b32.xlu0 %v10808_v37, 257 }
 0x1ea   :  { %v11349_v45 = vpop.permute.xlu1 %476  ;;  %v11353_v34 = vpop.permute.xlu0 %856 }
 0x1eb   :  { %20318 = vst [vmem:[#allocation164_spill] sm:$0xff] %v11349_v45  ;;  %20319 = vst [vmem:[#allocation165_spill] sm:$0xff] %v11353_v34  ;;  %v2221_v45 = vsel %vm1487_vm1, %v2173_v12, %v10974_v42  ;;  %v1496_v34 = vsel %vm1487_vm1, %v1447_v6, %v10984_v3  ;;  %v2175_v12 = vsel %vm1438_vm0, %v10978_v62, %v10984_v3 }
 0x1ec   :  { %916 = vbcast.lane.b32.xlu1 %v10660_v5, 268  ;;  %892 = vbcast.lane.b32.xlu0 %v10802_v36, 267  ;;  %v1545_v42 = vsel %vm19492_vm2, %v1496_v34, %v10990_v40  ;;  %v2269_v18 = vsel %vm19492_vm2, %v2221_v45, %v10972_v63  ;;  %v1739_v6 = vsel %vm1732_vm6, %v1690_v31, %v10984_v3 }
 0x1ed   :  { %v2223_v1 = vsel %vm1487_vm1, %v2175_v12, %v10990_v40  ;;  %v1594_v32 = vsel %vm19490_vm3, %v1545_v42, %v11004_v21  ;;  %v1446_v34 = vsel %vm1438_vm0, %v10840_v44, %v10980_v20 }
 0x1ee   :  { %v11362_v30 = vpop.permute.xlu1 %852  ;;  %v11369_v5 = vpop.permute.xlu0 %668  ;;  %v2271_v45 = vsel %vm19492_vm2, %v2223_v1, %v11004_v21  ;;  %v1495_v31 = vsel %vm1487_vm1, %v1446_v34, %v10986_v2  ;;  %v2317_v1 = vsel %vm19490_vm3, %v2269_v18, %v10848_v47  ;;  %v2174_v34 = vsel %vm1438_vm0, %v10980_v20, %v10986_v2 }
 0x1ef   :  { %20320 = vst [vmem:[#allocation166_spill] sm:$0xff] %v11369_v5  ;;  %v1544_v12 = vsel %vm19492_vm2, %v1495_v31, %v10992_v41  ;;  %v2319_v31 = vsel %vm19490_vm3, %v2271_v45, %v10854_v49 }
 0x1f0   :  { %348 = vbcast.lane.b32.xlu1 %v10672_v8, 265  ;;  %1076 = vbcast.lane.b32.xlu0 %v10796_v35, 268  ;;  %v1788_v35 = vsel %vm1781_vm7, %v1739_v6, %v10990_v40  ;;  %v1643_v6 = vsel %vm1634_vm4, %v1594_v32, %v10854_v49  ;;  %v2222_v32 = vsel %vm1487_vm1, %v2174_v34, %v10992_v41 }
 0x1f1   :  { %v1837_v42 = vsel %vm1830_vm8, %v1788_v35, %v11004_v21  ;;  %v1593_v35 = vsel %vm19490_vm3, %v1544_v12, %v11006_v26  ;;  %v1449_v12 = vsel %vm1438_vm0, %v10854_v49, %v10998_v43  ;;  %v2270_v2 = vsel %vm19492_vm2, %v2222_v32, %v11006_v26 }
 0x1f2   :  { %v11390_v5 = vpop.permute.xlu1 %480  ;;  %v11399_v63 = vpop.permute.xlu0 %1048  ;;  %v1886_v44 = vsel %vm19495_vm9, %v1837_v42, %v10854_v49  ;;  %v1692_v45 = vsel %vm1683_vm5, %v1643_v6, %v10998_v43  ;;  %v2365_v34 = vsel %vm1634_vm4, %v2317_v1, %v10978_v62  ;;  %v1642_v42 = vsel %vm1634_vm4, %v1593_v35, %v10846_v46 }
 0x1f3   :  { %v1448_v41 = vsel %vm1438_vm0, %v10846_v46, %v11010_v22  ;;  %v2413_v32 = vsel %vm1683_vm5, %v2365_v34, %v10984_v3  ;;  %v2367_v6 = vsel %vm1634_vm4, %v2319_v31, %v10998_v43  ;;  %v2177_v1 = vsel %vm1438_vm0, %v10998_v43, %v10996_v27 }
 0x1f4   :  { %1084 = vbcast.lane.b32.xlu1 %v10802_v36, 268  ;;  %896 = vbcast.lane.b32.xlu0 %v10808_v37, 259  ;;  %v1691_v35 = vsel %vm1683_vm5, %v1642_v42, %v11010_v22  ;;  %v2461_v49 = vsel %vm1732_vm6, %v2413_v32, %v10990_v40  ;;  %v1935_v20 = vsel %vm1928_vm10, %v1886_v44, %v10998_v43 }
 0x1f5   :  { %v2318_v34 = vsel %vm19490_vm3, %v2270_v2, %v10846_v46  ;;  %v1498_v31 = vsel %vm1487_vm1, %v1449_v12, %v10996_v27  ;;  %v1741_v3 = vsel %vm1732_vm6, %v1692_v45, %v10996_v27  ;;  %v11469_v42 = vsel %vm1781_vm7, %v2461_v49, %v11004_v21 }
 0x1f6   :  { %v11418_v36 = vpop.permute.xlu1 %860  ;;  %v11426_v18 = vpop.permute.xlu0 %672  ;;  %v2176_v32 = vsel %vm1438_vm0, %v11010_v22, %v11008_v16  ;;  %v1497_v43 = vsel %vm1487_vm1, %v1448_v41, %v11008_v16  ;;  %v11479_v44 = vrot.slane %v10784_v33, %v10681_v11  ;;  %v2415_v2 = vsel %vm1683_vm5, %v2367_v6, %v10996_v27 }
 0x1f7   :  { %v1546_v49 = vsel %vm19492_vm2, %v1497_v43, %v11013_v38  ;;  %v1740_v12 = vsel %vm1732_vm6, %v1691_v35, %v11008_v16  ;;  %v2366_v41 = vsel %vm1634_vm4, %v2318_v34, %v11010_v22  ;;  %v1984_v45 = vsel %vm19554_vm11, %v1935_v20, %v10996_v27 }
 0x1f8   :  { %1088 = vbcast.lane.b32.xlu1 %v10808_v37, 260  ;;  %540 = vbcast.lane.b32.xlu0 %v10672_v8, 266  ;;  %v1789_v11 = vsel %vm1781_vm7, %v1740_v12, %v11013_v38  ;;  %v1547_v33 = vsel %vm19492_vm2, %v1498_v31, %v11015_v24  ;;  %v1790_v6 = vsel %vm1781_vm7, %v1741_v3, %v11015_v24 }
 0x1f9   :  { %v2225_v35 = vsel %vm1487_vm1, %v2177_v1, %v11015_v24  ;;  %v1595_v34 = vsel %vm19490_vm3, %v1546_v49, %v11020_v39  ;;  %v1838_v27 = vsel %vm1830_vm8, %v1789_v11, %v11020_v39  ;;  %v1596_v20 = vsel %vm19490_vm3, %v1547_v33, %v11022_v25 }
 0x1fa   :  { %v11453_v26 = vpop.permute.xlu1 %864  ;;  %v11465_v62 = vpop.permute.xlu0 %1044  ;;  %v1839_v31 = vsel %vm1830_vm8, %v1790_v6, %v11022_v25  ;;  %v2224_v3 = vsel %vm1487_vm1, %v2176_v32, %v11013_v38  ;;  %v2273_v1 = vsel %vm19492_vm2, %v2225_v35, %v11022_v25  ;;  %v2463_v49 = vsel %vm1732_vm6, %v2415_v2, %v11015_v24 }
 0x1fb   :  { %v2414_v11 = vsel %vm1683_vm5, %v2366_v41, %v11008_v16  ;;  %v2272_v33 = vsel %vm19492_vm2, %v2224_v3, %v11020_v39  ;;  %v1450_v6 = vsel %vm1438_vm0, %v10852_v48, %v11030_v10  ;;  %v2033_v35 = vsel %vm19553_vm12, %v1984_v45, %v11015_v24 }
 0x1fc   :  { %708 = vbcast.lane.b32.xlu1 %v10808_v37, 266  ;;  %516 = vbcast.lane.b32.xlu0 %v10808_v37, 265  ;;  %v2462_v32 = vsel %vm1732_vm6, %v2414_v11, %v11013_v38  ;;  %v1645_v2 = vsel %vm1634_vm4, %v1596_v20, %v10860_v51  ;;  %v1888_v41 = vsel %vm19495_vm9, %v1839_v31, %v10860_v51 }
 0x1fd   :  { %v1644_v3 = vsel %vm1634_vm4, %v1595_v34, %v10852_v48  ;;  %v1887_v16 = vsel %vm19495_vm9, %v1838_v27, %v10852_v48  ;;  %v1451_v11 = vsel %vm1438_vm0, %v10860_v51, %v11026_v14  ;;  %v1694_v24 = vsel %vm1683_vm5, %v1645_v2, %v11026_v14 }
 0x1fe   :  { %v11500_v43 = vpop.permute.xlu1 %1056  ;;  %v11510_v12 = vpop.permute.xlu0 %1052  ;;  %v11550_v20 = vsel %vm1781_vm7, %v2463_v49, %v11022_v25  ;;  %v2321_v34 = vsel %vm19490_vm3, %v2273_v1, %v10860_v51  ;;  %v1499_v27 = vsel %vm1487_vm1, %v1450_v6, %v11028_v4  ;;  %v11559_v31 = vsel %vm1781_vm7, %v2462_v32, %v11020_v39 }
 0x1ff   :  { %20321 = vst [vmem:[#allocation167_spill] sm:$0xff] %v11500_v43  ;;  %20322 = vst [vmem:[#allocation168_spill] sm:$0xff] %v11510_v12  ;;  %v2369_v2 = vsel %vm1634_vm4, %v2321_v34, %v11026_v14  ;;  %v2082_v38 = vsel %vm2075_vm13, %v2033_v35, %v11022_v25  ;;  %v1937_v49 = vsel %vm1928_vm10, %v1888_v41, %v11026_v14 }
 0x200   :  { %1110 = vbcast.lane.b32.xlu1 %v11479_v44, 256  ;;  %732 = vbcast.lane.b32.xlu0 %v10672_v8, 267  ;;  %v1693_v1 = vsel %vm1683_vm5, %v1644_v3, %v11030_v10  ;;  %v1548_v6 = vsel %vm19492_vm2, %v1499_v27, %v11036_v60  ;;  %v2320_v32 = vsel %vm19490_vm3, %v2272_v33, %v10852_v48 }
 0x201   :  { %v2179_v34 = vsel %vm1438_vm0, %v11026_v14, %v11024_v9  ;;  %v1500_v25 = vsel %vm1487_vm1, %v1451_v11, %v11024_v9  ;;  %v1743_v35 = vsel %vm1732_vm6, %v1694_v24, %v11024_v9  ;;  %v1597_v41 = vsel %vm19490_vm3, %v1548_v6, %v11052_v55 }
 0x202   :  { %v11539_v22 = vpop.permute.xlu1 %484  ;;  %v11546_v45 = vpop.permute.xlu0 %328  ;;  %v1936_v27 = vsel %vm1928_vm10, %v1887_v16, %v11030_v10  ;;  %v2417_v33 = vsel %vm1683_vm5, %v2369_v2, %v11024_v9  ;;  %v2368_v14 = vsel %vm1634_vm4, %v2320_v32, %v11030_v10  ;;  %v11595_v11 = vsel %vm19583_vm14, %v2082_v38, %v10860_v51 }
 0x203   :  { %20323 = vst [vmem:[#allocation169_spill] sm:$0xff] %v11539_v22  ;;  %20326 = vst [vmem:[#allocation172_spill] sm:$0xff] %v11595_v11  ;;  %v2178_v24 = vsel %vm1438_vm0, %v11030_v10, %v11028_v4  ;;  %v1549_v6 = vsel %vm19492_vm2, %v1500_v25, %v11034_v7  ;;  %v1742_v16 = vsel %vm1732_vm6, %v1693_v1, %v11028_v4 }
 0x204   :  { %1142 = vbcast.lane.b32.xlu1 %v11479_v44, 258  ;;  %1126 = vbcast.lane.b32.xlu0 %v11479_v44, 257  ;;  %v1986_v2 = vsel %vm19554_vm11, %v1937_v49, %v11024_v9  ;;  %v1792_v32 = vsel %vm1781_vm7, %v1743_v35, %v11034_v7  ;;  %v2227_v38 = vsel %vm1487_vm1, %v2179_v34, %v11034_v7 }
 0x205   :  { %v1598_v51 = vsel %vm19490_vm3, %v1549_v6, %v11044_v56  ;;  %v1646_v10 = vsel %vm1634_vm4, %v1597_v41, %v10858_v50  ;;  %v2275_v9 = vsel %vm19492_vm2, %v2227_v38, %v11044_v56  ;;  %v2416_v1 = vsel %vm1683_vm5, %v2368_v14, %v11028_v4 }
 0x206   :  { %v11583_v3 = vpop.permute.xlu1 %676  ;;  %v11587_v39 = vpop.permute.xlu0 %488  ;;  %v1985_v34 = vsel %vm19554_vm11, %v1936_v27, %v11028_v4  ;;  %v1452_v25 = vsel %vm1438_vm0, %v10858_v50, %v11032_v23  ;;  %v1791_v35 = vsel %vm1781_vm7, %v1742_v16, %v11036_v60  ;;  %v2465_v6 = vsel %vm1732_vm6, %v2417_v33, %v11034_v7  ;;  %v11647_v16 = vld [vmem:[%s19237_s0 + $0x18] sm:$0xff]  ;;  %v20328_v33 = vld [vmem:[#allocation2_spill] sm:$0xff]  ;;  %s10605_s0 = smov 16  }
 0x207   :  { %20324 = vst [vmem:[#allocation170_spill] sm:$0xff] %v11583_v3  ;;  %20325 = vst [vmem:[#allocation171_spill] sm:$0xff] %v11587_v39  ;;  %v2226_v14 = vsel %vm1487_vm1, %v2178_v24, %v11036_v60  ;;  %v1647_v4 = vsel %vm1634_vm4, %v1598_v51, %v10866_v53  ;;  %v1695_v27 = vsel %vm1683_vm5, %v1646_v10, %v11032_v23 }
 0x208   :  { %924 = vbcast.lane.b32.xlu1 %v10672_v8, 268  ;;  %900 = vbcast.lane.b32.xlu0 %v10808_v37, 267  ;;  %v1841_v8 = vsel %vm1830_vm8, %v1792_v32, %v11044_v56  ;;  %v2035_v32 = vsel %vm19553_vm12, %v1986_v2, %v11034_v7  ;;  %v11651_v38 = vrot.slane %v11647_v16, %v20328_v33  ;;  %v20329_v7 = vld [vmem:[#allocation69_spill] sm:$0xff] }
 0x209   :  { %v1501_v24 = vsel %vm1487_vm1, %v1452_v25, %v20329_v7  ;;  %v1890_v2 = vsel %vm19495_vm9, %v1841_v8, %v10866_v53  ;;  %v2274_v51 = vsel %vm19492_vm2, %v2226_v14, %v11052_v55  ;;  %v2180_v10 = vsel %vm1438_vm0, %v11032_v23, %v20329_v7  ;;  %v20331_v14 = vld [vmem:[#allocation70_spill] sm:$0xff] }
 0x20a   :  { %v11620_v49 = vpop.permute.xlu1 %520  ;;  %v11631_v41 = vpop.permute.xlu0 %680  ;;  %v1840_v33 = vsel %vm1830_vm8, %v1791_v35, %v11052_v55  ;;  %v2464_v8 = vsel %vm1732_vm6, %v2416_v1, %v11036_v60  ;;  %v2084_v25 = vsel %vm2075_vm13, %v2035_v32, %v11044_v56  ;;  %v1453_v48 = vsel %vm1438_vm0, %v10866_v53, %v20331_v14 }
 0x20b   :  { %20327 = vst [vmem:[#allocation173_spill] sm:$0xff] %v11631_v41  ;;  %v1744_v46 = vsel %vm1732_vm6, %v1695_v27, %v20329_v7  ;;  %v2034_v35 = vsel %vm19553_vm12, %v1985_v34, %v11036_v60  ;;  %v11687_v1 = vsel %vm1781_vm7, %v2465_v6, %v11044_v56  ;;  %v1939_v27 = vsel %vm1928_vm10, %v1890_v2, %v20331_v14  ;;  %v20335_v6 = vld [vmem:[#allocation72_spill] sm:$0xff] }
 0x20c   :  { %1092 = vbcast.lane.b32.xlu1 %v10808_v37, 268  ;;  %1158 = vbcast.lane.b32.xlu0 %v11479_v44, 259  ;;  %v2323_v37 = vsel %vm19490_vm3, %v2275_v9, %v10866_v53  ;;  %v1696_v9 = vsel %vm1683_vm5, %v1647_v4, %v20331_v14  ;;  %v2322_v4 = vsel %vm19490_vm3, %v2274_v51, %v10858_v50 }
 0x20d   :  { %v2371_v32 = vsel %vm1634_vm4, %v2323_v37, %v20331_v14  ;;  %v1889_v34 = vsel %vm19495_vm9, %v1840_v33, %v10858_v50  ;;  %v11704_v56 = vsel %vm19583_vm14, %v2084_v25, %v10866_v53  ;;  %v1502_v51 = vsel %vm1487_vm1, %v1453_v48, %v20335_v6  ;;  %v20337_v33 = vld [vmem:[#allocation73_spill] sm:$0xff] }
 0x20e   :  { %v11667_v11 = vpop.permute.xlu1 %872  ;;  %v11680_v21 = vpop.permute.xlu0 %868  ;;  %20334 = vst [vmem:[#allocation70_spill] sm:$0xff] %v11704_v56  ;;  %v1745_v2 = vsel %vm1732_vm6, %v1696_v9, %v20335_v6  ;;  %v1551_v40 = vsel %vm19492_vm2, %v1502_v51, %v20337_v33  ;;  %v2419_v48 = vsel %vm1683_vm5, %v2371_v32, %v20335_v6  ;;  %v2370_v9 = vsel %vm1634_vm4, %v2322_v4, %v11032_v23  ;;  %v20339_v56 = vld [vmem:[#allocation74_spill] sm:$0xff] }
 0x20f   :  { %20330 = vst [vmem:[#allocation2_spill] sm:$0xff] %v11667_v11  ;;  %20332 = vst [vmem:[#allocation69_spill] sm:$0xff] %v11680_v21  ;;  %v20333_v11 = vld [vmem:[#allocation71_spill] sm:$0xff]  ;;  %v1794_v53 = vsel %vm1781_vm7, %v1745_v2, %v20337_v33  ;;  %v1938_v51 = vsel %vm1928_vm10, %v1889_v34, %v11032_v23  ;;  %v1988_v2 = vsel %vm19554_vm11, %v1939_v27, %v20335_v6 }
 0x210   :  { %1212 = vbcast.lane.b32.xlu1 %v11651_v38, 257  ;;  %v1550_v21 = vsel %vm19492_vm2, %v1501_v24, %v20333_v11  ;;  %v2228_v60 = vsel %vm1487_vm1, %v2180_v10, %v20333_v11  ;;  %1174 = vbcast.lane.b32.xlu0 %v11479_v44, 260  ;;  %v2181_v24 = vsel %vm1438_vm0, %v20331_v14, %v20335_v6 }
 0x211   :  { %v1793_v37 = vsel %vm1781_vm7, %v1744_v46, %v20333_v11  ;;  %v1600_v14 = vsel %vm19490_vm3, %v1551_v40, %v11054_v15  ;;  %v1843_v46 = vsel %vm1830_vm8, %v1794_v53, %v11054_v15  ;;  %v2229_v32 = vsel %vm1487_vm1, %v2181_v24, %v20337_v33  ;;  %v20341_v24 = vld [vmem:[#allocation22_spill] sm:$0xff] }
 0x212   :  { %v11715_v10 = vpop.permute.xlu1 %688  ;;  %v11721_v25 = vpop.permute.xlu0 %496  ;;  %v1599_v4 = vsel %vm19490_vm3, %v1550_v21, %v20339_v56  ;;  %v1842_v40 = vsel %vm1830_vm8, %v1793_v37, %v20339_v56  ;;  %v2276_v53 = vsel %vm19492_vm2, %v2228_v60, %v20339_v56  ;;  %v2277_v23 = vsel %vm19492_vm2, %v2229_v32, %v11054_v15 }
 0x213   :  { %20336 = vst [vmem:[#allocation71_spill] sm:$0xff] %v11715_v10  ;;  %20338 = vst [vmem:[#allocation72_spill] sm:$0xff] %v11721_v25  ;;  %v11751_v27 = vsel %vm1781_vm7, %v2464_v8, %v11052_v55  ;;  %v2418_v21 = vsel %vm1683_vm5, %v2370_v9, %v20329_v7  ;;  %v2083_v6 = vsel %vm2075_vm13, %v2034_v35, %v11052_v55 }
 0x214   :  { %1114 = vbcast.lane.b32.xlu1 %v11479_v44, 264  ;;  %1228 = vbcast.lane.b32.xlu0 %v11651_v38, 258  ;;  %v1649_v60 = vsel %vm1634_vm4, %v1600_v14, %v20341_v24  ;;  %v1892_v37 = vsel %vm19495_vm9, %v1843_v46, %v20341_v24  ;;  %v2467_v32 = vsel %vm1732_vm6, %v2419_v48, %v20337_v33  ;;  %v20343_v46 = vld [vmem:[#allocation75_spill] sm:$0xff] }
 0x215   :  { %v1987_v8 = vsel %vm19554_vm11, %v1938_v51, %v20329_v7  ;;  %v11774_v35 = vsel %vm1781_vm7, %v2467_v32, %v11054_v15  ;;  %v1455_v48 = vsel %vm1438_vm0, %v20341_v24, %v20343_v46  ;;  %v2466_v7 = vsel %vm1732_vm6, %v2418_v21, %v20333_v11  ;;  %v20345_v32 = vld [vmem:[#allocation76_spill] sm:$0xff] }
 0x216   :  { %v11747_v34 = vpop.permute.xlu1 %1060  ;;  %v11761_v10 = vpop.permute.xlu0 %712  ;;  %v2325_v51 = vsel %vm19490_vm3, %v2277_v23, %v20341_v24  ;;  %v2036_v21 = vsel %vm19553_vm12, %v1987_v8, %v20333_v11  ;;  %v11816_v11 = vsel %vm1781_vm7, %v2466_v7, %v20339_v56 }
 0x217   :  { %20340 = vst [vmem:[#allocation73_spill] sm:$0xff] %v11747_v34  ;;  %v20342_v34 = vld [vmem:[#allocation20_spill] sm:$0xff]  ;;  %v2373_v8 = vsel %vm1634_vm4, %v2325_v51, %v20343_v46  ;;  %v20349_v51 = vld [vmem:[#allocation79_spill] sm:$0xff] }
 0x218   :  { %v1648_v9 = vsel %vm1634_vm4, %v1599_v4, %v20342_v34  ;;  %v1891_v55 = vsel %vm19495_vm9, %v1842_v40, %v20342_v34  ;;  %1146 = vbcast.lane.b32.xlu1 %v11479_v44, 266  ;;  %v2324_v14 = vsel %vm19490_vm3, %v2276_v53, %v20342_v34  ;;  %1130 = vbcast.lane.b32.xlu0 %v11479_v44, 265 }
 0x219   :  { %v11788_v4 = vsel %vm19583_vm14, %v2083_v6, %v10858_v50  ;;  %v1698_v40 = vsel %vm1683_vm5, %v1649_v60, %v20343_v46  ;;  %v1941_v53 = vsel %vm1928_vm10, %v1892_v37, %v20343_v46  ;;  %v1454_v25 = vsel %vm1438_vm0, %v20342_v34, %v20345_v32 }
 0x21a   :  { %20344 = vst [vmem:[#allocation74_spill] sm:$0xff] %v11788_v4  ;;  %v11797_v41 = vpop.permute.xlu1 %332  ;;  %v1697_v23 = vsel %vm1683_vm5, %v1648_v9, %v20345_v32  ;;  %v1940_v50 = vsel %vm1928_vm10, %v1891_v55, %v20345_v32  ;;  %v11805_v6 = vpop.permute.xlu0 %1064  ;;  %v2372_v60 = vsel %vm1634_vm4, %v2324_v14, %v20345_v32  ;;  %v2037_v37 = vsel %vm19553_vm12, %v1988_v2, %v20337_v33  ;;  %v20347_v4 = vld [vmem:[#allocation77_spill] sm:$0xff]  ;;  %v20348_v2 = vld [vmem:[#allocation78_spill] sm:$0xff] }
 0x21b   :  { %20346 = vst [vmem:[#allocation22_spill] sm:$0xff] %v11805_v6  ;;  %v1504_v39 = vsel %vm1487_vm1, %v1455_v48, %v20347_v4  ;;  %v2086_v9 = vsel %vm2075_vm13, %v2037_v37, %v11054_v15  ;;  %v1747_v55 = vsel %vm1732_vm6, %v1698_v40, %v20347_v4  ;;  %v2183_v33 = vsel %vm1438_vm0, %v20343_v46, %v20347_v4 }
 0x21c   :  { %1244 = vbcast.lane.b32.xlu1 %v11651_v38, 259  ;;  %v1503_v14 = vsel %vm1487_vm1, %v1454_v25, %v20348_v2  ;;  %1196 = vbcast.lane.b32.xlu0 %v11651_v38, 256  ;;  %v2085_v48 = vsel %vm2075_vm13, %v2036_v21, %v20339_v56  ;;  %v1746_v7 = vsel %vm1732_vm6, %v1697_v23, %v20348_v2 }
 0x21d   :  { %v2182_v15 = vsel %vm1438_vm0, %v20345_v32, %v20348_v2  ;;  %v1553_v40 = vsel %vm19492_vm2, %v1504_v39, %v20349_v51  ;;  %v2420_v25 = vsel %vm1683_vm5, %v2372_v60, %v20348_v2  ;;  %v2421_v56 = vsel %vm1683_vm5, %v2373_v8, %v20347_v4 }
 0x21e   :  { %v11839_v37 = vpop.permute.xlu1 %492  ;;  %v1602_v46 = vsel %vm19490_vm3, %v1553_v40, %v11078_v54  ;;  %v11845_v6 = vpop.permute.xlu0 %336  ;;  %v1990_v21 = vsel %vm19554_vm11, %v1941_v53, %v20347_v4  ;;  %v11853_v32 = vsel %vm19583_vm14, %v2086_v9, %v20341_v24  ;;  %v1796_v39 = vsel %vm1781_vm7, %v1747_v55, %v20349_v51  ;;  %v20353_v4 = vld [vmem:[#allocation80_spill] sm:$0xff] }
 0x21f   :  { %20350 = vst [vmem:[#allocation20_spill] sm:$0xff] %v11839_v37  ;;  %20351 = vst [vmem:[#allocation75_spill] sm:$0xff] %v11853_v32  ;;  %v2231_v23 = vsel %vm1487_vm1, %v2183_v33, %v20349_v51  ;;  %v11862_v60 = vsel %vm19583_vm14, %v2085_v48, %v20342_v34  ;;  %v1989_v8 = vsel %vm19554_vm11, %v1940_v50, %v20348_v2  ;;  %v20354_v34 = vld [vmem:[#allocation82_spill] sm:$0xff]  ;;  %v20355_v33 = vld [vmem:[#allocation24_spill] sm:$0xff] }
 0x220   :  { %1162 = vbcast.lane.b32.xlu1 %v11479_v44, 267  ;;  %20352 = vst [vmem:[#allocation76_spill] sm:$0xff] %v11862_v60  ;;  %v1552_v53 = vsel %vm19492_vm2, %v1503_v14, %v20353_v4  ;;  %v1795_v24 = vsel %vm1781_vm7, %v1746_v7, %v20353_v4  ;;  %v2230_v9 = vsel %vm1487_vm1, %v2182_v15, %v20353_v4  ;;  %v20359_v60 = vld [vmem:[#allocation21_spill] sm:$0xff]  ;;  %v20361_v37 = vld [vmem:[#allocation83_spill] sm:$0xff] }
 0x221   :  { %v2279_v55 = vsel %vm19492_vm2, %v2231_v23, %v11078_v54  ;;  %2605 = vrot.lane.b32.xlu0 %v11469_v42, %s10605_s0  ;;  %v1457_v50 = vsel %vm1438_vm0, %v20355_v33, %v20354_v34  ;;  %v1651_v2 = vsel %vm1634_vm4, %v1602_v46, %v20355_v33  ;;  %v1601_v14 = vsel %vm19490_vm3, %v1552_v53, %v11080_v0  ;;  %v20358_v53 = vld [vmem:[#allocation81_spill] sm:$0xff] }
 0x222   :  { %v11883_v48 = vpop.permute.xlu1 %880  ;;  %v2468_v7 = vsel %vm1732_vm6, %v2420_v25, %v20353_v4  ;;  %v1845_v15 = vsel %vm1830_vm8, %v1796_v39, %v11078_v54  ;;  %v2278_v42 = vsel %vm19492_vm2, %v2230_v9, %v11080_v0  ;;  %v11891_v40 = vpop.permute.xlu0 %684  ;;  %v2469_v23 = vsel %vm1732_vm6, %v2421_v56, %v20349_v51 }
 0x223   :  { %20356 = vst [vmem:[#allocation77_spill] sm:$0xff] %v11883_v48  ;;  %20357 = vst [vmem:[#allocation78_spill] sm:$0xff] %v11891_v40  ;;  %v2039_v46 = vsel %vm19553_vm12, %v1990_v21, %v20349_v51  ;;  %v2185_v32 = vsel %vm1438_vm0, %v20354_v34, %v20358_v53  ;;  %v1844_v25 = vsel %vm1830_vm8, %v1795_v24, %v11080_v0  ;;  %v20360_v24 = vld [vmem:[#allocation3_spill] sm:$0xff] }
 0x224   :  { %1178 = vbcast.lane.b32.xlu1 %v11479_v44, 268  ;;  %v2327_v39 = vsel %vm19490_vm3, %v2279_v55, %v20355_v33  ;;  %v2038_v9 = vsel %vm19553_vm12, %v1989_v8, %v20353_v4  ;;  %v1650_v56 = vsel %vm1634_vm4, %v1601_v14, %v20359_v60  ;;  %v1506_v51 = vsel %vm1487_vm1, %v1457_v50, %v20358_v53 }
 0x225   :  { %v1700_v21 = vsel %vm1683_vm5, %v1651_v2, %v20354_v34  ;;  %1260 = vbcast.lane.b32.xlu0 %v11651_v38, 260  ;;  %v11916_v44 = vrot.slane %v11647_v16, %v20360_v24  ;;  %v1894_v55 = vsel %vm19495_vm9, %v1845_v15, %v20355_v33  ;;  %v1456_v8 = vsel %vm1438_vm0, %v20359_v60, %v11085_v52 }
 0x226   :  { %v1699_v4 = vsel %vm1683_vm5, %v1650_v56, %v11085_v52  ;;  %v11925_v50 = vpop.permute.xlu1 %524  ;;  %v2326_v2 = vsel %vm19490_vm3, %v2278_v42, %v20359_v60  ;;  %v1893_v14 = vsel %vm19495_vm9, %v1844_v25, %v20359_v60  ;;  %v11931_v24 = vpop.permute.xlu0 %904  ;;  %v11935_v15 = vsel %vm1781_vm7, %v2468_v7, %v11080_v0 }
 0x227   :  { %v2374_v40 = vsel %vm1634_vm4, %v2326_v2, %v11085_v52  ;;  %v2375_v56 = vsel %vm1634_vm4, %v2327_v39, %v20354_v34  ;;  %v1942_v48 = vsel %vm1928_vm10, %v1893_v14, %v11085_v52  ;;  %v1749_v42 = vsel %vm1732_vm6, %v1700_v21, %v20358_v53 }
 0x228   :  { %1200 = vbcast.lane.b32.xlu1 %v11651_v38, 264  ;;  %v2088_v25 = vsel %vm2075_vm13, %v2039_v46, %v11078_v54  ;;  %v2087_v7 = vsel %vm2075_vm13, %v2038_v9, %v11080_v0  ;;  %v2184_v2 = vsel %vm1438_vm0, %v11085_v52, %v20361_v37  ;;  %v1505_v39 = vsel %vm1487_vm1, %v1456_v8, %v20361_v37  ;;  %v11965_v0 = vld [vmem:[%s19238_s1] sm:$0xff]  ;;  %v11970_v52 = vld [vmem:[%s19238_s1 + $0x8] sm:$0xff] }
 0x229   :  { %v1748_v14 = vsel %vm1732_vm6, %v1699_v4, %v20361_v37  ;;  %1282 = vbcast.lane.b32.xlu0 %v11916_v44, 256  ;;  %v11960_v21 = vsel %vm1781_vm7, %v2469_v23, %v11078_v54  ;;  %20362 = vst [vmem:[#allocation79_spill] sm:$0xff] %v11965_v0  ;;  %20363 = vst [vmem:[#allocation80_spill] sm:$0xff] %v11970_v52  ;;  %v2422_v9 = vsel %vm1683_vm5, %v2374_v40, %v20361_v37 }
 0x22a   :  { %v11972_v46 = vpop.permute.xlu1 %876  ;;  %v2423_v8 = vsel %vm1683_vm5, %v2375_v56, %v20358_v53  ;;  %v11980_v4 = vpop.permute.xlu0 %528  ;;  %v11984_v3 = vsel %vm19583_vm14, %v2088_v25, %v20355_v33  ;;  %v11988_v47 = vsel %vm19583_vm14, %v2087_v7, %v20359_v60  ;;  %v1943_v40 = vsel %vm1928_vm10, %v1894_v55, %v20354_v34  ;;  %v27_v34 = vld [vmem:[%s19238_s1 + $0x18] sm:$0x1] }
 0x22b   :  { %20364 = vst [vmem:[#allocation82_spill] sm:$0xff] %v11972_v46  ;;  %20365 = vst [vmem:[#allocation24_spill] sm:$0xff] %v11984_v3  ;;  %v1991_v56 = vsel %vm19554_vm11, %v1942_v48, %v20361_v37  ;;  %v20367_v46 = vld [vmem:[#allocation84_spill] sm:$0xff]  ;;  %v20368_v33 = vand.u32 4294901760, %v11965_v0  ;;  %v20369_v25 = vand.u32 4294901760, %v11970_v52  ;;  %v20371_v48 = vld [vmem:[#allocation85_spill] sm:$0xff] }
 0x22c   :  { %20366 = vst [vmem:[#allocation81_spill] sm:$0xff] %v11988_v47  ;;  %v1554_v54 = vsel %vm19492_vm2, %v1505_v39, %v20367_v46  ;;  %v1797_v23 = vsel %vm1781_vm7, %v1748_v14, %v20367_v46  ;;  %1314 = vbcast.lane.b32.xlu1 %v11916_v44, 258  ;;  %v2232_v37 = vsel %vm1487_vm1, %v2184_v2, %v20367_v46  ;;  %v12018_v39 = vld [vmem:[%s19238_s1 + $0x10] sm:$0xff]  ;;  %v12020_v14 = vsel %vm2985_vm15, %v27_v34, 0  ;;  %v20374_v47 = vld [vmem:[#allocation86_spill] sm:$0xff]  ;;  %v20375_v52 = vld [vmem:[#allocation87_spill] sm:$0xff] }
 0x22d   :  { %v12003_v60 = vpack.c.bf16 %v20369_v25, %v20368_v33  ;;  %v1555_v55 = vsel %vm19492_vm2, %v1506_v51, %v20371_v48  ;;  %v1798_v7 = vsel %vm1781_vm7, %v1749_v42, %v20371_v48  ;;  %1298 = vbcast.lane.b32.xlu0 %v11916_v44, 257  ;;  %20372 = vst [vmem:[#allocation3_spill] sm:$0xff] %v12018_v39  ;;  %20373 = vst [vmem:[#allocation83_spill] sm:$0xff] %v12020_v14  ;;  %vm19482_vm15 = vcmask 130048  }
 0x22e   :  { %v2233_v33 = vsel %vm1487_vm1, %v2185_v32, %v20371_v48  ;;  %v12024_v25 = vpop.permute.xlu1 %344  ;;  %v2470_v51 = vsel %vm1732_vm6, %v2422_v9, %v20367_v46  ;;  %v19428_v42 = vand.u32 4294901760, %v12018_v39  ;;  %v19427_v2 = vand.u32 4294901760, %v12020_v14  ;;  %v12039_v22 = vpop.permute.xlu0 %1072  ;;  %v20384_v39 = vld [vmem:[#allocation88_spill] sm:$0xff] }
 0x22f   :  { %20370 = vst [vmem:[#allocation21_spill] sm:$0xff] %v12003_v60  ;;  %10128 = vmatprep.subr.bf16.mxu0 %v12003_v60  ;;  %v1603_v3 = vsel %vm19490_vm3, %v1554_v54, %v20374_v47  ;;  %v1846_v34 = vsel %vm1830_vm8, %v1797_v23, %v20374_v47  ;;  %v1604_v32 = vsel %vm19490_vm3, %v1555_v55, %v20375_v52  ;;  %20376 = vst [vmem:[#allocation84_spill] sm:$0xff] %v12039_v22 }
 0x230   :  { %v1847_v0 = vsel %vm1830_vm8, %v1798_v7, %v20375_v52  ;;  %10130 = vmatpush3.bf16.msra.mxu0 %v12003_v60  ;;  %v2281_v9 = vsel %vm19492_vm2, %v2233_v33, %v20375_v52  ;;  %2609 = vrot.lane.b32.xlu1 %v11550_v20, %s10605_s0  ;;  %v2471_v54 = vsel %vm1732_vm6, %v2423_v8, %v20371_v48  ;;  %v20378_v60 = vld [vmem:[#allocation91_spill] sm:$0xff] }
 0x231   :  { %v12052_v23 = vpack.c.bf16 %v19427_v2, %v19428_v42  ;;  %v1992_v55 = vsel %vm19554_vm11, %v1943_v40, %v20358_v53  ;;  %v2280_v7 = vsel %vm19492_vm2, %v2232_v37, %v20374_v47  ;;  %v20379_v33 = vld [vmem:[#allocation23_spill] sm:$0xff]  ;;  %2607 = vrot.lane.b32.xlu0 %v11559_v31, %s10605_s0  ;;  %v2040_v8 = vsel %vm19553_vm12, %v1991_v56, %v20367_v46  ;;  %v20380_v2 = vld [vmem:[#allocation26_spill] sm:$0xff]  ;;  %v20381_v31 = vld [vmem:[#allocation89_spill] sm:$0xff] }
 0x232   :  { %v1458_v22 = vsel %vm1438_vm0, %v20379_v33, %v20378_v60  ;;  %v2041_v20 = vsel %vm19553_vm12, %v1992_v55, %v20371_v48  ;;  %v1653_v42 = vsel %vm1634_vm4, %v1604_v32, %v20380_v2  ;;  %v1896_v53 = vsel %vm19495_vm9, %v1847_v0, %v20380_v2  ;;  %v12075_v14 = vpop.permute.xlu1 %720  ;;  %v12083_v48 = vpop.permute.xlu0 %716 }
 0x233   :  { %20377 = vst [vmem:[#allocation85_spill] sm:$0xff] %v12052_v23  ;;  %v1652_v40 = vsel %vm1634_vm4, %v1603_v3, %v20379_v33  ;;  %v1895_v37 = vsel %vm19495_vm9, %v1846_v34, %v20379_v33  ;;  %10132 = vmatprep.subr.bf16.mxu0 %v12052_v23  ;;  %v1459_v46 = vsel %vm1438_vm0, %v20380_v2, %v20381_v31  ;;  %20382 = vst [vmem:[#allocation86_spill] sm:$0xff] %v12083_v48  ;;  %v20383_v34 = vld [vmem:[#allocation90_spill] sm:$0xff]  ;;  %v20398_v48 = vld [vmem:[#allocation95_spill] sm:$0xff] }
 0x234   :  { %v1702_v56 = vsel %vm1683_vm5, %v1653_v42, %v20381_v31  ;;  %v12087_v0 = vsel %vm1781_vm7, %v2470_v51, %v20374_v47  ;;  %v2329_v3 = vsel %vm19490_vm3, %v2281_v9, %v20380_v2  ;;  %10134 = vmatpush3.bf16.msra.mxu0 %v12052_v23  ;;  %v1507_v32 = vsel %vm1487_vm1, %v1458_v22, %v20383_v34 }
 0x235   :  { %1232 = vbcast.lane.b32.xlu1 %v11651_v38, 266  ;;  %v2377_v55 = vsel %vm1634_vm4, %v2329_v3, %v20381_v31  ;;  %v12099_v42 = vsel %vm1781_vm7, %v2471_v54, %v20375_v52  ;;  %v2090_v51 = vsel %vm2075_vm13, %v2041_v20, %v20375_v52  ;;  %v1945_v9 = vsel %vm1928_vm10, %v1896_v53, %v20381_v31  ;;  %v20385_v53 = vld [vmem:[#allocation100_spill] sm:$0xff] }
 0x236   :  { %v1556_v23 = vsel %vm19492_vm2, %v1507_v32, %v11112_v17  ;;  %1216 = vbcast.lane.b32.xlu0 %v11651_v38, 265  ;;  %v2328_v22 = vsel %vm19490_vm3, %v2280_v7, %v20379_v33  ;;  %v2089_v3 = vsel %vm2075_vm13, %v2040_v8, %v20374_v47  ;;  %v2187_v54 = vsel %vm1438_vm0, %v20381_v31, %v20384_v39  ;;  %v12121_v12 = vpop.permute.xlu1 %340  ;;  %v12127_v8 = vpop.permute.xlu0 %1068 }
 0x237   :  { %v1508_v52 = vsel %vm1487_vm1, %v1459_v46, %v20384_v39  ;;  %v1751_v20 = vsel %vm1732_vm6, %v1702_v56, %v20384_v39  ;;  %v1605_v32 = vsel %vm19490_vm3, %v1556_v23, %v20385_v53  ;;  %20386 = vst [vmem:[#allocation87_spill] sm:$0xff] %v12121_v12  ;;  %v1701_v7 = vsel %vm1683_vm5, %v1652_v40, %v20378_v60  ;;  %v20389_v56 = vld [vmem:[#allocation93_spill] sm:$0xff]  ;;  %v20396_v12 = vld [vmem:[#allocation28_spill] sm:$0xff] }
 0x238   :  { %v1944_v47 = vsel %vm1928_vm10, %v1895_v37, %v20378_v60  ;;  %20387 = vst [vmem:[#allocation91_spill] sm:$0xff] %v12127_v8  ;;  %v2425_v31 = vsel %vm1683_vm5, %v2377_v55, %v20384_v39  ;;  %v12133_v46 = vsel %vm19583_vm14, %v2090_v51, %v20380_v2  ;;  %v1557_v23 = vsel %vm19492_vm2, %v1508_v52, %v20389_v56  ;;  %v20391_v51 = vld [vmem:[#allocation96_spill] sm:$0xff] }
 0x239   :  { %20388 = vst [vmem:[#allocation23_spill] sm:$0xff] %v12133_v46  ;;  %1248 = vbcast.lane.b32.xlu1 %v11651_v38, 267  ;;  %v2376_v40 = vsel %vm1634_vm4, %v2328_v22, %v20378_v60  ;;  %v12142_v37 = vsel %vm19583_vm14, %v2089_v3, %v20379_v33  ;;  %v1994_v8 = vsel %vm19554_vm11, %v1945_v9, %v20384_v39  ;;  %v20392_v46 = vld [vmem:[#allocation25_spill] sm:$0xff] }
 0x23a   :  { %20390 = vst [vmem:[#allocation26_spill] sm:$0xff] %v12142_v37  ;;  %v2186_v2 = vsel %vm1438_vm0, %v20378_v60, %v20383_v34  ;;  %v2235_v55 = vsel %vm1487_vm1, %v2187_v54, %v20389_v56  ;;  %v1606_v52 = vsel %vm19490_vm3, %v1557_v23, %v20391_v51  ;;  %v1654_v22 = vsel %vm1634_vm4, %v1605_v32, %v20392_v46  ;;  %v12162_v9 = vpop.permute.xlu1 %536  ;;  %v20394_v54 = vld [vmem:[#allocation92_spill] sm:$0xff]  ;;  %v12171_v37 = vpop.permute.xlu0 %504 }
 0x23b   :  { %1330 = vbcast.lane.b32.xlu0 %v11916_v44, 259  ;;  %v1800_v33 = vsel %vm1781_vm7, %v1751_v20, %v20389_v56  ;;  %v1750_v39 = vsel %vm1732_vm6, %v1701_v7, %v20383_v34  ;;  %v2283_v60 = vsel %vm19492_vm2, %v2235_v55, %v20391_v51  ;;  %20393 = vst [vmem:[#allocation89_spill] sm:$0xff] %v12162_v9  ;;  %20395 = vst [vmem:[#allocation90_spill] sm:$0xff] %v12171_v37 }
 0x23c   :  { %v1993_v3 = vsel %vm19554_vm11, %v1944_v47, %v20383_v34  ;;  %v1460_v32 = vsel %vm1438_vm0, %v20392_v46, %v20394_v54  ;;  %v1849_v23 = vsel %vm1830_vm8, %v1800_v33, %v20391_v51  ;;  %v2473_v20 = vsel %vm1732_vm6, %v2425_v31, %v20389_v56 }
 0x23d   :  { %v2424_v7 = vsel %vm1683_vm5, %v2376_v40, %v20383_v34  ;;  %v1799_v55 = vsel %vm1781_vm7, %v1750_v39, %v11112_v17  ;;  %v2234_v47 = vsel %vm1487_vm1, %v2186_v2, %v11112_v17  ;;  %v1655_v43 = vsel %vm1634_vm4, %v1606_v52, %v20396_v12  ;;  %1318 = vbcast.lane.b32.xlu1 %v11916_v44, 266  ;;  %v20397_v52 = vld [vmem:[#allocation94_spill] sm:$0xff] }
 0x23e   :  { %v1703_v33 = vsel %vm1683_vm5, %v1654_v22, %v20394_v54  ;;  %v1848_v31 = vsel %vm1830_vm8, %v1799_v55, %v20385_v53  ;;  %v2282_v34 = vsel %vm19492_vm2, %v2234_v47, %v20385_v53  ;;  %v2331_v40 = vsel %vm19490_vm3, %v2283_v60, %v20396_v12  ;;  %v12202_v37 = vpop.permute.xlu1 %908 }
 0x23f   :  { %1302 = vbcast.lane.b32.xlu0 %v11916_v44, 265  ;;  %v2043_v2 = vsel %vm19553_vm12, %v1994_v8, %v20389_v56  ;;  %v1509_v39 = vsel %vm1487_vm1, %v1460_v32, %v20397_v52  ;;  %v2188_v22 = vsel %vm1438_vm0, %v20394_v54, %v20397_v52  ;;  %v1898_v55 = vsel %vm19495_vm9, %v1849_v23, %v20396_v12  ;;  %v12210_v56 = vpop.permute.xlu0 %696 }
 0x240   :  { %v2092_v47 = vsel %vm2075_vm13, %v2043_v2, %v20391_v51  ;;  %v1704_v60 = vsel %vm1683_vm5, %v1655_v43, %v20398_v48  ;;  %v1752_v8 = vsel %vm1732_vm6, %v1703_v33, %v20397_v52  ;;  %20399 = vst [vmem:[#allocation88_spill] sm:$0xff] %v12210_v56  ;;  %v2472_v32 = vsel %vm1732_vm6, %v2424_v7, %v11112_v17  ;;  %v20400_v7 = vld [vmem:[#allocation97_spill] sm:$0xff] }
 0x241   :  { %v2042_v9 = vsel %vm19553_vm12, %v1993_v3, %v11112_v17  ;;  %v1461_v23 = vsel %vm1438_vm0, %v20396_v12, %v20398_v48  ;;  %v1897_v2 = vsel %vm19495_vm9, %v1848_v31, %v20392_v46  ;;  %2613 = vrot.lane.b32.xlu1 %v11687_v1, %s10605_s0  ;;  %v2379_v43 = vsel %vm1634_vm4, %v2331_v40, %v20398_v48 }
 0x242   :  { %v2330_v33 = vsel %vm19490_vm3, %v2282_v34, %v20392_v46  ;;  %v1558_v56 = vsel %vm19492_vm2, %v1509_v39, %v20400_v7  ;;  %v12232_v17 = vsel %vm1781_vm7, %v2473_v20, %v20391_v51  ;;  %v12236_v3 = vsel %vm19583_vm14, %v2092_v47, %v20396_v12  ;;  %v20402_v34 = vld [vmem:[#allocation98_spill] sm:$0xff]  ;;  %v12248_v20 = vpop.permute.xlu1 %500 }
 0x243   :  { %1346 = vbcast.lane.b32.xlu0 %v11916_v44, 260  ;;  %20401 = vst [vmem:[#allocation100_spill] sm:$0xff] %v12236_v3  ;;  %v1947_v1 = vsel %vm1928_vm10, %v1898_v55, %v20398_v48  ;;  %v2236_v31 = vsel %vm1487_vm1, %v2188_v22, %v20400_v7  ;;  %v1510_v40 = vsel %vm1487_vm1, %v1461_v23, %v20402_v34  ;;  %20403 = vst [vmem:[#allocation93_spill] sm:$0xff] %v12248_v20  ;;  %v12253_v47 = vpop.permute.xlu0 %912  ;;  %v20404_v23 = vld [vmem:[#allocation99_spill] sm:$0xff] }
 0x244   :  { %v1753_v39 = vsel %vm1732_vm6, %v1704_v60, %v20402_v34  ;;  %v1801_v51 = vsel %vm1781_vm7, %v1752_v8, %v20400_v7  ;;  %v2189_v12 = vsel %vm1438_vm0, %v20398_v48, %v20402_v34  ;;  %v2427_v22 = vsel %vm1683_vm5, %v2379_v43, %v20402_v34 }
 0x245   :  { %v2378_v55 = vsel %vm1634_vm4, %v2330_v33, %v20394_v54  ;;  %v1946_v60 = vsel %vm1928_vm10, %v1897_v2, %v20394_v54  ;;  %v1559_v8 = vsel %vm19492_vm2, %v1510_v40, %v20404_v23  ;;  %v1802_v3 = vsel %vm1781_vm7, %v1753_v39, %v20404_v23  ;;  %1334 = vbcast.lane.b32.xlu1 %v11916_v44, 267  ;;  %v20405_v2 = vld [vmem:[#allocation4_spill] sm:$0xff] }
 0x246   :  { %v2237_v48 = vsel %vm1487_vm1, %v2189_v12, %v20404_v23  ;;  %v1996_v43 = vsel %vm19554_vm11, %v1947_v1, %v20402_v34  ;;  %v1607_v33 = vsel %vm19490_vm3, %v1558_v56, %v11136_v59  ;;  %v1850_v54 = vsel %vm1830_vm8, %v1801_v51, %v11136_v59  ;;  %v20406_v1 = vld [vmem:[#allocation101_spill] sm:$0xff]  ;;  %v12287_v56 = vpop.permute.xlu1 %692 }
 0x247   :  { %1264 = vbcast.lane.b32.xlu0 %v11651_v38, 268  ;;  %v12277_v40 = vrot.slane %v11647_v16, %v20405_v2  ;;  %v12281_v39 = vsel %vm1781_vm7, %v2472_v32, %v20385_v53  ;;  %v2284_v12 = vsel %vm19492_vm2, %v2236_v31, %v11136_v59  ;;  %v1608_v34 = vsel %vm19490_vm3, %v1559_v8, %v20406_v1  ;;  %v20408_v16 = vld [vmem:[#allocation105_spill] sm:$0xff]  ;;  %v12295_v20 = vpop.permute.xlu0 %532 }
 0x248   :  { %20407 = vst [vmem:[#allocation96_spill] sm:$0xff] %v12287_v56  ;;  %v2426_v51 = vsel %vm1683_vm5, %v2378_v55, %v20397_v52  ;;  %v1995_v38 = vsel %vm19554_vm11, %v1946_v60, %v20397_v52  ;;  %v1657_v2 = vsel %vm1634_vm4, %v1608_v34, %v20408_v16  ;;  %20409 = vst [vmem:[#allocation25_spill] sm:$0xff] %v12295_v20  ;;  %v20410_v56 = vld [vmem:[#allocation27_spill] sm:$0xff] }
 0x249   :  { %v2475_v32 = vsel %vm1732_vm6, %v2427_v22, %v20404_v23  ;;  %v2091_v31 = vsel %vm2075_vm13, %v2042_v9, %v20385_v53  ;;  %v2045_v8 = vsel %vm19553_vm12, %v1996_v43, %v20404_v23  ;;  %v1656_v55 = vsel %vm1634_vm4, %v1607_v33, %v20410_v56  ;;  %2611 = vrot.lane.b32.xlu1 %v11751_v27, %s10605_s0  ;;  %v20411_v23 = vld [vmem:[#allocation103_spill] sm:$0xff]  ;;  %v20412_v27 = vld [vmem:[#allocation104_spill] sm:$0xff] }
 0x24a   :  { %v1899_v52 = vsel %vm19495_vm9, %v1850_v54, %v20410_v56  ;;  %v1851_v60 = vsel %vm1830_vm8, %v1802_v3, %v20406_v1  ;;  %v2285_v34 = vsel %vm19492_vm2, %v2237_v48, %v20406_v1  ;;  %v12316_v53 = vsel %vm1781_vm7, %v2475_v32, %v20406_v1  ;;  %v12329_v33 = vpop.permute.xlu1 %888 }
 0x24b   :  { %1368 = vbcast.lane.b32.xlu0 %v12277_v40, 256  ;;  %v2474_v9 = vsel %vm1732_vm6, %v2426_v51, %v20400_v7  ;;  %v2332_v22 = vsel %vm19490_vm3, %v2284_v12, %v20410_v56  ;;  %v2044_v3 = vsel %vm19553_vm12, %v1995_v38, %v20400_v7  ;;  %v1462_v48 = vsel %vm1438_vm0, %v20410_v56, %v20411_v23  ;;  %v20415_v38 = vld [vmem:[#allocation102_spill] sm:$0xff] }
 0x24c   :  { %v1706_v43 = vsel %vm1683_vm5, %v1657_v2, %v20412_v27  ;;  %20413 = vst [vmem:[#allocation92_spill] sm:$0xff] %v12329_v33  ;;  %v12333_v54 = vsel %vm19583_vm14, %v2091_v31, %v20392_v46  ;;  %v2094_v51 = vsel %vm2075_vm13, %v2045_v8, %v20406_v1  ;;  %v1705_v12 = vsel %vm1683_vm5, %v1656_v55, %v20411_v23  ;;  %v12346_v33 = vpop.permute.xlu0 %728 }
 0x24d   :  { %20414 = vst [vmem:[#allocation28_spill] sm:$0xff] %v12333_v54  ;;  %v1948_v7 = vsel %vm1928_vm10, %v1899_v52, %v20411_v23  ;;  %v2190_v32 = vsel %vm1438_vm0, %v20411_v23, %v20415_v38  ;;  %v1755_v2 = vsel %vm1732_vm6, %v1706_v43, %v11152_v58  ;;  %v2191_v46 = vsel %vm1438_vm0, %v20412_v27, %v11152_v58  ;;  %v20416_v54 = vld [vmem:[#allocation109_spill] sm:$0xff] }
 0x24e   :  { %v1804_v1 = vsel %vm1781_vm7, %v1755_v2, %v11158_v61  ;;  %1350 = vbcast.lane.b32.xlu1 %v11916_v44, 268  ;;  %v2380_v31 = vsel %vm1634_vm4, %v2332_v22, %v20411_v23  ;;  %v2093_v8 = vsel %vm2075_vm13, %v2044_v3, %v11136_v59  ;;  %v1900_v55 = vsel %vm19495_vm9, %v1851_v60, %v20408_v16  ;;  %v20417_v23 = vld [vmem:[#allocation115_spill] sm:$0xff]  ;;  %v12375_v20 = vpop.permute.xlu1 %700 }
 0x24f   :  { %v2333_v52 = vsel %vm19490_vm3, %v2285_v34, %v20408_v16  ;;  %v2239_v43 = vsel %vm1487_vm1, %v2191_v46, %v11158_v61  ;;  %v1853_v2 = vsel %vm1830_vm8, %v1804_v1, %v20416_v54  ;;  %1286 = vbcast.lane.b32.xlu0 %v11916_v44, 264  ;;  %v1511_v22 = vsel %vm1487_vm1, %v1462_v48, %v20415_v38 }
 0x250   :  { %v1754_v3 = vsel %vm1732_vm6, %v1705_v12, %v20415_v38  ;;  %v2287_v60 = vsel %vm19492_vm2, %v2239_v43, %v20416_v54  ;;  %v1902_v34 = vsel %vm19495_vm9, %v1853_v2, %v20417_v23  ;;  %20418 = vst [vmem:[#allocation94_spill] sm:$0xff] %v12375_v20  ;;  %v12379_v1 = vpop.permute.xlu0 %508  ;;  %v12383_v44 = vsel %vm1781_vm7, %v2474_v9, %v11136_v59  ;;  %v20422_v9 = vld [vmem:[#allocation106_spill] sm:$0xff] }
 0x251   :  { %v2335_v46 = vsel %vm19490_vm3, %v2287_v60, %v20417_v23  ;;  %20419 = vst [vmem:[#allocation95_spill] sm:$0xff] %v12379_v1  ;;  %v2428_v48 = vsel %vm1683_vm5, %v2380_v31, %v20415_v38  ;;  %v1997_v12 = vsel %vm19554_vm11, %v1948_v7, %v20415_v38  ;;  %v1949_v43 = vsel %vm1928_vm10, %v1900_v55, %v20412_v27  ;;  %v20423_v55 = vld [vmem:[#allocation108_spill] sm:$0xff] }
 0x252   :  { %1372 = vbcast.lane.b32.xlu1 %v12277_v40, 264  ;;  %v2381_v2 = vsel %vm1634_vm4, %v2333_v52, %v20412_v27  ;;  %v12396_v60 = vsel %vm19583_vm14, %v2094_v51, %v20408_v16  ;;  %v12400_v59 = vsel %vm19583_vm14, %v2093_v8, %v20410_v56  ;;  %v1560_v31 = vsel %vm19492_vm2, %v1511_v22, %v20422_v9  ;;  %v12415_v51 = vpop.permute.xlu1 %884 }
 0x253   :  { %20420 = vst [vmem:[#allocation97_spill] sm:$0xff] %v12396_v60  ;;  %20421 = vst [vmem:[#allocation98_spill] sm:$0xff] %v12400_v59  ;;  %v1803_v7 = vsel %vm1781_vm7, %v1754_v3, %v20422_v9  ;;  %v2238_v38 = vsel %vm1487_vm1, %v2190_v32, %v20422_v9  ;;  %v1951_v27 = vsel %vm1928_vm10, %v1902_v34, %v20423_v55  ;;  %1384 = vbcast.lane.b32.xlu0 %v12277_v40, 257  ;;  %v20424_v32 = vld [vmem:[#allocation107_spill] sm:$0xff]  ;;  %v20425_v59 = vld [vmem:[#allocation110_spill] sm:$0xff] }
 0x254   :  { %v1998_v16 = vsel %vm19554_vm11, %v1949_v43, %v11152_v58  ;;  %v2383_v56 = vsel %vm1634_vm4, %v2335_v46, %v20423_v55  ;;  %v2476_v8 = vsel %vm1732_vm6, %v2428_v48, %v20422_v9  ;;  %v2429_v52 = vsel %vm1683_vm5, %v2381_v2, %v11152_v58  ;;  %v12427_v43 = vpop.permute.xlu0 %724  ;;  %v20426_v60 = vld [vmem:[#allocation111_spill] sm:$0xff] }
 0x255   :  { %v1609_v22 = vsel %vm19490_vm3, %v1560_v31, %v20424_v32  ;;  %v1852_v3 = vsel %vm1830_vm8, %v1803_v7, %v20424_v32  ;;  %v2286_v34 = vsel %vm19492_vm2, %v2238_v38, %v20424_v32  ;;  %v2046_v46 = vsel %vm19553_vm12, %v1997_v12, %v20422_v9  ;;  %v20427_v9 = vld [vmem:[#allocation113_spill] sm:$0xff] }
 0x256   :  { %v1658_v48 = vsel %vm1634_vm4, %v1609_v22, %v20425_v59  ;;  %v2000_v58 = vsel %vm19554_vm11, %v1951_v27, %v20426_v60  ;;  %1388 = vbcast.lane.b32.xlu1 %v12277_v40, 265  ;;  %v12438_v2 = vsel %vm1781_vm7, %v2476_v8, %v20424_v32  ;;  %v2477_v31 = vsel %vm1732_vm6, %v2429_v52, %v11158_v61  ;;  %v12455_v22 = vpop.permute.xlu1 %1080 }
 0x257   :  { %v1901_v7 = vsel %vm19495_vm9, %v1852_v3, %v20425_v59  ;;  %v2334_v12 = vsel %vm19490_vm3, %v2286_v34, %v20425_v59  ;;  %v1707_v38 = vsel %vm1683_vm5, %v1658_v48, %v20427_v9  ;;  %1400 = vbcast.lane.b32.xlu0 %v12277_v40, 258  ;;  %v2431_v27 = vsel %vm1683_vm5, %v2383_v56, %v20426_v60  ;;  %v20429_v48 = vld [vmem:[#allocation114_spill] sm:$0xff] }
 0x258   :  { %v1950_v8 = vsel %vm1928_vm10, %v1901_v7, %v20427_v9  ;;  %v2382_v52 = vsel %vm1634_vm4, %v2334_v12, %v20427_v9  ;;  %20428 = vst [vmem:[#allocation99_spill] sm:$0xff] %v12455_v22  ;;  %v2047_v3 = vsel %vm19553_vm12, %v1998_v16, %v11158_v61  ;;  %v2095_v34 = vsel %vm2075_vm13, %v2046_v46, %v20424_v32  ;;  %v12463_v20 = vpop.permute.xlu0 %920  ;;  %v20431_v16 = vld [vmem:[#allocation112_spill] sm:$0xff] }
 0x259   :  { %v2049_v1 = vsel %vm19553_vm12, %v2000_v58, %v20429_v48  ;;  %v12467_v56 = vsel %vm1781_vm7, %v2477_v31, %v20416_v54  ;;  %v2096_v7 = vsel %vm2075_vm13, %v2047_v3, %v20416_v54  ;;  %v12473_v12 = vsel %vm19583_vm14, %v2095_v34, %v20425_v59  ;;  %v20433_v31 = vld [vmem:[#allocation117_spill] sm:$0xff] }
 0x25a   :  { %20430 = vst [vmem:[#allocation4_spill] sm:$0xff] %v12473_v12  ;;  %v2193_v61 = vsel %vm1438_vm0, %v20423_v55, %v20426_v60  ;;  %v2192_v32 = vsel %vm1438_vm0, %v20427_v9, %v20431_v16  ;;  %v1756_v46 = vsel %vm1732_vm6, %v1707_v38, %v20431_v16  ;;  %2617 = vrot.lane.b32.xlu1 %v11774_v35, %s10605_s0  ;;  %v20434_v38 = vld [vmem:[#allocation116_spill] sm:$0xff] }
 0x25b   :  { %v2479_v54 = vsel %vm1732_vm6, %v2431_v27, %v20429_v48  ;;  %v2241_v59 = vsel %vm1487_vm1, %v2193_v61, %v20429_v48  ;;  %1416 = vbcast.lane.b32.xlu0 %v12277_v40, 259  ;;  %v2430_v60 = vsel %vm1683_vm5, %v2382_v52, %v20431_v16  ;;  %v12494_v55 = vsel %vm19583_vm14, %v2096_v7, %v20417_v23  ;;  %v12506_v52 = vpop.permute.xlu1 %704  ;;  %v20437_v7 = vld [vmem:[#allocation118_spill] sm:$0xff] }
 0x25c   :  { %20432 = vst [vmem:[#allocation101_spill] sm:$0xff] %v12494_v55  ;;  %v1999_v58 = vsel %vm19554_vm11, %v1950_v8, %v20431_v16  ;;  %v1805_v35 = vsel %vm1781_vm7, %v1756_v46, %v20433_v31  ;;  %v2240_v9 = vsel %vm1487_vm1, %v2192_v32, %v20433_v31  ;;  %v2098_v27 = vsel %vm2075_vm13, %v2049_v1, %v20434_v38  ;;  %v12511_v34 = vpop.permute.xlu0 %512  ;;  %v20439_v32 = vld [vmem:[#allocation119_spill] sm:$0xff] }
 0x25d   :  { %v2289_v3 = vsel %vm19492_vm2, %v2241_v59, %v20434_v38  ;;  %20435 = vst [vmem:[#allocation105_spill] sm:$0xff] %v12506_v52  ;;  %v2194_v23 = vsel %vm1438_vm0, %v11204_v29, %v11212_v19  ;;  %20436 = vst [vmem:[#allocation27_spill] sm:$0xff] %v12511_v34  ;;  %v12515_v8 = vsel %vm1781_vm7, %v2479_v54, %v20434_v38  ;;  %v20440_v59 = vld [vmem:[#allocation125_spill] sm:$0xff]  ;;  %v20446_v34 = vld [vmem:[#allocation122_spill] sm:$0xff] }
 0x25e   :  { %v2478_v48 = vsel %vm1732_vm6, %v2430_v60, %v20433_v31  ;;  %v2048_v1 = vsel %vm19553_vm12, %v1999_v58, %v20433_v31  ;;  %v12523_v61 = vsel %vm19583_vm14, %v2098_v27, %v20437_v7  ;;  %v2337_v16 = vsel %vm19490_vm3, %v2289_v3, %v20437_v7  ;;  %1432 = vbcast.lane.b32.xlu1 %v12277_v40, 260  ;;  %v20441_v38 = vld [vmem:[#allocation129_spill] sm:$0xff]  ;;  %v20442_v58 = vld [vmem:[#allocation36_spill] sm:$0xff] }
 0x25f   :  { %20438 = vst [vmem:[#allocation103_spill] sm:$0xff] %v12523_v61  ;;  %v1854_v46 = vsel %vm1830_vm8, %v1805_v35, %v20439_v32  ;;  %v2242_v54 = vsel %vm1487_vm1, %v2194_v23, %v20440_v59  ;;  %v2288_v60 = vsel %vm19492_vm2, %v2240_v9, %v20439_v32  ;;  %v1469_v31 = vsel %vm1438_vm0, %v20442_v58, %v20441_v38  ;;  %v20443_v3 = vld [vmem:[#allocation120_spill] sm:$0xff]  ;;  %v20444_v7 = vld [vmem:[#allocation121_spill] sm:$0xff]  ;;  %v20445_v9 = vld [vmem:[#allocation134_spill] sm:$0xff]  ;;  %v12550_v55 = vpop.permute.xlu1 %916 }
 0x260   :  { %v2290_v27 = vsel %vm19492_vm2, %v2242_v54, %v11236_v13  ;;  %1404 = vbcast.lane.b32.xlu0 %v12277_v40, 266  ;;  %v12542_v35 = vsel %vm1781_vm7, %v2478_v48, %v20439_v32  ;;  %v2385_v23 = vsel %vm1634_vm4, %v2337_v16, %v20443_v3  ;;  %v1903_v61 = vsel %vm19495_vm9, %v1854_v46, %v20444_v7  ;;  %v12561_v52 = vpop.permute.xlu0 %892 }
 0x261   :  { %v2338_v12 = vsel %vm19490_vm3, %v2290_v27, %v20445_v9  ;;  %v2097_v54 = vsel %vm2075_vm13, %v2048_v1, %v20439_v32  ;;  %v2336_v58 = vsel %vm19490_vm3, %v2288_v60, %v20444_v7  ;;  %v1952_v48 = vsel %vm1928_vm10, %v1903_v61, %v11204_v29  ;;  %20447 = vst [vmem:[#allocation104_spill] sm:$0xff] %v12561_v52  ;;  %v20449_v32 = vld [vmem:[#allocation123_spill] sm:$0xff]  ;;  %v20450_v61 = vld [vmem:[#allocation128_spill] sm:$0xff] }
 0x262   :  { %v2195_v16 = vsel %vm1438_vm0, %v20443_v3, %v20446_v34  ;;  %v12565_v46 = vsel %vm19583_vm14, %v2097_v54, %v20444_v7  ;;  %v2384_v27 = vsel %vm1634_vm4, %v2336_v58, %v11204_v29  ;;  %v2433_v1 = vsel %vm1683_vm5, %v2385_v23, %v20446_v34  ;;  %1420 = vbcast.lane.b32.xlu1 %v12277_v40, 267  ;;  %v20451_v54 = vld [vmem:[#allocation131_spill] sm:$0xff]  ;;  %v20452_v58 = vld [vmem:[#allocation124_spill] sm:$0xff] }
 0x263   :  { %20448 = vst [vmem:[#allocation102_spill] sm:$0xff] %v12565_v46  ;;  %v2243_v60 = vsel %vm1487_vm1, %v2195_v16, %v20449_v32  ;;  %v1518_v22 = vsel %vm1487_vm1, %v1469_v31, %v20450_v61  ;;  %v2001_v3 = vsel %vm19554_vm11, %v1952_v48, %v11212_v19  ;;  %v2432_v7 = vsel %vm1683_vm5, %v2384_v27, %v11212_v19  ;;  %v20453_v16 = vld [vmem:[#allocation135_spill] sm:$0xff]  ;;  %v12592_v46 = vpop.permute.xlu1 %348 }
 0x264   :  { %v1567_v29 = vsel %vm19492_vm2, %v1518_v22, %v20451_v54  ;;  %v2386_v34 = vsel %vm1634_vm4, %v2338_v12, %v20452_v58  ;;  %2615 = vrot.lane.b32.xlu0 %v11816_v11, %s10605_s0  ;;  %v2481_v31 = vsel %vm1732_vm6, %v2433_v1, %v20449_v32  ;;  %v2050_v23 = vsel %vm19553_vm12, %v2001_v3, %v20440_v59  ;;  %v20454_v22 = vld [vmem:[#allocation126_spill] sm:$0xff]  ;;  %v20455_v27 = vld [vmem:[#allocation127_spill] sm:$0xff]  ;;  %v12604_v32 = vpop.permute.xlu0 %1076 }
 0x265   :  { %v1616_v48 = vsel %vm19490_vm3, %v1567_v29, %v20453_v16  ;;  %v2480_v19 = vsel %vm1732_vm6, %v2432_v7, %v20440_v59  ;;  %v2291_v12 = vsel %vm19492_vm2, %v2243_v60, %v20454_v22  ;;  %v2196_v11 = vsel %vm1438_vm0, %v20452_v58, %v20455_v27  ;;  %v20456_v29 = vld [vmem:[#allocation130_spill] sm:$0xff]  ;;  %v20459_v52 = vld [vmem:[#allocation139_spill] sm:$0xff] }
 0x266   :  { %v2197_v1 = vsel %vm1438_vm0, %v20441_v38, %v20450_v61  ;;  %v12608_v3 = vsel %vm1781_vm7, %v2481_v31, %v20454_v22  ;;  %v2244_v59 = vsel %vm1487_vm1, %v2196_v11, %v20456_v29  ;;  %v2099_v60 = vsel %vm2075_vm13, %v2050_v23, %v11236_v13  ;;  %1436 = vbcast.lane.b32.xlu1 %v12277_v40, 268  ;;  %v20457_v31 = vld [vmem:[#allocation132_spill] sm:$0xff]  ;;  %v20458_v38 = vld [vmem:[#allocation38_spill] sm:$0xff] }
 0x267   :  { %v12617_v7 = vsel %vm1781_vm7, %v2480_v19, %v11236_v13  ;;  %v2434_v58 = vsel %vm1683_vm5, %v2386_v34, %v20455_v27  ;;  %v2245_v61 = vsel %vm1487_vm1, %v2197_v1, %v20451_v54  ;;  %v2339_v22 = vsel %vm19490_vm3, %v2291_v12, %v20457_v31  ;;  %v20460_v13 = vld [vmem:[#allocation133_spill] sm:$0xff] }
 0x268   :  { %v1665_v11 = vsel %vm1634_vm4, %v1616_v48, %v20458_v38  ;;  %v1471_v40 = vsel %vm1438_vm0, %v20458_v38, %v20459_v52  ;;  %2619 = vrot.lane.b32.xlu0 %v11935_v15, %s10605_s0  ;;  %v2292_v23 = vsel %vm19492_vm2, %v2244_v59, %v20460_v13  ;;  %v2293_v34 = vsel %vm19492_vm2, %v2245_v61, %v20453_v16  ;;  %v20461_v12 = vld [vmem:[#allocation141_spill] sm:$0xff]  ;;  %v12640_v48 = vpop.permute.xlu1 %1084  ;;  %v12649_v54 = vpop.permute.xlu0 %896 }
 0x269   :  { %v1714_v19 = vsel %vm1683_vm5, %v1665_v11, %v20459_v52  ;;  %v1520_v27 = vsel %vm1487_vm1, %v1471_v40, %v20461_v12  ;;  %v2199_v15 = vsel %vm1438_vm0, %v20459_v52, %v20461_v12  ;;  %v20462_v31 = vld [vmem:[#allocation145_spill] sm:$0xff]  ;;  %20463 = vst [vmem:[#allocation109_spill] sm:$0xff] %v12649_v54  ;;  %v2482_v61 = vsel %vm1732_vm6, %v2434_v58, %v20456_v29  ;;  %v20465_v29 = vld [vmem:[#allocation136_spill] sm:$0xff] }
 0x26a   :  { %v1763_v1 = vsel %vm1732_vm6, %v1714_v19, %v20461_v12  ;;  %v1569_v59 = vsel %vm19492_vm2, %v1520_v27, %v20462_v31  ;;  %v12655_v11 = vsel %vm19583_vm14, %v2099_v60, %v20445_v9  ;;  %v2247_v19 = vsel %vm1487_vm1, %v2199_v15, %v20462_v31  ;;  %2623 = vrot.lane.b32.xlu1 %v12087_v0, %s10605_s0  ;;  %v20468_v0 = vld [vmem:[#allocation35_spill] sm:$0xff] }
 0x26b   :  { %20464 = vst [vmem:[#allocation115_spill] sm:$0xff] %v12655_v11  ;;  %v1812_v40 = vsel %vm1781_vm7, %v1763_v1, %v20462_v31  ;;  %v1618_v16 = vsel %vm19490_vm3, %v1569_v59, %v11300_v28  ;;  %v2341_v27 = vsel %vm19490_vm3, %v2293_v34, %v20458_v38  ;;  %v2387_v58 = vsel %vm1634_vm4, %v2339_v22, %v20465_v29  ;;  %v20466_v1 = vld [vmem:[#allocation137_spill] sm:$0xff]  ;;  %v20467_v59 = vld [vmem:[#allocation140_spill] sm:$0xff] }
 0x26c   :  { %v1861_v9 = vsel %vm1830_vm8, %v1812_v40, %v11300_v28  ;;  %v2295_v60 = vsel %vm19492_vm2, %v2247_v19, %v11300_v28  ;;  %2621 = vrot.lane.b32.xlu0 %v11960_v21, %s10605_s0  ;;  %v2435_v15 = vsel %vm1683_vm5, %v2387_v58, %v20466_v1  ;;  %v1470_v11 = vsel %vm1438_vm0, %v20468_v0, %v20467_v59  ;;  %v12680_v34 = vpop.permute.xlu1 %1088  ;;  %v20470_v19 = vld [vmem:[#allocation138_spill] sm:$0xff]  ;;  %v20472_v58 = vld [vmem:[#allocation40_spill] sm:$0xff]  ;;  %v12694_v54 = vpop.permute.xlu0 %540 }
 0x26d   :  { %20469 = vst [vmem:[#allocation106_spill] sm:$0xff] %v12680_v34  ;;  %v12684_v22 = vsel %vm1781_vm7, %v2482_v61, %v20460_v13  ;;  %v2389_v40 = vsel %vm1634_vm4, %v2341_v27, %v20459_v52  ;;  %v2340_v29 = vsel %vm19490_vm3, %v2292_v23, %v20470_v19  ;;  %v20471_v21 = vld [vmem:[#allocation142_spill] sm:$0xff]  ;;  %v1667_v1 = vsel %vm1634_vm4, %v1618_v16, %v20472_v58 }
 0x26e   :  { %v1519_v38 = vsel %vm1487_vm1, %v1470_v11, %v20471_v21  ;;  %v2437_v0 = vsel %vm1683_vm5, %v2389_v40, %v20461_v12  ;;  %v2198_v13 = vsel %vm1438_vm0, %v20467_v59, %v20471_v21  ;;  %v20473_v61 = vld [vmem:[#allocation146_spill] sm:$0xff]  ;;  %v1910_v23 = vsel %vm19495_vm9, %v1861_v9, %v20472_v58  ;;  %2629 = vrot.lane.b32.xlu1 %v12232_v17, %s10605_s0  ;;  %v20474_v11 = vld [vmem:[#allocation143_spill] sm:$0xff]  ;;  %v20476_v17 = vld [vmem:[#allocation144_spill] sm:$0xff] }
 0x26f   :  { %v1568_v27 = vsel %vm19492_vm2, %v1519_v38, %v20473_v61  ;;  %v2343_v16 = vsel %vm19490_vm3, %v2295_v60, %v20472_v58  ;;  %v2483_v19 = vsel %vm1732_vm6, %v2435_v15, %v20474_v11  ;;  %v2246_v40 = vsel %vm1487_vm1, %v2198_v13, %v20473_v61  ;;  %v20475_v38 = vld [vmem:[#allocation151_spill] sm:$0xff]  ;;  %v20479_v61 = vld [vmem:[#allocation148_spill] sm:$0xff] }
 0x270   :  { %v1473_v21 = vsel %vm1438_vm0, %v20472_v58, %v11296_v57  ;;  %v1617_v59 = vsel %vm19490_vm3, %v1568_v27, %v20475_v38  ;;  %2625 = vrot.lane.b32.xlu0 %v12099_v42, %s10605_s0  ;;  %v2388_v9 = vsel %vm1634_vm4, %v2340_v29, %v20476_v17  ;;  %v2294_v60 = vsel %vm19492_vm2, %v2246_v40, %v20475_v38  ;;  %v12726_v13 = vpop.permute.xlu1 %708  ;;  %v20478_v58 = vld [vmem:[#allocation147_spill] sm:$0xff]  ;;  %v12736_v12 = vpop.permute.xlu0 %516  ;;  %v20481_v40 = vld [vmem:[#allocation149_spill] sm:$0xff] }
 0x271   :  { %v1716_v15 = vsel %vm1683_vm5, %v1667_v1, %v11296_v57  ;;  %20477 = vst [vmem:[#allocation108_spill] sm:$0xff] %v12726_v13  ;;  %v2485_v11 = vsel %vm1732_vm6, %v2437_v0, %v20462_v31  ;;  %v12732_v27 = vsel %vm1781_vm7, %v2483_v19, %v20478_v58  ;;  %v2436_v42 = vsel %vm1683_vm5, %v2388_v9, %v20479_v61  ;;  %v20482_v0 = vld [vmem:[#allocation37_spill] sm:$0xff]  ;;  %v20487_v31 = vld [vmem:[#allocation154_spill] sm:$0xff] }
 0x272   :  { %20480 = vst [vmem:[#allocation107_spill] sm:$0xff] %v12736_v12  ;;  %v2391_v29 = vsel %vm1634_vm4, %v2343_v16, %v11296_v57  ;;  %v1959_v1 = vsel %vm1928_vm10, %v1910_v23, %v11296_v57  ;;  %v2201_v17 = vsel %vm1438_vm0, %v11296_v57, %v20481_v40  ;;  %v1666_v38 = vsel %vm1634_vm4, %v1617_v59, %v20482_v0  ;;  %v20483_v19 = vld [vmem:[#allocation5_spill] sm:$0xff]  ;;  %v20484_v23 = vld [vmem:[#allocation152_spill] sm:$0xff]  ;;  %v20491_v12 = vld [vmem:[#allocation159_spill] sm:$0xff] }
 0x273   :  { %v1522_v58 = vsel %vm1487_vm1, %v1473_v21, %v20481_v40  ;;  %424 = vbcast.lane.b32.xlu1 %v20483_v19, 257  ;;  %v12752_v61 = vsel %vm1781_vm7, %v2485_v11, %v11300_v28  ;;  %v2342_v16 = vsel %vm19490_vm3, %v2294_v60, %v20482_v0  ;;  %v1472_v9 = vsel %vm1438_vm0, %v20482_v0, %v20484_v23  ;;  %v20485_v21 = vld [vmem:[#allocation153_spill] sm:$0xff] }
 0x274   :  { %v1715_v57 = vsel %vm1683_vm5, %v1666_v38, %v20484_v23  ;;  %v1765_v59 = vsel %vm1732_vm6, %v1716_v15, %v20481_v40  ;;  %2627 = vrot.lane.b32.xlu0 %v12281_v39, %s10605_s0  ;;  %v2484_v11 = vsel %vm1732_vm6, %v2436_v42, %v20485_v21  ;;  %v12767_v28 = vpop.permute.xlu1 %1110  ;;  %v2390_v60 = vsel %vm1634_vm4, %v2342_v16, %v20484_v23  ;;  %v20488_v21 = vld [vmem:[#allocation155_spill] sm:$0xff]  ;;  %v12783_v13 = vpop.permute.xlu0 %732 }
 0x275   :  { %20486 = vst [vmem:[#allocation110_spill] sm:$0xff] %v12767_v28  ;;  %v2439_v0 = vsel %vm1683_vm5, %v2391_v29, %v20481_v40  ;;  %v2008_v38 = vsel %vm19554_vm11, %v1959_v1, %v20481_v40  ;;  %v1571_v15 = vsel %vm19492_vm2, %v1522_v58, %v20487_v31  ;;  %v1814_v39 = vsel %vm1781_vm7, %v1765_v59, %v20487_v31  ;;  %v20489_v40 = vld [vmem:[#allocation156_spill] sm:$0xff] }
 0x276   :  { %v2249_v42 = vsel %vm1487_vm1, %v2201_v17, %v20487_v31  ;;  %v1521_v52 = vsel %vm1487_vm1, %v1472_v9, %v20488_v21  ;;  %v1764_v29 = vsel %vm1732_vm6, %v1715_v57, %v20488_v21  ;;  %v2200_v1 = vsel %vm1438_vm0, %v20484_v23, %v20488_v21  ;;  %v20490_v9 = vld [vmem:[#allocation158_spill] sm:$0xff] }
 0x277   :  { %v1570_v58 = vsel %vm19492_vm2, %v1521_v52, %v20489_v40  ;;  %616 = vbcast.lane.b32.xlu1 %v20483_v19, 258  ;;  %v2487_v17 = vsel %vm1732_vm6, %v2439_v0, %v20487_v31  ;;  %v1813_v16 = vsel %vm1781_vm7, %v1764_v29, %v20489_v40  ;;  %v2438_v57 = vsel %vm1683_vm5, %v2390_v60, %v20488_v21  ;;  %v20496_v21 = vld [vmem:[#allocation39_spill] sm:$0xff] }
 0x278   :  { %v1619_v59 = vsel %vm19490_vm3, %v1570_v58, %v20490_v9  ;;  %2633 = vrot.lane.b32.xlu0 %v12316_v53, %s10605_s0  ;;  %v2057_v52 = vsel %vm19553_vm12, %v2008_v38, %v20487_v31  ;;  %v2248_v23 = vsel %vm1487_vm1, %v2200_v1, %v20489_v40  ;;  %v1862_v0 = vsel %vm1830_vm8, %v1813_v16, %v20490_v9  ;;  %v12813_v28 = vpop.permute.xlu1 %1142  ;;  %v20493_v53 = vld [vmem:[#allocation157_spill] sm:$0xff]  ;;  %v12824_v16 = vpop.permute.xlu0 %1126 }
 0x279   :  { %v1620_v29 = vsel %vm19490_vm3, %v1571_v15, %v20491_v12  ;;  %v1863_v58 = vsel %vm1830_vm8, %v1814_v39, %v20491_v12  ;;  %20492 = vst [vmem:[#allocation111_spill] sm:$0xff] %v12813_v28  ;;  %v12817_v60 = vsel %vm1781_vm7, %v2484_v11, %v20493_v53  ;;  %v2297_v31 = vsel %vm19492_vm2, %v2249_v42, %v20491_v12  ;;  %v20494_v38 = vld [vmem:[#allocation9_spill] sm:$0xff] }
 0x27a   :  { %v1439_v1 = vsel %vm1438_vm0, %v20494_v38, %v11546_v45  ;;  %20495 = vst [vmem:[#allocation113_spill] sm:$0xff] %v12824_v16  ;;  %v2486_v15 = vsel %vm1732_vm6, %v2438_v57, %v20489_v40  ;;  %v2296_v39 = vsel %vm19492_vm2, %v2248_v23, %v20490_v9  ;;  %v1668_v28 = vsel %vm1634_vm4, %v1619_v59, %v20496_v21  ;;  %v20497_v45 = vld [vmem:[#allocation42_spill] sm:$0xff] }
 0x27b   :  { %v1488_v11 = vsel %vm1487_vm1, %v1439_v1, %v11620_v49  ;;  %808 = vbcast.lane.b32.xlu1 %v20483_v19, 259  ;;  %v12837_v42 = vsel %vm1781_vm7, %v2486_v15, %v20490_v9  ;;  %v1669_v53 = vsel %vm1634_vm4, %v1620_v29, %v20497_v45  ;;  %v1912_v57 = vsel %vm19495_vm9, %v1863_v58, %v20497_v45  ;;  %v20498_v1 = vld [vmem:[#allocation161_spill] sm:$0xff]  ;;  %v20505_v40 = vld [vmem:[#allocation162_spill] sm:$0xff] }
 0x27c   :  { %v1911_v23 = vsel %vm19495_vm9, %v1862_v0, %v20496_v21  ;;  %v1537_v59 = vsel %vm19492_vm2, %v1488_v11, %v11761_v10  ;;  %2631 = vrot.lane.b32.xlu0 %v12383_v44, %s10605_s0  ;;  %v12851_v38 = vpop.permute.xlu1 %924  ;;  %v2345_v29 = vsel %vm19490_vm3, %v2297_v31, %v20497_v45  ;;  %v12857_v58 = vsel %vm1781_vm7, %v2487_v17, %v20491_v12  ;;  %v12868_v15 = vpop.permute.xlu0 %900  ;;  %v20500_v17 = vld [vmem:[#allocation163_spill] sm:$0xff] }
 0x27d   :  { %v1586_v49 = vsel %vm19490_vm3, %v1537_v59, %v11931_v24  ;;  %v2106_v0 = vsel %vm2075_vm13, %v2057_v52, %v20491_v12  ;;  %v1475_v10 = vsel %vm1438_vm0, %v20497_v45, %v20498_v1  ;;  %v1718_v44 = vsel %vm1683_vm5, %v1669_v53, %v20498_v1  ;;  %20499 = vst [vmem:[#allocation114_spill] sm:$0xff] %v12868_v15  ;;  %v20510_v15 = vld [vmem:[#allocation6_spill] sm:$0xff] }
 0x27e   :  { %v1961_v24 = vsel %vm1928_vm10, %v1912_v57, %v20498_v1  ;;  %v2393_v31 = vsel %vm1634_vm4, %v2345_v29, %v20498_v1  ;;  %v1474_v11 = vsel %vm1438_vm0, %v20496_v21, %v20500_v17  ;;  %v1717_v12 = vsel %vm1683_vm5, %v1668_v28, %v20500_v17  ;;  %v20501_v57 = vld [vmem:[#allocation160_spill] sm:$0xff] }
 0x27f   :  { %v1960_v52 = vsel %vm1928_vm10, %v1911_v23, %v20500_v17  ;;  %428 = vbcast.lane.b32.xlu1 %v20483_v19, 265  ;;  %v2344_v53 = vsel %vm19490_vm3, %v2296_v39, %v20496_v21  ;;  %v2203_v59 = vsel %vm1438_vm0, %v20498_v1, %v20501_v57  ;;  %v20502_v29 = vld [vmem:[#allocation8_spill] sm:$0xff]  ;;  %v12893_v23 = vsel %vm19583_vm14, %v2106_v0, %v20497_v45 }
 0x280   :  { %v1635_v9 = vsel %vm1634_vm4, %v1586_v49, %v20502_v29  ;;  %2635 = vrot.lane.b32.xlu0 %v12438_v2, %s10605_s0  ;;  %v2392_v28 = vsel %vm1634_vm4, %v2344_v53, %v20500_v17  ;;  %20503 = vst [vmem:[#allocation112_spill] sm:$0xff] %v12893_v23  ;;  %v1524_v39 = vsel %vm1487_vm1, %v1475_v10, %v20501_v57  ;;  %v12899_v1 = vpop.permute.xlu1 %1092  ;;  %v12912_v10 = vpop.permute.xlu0 %1158  ;;  %v20507_v23 = vld [vmem:[#allocation164_spill] sm:$0xff] }
 0x281   :  { %v1767_v21 = vsel %vm1732_vm6, %v1718_v44, %v20501_v57  ;;  %20504 = vst [vmem:[#allocation117_spill] sm:$0xff] %v12899_v1  ;;  %v2441_v49 = vsel %vm1683_vm5, %v2393_v31, %v20501_v57  ;;  %v2010_v2 = vsel %vm19554_vm11, %v1961_v24, %v20501_v57  ;;  %v2202_v53 = vsel %vm1438_vm0, %v20500_v17, %v20505_v40  ;;  %v20508_v31 = vld [vmem:[#allocation41_spill] sm:$0xff] }
 0x282   :  { %v1523_v45 = vsel %vm1487_vm1, %v1474_v11, %v20505_v40  ;;  %v1766_v0 = vsel %vm1732_vm6, %v1717_v12, %v20505_v40  ;;  %20506 = vst [vmem:[#allocation116_spill] sm:$0xff] %v12912_v10  ;;  %v2009_v44 = vsel %vm19554_vm11, %v1960_v52, %v20505_v40  ;;  %v1476_v1 = vsel %vm1438_vm0, %v20508_v31, %v20507_v23  ;;  %v20509_v24 = vld [vmem:[#allocation165_spill] sm:$0xff] }
 0x283   :  { %v1573_v57 = vsel %vm19492_vm2, %v1524_v39, %v20509_v24  ;;  %v1684_v17 = vsel %vm1683_vm5, %v1635_v9, %v11845_v6  ;;  %1000 = vbcast.lane.b32.xlu1 %v20483_v19, 260  ;;  %v2440_v11 = vsel %vm1683_vm5, %v2392_v28, %v20505_v40  ;;  %v1816_v12 = vsel %vm1781_vm7, %v1767_v21, %v20509_v24 }
 0x284   :  { %v2251_v52 = vsel %vm1487_vm1, %v2203_v59, %v20509_v24  ;;  %v1622_v10 = vsel %vm19490_vm3, %v1573_v57, %v11399_v63  ;;  %432 = vbcast.lane.b32.xlu0 %v20510_v15, 257  ;;  %v2489_v39 = vsel %vm1732_vm6, %v2441_v49, %v20509_v24  ;;  %v1572_v9 = vsel %vm19492_vm2, %v1523_v45, %v11362_v30  ;;  %v12942_v28 = vpop.permute.xlu1 %1212  ;;  %v12954_v16 = vpop.permute.xlu0 %1174 }
 0x285   :  { %v2299_v40 = vsel %vm19492_vm2, %v2251_v52, %v11399_v63  ;;  %v1441_v21 = vsel %vm1438_vm0, %v20502_v29, %v11845_v6  ;;  %20511 = vst [vmem:[#allocation118_spill] sm:$0xff] %v12942_v28  ;;  %v2059_v59 = vsel %vm19553_vm12, %v2010_v2, %v20509_v24  ;;  %v1815_v57 = vsel %vm1781_vm7, %v1766_v0, %v11362_v30  ;;  %v20513_v29 = vld [vmem:[#allocation44_spill] sm:$0xff]  ;;  %v20518_v28 = vld [vmem:[#allocation7_spill] sm:$0xff] }
 0x286   :  { %v1865_v49 = vsel %vm1830_vm8, %v1816_v12, %v11399_v63  ;;  %v1490_v45 = vsel %vm1487_vm1, %v1441_v21, %v11980_v4  ;;  %v1733_v52 = vsel %vm1732_vm6, %v1684_v17, %v11980_v4  ;;  %20512 = vst [vmem:[#allocation119_spill] sm:$0xff] %v12954_v16  ;;  %v2250_v6 = vsel %vm1487_vm1, %v2202_v53, %v11362_v30  ;;  %v20514_v17 = vld [vmem:[#allocation166_spill] sm:$0xff] }
 0x287   :  { %v1671_v2 = vsel %vm1634_vm4, %v1622_v10, %v20513_v29  ;;  %v1539_v0 = vsel %vm19492_vm2, %v1490_v45, %v12075_v14  ;;  %v1782_v24 = vsel %vm1781_vm7, %v1733_v52, %v12075_v14  ;;  %620 = vbcast.lane.b32.xlu1 %v20483_v19, 266  ;;  %v2347_v53 = vsel %vm19490_vm3, %v2299_v40, %v20513_v29 }
 0x288   :  { %v1588_v12 = vsel %vm19490_vm3, %v1539_v0, %v12253_v47  ;;  %v1831_v4 = vsel %vm1830_vm8, %v1782_v24, %v12253_v47  ;;  %2637 = vrot.lane.b32.xlu0 %v12467_v56, %s10605_s0  ;;  %v12975_v10 = vsel %vm1732_vm6, %v2440_v11, %v11362_v30  ;;  %v1525_v14 = vsel %vm1487_vm1, %v1476_v1, %v20514_v17  ;;  %v12984_v45 = vpop.permute.xlu1 %1114  ;;  %v12995_v52 = vpop.permute.xlu0 %1228  ;;  %v20517_v0 = vld [vmem:[#allocation13_spill] sm:$0xff] }
 0x289   :  { %v2204_v21 = vsel %vm1438_vm0, %v20507_v23, %v20514_v17  ;;  %v1914_v47 = vsel %vm19495_vm9, %v1865_v49, %v20513_v29  ;;  %20515 = vst [vmem:[#allocation125_spill] sm:$0xff] %v12984_v45  ;;  %v2108_v56 = vsel %vm2075_vm13, %v2059_v59, %v11399_v63  ;;  %v1477_v11 = vsel %vm1438_vm0, %v20513_v29, %v11390_v5 }
 0x28a   :  { %v1720_v40 = vsel %vm1683_vm5, %v1671_v2, %v11390_v5  ;;  %v1621_v1 = vsel %vm19490_vm3, %v1572_v9, %v11465_v62  ;;  %20516 = vst [vmem:[#allocation120_spill] sm:$0xff] %v12995_v52  ;;  %v2058_v49 = vsel %vm19553_vm12, %v2009_v44, %v11362_v30  ;;  %v1637_v24 = vsel %vm1634_vm4, %v1588_v12, %v20517_v0 }
 0x28b   :  { %v1880_v59 = vsel %vm19495_vm9, %v1831_v4, %v20517_v0  ;;  %440 = vbcast.lane.b32.xlu1 %v20518_v28, 257  ;;  %v13006_v45 = vsel %vm1781_vm7, %v2489_v39, %v11399_v63  ;;  %v2395_v9 = vsel %vm1634_vm4, %v2347_v53, %v11390_v5  ;;  %v13012_v2 = vsel %vm19492_vm2, %v1525_v14, %v11418_v36 }
 0x28c   :  { %v13016_v30 = vsel %vm1487_vm1, %v2204_v21, %v11418_v36  ;;  %624 = vbcast.lane.b32.xlu0 %v20510_v15, 258  ;;  %v13021_v44 = vsel %vm19583_vm14, %v2108_v56, %v20513_v29  ;;  %v1963_v63 = vsel %vm1928_vm10, %v1914_v47, %v11390_v5  ;;  %v1526_v39 = vsel %vm1487_vm1, %v1477_v11, %v11426_v18  ;;  %v13033_v14 = vpop.permute.xlu1 %1146  ;;  %v13042_v56 = vpop.permute.xlu0 %1130 }
 0x28d   :  { %20519 = vst [vmem:[#allocation121_spill] sm:$0xff] %v13021_v44  ;;  %v1769_v12 = vsel %vm1732_vm6, %v1720_v40, %v11426_v18  ;;  %v1670_v4 = vsel %vm1634_vm4, %v1621_v1, %v20508_v31  ;;  %v2298_v53 = vsel %vm19492_vm2, %v2250_v6, %v11465_v62  ;;  %20520 = vst [vmem:[#allocation134_spill] sm:$0xff] %v13033_v14  ;;  %v20524_v44 = vld [vmem:[#allocation86_spill] sm:$0xff] }
 0x28e   :  { %v2205_v29 = vsel %vm1438_vm0, %v11390_v5, %v11426_v18  ;;  %v1686_v21 = vsel %vm1683_vm5, %v1637_v24, %v12024_v25  ;;  %v1929_v47 = vsel %vm1928_vm10, %v1880_v59, %v12024_v25  ;;  %20521 = vst [vmem:[#allocation122_spill] sm:$0xff] %v13042_v56  ;;  %v2443_v11 = vsel %vm1683_vm5, %v2395_v9, %v11426_v18  ;;  %v20522_v59 = vld [vmem:[#allocation11_spill] sm:$0xff] }
 0x28f   :  { %v1575_v6 = vsel %vm19492_vm2, %v1526_v39, %v11453_v26  ;;  %v1818_v40 = vsel %vm1781_vm7, %v1769_v12, %v11453_v26  ;;  %v1864_v5 = vsel %vm1830_vm8, %v1815_v57, %v11465_v62  ;;  %816 = vbcast.lane.b32.xlu1 %v20510_v15, 259  ;;  %v13055_v1 = vsel %vm19554_vm11, %v1963_v63, %v11426_v18  ;;  %v20523_v63 = vld [vmem:[#allocation89_spill] sm:$0xff] }
 0x290   :  { %v1719_v24 = vsel %vm1683_vm5, %v1670_v4, %v20507_v23  ;;  %v1440_v9 = vsel %vm1438_vm0, %v20522_v59, %v11797_v41  ;;  %812 = vbcast.lane.b32.xlu0 %v20483_v19, 267  ;;  %v2346_v39 = vsel %vm19490_vm3, %v2298_v53, %v20508_v31  ;;  %v2107_v57 = vsel %vm2075_vm13, %v2058_v49, %v11465_v62  ;;  %v13076_v59 = vpop.permute.xlu1 %1244 }
 0x291   :  { %v1489_v12 = vsel %vm1487_vm1, %v1440_v9, %v11925_v50  ;;  %v1443_v18 = vsel %vm1438_vm0, %v20517_v0, %v12024_v25  ;;  %v1735_v4 = vsel %vm1732_vm6, %v1686_v21, %v20523_v63  ;;  %v1978_v41 = vsel %vm19554_vm11, %v1929_v47, %v20523_v63  ;;  %v13086_v0 = vpop.permute.xlu0 %1196 }
 0x292   :  { %v1538_v53 = vsel %vm19492_vm2, %v1489_v12, %v20524_v44  ;;  %v1492_v49 = vsel %vm1487_vm1, %v1443_v18, %v20523_v63  ;;  %v1784_v50 = vsel %vm1781_vm7, %v1735_v4, %v12346_v33  ;;  %v2027_v25 = vsel %vm19553_vm12, %v1978_v41, %v12346_v33  ;;  %20525 = vst [vmem:[#allocation123_spill] sm:$0xff] %v13086_v0 }
 0x293   :  { %v1587_v21 = vsel %vm19490_vm3, %v1538_v53, %v12202_v37  ;;  %v1541_v47 = vsel %vm19492_vm2, %v1492_v49, %v12346_v33  ;;  %v1833_v44 = vsel %vm1830_vm8, %v1784_v50, %v12463_v20  ;;  %v2076_v9 = vsel %vm2075_vm13, %v2027_v25, %v12463_v20  ;;  %632 = vbcast.lane.b32.xlu1 %v20518_v28, 258  ;;  %v20528_v53 = vld [vmem:[#allocation15_spill] sm:$0xff] }
 0x294   :  { %v1913_v12 = vsel %vm19495_vm9, %v1864_v5, %v20508_v31  ;;  %v1768_v18 = vsel %vm1732_vm6, %v1719_v24, %v20514_v17  ;;  %v1590_v37 = vsel %vm19490_vm3, %v1541_v47, %v12463_v20  ;;  %436 = vbcast.lane.b32.xlu0 %v20510_v15, 265  ;;  %v2253_v33 = vsel %vm1487_vm1, %v2205_v29, %v11453_v26  ;;  %v13106_v63 = vpop.permute.xlu1 %1162  ;;  %v20527_v20 = vld [vmem:[#allocation10_spill] sm:$0xff] }
 0x295   :  { %20526 = vst [vmem:[#allocation124_spill] sm:$0xff] %v13106_v63  ;;  %v2491_v4 = vsel %vm1732_vm6, %v2443_v11, %v11453_v26  ;;  %v13113_v5 = vsel %vm1781_vm7, %v12975_v10, %v11465_v62  ;;  %v2394_v24 = vsel %vm1634_vm4, %v2346_v39, %v20507_v23  ;;  %v1636_v41 = vsel %vm1634_vm4, %v1587_v21, %v20527_v20  ;;  %v2606_v50 = vpop.permute.xlu0 %2605  ;;  %v20530_v21 = vld [vmem:[#allocation167_spill] sm:$0xff] }
 0x296   :  { %v1882_v49 = vsel %vm19495_vm9, %v1833_v44, %v20528_v53  ;;  %v2125_v29 = vsel %vm19583_vm14, %v2076_v9, %v20528_v53  ;;  %v13125_v11 = vsel %vm19583_vm14, %v2107_v57, %v20508_v31  ;;  %v1817_v62 = vsel %vm1781_vm7, %v1768_v18, %v11418_v36  ;;  %v20531_v57 = vld [vmem:[#allocation168_spill] sm:$0xff] }
 0x297   :  { %20529 = vst [vmem:[#allocation126_spill] sm:$0xff] %v13125_v11  ;;  %v1639_v10 = vsel %vm1634_vm4, %v1590_v37, %v20528_v53  ;;  %v2750_v39 = vsel %vm19482_vm15, %v2125_v29, %v2606_v50  ;;  %1008 = vbcast.lane.b32.xlu1 %v20510_v15, 260  ;;  %v1962_v25 = vsel %vm1928_vm10, %v1913_v12, %v20507_v23  ;;  %v20532_v37 = vld [vmem:[#allocation87_spill] sm:$0xff]  ;;  %v20533_v23 = vld [vmem:[#allocation54_spill] sm:$0xff]  ;;  %vm2912_vm15 = vcmask 203776   ;;  %v20535_v29 = vld [vmem:[#allocation25_spill] sm:$0xff] }
 0x298   :  { %v1624_v47 = vsel %vm19490_vm3, %v1575_v6, %v20530_v21  ;;  %v1867_v31 = vsel %vm1830_vm8, %v1818_v40, %v20530_v21  ;;  %v1623_v44 = vsel %vm19490_vm3, %v13012_v2, %v20531_v57  ;;  %v2846_v9 = vcombine.high %v2750_v39, %v2750_v39  ;;  %1004 = vbcast.lane.b32.xlu0 %v20483_v19, 268  ;;  %v13149_v6 = vpop.permute.xlu1 %1178 }
 0x299   :  { %v2301_v18 = vsel %vm19492_vm2, %v2253_v33, %v20530_v21  ;;  %v1685_v53 = vsel %vm1683_vm5, %v1636_v41, %v20532_v37  ;;  %v1931_v12 = vsel %vm1928_vm10, %v1882_v49, %v20533_v23  ;;  %20534 = vst [vmem:[#allocation127_spill] sm:$0xff] %v13149_v6  ;;  %v1866_v40 = vsel %vm1830_vm8, %v1817_v62, %v20531_v57  ;;  %v13157_v33 = vpop.permute.xlu0 %1260  ;;  %v20537_v49 = vld [vmem:[#allocation43_spill] sm:$0xff]  ;;  %v20538_v6 = vld [vmem:[#allocation46_spill] sm:$0xff] }
 0x29a   :  { %v1734_v2 = vsel %vm1732_vm6, %v1685_v53, %v20535_v29  ;;  %v1688_v19 = vsel %vm1683_vm5, %v1639_v10, %v20533_v23  ;;  %v2876_v50 = vcombine.low %v2750_v39, %v2846_v9  ;;  %20536 = vst [vmem:[#allocation130_spill] sm:$0xff] %v13157_v33  ;;  %v2300_v41 = vsel %vm19492_vm2, %v13016_v30, %v20531_v57  ;;  %v20547_v33 = vld [vmem:[#allocation55_spill] sm:$0xff] }
 0x29b   :  { %v1672_v11 = vsel %vm1634_vm4, %v1623_v44, %v20537_v49  ;;  %v13166_v63 = vsel %vm1634_vm4, %v1624_v47, %v20538_v6  ;;  %v1783_v62 = vsel %vm1781_vm7, %v1734_v2, %v12427_v43  ;;  %2641 = vrot.lane.b32.xlu1 %v12515_v8, %s10605_s0  ;;  %v13174_v10 = vsel %vm19495_vm9, %v1867_v31, %v20538_v6  ;;  %v20539_v47 = vld [vmem:[#allocation53_spill] sm:$0xff] }
 0x29c   :  { %v1832_v30 = vsel %vm1830_vm8, %v1783_v62, %v12550_v55  ;;  %v2913_v39 = vsel %vm2912_vm15, %v2876_v50, 0  ;;  %2639 = vrot.lane.b32.xlu0 %v12542_v35, %s10605_s0  ;;  %v1980_v44 = vsel %vm19554_vm11, %v1931_v12, %v20539_v47  ;;  %v1915_v9 = vsel %vm19495_vm9, %v1866_v40, %v20537_v49  ;;  %v13189_v31 = vpop.permute.xlu1 %1200  ;;  %v20542_v2 = vld [vmem:[#allocation169_spill] sm:$0xff]  ;;  %v20544_v62 = vld [vmem:[#allocation12_spill] sm:$0xff] }
 0x29d   :  { %v1737_v8 = vsel %vm1732_vm6, %v1688_v19, %v20539_v47  ;;  %v13187_v53 = vand.u32 4294901760, %v2913_v39  ;;  %20541 = vst [vmem:[#allocation133_spill] sm:$0xff] %v13189_v31  ;;  %v2442_v23 = vsel %vm1683_vm5, %v2394_v24, %v20514_v17  ;;  %v13196_v35 = vsel %vm1438_vm0, %v20537_v49, %v20542_v2  ;;  %v13198_v50 = vpop.permute.xlu0 %1282  ;;  %v20545_v31 = vld [vmem:[#allocation56_spill] sm:$0xff] }
 0x29e   :  { %20543 = vst [vmem:[#allocation136_spill] sm:$0xff] %v13198_v50  ;;  %v13202_v12 = vsel %vm1781_vm7, %v2491_v4, %v20530_v21  ;;  %v2348_v40 = vsel %vm19490_vm3, %v2300_v41, %v20537_v49  ;;  %v13208_v19 = vsel %vm19490_vm3, %v2301_v18, %v20538_v6  ;;  %v1721_v24 = vsel %vm1683_vm5, %v1672_v11, %v20542_v2 }
 0x29f   :  { %20540 = vst [vmem:[#allocation132_spill] sm:$0xff] %v13187_v53  ;;  %v1881_v47 = vsel %vm19495_vm9, %v1832_v30, %v20544_v62  ;;  %824 = vbcast.lane.b32.xlu1 %v20518_v28, 259  ;;  %v2029_v50 = vsel %vm19553_vm12, %v1980_v44, %v20545_v31  ;;  %v13218_v4 = vsub.f32 %v2913_v39, %v13187_v53 }
 0x2a0   :  { %v13222_v41 = vsel %vm1928_vm10, %v1915_v9, %v20542_v2  ;;  %v1786_v18 = vsel %vm1781_vm7, %v1737_v8, %v20545_v31  ;;  %v1930_v11 = vsel %vm1928_vm10, %v1881_v47, %v12592_v46  ;;  %628 = vbcast.lane.b32.xlu0 %v20510_v15, 266  ;;  %v2490_v30 = vsel %vm1732_vm6, %v2442_v23, %v11418_v36  ;;  %v13236_v9 = vpop.permute.xlu1 %1314 }
 0x2a1   :  { %20546 = vst [vmem:[#allocation137_spill] sm:$0xff] %v13218_v4  ;;  %v1442_v39 = vsel %vm1438_vm0, %v20527_v20, %v20532_v37  ;;  %v1979_v44 = vsel %vm19554_vm11, %v1930_v11, %v12694_v54  ;;  %v19491_v53 = vand.u32 4294901760, %v13218_v4  ;;  %v2011_v8 = vsel %vm19554_vm11, %v1962_v25, %v20514_v17  ;;  %v13245_v47 = vpop.permute.xlu0 %1298 }
 0x2a2   :  { %v1491_v31 = vsel %vm1487_vm1, %v1442_v39, %v20535_v29  ;;  %v2028_v23 = vsel %vm19553_vm12, %v1979_v44, %v12783_v13  ;;  %v2078_v20 = vsel %vm2075_vm13, %v2029_v50, %v20547_v33  ;;  %v2061_v37 = vsel %vm19553_vm12, %v13055_v1, %v11453_v26 }
 0x2a3   :  { %v1540_v11 = vsel %vm19492_vm2, %v1491_v31, %v12427_v43  ;;  %v1835_v17 = vsel %vm1830_vm8, %v1786_v18, %v20547_v33  ;;  %v2077_v25 = vsel %vm2075_vm13, %v2028_v23, %v12851_v38  ;;  %1016 = vbcast.lane.b32.xlu1 %v20518_v28, 260  ;;  %v3061_v29 = vsub.f32 %v13218_v4, %v19491_v53  ;;  %v20548_v18 = vld [vmem:[#allocation17_spill] sm:$0xff]  ;;  %v20549_v31 = vld [vmem:[#allocation79_spill] sm:$0xff] }
 0x2a4   :  { %v1589_v50 = vsel %vm19490_vm3, %v1540_v11, %v12550_v55  ;;  %820 = vbcast.lane.b32.xlu0 %v20510_v15, 267  ;;  %v2396_v26 = vsel %vm1634_vm4, %v2348_v40, %v20542_v2  ;;  %v2060_v43 = vsel %vm19553_vm12, %v2011_v8, %v11418_v36  ;;  %v2110_v1 = vsel %vm2075_vm13, %v2061_v37, %v20530_v21  ;;  %v2610_v33 = vpop.permute.xlu1 %2609  ;;  %v10601_v55 = vld [vmem:[%s19238_s1] sm:$0xff]  ;;  %v10602_v36 = vld [vmem:[%s19238_s1 + $0x8] sm:$0xff]  ;;  %v20552_v40 = vld [vmem:[#allocation80_spill] sm:$0xff] }
 0x2a5   :  { %v2127_v39 = vsel %vm19583_vm14, %v2078_v20, %v20548_v18  ;;  %v3062_v44 = vand.u32 4294901760, %v3061_v29  ;;  %v20550_v23 = vand.u32 4294901760, %v20549_v31  ;;  %v20553_v8 = vand.u32 4294901760, %v20552_v40  ;;  %v20556_v20 = vld [vmem:[#allocation14_spill] sm:$0xff]  ;;  %v2608_v53 = vpop.permute.xlu0 %2607 }
 0x2a6   :  { %vm20555_vm3 = vcmask 130048   ;;  %v2126_v29 = vsel %vm19583_vm14, %v2077_v25, %v20556_v20  ;;  %v1884_v31 = vsel %vm19495_vm9, %v1835_v17, %v20548_v18  ;;  %v20559_v18 = vld [vmem:[#allocation57_spill] sm:$0xff] }
 0x2a7   :  { %v13278_v11 = vsub.f32 %v10601_v55, %v20550_v23  ;;  %v13285_v21 = vsub.f32 %v10602_v36, %v20553_v8  ;;  %v13288_v37 = vsel %vm20555_vm3, %v2127_v39, %v2610_v33  ;;  %v13296_v55 = vsel %vm1781_vm7, %v2490_v30, %v20531_v57  ;;  %vm20557_vm2 = vmmov %vm20555_vm3  ;;  %9763 = vmatprep.mubr.f32.mxu0 %v3062_v44 }
 0x2a8   :  { %v1638_v23 = vsel %vm1634_vm4, %v1589_v50, %v20544_v62  ;;  %v2751_v36 = vsel %vm20557_vm2, %v2126_v29, %v2608_v53  ;;  %1012 = vbcast.lane.b32.xlu1 %v20510_v15, 268  ;;  %2645 = vrot.lane.b32.xlu0 %v12608_v3, %s10605_s0  ;;  %v2109_v30 = vsel %vm2075_vm13, %v2060_v43, %v20531_v57  ;;  %v13317_v50 = vpop.permute.xlu1 %1232  ;;  %v20560_v57 = vld [vmem:[#allocation170_spill] sm:$0xff]  ;;  %vm20569_vm2 = vcmask 23552  }
 0x2a9   :  { %20551 = vst [vmem:[#allocation138_spill] sm:$0xff] %v13278_v11  ;;  %20554 = vst [vmem:[#allocation143_spill] sm:$0xff] %v13285_v21  ;;  %v19494_v33 = vand.u32 4294901760, %v13278_v11  ;;  %v19493_v25 = vand.u32 4294901760, %v13285_v21  ;;  %v1687_v39 = vsel %vm1683_vm5, %v1638_v23, %v12592_v46  ;;  %v2877_v17 = vcombine.low %v2751_v36, %v13288_v37 }
 0x2aa   :  { %v13313_v53 = vsel %vm19583_vm14, %v2110_v1, %v20538_v6  ;;  %v1736_v15 = vsel %vm1732_vm6, %v1687_v39, %v12694_v54  ;;  %v1933_v44 = vsel %vm1928_vm10, %v1884_v31, %v20559_v18  ;;  %v1527_v43 = vsel %vm1487_vm1, %v13196_v35, %v20560_v57  ;;  %v13335_v31 = vpop.permute.xlu0 %1216  ;;  %vm20572_vm3 = vmmov %vm20569_vm2 }
 0x2ab   :  { %20558 = vst [vmem:[#allocation144_spill] sm:$0xff] %v13313_v53  ;;  %v3422_v40 = vsub.f32 %v13278_v11, %v19494_v33  ;;  %v3429_v3 = vsub.f32 %v13285_v21, %v19493_v25  ;;  %v1770_v1 = vsel %vm1732_vm6, %v1721_v24, %v20560_v57  ;;  %v1785_v8 = vsel %vm1781_vm7, %v1736_v15, %v12783_v13  ;;  %v20562_v24 = vld [vmem:[#allocation171_spill] sm:$0xff]  ;;  %v20602_v21 = vld [vmem:[#allocation82_spill] sm:$0xff] }
 0x2ac   :  { %v2915_v29 = vsel %vm2912_vm15, %v2877_v17, 0  ;;  %v2206_v23 = vsel %vm1438_vm0, %v20542_v2, %v20560_v57  ;;  %v1834_v36 = vsel %vm1830_vm8, %v1785_v8, %v12851_v38  ;;  %444 = vbcast.lane.b32.xlu1 %v20518_v28, 265  ;;  %v2444_v35 = vsel %vm1683_vm5, %v2396_v26, %v20560_v57  ;;  %2643 = vrot.lane.b32.xlu0 %v12617_v7, %s10605_s0  ;;  %v20563_v15 = vld [vmem:[#allocation59_spill] sm:$0xff] }
 0x2ad   :  { %v13342_v39 = vand.u32 4294901760, %v2915_v29  ;;  %v1479_v17 = vsel %vm1438_vm0, %v20538_v6, %v20562_v24  ;;  %v1982_v2 = vsel %vm19554_vm11, %v1933_v44, %v20563_v15  ;;  %v3423_v18 = vand.u32 4294901760, %v3422_v40  ;;  %v13363_v6 = vpop.permute.xlu1 %1248 }
 0x2ae   :  { %v3430_v25 = vand.u32 4294901760, %v3429_v3  ;;  %v1722_v8 = vsel %vm1683_vm5, %v13166_v63, %v20562_v24  ;;  %v1965_v26 = vsel %vm1928_vm10, %v13174_v10, %v20562_v24  ;;  %v2397_v7 = vsel %vm1634_vm4, %v13208_v19, %v20562_v24  ;;  %v13370_v40 = vpop.permute.xlu0 %1330 }
 0x2af   :  { %20561 = vst [vmem:[#allocation147_spill] sm:$0xff] %v13342_v39  ;;  %v13361_v33 = vsub.f32 %v2915_v29, %v13342_v39  ;;  %v1883_v44 = vsel %vm19495_vm9, %v1834_v36, %v20556_v20  ;;  %v13374_v63 = vsel %vm19583_vm14, %v2109_v30, %v20537_v49  ;;  %v2013_v10 = vsel %vm19554_vm11, %v13222_v41, %v20560_v57  ;;  %v20566_v29 = vld [vmem:[#allocation173_spill] sm:$0xff] }
 0x2b0   :  { %v10135_v3 = vpack.c.bf16 %v3430_v25, %v3423_v18  ;;  %20565 = vst [vmem:[#allocation149_spill] sm:$0xff] %v13374_v63  ;;  %v1528_v15 = vsel %vm1487_vm1, %v1479_v17, %v20566_v29  ;;  %v1444_v19 = vsel %vm1438_vm0, %v20544_v62, %v12592_v46  ;;  %828 = vbcast.lane.b32.xlu1 %v20518_v28, 267  ;;  %v20567_v25 = vld [vmem:[#allocation61_spill] sm:$0xff]  ;;  %v20568_v46 = vld [vmem:[#allocation2_spill] sm:$0xff]  ;;  %vm20573_vm9 = vcmask 31744  }
 0x2b1   :  { %20564 = vst [vmem:[#allocation148_spill] sm:$0xff] %v13361_v33  ;;  %v19498_v36 = vand.u32 4294901760, %v13361_v33  ;;  %v2031_v18 = vsel %vm19553_vm12, %v1982_v2, %v20567_v25  ;;  %v1771_v49 = vsel %vm1732_vm6, %v1722_v8, %v20566_v29  ;;  %v2207_v41 = vsel %vm1438_vm0, %v20562_v24, %v20566_v29  ;;  %636 = vbcast.lane.b32.xlu0 %v20518_v28, 266  ;;  %v20570_v17 = vld [vmem:[#allocation58_spill] sm:$0xff]  ;;  %v13402_v8 = vpop.permute.xlu1 %1318 }
 0x2b2   :  { %v1493_v30 = vsel %vm1487_vm1, %v1444_v19, %v12694_v54  ;;  %10136 = vmatprep.subr.bf16.mxu0 %v10135_v3  ;;  %v2255_v62 = vsel %vm1487_vm1, %v2207_v41, %v20568_v46  ;;  %v1932_v2 = vsel %vm1928_vm10, %v1883_v44, %v20570_v17  ;;  %v20571_v25 = vld [vmem:[#allocation22_spill] sm:$0xff]  ;;  %v13411_v4 = vpop.permute.xlu0 %1302  ;;  %v20574_v41 = vld [vmem:[#allocation63_spill] sm:$0xff]  ;;  %v2445_v44 = vsel %vm1683_vm5, %v2397_v7, %v20566_v29  ;;  %v20577_v7 = vld [vmem:[#allocation60_spill] sm:$0xff] }
 0x2b3   :  { %v1542_v57 = vsel %vm20569_vm2, %v1493_v30, %v12783_v13  ;;  %v3071_v24 = vsub.f32 %v13361_v33, %v19498_v36  ;;  %v2303_v54 = vsel %vm20572_vm3, %v2255_v62, %v20571_v25  ;;  %v2080_v13 = vsel %vm2075_vm13, %v2031_v18, %v20574_v41 }
 0x2b4   :  { %v1591_v19 = vsel %vm20573_vm9, %v1542_v57, %v12851_v38  ;;  %v1577_v30 = vsel %vm20569_vm2, %v1528_v15, %v20568_v46  ;;  %v13421_v36 = vsel %vm1781_vm7, %v1771_v49, %v20568_v46  ;;  %1020 = vbcast.lane.b32.xlu1 %v20518_v28, 268  ;;  %v2014_v38 = vsel %vm19554_vm11, %v1965_v26, %v20566_v29  ;;  %v20575_v57 = vld [vmem:[#allocation69_spill] sm:$0xff]  ;;  %vm20576_vm9 = vmmov %vm20569_vm2  ;;  %v20578_v28 = vld [vmem:[#allocation72_spill] sm:$0xff] }
 0x2b5   :  { %v3072_v62 = vand.u32 4294901760, %v3071_v24  ;;  %v1576_v33 = vsel %vm20576_vm9, %v1527_v43, %v20575_v57  ;;  %v2254_v18 = vsel %vm1487_vm1, %v2206_v23, %v20575_v57  ;;  %2649 = vrot.lane.b32.xlu0 %v12732_v27, %s10605_s0  ;;  %v1981_v15 = vsel %vm19554_vm11, %v1932_v2, %v20577_v7  ;;  %v20579_v24 = vld [vmem:[#allocation48_spill] sm:$0xff]  ;;  %v2614_v43 = vpop.permute.xlu1 %2613  ;;  %v20580_v29 = vld [vmem:[#allocation19_spill] sm:$0xff] }
 0x2b6   :  { %v2493_v49 = vsel %vm1732_vm6, %v2445_v44, %v20568_v46  ;;  %v1481_v41 = vsel %vm1438_vm0, %v20579_v24, %v20578_v28  ;;  %v1640_v26 = vsel %vm1634_vm4, %v1591_v19, %v20556_v20  ;;  %v2129_v23 = vsel %vm19583_vm14, %v2080_v13, %v20580_v29  ;;  %v20582_v44 = vld [vmem:[#allocation73_spill] sm:$0xff]  ;;  %v13452_v63 = vpop.permute.xlu0 %1346  ;;  %v20593_v29 = vld [vmem:[#allocation20_spill] sm:$0xff] }
 0x2b7   :  { %9764 = vmatmul.mubr.f32.vlgmr.msra.gmra.mrb[0].mxu0 %v3072_v62  ;;  %vm20581_vm3 = vcmask 31744   ;;  %v13447_v2 = vsel %vm1781_vm7, %v1770_v1, %v20575_v57  ;;  %v2302_v39 = vsel %vm20569_vm2, %v2254_v18, %v20582_v44  ;;  %vm20583_vm9 = vcmask 130048   ;;  %v20586_v18 = vld [vmem:[#allocation71_spill] sm:$0xff] }
 0x2b8   :  { %v2351_v27 = vsel %vm20581_vm3, %v2303_v54, %v20579_v24  ;;  %v2754_v53 = vsel %vm20583_vm9, %v2129_v23, %v2614_v43  ;;  %v2492_v20 = vsel %vm1732_vm6, %v2444_v35, %v20575_v57  ;;  %10138 = vmatpush3.bf16.msra.mxu0 %v10135_v3  ;;  %2651 = vrot.lane.b32.xlu1 %v12817_v60, %s10605_s0  ;;  %v20584_v54 = vld [vmem:[#allocation62_spill] sm:$0xff]  ;;  %vm20590_vm2 = vmmov %vm20581_vm3  ;;  %v20592_v43 = vld [vmem:[#allocation64_spill] sm:$0xff] }
 0x2b9   :  { %v2848_v19 = vcombine.high %v2754_v53, %v2754_v53  ;;  %v2030_v13 = vsel %vm19553_vm12, %v1981_v15, %v20584_v54  ;;  %v13462_v1 = vsel %vm19553_vm12, %v2014_v38, %v20568_v46  ;;  %v13466_v62 = vsel %vm19553_vm12, %v2013_v10, %v20575_v57  ;;  %2647 = vrot.lane.b32.xlu0 %v12684_v22, %s10605_s0  ;;  %v13485_v57 = vpop.permute.xlu1 %1334  ;;  %vm20591_vm9 = vmmov %vm20590_vm2 }
 0x2ba   :  { %20585 = vst [vmem:[#allocation5_spill] sm:$0xff] %v13462_v1  ;;  %v2209_v35 = vsel %vm1438_vm0, %v20578_v28, %v20586_v18  ;;  %v13473_v3 = vsel %vm1487_vm1, %v1481_v41, %v20586_v18  ;;  %v1689_v60 = vsel %vm1683_vm5, %v1640_v26, %v20570_v17  ;;  %v2399_v46 = vsel %vm1634_vm4, %v2351_v27, %v20578_v28  ;;  %v20589_v41 = vld [vmem:[#allocation45_spill] sm:$0xff]  ;;  %v13497_v26 = vpop.permute.xlu0 %1264 }
 0x2bb   :  { %20587 = vst [vmem:[#allocation153_spill] sm:$0xff] %v13473_v3  ;;  %v13483_v10 = vsel %vm20581_vm3, %v1576_v33, %v20582_v44  ;;  %v2879_v38 = vcombine.low %v2754_v53, %v2848_v19  ;;  %v13489_v15 = vsel %vm1781_vm7, %v2492_v20, %v20582_v44  ;;  %v2350_v17 = vsel %vm20590_vm2, %v2302_v39, %v20589_v41  ;;  %v20594_v27 = vld [vmem:[#allocation77_spill] sm:$0xff]  ;;  %v20620_v41 = vld [vmem:[#allocation104_spill] sm:$0xff] }
 0x2bc   :  { %20588 = vst [vmem:[#allocation154_spill] sm:$0xff] %v13483_v10  ;;  %v13495_v22 = vsel %vm20591_vm9, %v1577_v30, %v20571_v25  ;;  %v2079_v33 = vsel %vm2075_vm13, %v2030_v13, %v20592_v43  ;;  %v2398_v53 = vsel %vm1634_vm4, %v2350_v17, %v20593_v29  ;;  %v13505_v23 = vsel %vm1781_vm7, %v2493_v49, %v20571_v25  ;;  %v20595_v13 = vld [vmem:[#allocation78_spill] sm:$0xff] }
 0x2bd   :  { %v2257_v20 = vsel %vm1487_vm1, %v2209_v35, %v20594_v27  ;;  %v1738_v39 = vsel %vm1732_vm6, %v1689_v60, %v20577_v7  ;;  %v2919_v30 = vsel %vm2912_vm15, %v2879_v38, 0  ;;  %2655 = vrot.lane.b32.xlu1 %v12837_v42, %s10605_s0  ;;  %v2447_v19 = vsel %vm1683_vm5, %v2399_v46, %v20586_v18  ;;  %2653 = vrot.lane.b32.xlu0 %v12752_v61, %s10605_s0  ;;  %v20597_v60 = vld [vmem:[#allocation84_spill] sm:$0xff]  ;;  %v20600_v46 = vld [vmem:[#allocation93_spill] sm:$0xff]  ;;  %v2612_v1 = vpop.permute.xlu1 %2611 }
 0x2be   :  { %v2208_v17 = vsel %vm1438_vm0, %v20593_v29, %v20595_v13  ;;  %v13519_v49 = vand.u32 4294901760, %v2919_v30  ;;  %v2446_v7 = vsel %vm1683_vm5, %v2398_v53, %v20595_v13  ;;  %v2495_v35 = vsel %vm1732_vm6, %v2447_v19, %v20594_v27  ;;  %v20599_v38 = vld [vmem:[#allocation96_spill] sm:$0xff]  ;;  %v13543_v27 = vpop.permute.xlu0 %1368 }
 0x2bf   :  { %vm20598_vm3 = vcmask 23552   ;;  %v2210_v3 = vsel %vm1438_vm0, %v20600_v46, %v20599_v38  ;;  %v2847_v18 = vcombine.high %v13288_v37, %v13288_v37  ;;  %v20601_v29 = vld [vmem:[#allocation16_spill] sm:$0xff]  ;;  %v2256_v53 = vsel %vm1487_vm1, %v2208_v17, %v20602_v21  ;;  %v20606_v17 = vld [vmem:[#allocation91_spill] sm:$0xff] }
 0x2c0   :  { %20596 = vst [vmem:[#allocation159_spill] sm:$0xff] %v13519_v49  ;;  %v2305_v42 = vsel %vm20598_vm3, %v2257_v20, %v20597_v60  ;;  %v2128_v61 = vsel %vm19583_vm14, %v2079_v33, %v20601_v29  ;;  %v2258_v19 = vsel %vm1487_vm1, %v2210_v3, %v12415_v51  ;;  %v1787_v20 = vsel %vm1781_vm7, %v1738_v39, %v20584_v54  ;;  %vm20604_vm9 = vmmov %vm20598_vm3  ;;  %v20607_v39 = vld [vmem:[#allocation88_spill] sm:$0xff] }
 0x2c1   :  { %vm20603_vm2 = vcmask 130048   ;;  %v2306_v37 = vsel %vm20604_vm9, %v2258_v19, %v12604_v32  ;;  %v13548_v11 = vsub.f32 %v2919_v30, %v13519_v49  ;;  %2661 = vrot.lane.b32.xlu1 %v13006_v45, %s10605_s0  ;;  %v2494_v3 = vsel %vm1732_vm6, %v2446_v7, %v20602_v21  ;;  %2657 = vrot.lane.b32.xlu0 %v12857_v58, %s10605_s0  ;;  %v20609_v19 = vld [vmem:[#allocation50_spill] sm:$0xff]  ;;  %v20611_v45 = vld [vmem:[#allocation92_spill] sm:$0xff]  ;;  %v13572_v49 = vpop.permute.xlu1 %1350  ;;  %v20612_v21 = vld [vmem:[#allocation99_spill] sm:$0xff] }
 0x2c2   :  { %v2753_v13 = vsel %vm20603_vm2, %v2128_v61, %v2612_v1  ;;  %v2304_v54 = vsel %vm20598_vm3, %v2256_v53, %v20606_v17  ;;  %v20608_v1 = vld [vmem:[#allocation90_spill] sm:$0xff]  ;;  %vm20610_vm2 = vcmask 31744   ;;  %v1836_v7 = vsel %vm1830_vm8, %v1787_v20, %v20592_v43  ;;  %vm20613_vm9 = vmmov %vm20598_vm3 }
 0x2c3   :  { %20605 = vst [vmem:[#allocation157_spill] sm:$0xff] %v13548_v11  ;;  %v2878_v33 = vcombine.low %v2847_v18, %v2753_v13  ;;  %v2211_v61 = vsel %vm1438_vm0, %v20608_v1, %v20607_v39  ;;  %v2353_v30 = vsel %vm20610_vm2, %v2305_v42, %v20609_v19  ;;  %v13565_v18 = vsel %vm1781_vm7, %v2495_v35, %v20597_v60  ;;  %v13580_v35 = vpop.permute.xlu0 %1286  ;;  %v20615_v60 = vld [vmem:[#allocation49_spill] sm:$0xff]  ;;  %vm20616_vm3 = vmmov %vm20610_vm2  ;;  %v20617_v20 = vld [vmem:[#allocation94_spill] sm:$0xff] }
 0x2c4   :  { %v2259_v13 = vsel %vm1487_vm1, %v2211_v61, %v20611_v45  ;;  %v2542_v58 = vsel %vm1781_vm7, %v2494_v3, %v20606_v17  ;;  %v2401_v61 = vsel %vm1634_vm4, %v2353_v30, %v20608_v1  ;;  %v2354_v43 = vsel %vm20616_vm3, %v2306_v37, %v20615_v60  ;;  %v20619_v17 = vld [vmem:[#allocation47_spill] sm:$0xff] }
 0x2c5   :  { %v2917_v53 = vsel %vm2912_vm15, %v2878_v33, 0  ;;  %v2307_v42 = vsel %vm20613_vm9, %v2259_v13, %v20612_v21  ;;  %v20618_v33 = vld [vmem:[#allocation95_spill] sm:$0xff]  ;;  %2665 = vrot.lane.b32.xlu1 %v13202_v12, %s10605_s0  ;;  %v2449_v13 = vsel %vm1683_vm5, %v2401_v61, %v20607_v39  ;;  %v2352_v10 = vsel %vm20610_vm2, %v2304_v54, %v20619_v17  ;;  %2659 = vrot.lane.b32.xlu0 %v13113_v5, %s10605_s0  ;;  %v13609_v39 = vpop.permute.xlu1 %1372  ;;  %v20624_v54 = vld [vmem:[#allocation52_spill] sm:$0xff] }
 0x2c6   :  { %v13578_v19 = vand.u32 4294901760, %v2917_v53  ;;  %v2212_v28 = vsel %vm1438_vm0, %v20618_v33, %v20617_v20  ;;  %v2400_v12 = vsel %vm1634_vm4, %v2352_v10, %v20600_v46  ;;  %vm20622_vm9 = vcmask 80896   ;;  %v20626_v1 = vld [vmem:[#allocation27_spill] sm:$0xff] }
 0x2c7   :  { %v2260_v30 = vsel %vm1487_vm1, %v2212_v28, %v20620_v41  ;;  %v1885_v3 = vsel %vm20622_vm9, %v1836_v7, %v20601_v29  ;;  %vm20623_vm3 = vcmask 23552   ;;  %v2355_v28 = vsel %vm20610_vm2, %v2307_v42, %v20624_v54  ;;  %v13620_v60 = vpop.permute.xlu0 %1384  ;;  %v20629_v29 = vld [vmem:[#allocation66_spill] sm:$0xff] }
 0x2c8   :  { %20614 = vst [vmem:[#allocation9_spill] sm:$0xff] %v13578_v19  ;;  %v13599_v37 = vsub.f32 %v2917_v53, %v13578_v19  ;;  %v2308_v61 = vsel %vm20623_vm3, %v2260_v30, %v12640_v48  ;;  %v2448_v53 = vsel %vm1683_vm5, %v2400_v12, %v20599_v38  ;;  %v2402_v5 = vsel %vm1634_vm4, %v2354_v43, %v20618_v33  ;;  %v20625_v19 = vld [vmem:[#allocation105_spill] sm:$0xff]  ;;  %vm20630_vm9 = vmmov %vm20623_vm3 }
 0x2c9   :  { %v2213_v10 = vsel %vm1438_vm0, %v20626_v1, %v20625_v19  ;;  %v2497_v7 = vsel %vm1732_vm6, %v2449_v13, %v20611_v45  ;;  %v2403_v42 = vsel %vm1634_vm4, %v2355_v28, %v20626_v1  ;;  %v20627_v30 = vld [vmem:[#allocation109_spill] sm:$0xff]  ;;  %2667 = vrot.lane.b32.xlu1 %v13489_v15, %s10605_s0  ;;  %v20628_v43 = vand.u32 4294901760, %v13548_v11  ;;  %2663 = vrot.lane.b32.xlu0 %v13296_v55, %s10605_s0  ;;  %vm20633_vm3 = vmmov %vm20610_vm2 }
 0x2ca   :  { %20621 = vst [vmem:[#allocation42_spill] sm:$0xff] %v13599_v37  ;;  %v2261_v12 = vsel %vm1487_vm1, %v2213_v10, %v20627_v30  ;;  %v2496_v33 = vsel %vm1732_vm6, %v2448_v53, %v12415_v51  ;;  %v1934_v38 = vsel %vm1928_vm10, %v1885_v3, %v20629_v29  ;;  %v20631_v28 = vand.u32 4294901760, %v13599_v37  ;;  %v20632_v10 = vld [vmem:[#allocation51_spill] sm:$0xff]  ;;  %v20634_v53 = vld [vmem:[#allocation110_spill] sm:$0xff]  ;;  %v13651_v3 = vpop.permute.xlu1 %1388 }
 0x2cb   :  { %v3091_v54 = vsub.f32 %v13548_v11, %v20628_v43  ;;  %v2309_v13 = vsel %vm20630_vm9, %v2261_v12, %v12680_v34  ;;  %v2356_v1 = vsel %vm20633_vm3, %v2308_v61, %v20632_v10  ;;  %v2450_v43 = vsel %vm1683_vm5, %v2402_v5, %v20617_v20  ;;  %v20635_v12 = vld [vmem:[#allocation107_spill] sm:$0xff]  ;;  %v13661_v10 = vpop.permute.xlu0 %1400  ;;  %vm20644_vm3 = vmmov %vm20630_vm9 }
 0x2cc   :  { %v3081_v15 = vsub.f32 %v13599_v37, %v20631_v28  ;;  %v2357_v11 = vsel %vm20610_vm2, %v2309_v13, %v20634_v53  ;;  %v2545_v29 = vsel %vm1781_vm7, %v2497_v7, %v20612_v21  ;;  %v2451_v55 = vsel %vm1683_vm5, %v2403_v42, %v20625_v19  ;;  %v20636_v37 = vld [vmem:[#allocation113_spill] sm:$0xff]  ;;  %v20638_v19 = vld [vmem:[#allocation108_spill] sm:$0xff] }
 0x2cd   :  { %v2404_v28 = vsel %vm1634_vm4, %v2356_v1, %v20635_v12  ;;  %v2405_v61 = vsel %vm1634_vm4, %v2357_v11, %v20636_v37  ;;  %v2499_v13 = vsel %vm1732_vm6, %v2451_v55, %v20627_v30  ;;  %v20637_v53 = vld [vmem:[#allocation65_spill] sm:$0xff]  ;;  %2671 = vrot.lane.b32.xlu1 %v2542_v58, %s10605_s0  ;;  %v3092_v7 = vand.u32 4294901760, %v3091_v54  ;;  %v20639_v55 = vld [vmem:[#allocation111_spill] sm:$0xff]  ;;  %2669 = vrot.lane.b32.xlu0 %v13505_v23, %s10605_s0  ;;  %v20640_v54 = vld [vmem:[#allocation114_spill] sm:$0xff] }
 0x2ce   :  { %v3082_v5 = vand.u32 4294901760, %v3081_v15  ;;  %v1983_v20 = vsel %vm19554_vm11, %v1934_v38, %v20637_v53  ;;  %v2547_v42 = vsel %vm1781_vm7, %v2499_v13, %v12680_v34  ;;  %v2544_v1 = vsel %vm1781_vm7, %v2496_v33, %v12604_v32  ;;  %v20641_v53 = vld [vmem:[#allocation116_spill] sm:$0xff]  ;;  %v2618_v13 = vpop.permute.xlu1 %2617  ;;  %v20643_v30 = vld [vmem:[#allocation117_spill] sm:$0xff] }
 0x2cf   :  { %v2498_v11 = vsel %vm1732_vm6, %v2450_v43, %v20620_v41  ;;  %v2214_v15 = vsel %vm1438_vm0, %v20635_v12, %v20638_v19  ;;  %v2215_v38 = vsel %vm1438_vm0, %v20636_v37, %v20639_v55  ;;  %v2452_v58 = vsel %vm1683_vm5, %v2404_v28, %v20638_v19  ;;  %v20642_v12 = vld [vmem:[#allocation67_spill] sm:$0xff] }
 0x2d0   :  { %9766 = vmatprep.mubr.f32.mxu0 %v3082_v5  ;;  %v2262_v33 = vsel %vm1487_vm1, %v2214_v15, %v20640_v54  ;;  %v2263_v43 = vsel %vm1487_vm1, %v2215_v38, %v20641_v53  ;;  %v2032_v34 = vsel %vm19553_vm12, %v1983_v20, %v20642_v12  ;;  %v2453_v37 = vsel %vm1683_vm5, %v2405_v61, %v20639_v55  ;;  %v13696_v5 = vpop.permute.xlu0 %1416  ;;  %v10603_v15 = vld [vmem:[%s19238_s1 + $0x10] sm:$0xff]  ;;  %v20645_v38 = vld [vmem:[#allocation3_spill] sm:$0xff]  ;;  %v20651_v55 = vld [vmem:[#allocation125_spill] sm:$0xff] }
 0x2d1   :  { %9767 = vmatmul.mubr.f32.gmra.mrb[2].mxu0 %v3092_v7  ;;  %v2310_v23 = vsel %vm20630_vm9, %v2262_v33, %v20643_v30  ;;  %v2311_v28 = vsel %vm20644_vm3, %v2263_v43, %v12954_v16  ;;  %v20646_v7 = vand.u32 4294901760, %v20645_v38  ;;  %v20648_v20 = vld [vmem:[#allocation83_spill] sm:$0xff]  ;;  %vm20652_vm9 = vmmov %vm20610_vm2  ;;  %2677 = vrot.lane.b32.xlu1 %v2545_v29, %s10605_s0  ;;  %v2500_v41 = vsel %vm1732_vm6, %v2452_v58, %v20640_v54  ;;  %v20654_v29 = vld [vmem:[#allocation118_spill] sm:$0xff] }
 0x2d2   :  { %v20649_v12 = vand.u32 4294901760, %v20648_v20  ;;  %v2358_v33 = vsel %vm20610_vm2, %v2310_v23, %v20651_v55  ;;  %v2359_v43 = vsel %vm20652_vm9, %v2311_v28, %v13086_v0  ;;  %2673 = vrot.lane.b32.xlu0 %v13565_v18, %s10605_s0  ;;  %v2217_v58 = vsel %vm1438_vm0, %v20654_v29, %v12995_v52  ;;  %v20656_v55 = vld [vmem:[#allocation124_spill] sm:$0xff]  ;;  %vm20660_vm2 = vmmov %vm20644_vm3 }
 0x2d3   :  { %v13703_v19 = vsub.f32 %v10603_v15, %v20646_v7  ;;  %v2501_v15 = vsel %vm1732_vm6, %v2453_v37, %v20641_v53  ;;  %v2406_v38 = vsel %vm1634_vm4, %v2358_v33, %v13042_v56  ;;  %v20653_v7 = vld [vmem:[#allocation68_spill] sm:$0xff]  ;;  %v2548_v37 = vsel %vm1781_vm7, %v2500_v41, %v20643_v30  ;;  %v20658_v53 = vld [vmem:[#allocation130_spill] sm:$0xff]  ;;  %vm20664_vm12 = vmmov %vm20660_vm2 }
 0x2d4   :  { %v13708_v61 = vsub.f32 %v20648_v20, %v20649_v12  ;;  %v2081_v23 = vsel %vm2075_vm13, %v2032_v34, %v20653_v7  ;;  %v13730_v12 = vpop.permute.xlu1 %1432  ;;  %v2546_v33 = vsel %vm1781_vm7, %v2498_v11, %v12640_v48  ;;  %v2549_v18 = vsel %vm1781_vm7, %v2501_v15, %v12954_v16  ;;  %v13743_v28 = vpop.permute.xlu0 %1404  ;;  %v20661_v54 = vld [vmem:[#allocation136_spill] sm:$0xff] }
 0x2d5   :  { %20647 = vst [vmem:[#allocation161_spill] sm:$0xff] %v13703_v19  ;;  %v19546_v20 = vand.u32 4294901760, %v13703_v19  ;;  %v2216_v34 = vsel %vm1438_vm0, %v13042_v56, %v13033_v14  ;;  %v2407_v7 = vsel %vm1634_vm4, %v2359_v43, %v20654_v29  ;;  %v2265_v15 = vsel %vm1487_vm1, %v2217_v58, %v13076_v59  ;;  %2681 = vrot.lane.b32.xlu1 %v2547_v42, %s10605_s0  ;;  %v20657_v56 = vld [vmem:[#allocation18_spill] sm:$0xff] }
 0x2d6   :  { %20650 = vst [vmem:[#allocation163_spill] sm:$0xff] %v13708_v61  ;;  %v20655_v41 = vand.u32 4294901760, %v13708_v61  ;;  %v2264_v16 = vsel %vm1487_vm1, %v2216_v34, %v20656_v55  ;;  %v2130_v43 = vsel %vm19583_vm14, %v2081_v23, %v20657_v56  ;;  %v2454_v29 = vsel %vm1683_vm5, %v2406_v38, %v13033_v14  ;;  %2675 = vrot.lane.b32.xlu0 %v2544_v1, %s10605_s0  ;;  %v20659_v34 = vld [vmem:[#allocation127_spill] sm:$0xff]  ;;  %v20662_v14 = vld [vmem:[#allocation133_spill] sm:$0xff] }
 0x2d7   :  { %v3436_v0 = vsub.f32 %v13703_v19, %v19546_v20  ;;  %v2313_v20 = vsel %vm20644_vm3, %v2265_v15, %v20658_v53  ;;  %v2312_v42 = vsel %vm20660_vm2, %v2264_v16, %v20659_v34  ;;  %v2455_v15 = vsel %vm1683_vm5, %v2407_v7, %v12995_v52  ;;  %vm20663_vm3 = vmmov %vm20652_vm9 }
 0x2d8   :  { %v3443_v11 = vsub.f32 %v13708_v61, %v20655_v41  ;;  %v2218_v41 = vsel %vm1438_vm0, %v13335_v31, %v13317_v50  ;;  %v2361_v56 = vsel %vm20652_vm9, %v2313_v20, %v20661_v54  ;;  %v13772_v23 = vpop.permute.xlu1 %1420  ;;  %v2360_v61 = vsel %vm20663_vm3, %v2312_v42, %v20662_v14  ;;  %v2616_v1 = vpop.permute.xlu0 %2615  ;;  %vm20665_vm2 = vmmov %vm20663_vm3  ;;  %v20666_v54 = vld [vmem:[#allocation172_spill] sm:$0xff] }
 0x2d9   :  { %v3437_v58 = vand.u32 4294901760, %v3436_v0  ;;  %v2266_v38 = vsel %vm1487_vm1, %v2218_v41, %v13363_v6  ;;  %v2409_v0 = vsel %vm1634_vm4, %v2361_v56, %v13245_v47  ;;  %v2408_v20 = vsel %vm1634_vm4, %v2360_v61, %v13335_v31  ;;  %2683 = vrot.lane.b32.xlu1 %v2548_v37, %s10605_s0  ;;  %vm20672_vm3 = vmmov %vm20665_vm2 }
 0x2da   :  { %v3444_v30 = vand.u32 4294901760, %v3443_v11  ;;  %v2314_v16 = vsel %vm20664_vm12, %v2266_v38, %v13497_v26  ;;  %vm20667_vm9 = vcmask 130048   ;;  %2679 = vrot.lane.b32.xlu0 %v2546_v33, %s10605_s0  ;;  %v2502_v56 = vsel %vm1732_vm6, %v2454_v29, %v20656_v55 }
 0x2db   :  { %v2362_v41 = vsel %vm20665_vm2, %v2314_v16, %v13580_v35  ;;  %v2756_v7 = vsel %vm20667_vm9, %v20666_v54, %v2618_v13  ;;  %vm20668_vm11 = vmmov %vm20667_vm9  ;;  %v2219_v61 = vsel %vm1438_vm0, %v13245_v47, %v13236_v9  ;;  %v2457_v54 = vsel %vm1683_vm5, %v2409_v0, %v13236_v9 }
 0x2dc   :  { %v10139_v11 = vpack.c.bf16 %v3444_v30, %v3437_v58  ;;  %v2755_v52 = vsel %vm20668_vm11, %v2130_v43, %v2616_v1  ;;  %v2503_v30 = vsel %vm1732_vm6, %v2455_v15, %v13076_v59  ;;  %v13800_v13 = vpop.permute.xlu1 %1436  ;;  %v2410_v29 = vsel %vm1634_vm4, %v2362_v41, %v13411_v4  ;;  %v2620_v58 = vpop.permute.xlu0 %2619  ;;  %v20669_v15 = vld [vmem:[#allocation74_spill] sm:$0xff]  ;;  %vm20670_vm11 = vmmov %vm20667_vm9 }
 0x2dd   :  { %v2880_v42 = vcombine.low %v2755_v52, %v2756_v7  ;;  %v2550_v52 = vsel %vm1781_vm7, %v2502_v56, %v20659_v34  ;;  %v2551_v37 = vsel %vm1781_vm7, %v2503_v30, %v20658_v53  ;;  %v2849_v33 = vcombine.high %v2756_v7, %v2756_v7  ;;  %vm20673_vm2 = vmmov %vm20664_vm12 }
 0x2de   :  { %10140 = vmatprep.subr.bf16.mxu0 %v10139_v11  ;;  %v2456_v47 = vsel %vm1683_vm5, %v2408_v20, %v13317_v50  ;;  %v2267_v9 = vsel %vm1487_vm1, %v2219_v61, %v13370_v40  ;;  %v2757_v0 = vsel %vm20670_vm11, %v20669_v15, %v2620_v58  ;;  %2687 = vrot.lane.b32.xlu1 %v2550_v52, %s10605_s0  ;;  %vm20675_vm11 = vmmov %vm20672_vm3 }
 0x2df   :  { %10142 = vmatpush3.bf16.msra.mxu0 %v10139_v11  ;;  %v2921_v43 = vsel %vm2912_vm15, %v2880_v42, 0  ;;  %v2504_v16 = vsel %vm1732_vm6, %v2456_v47, %v13363_v6  ;;  %v2505_v1 = vsel %vm1732_vm6, %v2457_v54, %v13370_v40  ;;  %v2220_v11 = vsel %vm1438_vm0, %v13411_v4, %v13402_v8  ;;  %2685 = vrot.lane.b32.xlu0 %v2549_v18, %s10605_s0 }
 0x2e0   :  { %v13813_v38 = vand.u32 4294901760, %v2921_v43  ;;  %v2315_v20 = vsel %vm20664_vm12, %v2267_v9, %v13452_v63  ;;  %v2881_v41 = vcombine.low %v2849_v33, %v2757_v0  ;;  %v2268_v7 = vsel %vm1487_vm1, %v2220_v11, %v13485_v57  ;;  %v2624_v56 = vpop.permute.xlu1 %2623  ;;  %v2622_v54 = vpop.permute.xlu0 %2621  ;;  %vm20678_vm12 = vmmov %vm20667_vm9  ;;  %v20679_v11 = vld [vmem:[#allocation24_spill] sm:$0xff] }
 0x2e1   :  { %v2553_v40 = vsel %vm1781_vm7, %v2505_v1, %v13452_v63  ;;  %v2458_v30 = vsel %vm1683_vm5, %v2410_v29, %v13402_v8  ;;  %v2363_v4 = vsel %vm20672_vm3, %v2315_v20, %v13543_v27  ;;  %v2316_v61 = vsel %vm20673_vm2, %v2268_v7, %v13572_v49  ;;  %v20674_v63 = vld [vmem:[#allocation70_spill] sm:$0xff]  ;;  %vm20680_vm3 = vmmov %vm20667_vm9 }
 0x2e2   :  { %v13831_v42 = vsub.f32 %v2921_v43, %v13813_v38  ;;  %v2923_v18 = vsel %vm2912_vm15, %v2881_v41, 0  ;;  %v2552_v52 = vsel %vm1781_vm7, %v2504_v16, %v13497_v26  ;;  %v2411_v33 = vsel %vm1634_vm4, %v2363_v4, %v13620_v60  ;;  %2693 = vrot.lane.b32.xlu1 %v2553_v40, %s10605_s0  ;;  %v20681_v41 = vld [vmem:[#allocation75_spill] sm:$0xff]  ;;  %vm20682_vm2 = vmmov %vm20680_vm3 }
 0x2e3   :  { %v13846_v43 = vand.u32 4294901760, %v2923_v18  ;;  %v2758_v8 = vsel %vm20667_vm9, %v20674_v63, %v2622_v54  ;;  %v2364_v29 = vsel %vm20675_vm11, %v2316_v61, %v13609_v39  ;;  %v2459_v58 = vsel %vm1683_vm5, %v2411_v33, %v13661_v10  ;;  %2689 = vrot.lane.b32.xlu0 %v2551_v37, %s10605_s0  ;;  %v20677_v37 = vld [vmem:[#allocation76_spill] sm:$0xff]  ;;  %vm20685_vm9 = vmmov %vm20682_vm2 }
 0x2e4   :  { %20671 = vst [vmem:[#allocation160_spill] sm:$0xff] %v13831_v42  ;;  %v19561_v27 = vand.u32 4294901760, %v13831_v42  ;;  %v2850_v47 = vcombine.high %v2758_v8, %v2758_v8  ;;  %v2506_v60 = vsel %vm1732_vm6, %v2458_v30, %v13485_v57  ;;  %v2412_v9 = vsel %vm1634_vm4, %v2364_v29, %v13651_v3  ;;  %v2630_v16 = vpop.permute.xlu1 %2629  ;;  %v2626_v20 = vpop.permute.xlu0 %2625 }
 0x2e5   :  { %v2507_v15 = vsel %vm1732_vm6, %v2459_v58, %v13696_v5  ;;  %v13864_v0 = vsub.f32 %v2923_v18, %v13846_v43  ;;  %v2759_v57 = vsel %vm20678_vm12, %v20677_v37, %v2624_v56  ;;  %v2762_v3 = vsel %vm20680_vm3, %v20679_v11, %v2630_v16  ;;  %vm20699_vm3 = vmmov %vm20682_vm2 }
 0x2e6   :  { %v3101_v39 = vsub.f32 %v13831_v42, %v19561_v27  ;;  %v2555_v10 = vsel %vm1781_vm7, %v2507_v15, %v13730_v12  ;;  %v2882_v1 = vcombine.low %v2758_v8, %v2850_v47  ;;  %v2852_v5 = vcombine.high %v2762_v3, %v2762_v3  ;;  %v20684_v15 = vld [vmem:[#allocation81_spill] sm:$0xff] }
 0x2e7   :  { %20676 = vst [vmem:[#allocation8_spill] sm:$0xff] %v13864_v0  ;;  %v2760_v7 = vsel %vm20682_vm2, %v20681_v41, %v2626_v20  ;;  %2697 = vrot.lane.b32.xlu1 %v2555_v10, %s10605_s0  ;;  %v19559_v30 = vand.u32 4294901760, %v13864_v0  ;;  %v1869_v12 = vsel %vm1830_vm8, %v13421_v36, %v20571_v25  ;;  %v2460_v56 = vsel %vm1683_vm5, %v2412_v9, %v13743_v28  ;;  %v20689_v20 = vld [vmem:[#allocation154_spill] sm:$0xff] }
 0x2e8   :  { %v3102_v40 = vand.u32 4294901760, %v3101_v39  ;;  %v2925_v4 = vsel %vm2912_vm15, %v2882_v1, 0  ;;  %v2883_v61 = vcombine.low %v2759_v57, %v2760_v7  ;;  %2691 = vrot.lane.b32.xlu0 %v2552_v52, %s10605_s0  ;;  %v2508_v18 = vsel %vm1732_vm6, %v2460_v56, %v13772_v23  ;;  %v13890_v63 = vpop.permute.xlu1 %424  ;;  %v2628_v52 = vpop.permute.xlu0 %2627 }
 0x2e9   :  { %v13888_v54 = vand.u32 4294901760, %v2925_v4  ;;  %v2885_v33 = vcombine.low %v2762_v3, %v2852_v5  ;;  %v3111_v36 = vsub.f32 %v13864_v0, %v19559_v30  ;;  %v2556_v28 = vsel %vm1781_vm7, %v2508_v18, %v13800_v13  ;;  %v20688_v3 = vld [vmem:[#allocation45_spill] sm:$0xff]  ;;  %v20732_v0 = vld [vmem:[#allocation88_spill] sm:$0xff] }
 0x2ea   :  { %9769 = vmatprep.mubr.f32.mxu0 %v3102_v40  ;;  %v2851_v8 = vcombine.high %v2760_v7, %v2760_v7  ;;  %v2927_v29 = vsel %vm2912_vm15, %v2883_v61, 0  ;;  %v2554_v23 = vsel %vm1781_vm7, %v2506_v60, %v13572_v49  ;;  %v2761_v16 = vsel %vm20685_vm9, %v20684_v15, %v2628_v52  ;;  %v20696_v15 = vld [vmem:[#allocation20_spill] sm:$0xff] }
 0x2eb   :  { %v13901_v58 = vsub.f32 %v2925_v4, %v13888_v54  ;;  %v2931_v47 = vsel %vm2912_vm15, %v2885_v33, 0  ;;  %v13904_v9 = vand.u32 4294901760, %v2927_v29  ;;  %2699 = vrot.lane.b32.xlu1 %v2556_v28, %s10605_s0  ;;  %v1868_v13 = vsel %vm1830_vm8, %v13447_v2, %v20582_v44  ;;  %v20693_v33 = vld [vmem:[#allocation138_spill] sm:$0xff] }
 0x2ec   :  { %v13912_v39 = vand.u32 4294901760, %v2931_v47  ;;  %v2884_v10 = vcombine.low %v2851_v8, %v2761_v16  ;;  %2695 = vrot.lane.b32.xlu0 %v2554_v23, %s10605_s0  ;;  %v3112_v49 = vand.u32 4294901760, %v3111_v36  ;;  %v1675_v60 = vsel %vm1634_vm4, %v13495_v22, %v20579_v24  ;;  %v13921_v57 = vpop.permute.xlu1 %616  ;;  %v2634_v7 = vpop.permute.xlu0 %2633  ;;  %v20694_v36 = vld [vmem:[#allocation143_spill] sm:$0xff] }
 0x2ed   :  { %20683 = vst [vmem:[#allocation162_spill] sm:$0xff] %v13901_v58  ;;  %v13919_v37 = vsub.f32 %v2927_v29, %v13904_v9  ;;  %v19558_v1 = vand.u32 4294901760, %v13901_v58  ;;  %v2111_v2 = vsel %vm2075_vm13, %v13466_v62, %v20582_v44  ;;  %vm20687_vm11 = vcmask 80896  }
 0x2ee   :  { %v1918_v11 = vsel %vm20687_vm11, %v1869_v12, %v20579_v24  ;;  %v1674_v5 = vsel %vm1634_vm4, %v20689_v20, %v20688_v3  ;;  %v13933_v22 = vsub.f32 %v2931_v47, %v13912_v39  ;;  %v2929_v41 = vsel %vm2912_vm15, %v2884_v10, 0  ;;  %9770 = vmatmul.mubr.f32.gmra.mrb[4].mxu0 %v3112_v49  ;;  %vm20691_vm12 = vmmov %vm20687_vm11  ;;  %v20692_v12 = vld [vmem:[#allocation72_spill] sm:$0xff]  ;;  %v20698_v20 = vld [vmem:[#allocation23_spill] sm:$0xff] }
 0x2ef   :  { %20686 = vst [vmem:[#allocation164_spill] sm:$0xff] %v13919_v37  ;;  %v1917_v40 = vsel %vm20691_vm12, %v1868_v13, %v20688_v3  ;;  %v13938_v56 = vand.u32 4294901760, %v2929_v41  ;;  %v3121_v44 = vsub.f32 %v13901_v58, %v19558_v1  ;;  %v19556_v62 = vand.u32 4294901760, %v13919_v37 }
 0x2f0   :  { %20690 = vst [vmem:[#allocation41_spill] sm:$0xff] %v13933_v22  ;;  %v1724_v4 = vsel %vm1683_vm5, %v1675_v60, %v20692_v12  ;;  %v19557_v61 = vand.u32 4294901760, %v13933_v22  ;;  %v13949_v18 = vsel %vm19583_vm14, %v2111_v2, %v20688_v3  ;;  %v13953_v28 = vpack.c.bf16 %v20694_v36, %v20693_v33  ;;  %v13958_v29 = vpop.permute.xlu1 %808  ;;  %v2632_v49 = vpop.permute.xlu0 %2631  ;;  %v20697_v60 = vld [vmem:[#allocation5_spill] sm:$0xff] }
 0x2f1   :  { %v13956_v8 = vsub.f32 %v2929_v41, %v13938_v56  ;;  %v3122_v52 = vand.u32 4294901760, %v3121_v44  ;;  %v3131_v23 = vsub.f32 %v13919_v37, %v19556_v62  ;;  %v1967_v47 = vsel %vm1928_vm10, %v1918_v11, %v20692_v12  ;;  %v20700_v41 = vld [vmem:[#allocation26_spill] sm:$0xff]  ;;  %v20701_v12 = vld [vmem:[#allocation71_spill] sm:$0xff]  ;;  %v20703_v62 = vld [vmem:[#allocation77_spill] sm:$0xff] }
 0x2f2   :  { %v1480_v16 = vsel %vm1438_vm0, %v20688_v3, %v20696_v15  ;;  %v1723_v13 = vsel %vm1683_vm5, %v1674_v5, %v20696_v15  ;;  %v1966_v10 = vsel %vm1928_vm10, %v1917_v40, %v20696_v15  ;;  %v2112_v2 = vsel %vm2075_vm13, %v20697_v60, %v20571_v25  ;;  %10144 = vmatprep.subr.bf16.mxu0 %v13953_v28  ;;  %v20731_v37 = vld [vmem:[#allocation90_spill] sm:$0xff] }
 0x2f3   :  { %20695 = vst [vmem:[#allocation165_spill] sm:$0xff] %v13956_v8  ;;  %v2764_v11 = vsel %vm20699_vm3, %v20698_v20, %v2634_v7  ;;  %v2763_v44 = vsel %vm20682_vm2, %v20700_v41, %v2632_v49  ;;  %9772 = vmatprep.mubr.f32.mxu0 %v3122_v52  ;;  %v3132_v3 = vand.u32 4294901760, %v3131_v23  ;;  %v19560_v5 = vand.u32 4294901760, %v13956_v8  ;;  %v20704_v7 = vld [vmem:[#allocation153_spill] sm:$0xff]  ;;  %v20706_v23 = vld [vmem:[#allocation78_spill] sm:$0xff]  ;;  %vm20710_vm3 = vmmov %vm20682_vm2 }
 0x2f4   :  { %v1773_v40 = vsel %vm1732_vm6, %v1724_v4, %v20701_v12  ;;  %v2886_v15 = vcombine.low %v2763_v44, %v2764_v11  ;;  %v3151_v25 = vsub.f32 %v13933_v22, %v19557_v61  ;;  %vm20702_vm9 = vcmask 97280   ;;  %v13995_v4 = vpop.permute.xlu1 %428  ;;  %v20714_v22 = vld [vmem:[#allocation84_spill] sm:$0xff] }
 0x2f5   :  { %v2016_v60 = vsel %vm20702_vm9, %v1967_v47, %v20701_v12  ;;  %vm20705_vm11 = vcmask 23552   ;;  %v1822_v52 = vsel %vm1781_vm7, %v1773_v40, %v20703_v62  ;;  %v1529_v49 = vsel %vm1487_vm1, %v1480_v16, %v20706_v23  ;;  %9773 = vmatmul.mubr.f32.gmra.mrb[6].mxu0 %v3132_v3  ;;  %v20709_v16 = vld [vmem:[#allocation28_spill] sm:$0xff]  ;;  %vm20711_vm2 = vmmov %vm20702_vm9 }
 0x2f6   :  { %v1579_v20 = vsel %vm20705_vm11, %v20704_v7, %v20703_v62  ;;  %v3141_v41 = vsub.f32 %v13956_v8, %v19560_v5  ;;  %v1772_v47 = vsel %vm1732_vm6, %v1723_v13, %v20706_v23  ;;  %v2853_v44 = vcombine.high %v2764_v11, %v2764_v11  ;;  %v2636_v7 = vpop.permute.xlu0 %2635  ;;  %v20712_v5 = vld [vmem:[#allocation82_spill] sm:$0xff]  ;;  %vm20713_vm9 = vmmov %vm20705_vm11 }
 0x2f7   :  { %v2933_v12 = vsel %vm2912_vm15, %v2886_v15, 0  ;;  %vm20707_vm12 = vcmask 105472   ;;  %v2765_v3 = vsel %vm20710_vm3, %v20709_v16, %v2636_v7  ;;  %v2015_v30 = vsel %vm20711_vm2, %v1966_v10, %v20706_v23  ;;  %vm20720_vm3 = vmmov %vm20713_vm9 }
 0x2f8   :  { %v2065_v40 = vsel %vm20707_vm12, %v2016_v60, %v20703_v62  ;;  %v14005_v61 = vand.u32 4294901760, %v2933_v12  ;;  %v3142_v1 = vand.u32 4294901760, %v3141_v41  ;;  %v1578_v27 = vsel %vm20713_vm9, %v1529_v49, %v20712_v5  ;;  %v20716_v60 = vld [vmem:[#allocation91_spill] sm:$0xff]  ;;  %v14025_v23 = vpop.permute.xlu1 %1000 }
 0x2f9   :  { %v1821_v13 = vsel %vm1781_vm7, %v1772_v47, %v20712_v5  ;;  %v2887_v11 = vcombine.low %v2853_v44, %v2765_v3  ;;  %v3152_v15 = vand.u32 4294901760, %v3151_v25  ;;  %vm20715_vm11 = vcmask 31744   ;;  %v20719_v25 = vld [vmem:[#allocation96_spill] sm:$0xff] }
 0x2fa   :  { %20708 = vst [vmem:[#allocation6_spill] sm:$0xff] %v14005_v61  ;;  %v1628_v62 = vsel %vm20715_vm11, %v1579_v20, %v20714_v22  ;;  %vm20717_vm12 = vmmov %vm20715_vm11  ;;  %v1482_v41 = vsel %vm1438_vm0, %v20619_v17, %v20600_v46  ;;  %v14023_v10 = vsub.f32 %v2933_v12, %v14005_v61  ;;  %9775 = vmatprep.mubr.f32.mxu0 %v3142_v1  ;;  %vm20723_vm9 = vcmask 105472   ;;  %v20812_v61 = vld [vmem:[#allocation139_spill] sm:$0xff] }
 0x2fb   :  { %v1627_v8 = vsel %vm20717_vm12, %v1578_v27, %v20716_v60  ;;  %v1871_v49 = vsel %vm1830_vm8, %v1822_v52, %v20714_v22  ;;  %v1531_v47 = vsel %vm1487_vm1, %v1482_v41, %v20719_v25  ;;  %v2935_v20 = vsel %vm2912_vm15, %v2887_v11, 0  ;;  %9776 = vmatmul.mubr.f32.gmra.mrb[8].mxu0 %v3152_v15  ;;  %v14032_v27 = vpop.permute.xlu0 %432  ;;  %vm20722_vm2 = vmmov %vm20715_vm11 }
 0x2fc   :  { %20718 = vst [vmem:[#allocation44_spill] sm:$0xff] %v14023_v10  ;;  %v2114_v44 = vsel %vm2075_vm13, %v2065_v40, %v20714_v22  ;;  %v1870_v12 = vsel %vm1830_vm8, %v1821_v13, %v20716_v60  ;;  %v1580_v1 = vsel %vm20720_vm3, %v1531_v47, %v12415_v51  ;;  %v14040_v7 = vand.u32 4294901760, %v2935_v20  ;;  %v20724_v40 = vld [vmem:[#allocation50_spill] sm:$0xff] }
 0x2fd   :  { %v19566_v52 = vand.u32 4294901760, %v14023_v10  ;;  %v1676_v16 = vsel %vm1634_vm4, %v1627_v8, %v20619_v17  ;;  %v1629_v3 = vsel %vm20722_vm2, %v1580_v1, %v12604_v32  ;;  %v14049_v11 = vsel %vm19583_vm14, %v2112_v2, %v20579_v24  ;;  %v14060_v8 = vpop.permute.xlu1 %620 }
 0x2fe   :  { %20721 = vst [vmem:[#allocation166_spill] sm:$0xff] %v14040_v7  ;;  %v2064_v22 = vsel %vm20723_vm9, %v2015_v30, %v20712_v5  ;;  %v1677_v13 = vsel %vm1634_vm4, %v1628_v62, %v20724_v40  ;;  %v1725_v15 = vsel %vm1683_vm5, %v1676_v16, %v20600_v46  ;;  %v14058_v41 = vsub.f32 %v2935_v20, %v14040_v7  ;;  %v20728_v20 = vld [vmem:[#allocation49_spill] sm:$0xff]  ;;  %v20729_v16 = vld [vmem:[#allocation100_spill] sm:$0xff]  ;;  %v20807_v7 = vld [vmem:[#allocation119_spill] sm:$0xff] }
 0x2ff   :  { %v3161_v47 = vsub.f32 %v14023_v10, %v19566_v52  ;;  %vm20726_vm11 = vcmask 80896   ;;  %v1774_v2 = vsel %vm1732_vm6, %v1725_v15, %v20719_v25  ;;  %v2638_v5 = vpop.permute.xlu0 %2637  ;;  %v14073_v62 = vsel %vm19583_vm14, %v2114_v44, %v20724_v40 }
 0x300   :  { %20725 = vst [vmem:[#allocation13_spill] sm:$0xff] %v14058_v41  ;;  %v1920_v24 = vsel %vm20726_vm11, %v1871_v49, %v20724_v40  ;;  %vm20727_vm12 = vmmov %vm20726_vm11  ;;  %v1678_v1 = vsel %vm1634_vm4, %v1629_v3, %v20728_v20  ;;  %vm20730_vm3 = vcmask 130048   ;;  %v19577_v49 = vand.u32 4294901760, %v14058_v41 }
 0x301   :  { %v1919_v30 = vsel %vm20727_vm12, %v1870_v12, %v20619_v17  ;;  %v2766_v52 = vsel %vm20730_vm3, %v20729_v16, %v2638_v5  ;;  %v3162_v10 = vand.u32 4294901760, %v3161_v47  ;;  %v1483_v12 = vsel %vm1438_vm0, %v20724_v40, %v20731_v37  ;;  %v14093_v16 = vpop.permute.xlu1 %440 }
 0x302   :  { %v1823_v15 = vsel %vm1781_vm7, %v1774_v2, %v12415_v51  ;;  %v2854_v58 = vcombine.high %v2766_v52, %v2766_v52  ;;  %v2113_v44 = vsel %vm2075_vm13, %v2064_v22, %v20716_v60  ;;  %v1726_v3 = vsel %vm1683_vm5, %v1677_v13, %v20731_v37  ;;  %v20734_v22 = vld [vmem:[#allocation95_spill] sm:$0xff] }
 0x303   :  { %v1532_v5 = vsel %vm1487_vm1, %v1483_v12, %v20732_v0  ;;  %v1872_v47 = vsel %vm1830_vm8, %v1823_v15, %v12604_v32  ;;  %9778 = vmatprep.mubr.f32.mxu0 %v3162_v10  ;;  %v3171_v40 = vsub.f32 %v14058_v41, %v19577_v49  ;;  %v1969_v2 = vsel %vm1928_vm10, %v1920_v24, %v20731_v37  ;;  %v14104_v42 = vpop.permute.xlu0 %624 }
 0x304   :  { %vm20733_vm2 = vcmask 23552   ;;  %v1727_v13 = vsel %vm1683_vm5, %v1678_v1, %v20734_v22  ;;  %v2888_v12 = vcombine.low %v2766_v52, %v2854_v58  ;;  %v1775_v10 = vsel %vm1732_vm6, %v1726_v3, %v20732_v0 }
 0x305   :  { %v1581_v60 = vsel %vm20733_vm2, %v1532_v5, %v20611_v45  ;;  %vm20735_vm9 = vcmask 31744   ;;  %v3172_v36 = vand.u32 4294901760, %v3171_v40  ;;  %vm20736_vm11 = vcmask 97280   ;;  %v20737_v5 = vld [vmem:[#allocation94_spill] sm:$0xff] }
 0x306   :  { %v1630_v15 = vsel %vm20735_vm9, %v1581_v60, %v20612_v21  ;;  %v2018_v49 = vsel %vm20736_vm11, %v1969_v2, %v20732_v0  ;;  %v1968_v37 = vsel %vm1928_vm10, %v1919_v30, %v20600_v46  ;;  %v1824_v24 = vsel %vm1781_vm7, %v1775_v10, %v20611_v45  ;;  %v14128_v46 = vpop.permute.xlu1 %816  ;;  %v20739_v30 = vld [vmem:[#allocation52_spill] sm:$0xff]  ;;  %vm20740_vm3 = vmmov %vm20736_vm11  ;;  %v20742_v10 = vld [vmem:[#allocation27_spill] sm:$0xff] }
 0x307   :  { %v1921_v58 = vsel %vm20727_vm12, %v1872_v47, %v20728_v20  ;;  %v2937_v52 = vsel %vm2912_vm15, %v2888_v12, 0  ;;  %v1484_v1 = vsel %vm1438_vm0, %v20728_v20, %v20734_v22  ;;  %v1873_v3 = vsel %vm1830_vm8, %v1824_v24, %v20612_v21  ;;  %9779 = vmatmul.mubr.f32.gmra.mrb[10].mxu0 %v3172_v36  ;;  %v14132_v2 = vpop.permute.xlu0 %812  ;;  %vm20744_vm9 = vmmov %vm20727_vm12 }
 0x308   :  { %v1776_v0 = vsel %vm1732_vm6, %v1727_v13, %v20737_v5  ;;  %v14126_v40 = vand.u32 4294901760, %v2937_v52  ;;  %v1679_v47 = vsel %vm1634_vm4, %v1630_v15, %v20739_v30  ;;  %v2017_v60 = vsel %vm20740_vm3, %v1968_v37, %v20719_v25 }
 0x309   :  { %v14138_v12 = vsel %vm19583_vm14, %v2113_v44, %v20619_v17  ;;  %vm20741_vm2 = vcmask 105472   ;;  %v1485_v36 = vsel %vm1438_vm0, %v20739_v30, %v20742_v10  ;;  %v1970_v15 = vsel %vm1928_vm10, %v1921_v58, %v20734_v22 }
 0x30a   :  { %20738 = vst [vmem:[#allocation7_spill] sm:$0xff] %v14126_v40  ;;  %v2067_v13 = vsel %vm20741_vm2, %v2018_v49, %v20611_v45  ;;  %v14146_v24 = vsub.f32 %v2937_v52, %v14126_v40  ;;  %v1922_v17 = vsel %vm20744_vm9, %v1873_v3, %v20739_v30  ;;  %v1728_v44 = vsel %vm1683_vm5, %v1679_v47, %v20742_v10  ;;  %v20745_v49 = vld [vmem:[#allocation104_spill] sm:$0xff]  ;;  %v14164_v58 = vpop.permute.xlu1 %632  ;;  %vm20747_vm12 = vmmov %vm20741_vm2 }
 0x30b   :  { %v2116_v25 = vsel %vm2075_vm13, %v2067_v13, %v20612_v21  ;;  %v1533_v45 = vsel %vm1487_vm1, %v1484_v1, %v20737_v5  ;;  %v1825_v37 = vsel %vm1781_vm7, %v1776_v0, %v20745_v49  ;;  %v1971_v52 = vsel %vm1928_vm10, %v1922_v17, %v20742_v10  ;;  %v20749_v1 = vld [vmem:[#allocation105_spill] sm:$0xff]  ;;  %v14173_v0 = vpop.permute.xlu0 %436 }
 0x30c   :  { %20743 = vst [vmem:[#allocation11_spill] sm:$0xff] %v14146_v24  ;;  %vm20746_vm11 = vcmask 23552   ;;  %v19580_v21 = vand.u32 4294901760, %v14146_v24  ;;  %v2066_v3 = vsel %vm20747_vm12, %v2017_v60, %v12415_v51  ;;  %vm20748_vm3 = vcmask 31744  }
 0x30d   :  { %v1582_v22 = vsel %vm20746_vm11, %v1533_v45, %v20745_v49  ;;  %v1534_v13 = vsel %vm1487_vm1, %v1485_v36, %v20749_v1  ;;  %vm20750_vm2 = vcmask 97280   ;;  %v14179_v17 = vsel %vm19583_vm14, %v2116_v25, %v20739_v30  ;;  %vm20752_vm9 = vmmov %vm20746_vm11 }
 0x30e   :  { %v1631_v47 = vsel %vm20748_vm3, %v1582_v22, %v12640_v48  ;;  %v2019_v10 = vsel %vm20750_vm2, %v1970_v15, %v20737_v5  ;;  %v1874_v45 = vsel %vm1830_vm8, %v1825_v37, %v12640_v48  ;;  %v1777_v51 = vsel %vm1732_vm6, %v1728_v44, %v20749_v1  ;;  %v20751_v22 = vld [vmem:[#allocation109_spill] sm:$0xff]  ;;  %v20753_v15 = vld [vmem:[#allocation30_spill] sm:$0xff]  ;;  %vm20754_vm11 = vmmov %vm20750_vm2 }
 0x30f   :  { %v3181_v60 = vsub.f32 %v14146_v24, %v19580_v21  ;;  %v2115_v36 = vsel %vm2075_vm13, %v2066_v3, %v12604_v32  ;;  %v1583_v5 = vsel %vm20752_vm9, %v1534_v13, %v20751_v22  ;;  %v1826_v30 = vsel %vm1781_vm7, %v1777_v51, %v20751_v22  ;;  %v20755_v37 = vld [vmem:[#allocation51_spill] sm:$0xff]  ;;  %v1009_v32 = vpop.permute.xlu1 %1008  ;;  %vm20757_vm2 = vmmov %vm20752_vm9 }
 0x310   :  { %v1463_v25 = vsel %vm1438_vm0, %v20753_v15, %v13890_v63  ;;  %v2020_v44 = vsel %vm20754_vm11, %v1971_v52, %v20749_v1  ;;  %v1680_v41 = vsel %vm1634_vm4, %v1631_v47, %v20755_v37  ;;  %v2068_v13 = vsel %vm20747_vm12, %v2019_v10, %v20745_v49  ;;  %v20758_v15 = vld [vmem:[#allocation32_spill] sm:$0xff]  ;;  %v1005_v1 = vpop.permute.xlu0 %1004 }
 0x311   :  { %v1512_v21 = vsel %vm1487_vm1, %v1463_v25, %v13921_v57  ;;  %v3182_v3 = vand.u32 4294901760, %v3181_v60  ;;  %vm20756_vm3 = vcmask 80896   ;;  %v1465_v52 = vsel %vm1438_vm0, %v20758_v15, %v14032_v27  ;;  %v20759_v57 = vld [vmem:[#allocation106_spill] sm:$0xff] }
 0x312   :  { %v1923_v51 = vsel %vm20756_vm3, %v1874_v45, %v20755_v37  ;;  %v1561_v63 = vsel %vm20757_vm2, %v1512_v21, %v13958_v29  ;;  %v14214_v47 = vsel %vm19583_vm14, %v2115_v36, %v20728_v20  ;;  %vm20760_vm9 = vcmask 31744   ;;  %vm20762_vm3 = vmmov %vm20757_vm2 }
 0x313   :  { %v1632_v60 = vsel %vm20760_vm9, %v1583_v5, %v20759_v57  ;;  %vm20761_vm11 = vmmov %vm20760_vm9  ;;  %v1514_v10 = vsel %vm1487_vm1, %v1465_v52, %v14104_v42  ;;  %9781 = vmatprep.mubr.f32.mxu0 %v3182_v3  ;;  %v2069_v29 = vsel %vm20747_vm12, %v2020_v44, %v20751_v22  ;;  %v1875_v21 = vsel %vm1830_vm8, %v1826_v30, %v20759_v57  ;;  %v2642_v44 = vpop.permute.xlu1 %2641  ;;  %v20765_v3 = vld [vmem:[#allocation110_spill] sm:$0xff]  ;;  %v20767_v52 = vld [vmem:[#allocation97_spill] sm:$0xff] }
 0x314   :  { %v1610_v49 = vsel %vm20761_vm11, %v1561_v63, %v14025_v23  ;;  %v1563_v20 = vsel %vm20762_vm3, %v1514_v10, %v14128_v46  ;;  %v2117_v45 = vsel %vm2075_vm13, %v2068_v13, %v12640_v48  ;;  %v2118_v36 = vsel %vm2075_vm13, %v2069_v29, %v20759_v57  ;;  %v20763_v23 = vld [vmem:[#allocation107_spill] sm:$0xff]  ;;  %vm20764_vm2 = vmmov %vm20760_vm9  ;;  %v20769_v10 = vld [vmem:[#allocation113_spill] sm:$0xff] }
 0x315   :  { %v1486_v5 = vsel %vm1438_vm0, %v20755_v37, %v20763_v23  ;;  %v1729_v25 = vsel %vm1683_vm5, %v1680_v41, %v20763_v23  ;;  %v1972_v22 = vsel %vm1928_vm10, %v1923_v51, %v20763_v23  ;;  %v1612_v30 = vsel %vm20764_vm2, %v1563_v20, %v1009_v32  ;;  %v2640_v41 = vpop.permute.xlu0 %2639  ;;  %v20770_v20 = vld [vmem:[#allocation98_spill] sm:$0xff]  ;;  %v20772_v23 = vld [vmem:[#allocation108_spill] sm:$0xff] }
 0x316   :  { %v1681_v63 = vsel %vm1634_vm4, %v1632_v60, %v20765_v3  ;;  %vm20766_vm9 = vcmask 80896   ;;  %v1659_v13 = vsel %vm1634_vm4, %v1610_v49, %v20758_v15  ;;  %vm20768_vm11 = vcmask 130048   ;;  %v20773_v49 = vld [vmem:[#allocation34_spill] sm:$0xff] }
 0x317   :  { %v1924_v48 = vsel %vm20766_vm9, %v1875_v21, %v20765_v3  ;;  %v14248_v57 = vsel %vm20768_vm11, %v20767_v52, %v2642_v44  ;;  %v1730_v51 = vsel %vm1683_vm5, %v1681_v63, %v20769_v10  ;;  %vm20771_vm12 = vmmov %vm20768_vm11  ;;  %v14258_v21 = vsel %vm19583_vm14, %v2117_v45, %v20755_v37  ;;  %v20774_v63 = vld [vmem:[#allocation163_spill] sm:$0xff]  ;;  %v14273_v37 = vpop.permute.xlu1 %824 }
 0x318   :  { %v1973_v29 = vsel %vm1928_vm10, %v1924_v48, %v20769_v10  ;;  %v2767_v60 = vsel %vm20771_vm12, %v20770_v20, %v2640_v41  ;;  %v1535_v15 = vsel %vm1487_vm1, %v1486_v5, %v20772_v23  ;;  %v1661_v44 = vsel %vm1634_vm4, %v1612_v30, %v20773_v49  ;;  %v20776_v30 = vld [vmem:[#allocation111_spill] sm:$0xff] }
 0x319   :  { %v2889_v52 = vcombine.low %v2767_v60, %v14248_v57  ;;  %v14267_v24 = vpack.c.bf16 %v20774_v63, %v13703_v19  ;;  %v1778_v48 = vsel %vm1732_vm6, %v1729_v25, %v20772_v23  ;;  %v1708_v41 = vsel %vm1683_vm5, %v1659_v13, %v14032_v27  ;;  %v629_v60 = vpop.permute.xlu0 %628 }
 0x31a   :  { %v14277_v45 = vsel %vm19583_vm14, %v2118_v36, %v20765_v3  ;;  %vm20775_vm3 = vcmask 97280   ;;  %v1779_v10 = vsel %vm1732_vm6, %v1730_v51, %v20776_v30  ;;  %v1757_v20 = vsel %vm1732_vm6, %v1708_v41, %v14104_v42  ;;  %v20779_v51 = vld [vmem:[#allocation114_spill] sm:$0xff] }
 0x31b   :  { %v2021_v5 = vsel %vm20775_vm3, %v1972_v22, %v20772_v23  ;;  %v2939_v25 = vsel %vm2912_vm15, %v2889_v52, 0  ;;  %vm20777_vm2 = vmmov %vm20775_vm3  ;;  %v1467_v36 = vsel %vm1438_vm0, %v20773_v49, %v14093_v16  ;;  %v1806_v3 = vsel %vm1781_vm7, %v1757_v20, %v14128_v46  ;;  %v20781_v23 = vld [vmem:[#allocation29_spill] sm:$0xff]  ;;  %v1017_v20 = vpop.permute.xlu1 %1016 }
 0x31c   :  { %v2022_v27 = vsel %vm20777_vm2, %v1973_v29, %v20776_v30  ;;  %v1710_v22 = vsel %vm1683_vm5, %v1661_v44, %v14093_v16  ;;  %v14295_v13 = vand.u32 4294901760, %v2939_v25  ;;  %vm20780_vm9 = vcmask 23552  }
 0x31d   :  { %v1584_v42 = vsel %vm20780_vm9, %v1535_v15, %v20779_v51  ;;  %v1464_v52 = vsel %vm1438_vm0, %v20781_v23, %v13995_v4  ;;  %v1516_v29 = vsel %vm1487_vm1, %v1467_v36, %v14164_v58  ;;  %v1855_v41 = vsel %vm1830_vm8, %v1806_v3, %v1009_v32  ;;  %vm20783_vm11 = vmmov %vm20780_vm9  ;;  %v821_v3 = vpop.permute.xlu0 %820 }
 0x31e   :  { %20778 = vst [vmem:[#allocation89_spill] sm:$0xff] %v14295_v13  ;;  %v1827_v46 = vsel %vm1781_vm7, %v1778_v48, %v20779_v51  ;;  %v1513_v44 = vsel %vm1487_vm1, %v1464_v52, %v14060_v8  ;;  %v14310_v30 = vsub.f32 %v2939_v25, %v14295_v13  ;;  %v1565_v15 = vsel %vm20783_vm11, %v1516_v29, %v14273_v37  ;;  %vm20784_vm12 = vmmov %vm20780_vm9  ;;  %v20789_v52 = vld [vmem:[#allocation36_spill] sm:$0xff]  ;;  %v20790_v29 = vld [vmem:[#allocation117_spill] sm:$0xff] }
 0x31f   :  { %v1562_v4 = vsel %vm20784_vm12, %v1513_v44, %v14132_v2  ;;  %v1759_v36 = vsel %vm1732_vm6, %v1710_v22, %v14164_v58  ;;  %vm20785_vm3 = vcmask 31744   ;;  %vm20786_vm2 = vcmask 105472   ;;  %v20792_v44 = vld [vmem:[#allocation129_spill] sm:$0xff]  ;;  %v20799_v13 = vld [vmem:[#allocation135_spill] sm:$0xff] }
 0x320   :  { %20782 = vst [vmem:[#allocation86_spill] sm:$0xff] %v14310_v30  ;;  %v1614_v32 = vsel %vm20785_vm3, %v1565_v15, %v1017_v20  ;;  %v2070_v48 = vsel %vm20786_vm2, %v2021_v5, %v20779_v51  ;;  %vm20787_vm9 = vcmask 80896   ;;  %vm20788_vm14 = vmmov %vm20785_vm3  ;;  %v1808_v23 = vsel %vm1781_vm7, %v1759_v36, %v14273_v37  ;;  %v20793_v51 = vld [vmem:[#allocation116_spill] sm:$0xff]  ;;  %v1013_v36 = vpop.permute.xlu1 %1012  ;;  %v20797_v5 = vld [vmem:[#allocation131_spill] sm:$0xff] }
 0x321   :  { %v1904_v8 = vsel %vm20787_vm9, %v1855_v41, %v20773_v49  ;;  %v1611_v25 = vsel %vm20788_vm14, %v1562_v4, %v1005_v1  ;;  %v1663_v2 = vsel %vm1634_vm4, %v1614_v32, %v20789_v52  ;;  %vm20791_vm11 = vmmov %vm20785_vm3  ;;  %v1857_v63 = vsel %vm1830_vm8, %v1808_v23, %v1017_v20  ;;  %v20794_v41 = vld [vmem:[#allocation128_spill] sm:$0xff]  ;;  %v20796_v23 = vld [vmem:[#allocation31_spill] sm:$0xff]  ;;  %v2646_v19 = vpop.permute.xlu0 %2645 }
 0x322   :  { %v1633_v22 = vsel %vm20791_vm11, %v1584_v42, %v20790_v29  ;;  %v1712_v15 = vsel %vm1683_vm5, %v1663_v2, %v20792_v44  ;;  %v1828_v49 = vsel %vm1781_vm7, %v1779_v10, %v20793_v51  ;;  %v14338_v1 = vsel %vm1830_vm8, %v1827_v46, %v20790_v29  ;;  %vm20795_vm14 = vmmov %vm20786_vm2 }
 0x323   :  { %v1761_v4 = vsel %vm1732_vm6, %v1712_v15, %v20794_v41  ;;  %v2071_v42 = vsel %vm20795_vm14, %v2022_v27, %v20793_v51  ;;  %v1953_v32 = vsel %vm1928_vm10, %v1904_v8, %v14093_v16  ;;  %v1660_v2 = vsel %vm1634_vm4, %v1611_v25, %v20796_v23  ;;  %vm20800_vm12 = vmmov %vm20787_vm9  ;;  %v20801_v8 = vld [vmem:[#allocation101_spill] sm:$0xff] }
 0x324   :  { %v1810_v10 = vsel %vm1781_vm7, %v1761_v4, %v20797_v5  ;;  %v20798_v46 = vand.u32 4294901760, %v14310_v30  ;;  %v1466_v15 = vsel %vm1438_vm0, %v20796_v23, %v14173_v0  ;;  %v1906_v16 = vsel %vm20800_vm12, %v1857_v63, %v20789_v52  ;;  %vm20806_vm14 = vmmov %vm20800_vm12 }
 0x325   :  { %v1859_v27 = vsel %vm1830_vm8, %v1810_v10, %v20799_v13  ;;  %vm20802_vm3 = vcmask 130048   ;;  %v1515_v51 = vsel %vm1487_vm1, %v1466_v15, %v629_v60  ;;  %v2855_v23 = vcombine.high %v14248_v57, %v14248_v57 }
 0x326   :  { %v3191_v33 = vsub.f32 %v14310_v30, %v20798_v46  ;;  %v2770_v25 = vsel %vm20802_vm3, %v20801_v8, %v2646_v19  ;;  %v14365_v46 = vsel %vm2075_vm13, %v2070_v48, %v20790_v29  ;;  %vm20803_vm2 = vcmask 97280   ;;  %v445_v19 = vpop.permute.xlu1 %444  ;;  %v2644_v48 = vpop.permute.xlu0 %2643  ;;  %v20805_v29 = vld [vmem:[#allocation38_spill] sm:$0xff] }
 0x327   :  { %v2856_v4 = vcombine.high %v2770_v25, %v2770_v25  ;;  %v2002_v10 = vsel %vm20803_vm2, %v1953_v32, %v14164_v58  ;;  %v1709_v63 = vsel %vm1683_vm5, %v1660_v2, %v14173_v0  ;;  %vm20804_vm9 = vcmask 23552   ;;  %v20809_v2 = vld [vmem:[#allocation4_spill] sm:$0xff] }
 0x328   :  { %v3192_v40 = vand.u32 4294901760, %v3191_v33  ;;  %v1564_v30 = vsel %vm20804_vm9, %v1515_v51, %v821_v3  ;;  %v1955_v15 = vsel %vm1928_vm10, %v1906_v16, %v20792_v44  ;;  %v1908_v57 = vsel %vm20806_vm14, %v1859_v27, %v20805_v29  ;;  %v20810_v27 = vld [vmem:[#allocation33_spill] sm:$0xff]  ;;  %vm20818_vm9 = vmmov %vm20803_vm2 }
 0x329   :  { %v1613_v33 = vsel %vm20791_vm11, %v1564_v30, %v1013_v36  ;;  %v2891_v8 = vcombine.low %v2770_v25, %v2856_v4  ;;  %v14381_v58 = vsel %vm1830_vm8, %v1828_v49, %v20807_v7  ;;  %vm20808_vm12 = vcmask 105472  }
 0x32a   :  { %9782 = vmatmul.mubr.f32.gmra.mrb[12].mxu0 %v3192_v40  ;;  %v2051_v0 = vsel %vm20808_vm12, %v2002_v10, %v14273_v37  ;;  %v1758_v32 = vsel %vm1732_vm6, %v1709_v63, %v629_v60  ;;  %v2769_v44 = vsel %vm20802_vm3, %v20809_v2, %v2644_v48  ;;  %v1662_v51 = vsel %vm1634_vm4, %v1613_v33, %v20810_v27  ;;  %v829_v4 = vpop.permute.xlu1 %828  ;;  %v637_v63 = vpop.permute.xlu0 %636 }
 0x32b   :  { %v2100_v30 = vsel %vm2075_vm13, %v2051_v0, %v1017_v20  ;;  %v1807_v40 = vsel %vm1781_vm7, %v1758_v32, %v821_v3  ;;  %v2943_v16 = vsel %vm2912_vm15, %v2891_v8, 0  ;;  %v2890_v25 = vcombine.low %v2855_v23, %v2769_v44 }
 0x32c   :  { %v14393_v49 = vand.u32 4294901760, %v2943_v16  ;;  %v1957_v37 = vsel %vm1928_vm10, %v1908_v57, %v20812_v61  ;;  %v2004_v60 = vsel %vm20803_vm2, %v1955_v15, %v20794_v41  ;;  %v1856_v10 = vsel %vm1830_vm8, %v1807_v40, %v1013_v36  ;;  %v20815_v41 = vld [vmem:[#allocation125_spill] sm:$0xff]  ;;  %vm20824_vm2 = vmmov %vm20806_vm14 }
 0x32d   :  { %v1468_v20 = vsel %vm1438_vm0, %v20810_v27, %v445_v19  ;;  %v1711_v3 = vsel %vm1683_vm5, %v1662_v51, %v445_v19  ;;  %v2941_v23 = vsel %vm2912_vm15, %v2890_v25, 0  ;;  %v14413_v36 = vsel %vm1634_vm4, %v1633_v22, %v20815_v41  ;;  %v20817_v57 = vld [vmem:[#allocation141_spill] sm:$0xff] }
 0x32e   :  { %20811 = vst [vmem:[#allocation10_spill] sm:$0xff] %v14393_v49  ;;  %v14405_v33 = vsub.f32 %v2943_v16, %v14393_v49  ;;  %v14407_v8 = vand.u32 4294901760, %v2941_v23  ;;  %v1517_v61 = vsel %vm1487_vm1, %v1468_v20, %v637_v63  ;;  %v1760_v48 = vsel %vm1732_vm6, %v1711_v3, %v637_v63  ;;  %v1021_v44 = vpop.permute.xlu1 %1020  ;;  %v2650_v51 = vpop.permute.xlu0 %2649  ;;  %v20825_v3 = vld [vmem:[#allocation103_spill] sm:$0xff] }
 0x32f   :  { %vm20816_vm0 = vcmask 121856   ;;  %v2006_v0 = vsel %vm20818_vm9, %v1957_v37, %v20817_v57  ;;  %v14421_v32 = vsel %vm2075_vm13, %v2071_v42, %v20807_v7  ;;  %vm20820_vm11 = vcmask 23552   ;;  %v20823_v42 = vld [vmem:[#allocation35_spill] sm:$0xff] }
 0x330   :  { %20813 = vst [vmem:[#allocation15_spill] sm:$0xff] %v14405_v33  ;;  %20814 = vst [vmem:[#allocation167_spill] sm:$0xff] %v14407_v8  ;;  %v2149_v15 = vsel %vm20816_vm0, %v2100_v30, %v20789_v52  ;;  %v14424_v2 = vsub.f32 %v2941_v23, %v14407_v8  ;;  %v1566_v40 = vsel %vm20820_vm11, %v1517_v61, %v829_v4  ;;  %v19602_v22 = vand.u32 4294901760, %v14405_v33 }
 0x331   :  { %v1809_v16 = vsel %vm1781_vm7, %v1760_v48, %v829_v4  ;;  %v1905_v52 = vsel %vm20806_vm14, %v1856_v10, %v20810_v27  ;;  %vm20821_vm12 = vcmask 31744   ;;  %vm20822_vm3 = vcmask 105472   ;;  %v20827_v10 = vld [vmem:[#allocation140_spill] sm:$0xff] }
 0x332   :  { %20819 = vst [vmem:[#allocation168_spill] sm:$0xff] %v14424_v2  ;;  %v1615_v30 = vsel %vm20821_vm12, %v1566_v40, %v1021_v44  ;;  %v1858_v25 = vsel %vm1830_vm8, %v1809_v16, %v1021_v44  ;;  %v2053_v7 = vsel %vm20822_vm3, %v2004_v60, %v20797_v5  ;;  %vm20826_vm0 = vcmask 130048   ;;  %v20828_v5 = vld [vmem:[#allocation145_spill] sm:$0xff]  ;;  %vm20829_vm9 = vmmov %vm20822_vm3  ;;  %v20830_v40 = vld [vmem:[#allocation142_spill] sm:$0xff] }
 0x333   :  { %v1664_v37 = vsel %vm1634_vm4, %v1615_v30, %v20823_v42  ;;  %v1907_v20 = vsel %vm20824_vm2, %v1858_v25, %v20823_v42  ;;  %v2772_v23 = vsel %vm20826_vm0, %v20825_v3, %v2650_v51  ;;  %v19597_v61 = vand.u32 4294901760, %v14424_v2  ;;  %v2652_v25 = vpop.permute.xlu1 %2651  ;;  %v20833_v3 = vld [vmem:[#allocation115_spill] sm:$0xff]  ;;  %vm20834_vm11 = vmmov %vm20826_vm0 }
 0x334   :  { %v1954_v27 = vsel %vm1928_vm10, %v1905_v52, %v445_v19  ;;  %v1713_v48 = vsel %vm1683_vm5, %v1664_v37, %v20827_v10  ;;  %v1956_v57 = vsel %vm1928_vm10, %v1907_v20, %v20827_v10  ;;  %v2055_v60 = vsel %vm20829_vm9, %v2006_v0, %v20828_v5  ;;  %v20832_v37 = vld [vmem:[#allocation146_spill] sm:$0xff]  ;;  %v2648_v10 = vpop.permute.xlu0 %2647  ;;  %v20836_v5 = vld [vmem:[#allocation151_spill] sm:$0xff]  ;;  %vm20838_vm12 = vmmov %vm20826_vm0 }
 0x335   :  { %v1762_v16 = vsel %vm1732_vm6, %v1713_v48, %v20830_v40  ;;  %v2857_v30 = vcombine.high %v2772_v23, %v2772_v23  ;;  %v3201_v51 = vsub.f32 %v14424_v2, %v19597_v61  ;;  %v3211_v19 = vsub.f32 %v14405_v33, %v19602_v22  ;;  %v20837_v2 = vld [vmem:[#allocation102_spill] sm:$0xff]  ;;  %vm20840_vm3 = vmmov %vm20824_vm2 }
 0x336   :  { %vm20831_vm4 = vcmask 97280   ;;  %v1811_v20 = vsel %vm1781_vm7, %v1762_v16, %v20832_v37  ;;  %v2773_v0 = vsel %vm20834_vm11, %v20833_v3, %v2652_v25  ;;  %v2771_v8 = vsel %vm20838_vm12, %v20837_v2, %v2648_v10  ;;  %v20839_v16 = vld [vmem:[#allocation37_spill] sm:$0xff]  ;;  %vm20841_vm2 = vmmov %vm20829_vm9 }
 0x337   :  { %v2003_v52 = vsel %vm20831_vm4, %v1954_v27, %v637_v63  ;;  %vm20835_vm14 = vmmov %vm20831_vm4  ;;  %v1860_v49 = vsel %vm1830_vm8, %v1811_v20, %v20836_v5  ;;  %v2893_v61 = vcombine.low %v2857_v30, %v2773_v0  ;;  %v3202_v22 = vand.u32 4294901760, %v3201_v51  ;;  %v20842_v20 = vld [vmem:[#allocation150_spill] sm:$0xff]  ;;  %v20843_v0 = vld [vmem:[#allocation152_spill] sm:$0xff] }
 0x338   :  { %v2005_v48 = vsel %vm20835_vm14, %v1956_v57, %v20830_v40  ;;  %v2892_v33 = vcombine.low %v2771_v8, %v2772_v23  ;;  %v3212_v63 = vand.u32 4294901760, %v3211_v19  ;;  %v2102_v27 = vsel %vm2075_vm13, %v2053_v7, %v20799_v13  ;;  %v2656_v40 = vpop.permute.xlu1 %2655  ;;  %vm20845_vm0 = vmmov %vm20841_vm2  ;;  %v20851_v19 = vld [vmem:[#allocation155_spill] sm:$0xff] }
 0x339   :  { %v1909_v25 = vsel %vm20840_vm3, %v1860_v49, %v20839_v16  ;;  %v2052_v3 = vsel %vm20841_vm2, %v2003_v52, %v829_v4  ;;  %v2947_v57 = vsel %vm2912_vm15, %v2893_v61, 0  ;;  %9784 = vmatprep.mubr.f32.mxu0 %v3202_v22  ;;  %v2104_v30 = vsel %vm2075_vm13, %v2055_v60, %v20842_v20  ;;  %v2654_v49 = vpop.permute.xlu0 %2653  ;;  %vm20846_vm9 = vmmov %vm20840_vm3  ;;  %v20859_v20 = vld [vmem:[#allocation156_spill] sm:$0xff] }
 0x33a   :  { %v1958_v2 = vsel %vm1928_vm10, %v1909_v25, %v20843_v0  ;;  %v2101_v8 = vsel %vm2075_vm13, %v2052_v3, %v1021_v44  ;;  %v14479_v23 = vand.u32 4294901760, %v2947_v57  ;;  %v2945_v13 = vsel %vm2912_vm15, %v2892_v33, 0  ;;  %9785 = vmatmul.mubr.f32.gmra.mrb[14].mxu0 %v3212_v63  ;;  %vm20848_vm4 = vmmov %vm20834_vm11  ;;  %v20861_v0 = vld [vmem:[#allocation122_spill] sm:$0xff] }
 0x33b   :  { %v2054_v4 = vsel %vm20845_vm0, %v2005_v48, %v20832_v37  ;;  %v1925_v22 = vsel %vm20846_vm9, %v14338_v1, %v20815_v41  ;;  %v14487_v7 = vand.u32 4294901760, %v2945_v13  ;;  %v2774_v61 = vsel %vm20848_vm4, %v2149_v15, %v2654_v49  ;;  %v20854_v37 = vld [vmem:[#allocation40_spill] sm:$0xff]  ;;  %vm20856_vm0 = vmmov %vm20848_vm4 }
 0x33c   :  { %20844 = vst [vmem:[#allocation87_spill] sm:$0xff] %v14479_v23  ;;  %vm20849_vm11 = vcmask 121856   ;;  %v14496_v33 = vsub.f32 %v2947_v57, %v14479_v23  ;;  %v2858_v60 = vcombine.high %v2774_v61, %v2774_v61  ;;  %vm20852_vm12 = vcmask 97280   ;;  %vm20857_vm9 = vmmov %vm20856_vm0 }
 0x33d   :  { %20847 = vst [vmem:[#allocation54_spill] sm:$0xff] %v14487_v7  ;;  %v14493_v44 = vsel %vm20849_vm11, %v14365_v46, %v20815_v41  ;;  %vm20850_vm14 = vmmov %vm20849_vm11  ;;  %v2007_v52 = vsel %vm20852_vm12, %v1958_v2, %v20851_v19  ;;  %v14503_v1 = vsub.f32 %v2945_v13, %v14487_v7  ;;  %v2662_v41 = vpop.permute.xlu1 %2661  ;;  %v2103_v10 = vsel %vm2075_vm13, %v2054_v4, %v20836_v5  ;;  %v20864_v19 = vld [vmem:[#allocation112_spill] sm:$0xff] }
 0x33e   :  { %v2151_v51 = vsel %vm20850_vm14, %v2102_v27, %v20805_v29  ;;  %vm20853_vm3 = vmmov %vm20849_vm11  ;;  %v2894_v63 = vcombine.low %v2774_v61, %v2858_v60  ;;  %v2658_v27 = vpop.permute.xlu0 %2657  ;;  %v19607_v25 = vand.u32 4294901760, %v14496_v33  ;;  %vm20860_vm11 = vcmask 105472  }
 0x33f   :  { %v2150_v15 = vsel %vm20853_vm3, %v2101_v8, %v20823_v42  ;;  %vm20855_vm2 = vmmov %vm20853_vm3  ;;  %v19609_v42 = vand.u32 4294901760, %v14503_v1  ;;  %v1731_v5 = vsel %vm1683_vm5, %v14413_v36, %v20861_v0 }
 0x340   :  { %v2153_v46 = vsel %vm20855_vm2, %v2104_v30, %v20854_v37  ;;  %v2775_v48 = vsel %vm20856_vm0, %v2150_v15, %v2656_v40  ;;  %vm20858_vm4 = vmmov %vm20856_vm0  ;;  %v2056_v30 = vsel %vm20860_vm11, %v2007_v52, %v20859_v20  ;;  %v2949_v40 = vsel %vm2912_vm15, %v2894_v63, 0  ;;  %v20866_v37 = vld [vmem:[#allocation158_spill] sm:$0xff] }
 0x341   :  { %v2778_v29 = vsel %vm20857_vm9, %v2153_v46, %v2662_v41  ;;  %v2776_v57 = vsel %vm20858_vm4, %v2151_v51, %v2658_v27  ;;  %v3231_v8 = vsub.f32 %v14496_v33, %v19607_v25  ;;  %v14525_v13 = vand.u32 4294901760, %v2949_v40  ;;  %v2666_v4 = vpop.permute.xlu1 %2665  ;;  %vm20863_vm14 = vmmov %vm20855_vm2 }
 0x342   :  { %v2860_v3 = vcombine.high %v2778_v29, %v2778_v29  ;;  %v2895_v2 = vcombine.low %v2775_v48, %v2776_v57  ;;  %v2152_v61 = vsel %vm20863_vm14, %v2103_v10, %v20839_v16  ;;  %v3221_v60 = vsub.f32 %v14503_v1, %v19609_v42  ;;  %vm20865_vm5 = vmmov %vm20856_vm0  ;;  %v2660_v15 = vpop.permute.xlu0 %2659 }
 0x343   :  { %20862 = vst [vmem:[#allocation25_spill] sm:$0xff] %v14525_v13  ;;  %v2859_v51 = vcombine.high %v2776_v57, %v2776_v57  ;;  %v2780_v52 = vsel %vm20865_vm5, %v20864_v19, %v2666_v4  ;;  %v2105_v46 = vsel %vm2075_vm13, %v2056_v30, %v20866_v37  ;;  %v14538_v41 = vsub.f32 %v2949_v40, %v14525_v13  ;;  %vm20869_vm12 = vmmov %vm20856_vm0 }
 0x344   :  { %v2897_v49 = vcombine.low %v2778_v29, %v2860_v3  ;;  %v2951_v36 = vsel %vm2912_vm15, %v2895_v2, 0  ;;  %v3232_v10 = vand.u32 4294901760, %v3231_v8  ;;  %v1974_v63 = vsel %vm1928_vm10, %v1925_v22, %v20861_v0  ;;  %v20873_v22 = vld [vmem:[#allocation126_spill] sm:$0xff]  ;;  %vm20874_vm3 = vmmov %vm20856_vm0 }
 0x345   :  { %v14541_v16 = vand.u32 4294901760, %v2951_v36  ;;  %v2777_v27 = vsel %vm20869_vm12, %v2152_v61, %v2660_v15  ;;  %v3222_v3 = vand.u32 4294901760, %v3221_v60  ;;  %v2861_v20 = vcombine.high %v2780_v52, %v2780_v52  ;;  %v2668_v40 = vpop.permute.xlu1 %2667  ;;  %v20875_v61 = vld [vmem:[#allocation39_spill] sm:$0xff]  ;;  %vm20882_vm4 = vmmov %vm20855_vm2 }
 0x346   :  { %v2955_v48 = vsel %vm2912_vm15, %v2897_v49, 0  ;;  %v2896_v30 = vcombine.low %v2859_v51, %v2777_v27  ;;  %v19606_v2 = vand.u32 4294901760, %v14538_v41  ;;  %v20871_v49 = vld [vmem:[#allocation134_spill] sm:$0xff]  ;;  %v2781_v0 = vsel %vm20874_vm3, %v20873_v22, %v2668_v40  ;;  %v20877_v40 = vld [vmem:[#allocation123_spill] sm:$0xff]  ;;  %vm20885_vm11 = vmmov %vm20856_vm0 }
 0x347   :  { %20867 = vst [vmem:[#allocation43_spill] sm:$0xff] %v14541_v16  ;;  %v14545_v29 = vand.u32 4294901760, %v2955_v48  ;;  %v14549_v57 = vsub.f32 %v2951_v36, %v14541_v16  ;;  %v1780_v4 = vsel %vm1732_vm6, %v1731_v5, %v20871_v49  ;;  %9787 = vmatprep.mubr.f32.mxu0 %v3222_v3  ;;  %v2154_v60 = vsel %vm20855_vm2, %v2105_v46, %v20875_v61  ;;  %v2664_v36 = vpop.permute.xlu0 %2663  ;;  %vm20889_vm14 = vmmov %vm20856_vm0 }
 0x348   :  { %v2953_v19 = vsel %vm2912_vm15, %v2896_v30, 0  ;;  %v2899_v51 = vcombine.low %v2861_v20, %v2781_v0  ;;  %9788 = vmatmul.mubr.f32.gmra.mrb[16].mxu0 %v3232_v10  ;;  %v2779_v15 = vsel %vm20856_vm0, %v2154_v60, %v2664_v36  ;;  %v3241_v5 = vsub.f32 %v14538_v41, %v19606_v2  ;;  %vm20896_vm3 = vmmov %vm20856_vm0 }
 0x349   :  { %20868 = vst [vmem:[#allocation46_spill] sm:$0xff] %v14545_v29  ;;  %20870 = vst [vmem:[#allocation53_spill] sm:$0xff] %v14549_v57  ;;  %v14555_v8 = vsub.f32 %v2955_v48, %v14545_v29  ;;  %v14566_v37 = vand.u32 4294901760, %v2953_v19  ;;  %v2898_v48 = vcombine.low %v2779_v15, %v2780_v52  ;;  %v19605_v27 = vand.u32 4294901760, %v14549_v57  ;;  %v2672_v10 = vpop.permute.xlu1 %2671 }
 0x34a   :  { %vm20878_vm6 = vcmask 80896   ;;  %v2959_v20 = vsel %vm2912_vm15, %v2899_v51, 0  ;;  %v3242_v30 = vand.u32 4294901760, %v3241_v5  ;;  %vm20879_vm9 = vcmask 97280   ;;  %vm20899_vm2 = vmmov %vm20856_vm0 }
 0x34b   :  { %20872 = vst [vmem:[#allocation169_spill] sm:$0xff] %v14555_v8  ;;  %20876 = vst [vmem:[#allocation12_spill] sm:$0xff] %v14566_v37  ;;  %v19608_v3 = vand.u32 4294901760, %v14555_v8  ;;  %v1926_v46 = vsel %vm20878_vm6, %v14381_v58, %v20877_v40  ;;  %v14576_v22 = vsel %vm20879_vm9, %v1974_v63, %v20871_v49  ;;  %v14579_v0 = vsub.f32 %v2953_v19, %v14566_v37  ;;  %v2670_v60 = vpop.permute.xlu0 %2669  ;;  %v20884_v63 = vld [vmem:[#allocation121_spill] sm:$0xff] }
 0x34c   :  { %v14581_v52 = vand.u32 4294901760, %v2959_v20  ;;  %v2957_v61 = vsel %vm2912_vm15, %v2898_v48, 0  ;;  %v14587_v58 = vsel %vm20882_vm4, %v14421_v32, %v20877_v40  ;;  %v1829_v36 = vsel %vm1781_vm7, %v1780_v4, %v20656_v55  ;;  %9790 = vmatprep.mubr.f32.mxu0 %v3242_v30  ;;  %v20886_v48 = vld [vmem:[#allocation118_spill] sm:$0xff]  ;;  %vm20887_vm7 = vmmov %vm20856_vm0 }
 0x34d   :  { %20880 = vst [vmem:[#allocation56_spill] sm:$0xff] %v14579_v0  ;;  %v14591_v51 = vand.u32 4294901760, %v2957_v61  ;;  %v2782_v49 = vsel %vm20885_vm11, %v20884_v63, %v2670_v60  ;;  %v3251_v19 = vsub.f32 %v14549_v57, %v19605_v27  ;;  %v19614_v32 = vand.u32 4294901760, %v14579_v0  ;;  %v2678_v27 = vpop.permute.xlu1 %2677  ;;  %vm20893_vm5 = vmmov %vm20878_vm6 }
 0x34e   :  { %20881 = vst [vmem:[#allocation55_spill] sm:$0xff] %v14581_v52  ;;  %v14599_v15 = vsub.f32 %v2959_v20, %v14581_v52  ;;  %v2862_v5 = vcombine.high %v2782_v49, %v2782_v49  ;;  %v3271_v4 = vsub.f32 %v14555_v8, %v19608_v3  ;;  %v1975_v40 = vsel %vm1928_vm10, %v1926_v46, %v20886_v48  ;;  %v20888_v46 = vld [vmem:[#allocation149_spill] sm:$0xff]  ;;  %vm20895_vm12 = vmmov %vm20879_vm9 }
 0x34f   :  { %20883 = vst [vmem:[#allocation17_spill] sm:$0xff] %v14591_v51  ;;  %v1878_v30 = vsel %vm1830_vm8, %v1829_v36, %v20659_v34  ;;  %v14610_v60 = vsub.f32 %v2957_v61, %v14591_v51  ;;  %v3252_v63 = vand.u32 4294901760, %v3251_v19  ;;  %v2786_v2 = vsel %vm20887_vm7, %v14049_v11, %v2678_v27  ;;  %v2674_v25 = vpop.permute.xlu0 %2673  ;;  %v20890_v61 = vld [vmem:[#allocation144_spill] sm:$0xff]  ;;  %vm20891_vm8 = vmmov %vm20856_vm0 }
 0x350   :  { %v2900_v20 = vcombine.low %v2782_v49, %v2862_v5  ;;  %v3261_v3 = vsub.f32 %v14579_v0, %v19614_v32  ;;  %v19617_v42 = vand.u32 4294901760, %v14599_v15  ;;  %v2783_v48 = vsel %vm20889_vm14, %v20888_v46, %v2672_v10  ;;  %v20894_v46 = vld [vmem:[#allocation120_spill] sm:$0xff]  ;;  %vm20901_vm6 = vmmov %vm20899_vm2 }
 0x351   :  { %9791 = vmatmul.mubr.f32.gmra.mrb[18].mxu0 %v3252_v63  ;;  %v2864_v36 = vcombine.high %v2786_v2, %v2786_v2  ;;  %v2784_v19 = vsel %vm20891_vm8, %v20890_v61, %v2674_v25  ;;  %v19618_v49 = vand.u32 4294901760, %v14610_v60  ;;  %v3272_v8 = vand.u32 4294901760, %v3271_v4  ;;  %v2682_v0 = vpop.permute.xlu1 %2681  ;;  %vm20902_vm9 = vmmov %vm20899_vm2 }
 0x352   :  { %v2961_v5 = vsel %vm2912_vm15, %v2900_v20, 0  ;;  %v2901_v11 = vcombine.low %v2783_v48, %v2784_v19  ;;  %v3262_v27 = vand.u32 4294901760, %v3261_v3  ;;  %v3291_v63 = vsub.f32 %v14599_v15, %v19617_v42  ;;  %vm20905_vm4 = vmmov %vm20895_vm12 }
 0x353   :  { %v14624_v57 = vand.u32 4294901760, %v2961_v5  ;;  %v2903_v32 = vcombine.low %v2786_v2, %v2864_v36  ;;  %v3281_v10 = vsub.f32 %v14610_v60, %v19618_v49  ;;  %v1927_v25 = vsel %vm20893_vm5, %v1878_v30, %v20662_v14  ;;  %v2676_v4 = vpop.permute.xlu0 %2675  ;;  %vm20909_vm7 = vmmov %vm20899_vm2 }
 0x354   :  { %v2024_v20 = vsel %vm20895_vm12, %v1975_v40, %v20894_v46  ;;  %v2963_v3 = vsel %vm2912_vm15, %v2901_v11, 0  ;;  %9793 = vmatprep.mubr.f32.mxu0 %v3262_v27  ;;  %v2788_v2 = vsel %vm20896_vm3, %v14073_v62, %v2682_v0  ;;  %v2863_v61 = vcombine.high %v2784_v19, %v2784_v19  ;;  %vm20912_vm8 = vmmov %vm20899_vm2 }
 0x355   :  { %20892 = vst [vmem:[#allocation79_spill] sm:$0xff] %v14624_v57  ;;  %v14640_v48 = vsub.f32 %v2961_v5, %v14624_v57  ;;  %v2967_v36 = vsel %vm2912_vm15, %v2903_v32, 0  ;;  %v14643_v42 = vand.u32 4294901760, %v2963_v3  ;;  %9794 = vmatmul.mubr.f32.gmra.mrb[20].mxu0 %v3272_v8  ;;  %v2785_v40 = vsel %vm20899_vm2, %v13949_v18, %v2676_v4  ;;  %v2684_v5 = vpop.permute.xlu1 %2683  ;;  %vm20913_vm5 = vmmov %vm20899_vm2 }
 0x356   :  { %v14645_v30 = vand.u32 4294901760, %v2967_v36  ;;  %v3282_v11 = vand.u32 4294901760, %v3281_v10  ;;  %v3292_v27 = vand.u32 4294901760, %v3291_v63  ;;  %v2865_v62 = vcombine.high %v2788_v2, %v2788_v2  ;;  %vm20914_vm12 = vmmov %vm20899_vm2 }
 0x357   :  { %20897 = vst [vmem:[#allocation80_spill] sm:$0xff] %v14643_v42  ;;  %v14650_v46 = vsub.f32 %v2963_v3, %v14643_v42  ;;  %v2902_v0 = vcombine.low %v2863_v61, %v2785_v40  ;;  %v19630_v49 = vand.u32 4294901760, %v14640_v48  ;;  %vm20900_vm0 = vcmask 105472   ;;  %v2680_v10 = vpop.permute.xlu0 %2679 }
 0x358   :  { %20898 = vst [vmem:[#allocation14_spill] sm:$0xff] %v14645_v30  ;;  %v2073_v32 = vsel %vm20900_vm0, %v2024_v20, %v13076_v59  ;;  %v1976_v8 = vsel %vm1928_vm10, %v1927_v25, %v13335_v31  ;;  %v14658_v19 = vsub.f32 %v2967_v36, %v14645_v30  ;;  %9796 = vmatprep.mubr.f32.mxu0 %v3282_v11  ;;  %vm20904_vm10 = vmmov %vm20900_vm0  ;;  %vm20911_vm14 = vcmask 121856  }
 0x359   :  { %v2789_v18 = vsel %vm20901_vm6, %v14214_v47, %v2684_v5  ;;  %v2965_v63 = vsel %vm2912_vm15, %v2902_v0, 0  ;;  %9797 = vmatmul.mubr.f32.gmra.mrb[22].mxu0 %v3292_v27  ;;  %v2787_v4 = vsel %vm20902_vm9, %v14138_v12, %v2680_v10  ;;  %v3301_v59 = vsub.f32 %v14640_v48, %v19630_v49  ;;  %v2688_v40 = vpop.permute.xlu1 %2687  ;;  %vm20907_vm11 = vmmov %vm20900_vm0  ;;  %v20910_v10 = vld [vmem:[#allocation136_spill] sm:$0xff]  ;;  %v20945_v49 = vld [vmem:[#allocation157_spill] sm:$0xff] }
 0x35a   :  { %v2905_v3 = vcombine.low %v2865_v62, %v2789_v18  ;;  %v14668_v31 = vand.u32 4294901760, %v2965_v63  ;;  %v2904_v25 = vcombine.low %v2787_v4, %v2788_v2  ;;  %v19629_v20 = vand.u32 4294901760, %v14650_v46  ;;  %vm20916_vm3 = vmmov %vm20911_vm14 }
 0x35b   :  { %v19619_v36 = vand.u32 4294901760, %v14658_v19  ;;  %v2122_v47 = vsel %vm2075_vm13, %v2073_v32, %v20658_v53  ;;  %v3302_v11 = vand.u32 4294901760, %v3301_v59  ;;  %v2072_v12 = vsel %vm20904_vm10, %v14576_v22, %v20656_v55  ;;  %v2686_v5 = vpop.permute.xlu0 %2685  ;;  %vm20919_vm0 = vmmov %vm20899_vm2 }
 0x35c   :  { %20903 = vst [vmem:[#allocation57_spill] sm:$0xff] %v14668_v31  ;;  %v2971_v61 = vsel %vm2912_vm15, %v2905_v3, 0  ;;  %v2025_v27 = vsel %vm20905_vm4, %v1976_v8, %v13317_v50  ;;  %v14681_v2 = vsub.f32 %v2965_v63, %v14668_v31  ;;  %v2969_v0 = vsel %vm2912_vm15, %v2904_v25, 0  ;;  %vm20921_vm6 = vmmov %vm20916_vm3 }
 0x35d   :  { %v14683_v62 = vand.u32 4294901760, %v2971_v61  ;;  %v2074_v53 = vsel %vm20907_vm11, %v2025_v27, %v13363_v6  ;;  %v14688_v32 = vand.u32 4294901760, %v2969_v0  ;;  %v2790_v18 = vsel %vm20909_vm7, %v14179_v17, %v2686_v5  ;;  %9799 = vmatprep.mubr.f32.mxu0 %v3302_v11  ;;  %v2694_v59 = vpop.permute.xlu1 %2693  ;;  %vm20922_vm9 = vmmov %vm20919_vm0 }
 0x35e   :  { %v3311_v50 = vsub.f32 %v14650_v46, %v19629_v20  ;;  %v2866_v22 = vcombine.high %v2790_v18, %v2790_v18  ;;  %v19628_v8 = vand.u32 4294901760, %v14681_v2  ;;  %v3331_v6 = vsub.f32 %v14658_v19, %v19619_v36 }
 0x35f   :  { %20906 = vst [vmem:[#allocation170_spill] sm:$0xff] %v14683_v62  ;;  %20908 = vst [vmem:[#allocation171_spill] sm:$0xff] %v14688_v32  ;;  %v14696_v55 = vsub.f32 %v2971_v61, %v14683_v62  ;;  %v2171_v63 = vsel %vm20911_vm14, %v2122_v47, %v20910_v10  ;;  %v2123_v17 = vsel %vm2075_vm13, %v2074_v53, %v13497_v26  ;;  %v2690_v11 = vpop.permute.xlu0 %2689  ;;  %vm5224_vm10 = vcmask 1045504  }
 0x360   :  { %v14707_v3 = vsub.f32 %v2969_v0, %v14688_v32  ;;  %v3312_v4 = vand.u32 4294901760, %v3311_v50  ;;  %v2906_v25 = vcombine.low %v2790_v18, %v2866_v22  ;;  %v2794_v61 = vsel %vm20912_vm8, %v14587_v58, %v2694_v59 }
 0x361   :  { %v3321_v27 = vsub.f32 %v14681_v2, %v19628_v8  ;;  %v19620_v5 = vand.u32 4294901760, %v14696_v55  ;;  %v2791_v47 = vsel %vm20913_vm5, %v14258_v21, %v2688_v40  ;;  %v2868_v26 = vcombine.high %v2794_v61, %v2794_v61  ;;  %v2698_v36 = vpop.permute.xlu1 %2697 }
 0x362   :  { %9800 = vmatmul.mubr.f32.gmra.mrb[24].mxu0 %v3312_v4  ;;  %v2792_v0 = vsel %vm20914_vm12, %v14277_v45, %v2690_v11  ;;  %v19627_v53 = vand.u32 4294901760, %v14707_v3  ;;  %v2973_v18 = vsel %vm2912_vm15, %v2906_v25, 0  ;;  %v3332_v22 = vand.u32 4294901760, %v3331_v6 }
 0x363   :  { %v2907_v58 = vcombine.low %v2791_v47, %v2792_v0  ;;  %v3322_v50 = vand.u32 4294901760, %v3321_v27  ;;  %v14721_v10 = vand.u32 4294901760, %v2973_v18  ;;  %v2909_v59 = vcombine.low %v2794_v61, %v2868_v26  ;;  %v2692_v25 = vpop.permute.xlu0 %2691 }
 0x364   :  { %v3341_v21 = vsub.f32 %v14707_v3, %v19627_v53  ;;  %v3351_v40 = vsub.f32 %v14696_v55, %v19620_v5  ;;  %v2172_v45 = vsel %vm20916_vm3, %v2123_v17, %v13580_v35  ;;  %v2796_v6 = vsel %vm20899_vm2, %v2171_v63, %v2698_v36  ;;  %v20943_v53 = vld [vmem:[#allocation143_spill] sm:$0xff] }
 0x365   :  { %20915 = vst [vmem:[#allocation59_spill] sm:$0xff] %v14721_v10  ;;  %v2975_v4 = vsel %vm2912_vm15, %v2907_v58, 0  ;;  %9802 = vmatprep.mubr.f32.mxu0 %v3322_v50  ;;  %v2121_v61 = vsel %vm2075_vm13, %v2072_v12, %v20659_v34  ;;  %v14736_v11 = vsub.f32 %v2973_v18, %v14721_v10  ;;  %v2979_v27 = vsel %vm2912_vm15, %v2909_v59, 0  ;;  %v2700_v18 = vpop.permute.xlu1 %2699  ;;  %vm20920_vm13 = vmmov %vm20919_vm0 }
 0x366   :  { %v2867_v47 = vcombine.high %v2792_v0, %v2792_v0  ;;  %v14739_v26 = vand.u32 4294901760, %v2975_v4  ;;  %9803 = vmatmul.mubr.f32.gmra.mrb[26].mxu0 %v3332_v22  ;;  %v14741_v5 = vand.u32 4294901760, %v2979_v27  ;;  %v2793_v35 = vsel %vm20919_vm0, %v14493_v44, %v2692_v25 }
 0x367   :  { %v3342_v17 = vand.u32 4294901760, %v3341_v21  ;;  %v3352_v36 = vand.u32 4294901760, %v3351_v40  ;;  %v2869_v34 = vcombine.high %v2796_v6, %v2796_v6  ;;  %v19626_v58 = vand.u32 4294901760, %v14736_v11  ;;  %v2696_v44 = vpop.permute.xlu0 %2695 }
 0x368   :  { %20917 = vst [vmem:[#allocation173_spill] sm:$0xff] %v14739_v26  ;;  %20918 = vst [vmem:[#allocation61_spill] sm:$0xff] %v14741_v5  ;;  %v14746_v63 = vsub.f32 %v2975_v4, %v14739_v26  ;;  %v2908_v12 = vcombine.low %v2867_v47, %v2793_v35  ;;  %v14750_v0 = vsub.f32 %v2979_v27, %v14741_v5  ;;  %v20944_v8 = vand.u32 4294901760, %v20943_v53  ;;  %v20954_v53 = vld [vmem:[#allocation11_spill] sm:$0xff] }
 0x369   :  { %9805 = vmatprep.mubr.f32.mxu0 %v3342_v17  ;;  %v2797_v50 = vsel %vm20920_vm13, %v2172_v45, %v2700_v18  ;;  %v2170_v22 = vsel %vm20921_vm6, %v2121_v61, %v20662_v14  ;;  %v3361_v4 = vsub.f32 %v14736_v11, %v19626_v58  ;;  %vm19984_vm4 = vcmask 1044480  }
 0x36a   :  { %v2977_v59 = vsel %vm2912_vm15, %v2908_v12, 0  ;;  %v2911_v21 = vcombine.low %v2869_v34, %v2797_v50  ;;  %9806 = vmatmul.mubr.f32.gmra.mrb[28].mxu0 %v3352_v36  ;;  %v2795_v40 = vsel %vm20922_vm9, %v2170_v22, %v2696_v44  ;;  %v19625_v47 = vand.u32 4294901760, %v14746_v63 }
 0x36b   :  { %v14760_v25 = vand.u32 4294901760, %v2977_v59  ;;  %v2910_v27 = vcombine.low %v2795_v40, %v2796_v6  ;;  %v3362_v35 = vand.u32 4294901760, %v3361_v4  ;;  %v19621_v14 = vand.u32 4294901760, %v14750_v0 }
 0x36c   :  { %v2983_v45 = vsel %vm2912_vm15, %v2911_v21, 0  ;;  %v3371_v34 = vsub.f32 %v14746_v63, %v19625_v47  ;;  %v20941_v47 = vld [vmem:[#allocation138_spill] sm:$0xff]  ;;  %vm6072_vm11 = vcmask 162816   ;;  %vm6089_vm7 = vcmask 244736  }
 0x36d   :  { %20923 = vst [vmem:[#allocation2_spill] sm:$0xff] %v14760_v25  ;;  %v14766_v61 = vsub.f32 %v2977_v59, %v14760_v25  ;;  %v14768_v17 = vand.u32 4294901760, %v2983_v45  ;;  %v2981_v36 = vsel %vm2912_vm15, %v2910_v27, 0  ;;  %9808 = vmatprep.mubr.f32.mxu0 %v3362_v35  ;;  %v3391_v44 = vsub.f32 %v14750_v0, %v19621_v14  ;;  %v20927_v14 = vld [vmem:[#allocation147_spill] sm:$0xff] }
 0x36e   :  { %v14774_v12 = vand.u32 4294901760, %v2981_v36  ;;  %v3372_v18 = vand.u32 4294901760, %v3371_v34  ;;  %v20942_v58 = vand.u32 4294901760, %v20941_v47  ;;  %v20952_v47 = vld [vmem:[#allocation44_spill] sm:$0xff]  ;;  %vm19957_vm15 = vcmask 1046528  }
 0x36f   :  { %20924 = vst [vmem:[#allocation58_spill] sm:$0xff] %v14768_v17  ;;  %v14777_v6 = vsub.f32 %v2983_v45, %v14768_v17  ;;  %v19624_v50 = vand.u32 4294901760, %v14766_v61  ;;  %v3392_v45 = vand.u32 4294901760, %v3391_v44  ;;  %v20929_v44 = vld [vmem:[#allocation159_spill] sm:$0xff]  ;;  %vm6106_vm14 = vcmask 326656  }
 0x370   :  { %20925 = vst [vmem:[#allocation22_spill] sm:$0xff] %v14774_v12  ;;  %v14781_v22 = vsub.f32 %v2981_v36, %v14774_v12  ;;  %9809 = vmatmul.mubr.f32.gmra.mrb[30].mxu0 %v3372_v18  ;;  %v20926_v18 = vld [vmem:[#allocation132_spill] sm:$0xff]  ;;  %v10159_v20 = vpack.c.bf16 %v20944_v8, %v20942_v58  ;;  %v20953_v8 = vld [vmem:[#allocation13_spill] sm:$0xff]  ;;  %v20955_v58 = vld [vmem:[#allocation86_spill] sm:$0xff]  ;;  %vm21278_vm8 = vcmask 80896   ;;  %vm6123_vm12 = vcmask 408576  }
 0x371   :  { %v3381_v59 = vsub.f32 %v14766_v61, %v19624_v50  ;;  %v19622_v21 = vand.u32 4294901760, %v14777_v6  ;;  %v20940_v50 = vld [vmem:[#allocation85_spill] sm:$0xff]  ;;  %vm21286_vm5 = vmmov %vm21278_vm8  ;;  %vm6140_vm3 = vcmask 490496   ;;  %vm6157_vm2 = vcmask 572416  }
 0x372   :  { %v19623_v40 = vand.u32 4294901760, %v14781_v22  ;;  %vm6174_vm0 = vcmask 654336   ;;  %vm7288_vm13 = vcmask 1041408   ;;  %vm21359_vm6 = vmmov %vm21286_vm5 }
 0x373   :  { %v3382_v4 = vand.u32 4294901760, %v3381_v59  ;;  %v3411_v27 = vsub.f32 %v14777_v6, %v19622_v21  ;;  %v20928_v59 = vld [vmem:[#allocation9_spill] sm:$0xff]  ;;  %v20938_v21 = vld [vmem:[#allocation148_spill] sm:$0xff]  ;;  %vm21366_vm9 = vmmov %vm21286_vm5 }
 0x374   :  { %v3401_v35 = vsub.f32 %v14781_v22, %v19623_v40  ;;  %v20939_v40 = vld [vmem:[#allocation42_spill] sm:$0xff] }
 0x375   :  { %9811 = vmatprep.mubr.f32.mxu0 %v3382_v4  ;;  %v3412_v34 = vand.u32 4294901760, %v3411_v27  ;;  %v20930_v4 = vld [vmem:[#allocation21_spill] sm:$0xff]  ;;  %v20932_v27 = vld [vmem:[#allocation166_spill] sm:$0xff] }
 0x376   :  { %9812 = vmatmul.mubr.f32.gmra.mrb[32].mxu0 %v3392_v45  ;;  %v3402_v36 = vand.u32 4294901760, %v3401_v35  ;;  %v20933_v45 = vld [vmem:[#allocation7_spill] sm:$0xff]  ;;  %v20934_v35 = vld [vmem:[#allocation89_spill] sm:$0xff] }
 0x378   :  { %9814 = vmatprep.mubr.f32.mxu0 %v3402_v36  ;;  %v20936_v36 = vld [vmem:[#allocation10_spill] sm:$0xff] }
 0x37a   :  { %9815 = vmatmul.mubr.f32.gmra.mrb[34].mxu0 %v3412_v34  ;;  %v20937_v34 = vld [vmem:[#allocation137_spill] sm:$0xff] }
 0x37b   :  { %9825 = vmatprep.mubr.f32.mxu0 %v20926_v18 }
 0x37e   :  { %9826 = vmatmul.mubr.f32.vlgmr.msra.gmra.mrb[0].mxu0 %v20927_v14 }
 0x37f   :  { %10146 = vmatpush3.bf16.msra.mxu0 %v13953_v28  ;;  %9828 = vmatprep.mubr.f32.mxu0 %v20928_v59  ;;  %v20931_v28 = vld [vmem:[#allocation6_spill] sm:$0xff] }
 0x380   :  { %10148 = vmatprep.subr.bf16.mxu0 %v14267_v24 }
 0x382   :  { %9829 = vmatmul.mubr.f32.gmra.mrb[2].mxu0 %v20929_v44 }
 0x383   :  { %9831 = vmatprep.mubr.f32.mxu0 %v13813_v38  ;;  %10150 = vmatpush3.bf16.msra.mxu0 %v14267_v24  ;;  %v20935_v24 = vld [vmem:[#allocation167_spill] sm:$0xff] }
 0x384   :  { %10152 = vmatprep.subr.bf16.mxu0 %v20930_v4 }
 0x386   :  { %9832 = vmatmul.mubr.f32.gmra.mrb[4].mxu0 %v13846_v43 }
 0x387   :  { %9834 = vmatprep.mubr.f32.mxu0 %v13888_v54 }
 0x38a   :  { %9835 = vmatmul.mubr.f32.gmra.mrb[6].mxu0 %v13904_v9 }
 0x38b   :  { %9837 = vmatprep.mubr.f32.mxu0 %v13938_v56 }
 0x38e   :  { %9838 = vmatmul.mubr.f32.gmra.mrb[8].mxu0 %v13912_v39 }
 0x38f   :  { %9840 = vmatprep.mubr.f32.mxu0 %v20931_v28 }
 0x392   :  { %9841 = vmatmul.mubr.f32.gmra.mrb[10].mxu0 %v20932_v27 }
 0x393   :  { %9843 = vmatprep.mubr.f32.mxu0 %v20933_v45 }
 0x396   :  { %9844 = vmatmul.mubr.f32.gmra.mrb[12].mxu0 %v20934_v35 }
 0x397   :  { %9846 = vmatprep.mubr.f32.mxu0 %v20935_v24 }
 0x39a   :  { %9847 = vmatmul.mubr.f32.gmra.mrb[14].mxu0 %v20936_v36 }
 0x39b   :  { %9849 = vmatprep.mubr.f32.mxu0 %v14487_v7  ;;  %v20968_v7 = vand.u32 4294901760, %v20945_v49 }
 0x39e   :  { %9850 = vmatmul.mubr.f32.gmra.mrb[16].mxu0 %v14479_v23  ;;  %v20967_v23 = vand.u32 4294901760, %v20939_v40 }
 0x39f   :  { %9852 = vmatprep.mubr.f32.mxu0 %v14525_v13  ;;  %v20966_v13 = vand.u32 4294901760, %v20938_v21 }
 0x3a2   :  { %9853 = vmatmul.mubr.f32.gmra.mrb[18].mxu0 %v14541_v16 }
 0x3a3   :  { %9855 = vmatprep.mubr.f32.mxu0 %v14566_v37 }
 0x3a6   :  { %9856 = vmatmul.mubr.f32.gmra.mrb[20].mxu0 %v14545_v29  ;;  %v20964_v29 = vld [vmem:[#allocation163_spill] sm:$0xff] }
 0x3a7   :  { %9858 = vmatprep.mubr.f32.mxu0 %v14591_v51  ;;  %v20965_v37 = vand.u32 4294901760, %v20964_v29 }
 0x3aa   :  { %9859 = vmatmul.mubr.f32.gmra.mrb[22].mxu0 %v14581_v52  ;;  %v20962_v52 = vld [vmem:[#allocation161_spill] sm:$0xff] }
 0x3ab   :  { %9861 = vmatprep.mubr.f32.mxu0 %v14624_v57  ;;  %v20961_v57 = vand.u32 4294901760, %v20937_v34  ;;  %v20963_v51 = vand.u32 4294901760, %v20962_v52  ;;  %v20977_v52 = vand.u32 4294901760, %v20954_v53 }
 0x3ad   :  { %v10163_v16 = vpack.c.bf16 %v20965_v37, %v20963_v51  ;;  %v20975_v37 = vand.u32 4294901760, %v20952_v47  ;;  %v20978_v51 = vand.u32 4294901760, %v20955_v58 }
 0x3ae   :  { %9862 = vmatmul.mubr.f32.gmra.mrb[24].mxu0 %v14643_v42  ;;  %v20960_v42 = vld [vmem:[#allocation169_spill] sm:$0xff] }
 0x3af   :  { %9864 = vmatprep.mubr.f32.mxu0 %v14668_v31  ;;  %v20959_v31 = vld [vmem:[#allocation56_spill] sm:$0xff] }
 0x3b2   :  { %9865 = vmatmul.mubr.f32.gmra.mrb[26].mxu0 %v14645_v30  ;;  %v20958_v30 = vld [vmem:[#allocation53_spill] sm:$0xff] }
 0x3b3   :  { %9867 = vmatprep.mubr.f32.mxu0 %v14688_v32  ;;  %v20957_v32 = vld [vmem:[#allocation15_spill] sm:$0xff] }
 0x3b6   :  { %9868 = vmatmul.mubr.f32.gmra.mrb[28].mxu0 %v14683_v62  ;;  %v20956_v62 = vld [vmem:[#allocation168_spill] sm:$0xff] }
 0x3b7   :  { %9870 = vmatprep.mubr.f32.mxu0 %v14721_v10  ;;  %v20951_v10 = vld [vmem:[#allocation41_spill] sm:$0xff] }
 0x3ba   :  { %9871 = vmatmul.mubr.f32.gmra.mrb[30].mxu0 %v14739_v26  ;;  %v20950_v26 = vld [vmem:[#allocation165_spill] sm:$0xff] }
 0x3bb   :  { %9873 = vmatprep.mubr.f32.mxu0 %v14760_v25  ;;  %v20949_v25 = vld [vmem:[#allocation164_spill] sm:$0xff] }
 0x3be   :  { %9874 = vmatmul.mubr.f32.gmra.mrb[32].mxu0 %v14741_v5  ;;  %v20948_v5 = vld [vmem:[#allocation162_spill] sm:$0xff] }
 0x3bf   :  { %9876 = vmatprep.mubr.f32.mxu0 %v14774_v12  ;;  %v20946_v12 = vld [vmem:[#allocation160_spill] sm:$0xff] }
 0x3c0   :  { %v20969_v36 = vand.u32 4294901760, %v20946_v12 }
 0x3c2   :  { %9877 = vmatmul.mubr.f32.gmra.mrb[34].mxu0 %v14768_v17  ;;  %v20947_v17 = vld [vmem:[#allocation8_spill] sm:$0xff] }
 0x3c3   :  { %9887 = vmatprep.mubr.f32.mxu0 %v20937_v34  ;;  %v20970_v29 = vand.u32 4294901760, %v20947_v17  ;;  %v21014_v34 = vld [vmem:[#allocation171_spill] sm:$0xff] }
 0x3c6   :  { %9888 = vmatmul.mubr.f32.vlgmr.msra.gmra.mrb[0].mxu0 %v20938_v21  ;;  %v21010_v21 = vld [vmem:[#allocation79_spill] sm:$0xff] }
 0x3c7   :  { %10154 = vmatpush3.bf16.msra.mxu0 %v20930_v4  ;;  %9890 = vmatprep.mubr.f32.mxu0 %v20939_v40  ;;  %v21011_v40 = vld [vmem:[#allocation80_spill] sm:$0xff] }
 0x3c8   :  { %10156 = vmatprep.subr.bf16.mxu0 %v20940_v50 }
 0x3ca   :  { %9891 = vmatmul.mubr.f32.gmra.mrb[2].mxu0 %v20945_v49  ;;  %v20979_v49 = vand.u32 4294901760, %v20956_v62 }
 0x3cb   :  { %9893 = vmatprep.mubr.f32.mxu0 %v20946_v12  ;;  %10158 = vmatpush3.bf16.msra.mxu0 %v20940_v50  ;;  %v21006_v12 = vld [vmem:[#allocation12_spill] sm:$0xff] }
 0x3cc   :  { %10160 = vmatprep.subr.bf16.mxu0 %v10159_v20 }
 0x3ce   :  { %9894 = vmatmul.mubr.f32.gmra.mrb[4].mxu0 %v20947_v17  ;;  %v20985_v17 = vand.u32 4294901760, %v20959_v31 }
 0x3cf   :  { %9896 = vmatprep.mubr.f32.mxu0 %v20948_v5 }
 0x3d2   :  { %9897 = vmatmul.mubr.f32.gmra.mrb[6].mxu0 %v20949_v25 }
 0x3d3   :  { %9899 = vmatprep.mubr.f32.mxu0 %v20950_v26 }
 0x3d6   :  { %9900 = vmatmul.mubr.f32.gmra.mrb[8].mxu0 %v20951_v10 }
 0x3d7   :  { %9902 = vmatprep.mubr.f32.mxu0 %v20952_v47  ;;  %v21015_v47 = vld [vmem:[#allocation170_spill] sm:$0xff] }
 0x3da   :  { %9903 = vmatmul.mubr.f32.gmra.mrb[10].mxu0 %v20953_v8 }
 0x3db   :  { %9905 = vmatprep.mubr.f32.mxu0 %v20954_v53  ;;  %v21017_v53 = vld [vmem:[#allocation173_spill] sm:$0xff] }
 0x3de   :  { %9906 = vmatmul.mubr.f32.gmra.mrb[12].mxu0 %v20955_v58  ;;  %v21018_v58 = vld [vmem:[#allocation2_spill] sm:$0xff] }
 0x3df   :  { %9908 = vmatprep.mubr.f32.mxu0 %v20956_v62  ;;  %v20986_v62 = vand.u32 4294901760, %v20960_v42 }
 0x3e2   :  { %9909 = vmatmul.mubr.f32.gmra.mrb[14].mxu0 %v20957_v32 }
 0x3e3   :  { %9911 = vmatprep.mubr.f32.mxu0 %v14503_v1 }
 0x3e6   :  { %9912 = vmatmul.mubr.f32.gmra.mrb[16].mxu0 %v14496_v33 }
 0x3e7   :  { %9914 = vmatprep.mubr.f32.mxu0 %v14538_v41 }
 0x3ea   :  { %9915 = vmatmul.mubr.f32.gmra.mrb[18].mxu0 %v20958_v30 }
 0x3eb   :  { %9917 = vmatprep.mubr.f32.mxu0 %v20959_v31  ;;  %v20992_v31 = vand.u32 4294901760, %v14658_v19 }
 0x3ee   :  { %9918 = vmatmul.mubr.f32.gmra.mrb[20].mxu0 %v20960_v42  ;;  %v20993_v42 = vand.u32 4294901760, %v14707_v3 }
 0x3ef   :  { %9920 = vmatprep.mubr.f32.mxu0 %v14610_v60 }
 0x3f2   :  { %9921 = vmatmul.mubr.f32.gmra.mrb[22].mxu0 %v14599_v15 }
 0x3f3   :  { %9923 = vmatprep.mubr.f32.mxu0 %v14640_v48 }
 0x3f6   :  { %9924 = vmatmul.mubr.f32.gmra.mrb[24].mxu0 %v14650_v46 }
 0x3f7   :  { %9926 = vmatprep.mubr.f32.mxu0 %v14681_v2 }
 0x3fa   :  { %9927 = vmatmul.mubr.f32.gmra.mrb[26].mxu0 %v14658_v19  ;;  %v20999_v19 = vand.u32 4294901760, %v14781_v22 }
 0x3fb   :  { %9929 = vmatprep.mubr.f32.mxu0 %v14707_v3  ;;  %v21000_v3 = vand.u32 4294901760, %v14777_v6 }
 0x3fe   :  { %9930 = vmatmul.mubr.f32.gmra.mrb[28].mxu0 %v14696_v55 }
 0x3ff   :  { %9932 = vmatprep.mubr.f32.mxu0 %v14736_v11 }
 0x402   :  { %9933 = vmatmul.mubr.f32.gmra.mrb[30].mxu0 %v14746_v63 }
 0x403   :  { %9935 = vmatprep.mubr.f32.mxu0 %v14766_v61 }
 0x406   :  { %9936 = vmatmul.mubr.f32.gmra.mrb[32].mxu0 %v14750_v0 }
 0x407   :  { %9938 = vmatprep.mubr.f32.mxu0 %v14781_v22  ;;  %v21009_v22 = vld [vmem:[#allocation55_spill] sm:$0xff] }
 0x40a   :  { %9939 = vmatmul.mubr.f32.gmra.mrb[34].mxu0 %v14777_v6  ;;  %v21007_v6 = vld [vmem:[#allocation46_spill] sm:$0xff] }
 0x40b   :  { %9949 = vmatprep.mubr.f32.mxu0 %v20961_v57  ;;  %v20971_v57 = vand.u32 4294901760, %v20948_v5  ;;  %v20981_v5 = vand.u32 4294901760, %v14503_v1  ;;  %v20988_v1 = vand.u32 4294901760, %v14599_v15  ;;  %v20995_v15 = vand.u32 4294901760, %v14736_v11  ;;  %v21002_v11 = vld [vmem:[#allocation54_spill] sm:$0xff] }
 0x40e   :  { %9950 = vmatmul.mubr.f32.vlgmr.msra.gmra.mrb[0].mxu0 %v20966_v13  ;;  %v20972_v13 = vand.u32 4294901760, %v20949_v25  ;;  %v20984_v25 = vand.u32 4294901760, %v20958_v30  ;;  %v20991_v30 = vand.u32 4294901760, %v14681_v2  ;;  %v20998_v2 = vand.u32 4294901760, %v14750_v0  ;;  %v21004_v0 = vld [vmem:[#allocation25_spill] sm:$0xff] }
 0x40f   :  { %10162 = vmatpush3.bf16.msra.mxu0 %v10159_v20  ;;  %9952 = vmatprep.mubr.f32.mxu0 %v20967_v23  ;;  %v20973_v23 = vand.u32 4294901760, %v20950_v26  ;;  %v20980_v20 = vand.u32 4294901760, %v20957_v32  ;;  %v20983_v26 = vand.u32 4294901760, %v14538_v41  ;;  %v20987_v32 = vand.u32 4294901760, %v14610_v60 }
 0x410   :  { %10164 = vmatprep.subr.bf16.mxu0 %v10163_v16  ;;  %v20990_v41 = vand.u32 4294901760, %v14650_v46  ;;  %v20994_v60 = vand.u32 4294901760, %v14696_v55  ;;  %v20997_v46 = vand.u32 4294901760, %v14766_v61  ;;  %v21001_v55 = vld [vmem:[#allocation10_spill] sm:$0xff]  ;;  %v21005_v61 = vld [vmem:[#allocation43_spill] sm:$0xff] }
 0x412   :  { %9953 = vmatmul.mubr.f32.gmra.mrb[2].mxu0 %v20968_v7  ;;  %v20974_v7 = vand.u32 4294901760, %v20951_v10  ;;  %v20982_v10 = vand.u32 4294901760, %v14496_v33  ;;  %v20989_v33 = vand.u32 4294901760, %v14640_v48  ;;  %v20996_v48 = vand.u32 4294901760, %v14746_v63  ;;  %v21003_v63 = vld [vmem:[#allocation87_spill] sm:$0xff] }
 0x413   :  { %9955 = vmatprep.mubr.f32.mxu0 %v20969_v36  ;;  %10166 = vmatpush3.bf16.msra.mxu0 %v10163_v16  ;;  %v20976_v16 = vand.u32 4294901760, %v20953_v8  ;;  %v21013_v36 = vld [vmem:[#allocation14_spill] sm:$0xff]  ;;  %v21016_v8 = vld [vmem:[#allocation59_spill] sm:$0xff] }
 0x414   :  { %10168 = vmatprep.subr.bf16.mxu0 %v20930_v4 }
 0x416   :  { %9956 = vmatmul.mubr.f32.gmra.mrb[4].mxu0 %v20970_v29  ;;  %v21019_v29 = vld [vmem:[#allocation61_spill] sm:$0xff] }
 0x417   :  { %9958 = vmatprep.mubr.f32.mxu0 %v20971_v57  ;;  %v21020_v57 = vld [vmem:[#allocation22_spill] sm:$0xff] }
 0x41a   :  { %9959 = vmatmul.mubr.f32.gmra.mrb[6].mxu0 %v20972_v13  ;;  %v21021_v13 = vld [vmem:[#allocation58_spill] sm:$0xff] }
 0x41b   :  { %9961 = vmatprep.mubr.f32.mxu0 %v20973_v23 }
 0x41e   :  { %9962 = vmatmul.mubr.f32.gmra.mrb[8].mxu0 %v20974_v7 }
 0x41f   :  { %9964 = vmatprep.mubr.f32.mxu0 %v20975_v37 }
 0x422   :  { %9965 = vmatmul.mubr.f32.gmra.mrb[10].mxu0 %v20976_v16 }
 0x423   :  { %9967 = vmatprep.mubr.f32.mxu0 %v20977_v52 }
 0x426   :  { %9968 = vmatmul.mubr.f32.gmra.mrb[12].mxu0 %v20978_v51 }
 0x427   :  { %9970 = vmatprep.mubr.f32.mxu0 %v20979_v49 }
 0x42a   :  { %9971 = vmatmul.mubr.f32.gmra.mrb[14].mxu0 %v20980_v20 }
 0x42b   :  { %9973 = vmatprep.mubr.f32.mxu0 %v20981_v5 }
 0x42e   :  { %9974 = vmatmul.mubr.f32.gmra.mrb[16].mxu0 %v20982_v10 }
 0x42f   :  { %9976 = vmatprep.mubr.f32.mxu0 %v20983_v26 }
 0x432   :  { %9977 = vmatmul.mubr.f32.gmra.mrb[18].mxu0 %v20984_v25 }
 0x433   :  { %9979 = vmatprep.mubr.f32.mxu0 %v20985_v17 }
 0x436   :  { %9980 = vmatmul.mubr.f32.gmra.mrb[20].mxu0 %v20986_v62 }
 0x437   :  { %9982 = vmatprep.mubr.f32.mxu0 %v20987_v32 }
 0x43a   :  { %9983 = vmatmul.mubr.f32.gmra.mrb[22].mxu0 %v20988_v1 }
 0x43b   :  { %9985 = vmatprep.mubr.f32.mxu0 %v20989_v33 }
 0x43e   :  { %9986 = vmatmul.mubr.f32.gmra.mrb[24].mxu0 %v20990_v41 }
 0x43f   :  { %9988 = vmatprep.mubr.f32.mxu0 %v20991_v30 }
 0x442   :  { %9989 = vmatmul.mubr.f32.gmra.mrb[26].mxu0 %v20992_v31 }
 0x443   :  { %9991 = vmatprep.mubr.f32.mxu0 %v20993_v42 }
 0x446   :  { %9992 = vmatmul.mubr.f32.gmra.mrb[28].mxu0 %v20994_v60 }
 0x447   :  { %9994 = vmatprep.mubr.f32.mxu0 %v20995_v15 }
 0x44a   :  { %9995 = vmatmul.mubr.f32.gmra.mrb[30].mxu0 %v20996_v48 }
 0x44b   :  { %9997 = vmatprep.mubr.f32.mxu0 %v20997_v46 }
 0x44e   :  { %9998 = vmatmul.mubr.f32.gmra.mrb[32].mxu0 %v20998_v2 }
 0x44f   :  { %10000 = vmatprep.mubr.f32.mxu0 %v20999_v19 }
 0x452   :  { %10001 = vmatmul.mubr.f32.gmra.mrb[34].mxu0 %v21000_v3 }
 0x453   :  { %10011 = vmatprep.mubr.f32.mxu0 %v20926_v18 }
 0x456   :  { %10012 = vmatmul.mubr.f32.vlgmr.msra.gmra.mrb[0].mxu0 %v20927_v14 }
 0x457   :  { %10170 = vmatpush3.bf16.msra.mxu0 %v20930_v4  ;;  %10014 = vmatprep.mubr.f32.mxu0 %v20928_v59  ;;  %v21012_v4 = vld [vmem:[#allocation57_spill] sm:$0xff] }
 0x458   :  { %10172 = vmatprep.subr.bf16.mxu0 %v20940_v50 }
 0x45a   :  { %10015 = vmatmul.mubr.f32.gmra.mrb[2].mxu0 %v20929_v44 }
 0x45b   :  { %10017 = vmatprep.mubr.f32.mxu0 %v13813_v38  ;;  %10174 = vmatpush3.bf16.msra.mxu0 %v20940_v50  ;;  %v21008_v50 = vld [vmem:[#allocation17_spill] sm:$0xff] }
 0x45e   :  { %10018 = vmatmul.mubr.f32.gmra.mrb[4].mxu0 %v13846_v43 }
 0x45f   :  { %10020 = vmatprep.mubr.f32.mxu0 %v13888_v54 }
 0x462   :  { %10021 = vmatmul.mubr.f32.gmra.mrb[6].mxu0 %v13904_v9 }
 0x463   :  { %10023 = vmatprep.mubr.f32.mxu0 %v13938_v56 }
 0x466   :  { %10024 = vmatmul.mubr.f32.gmra.mrb[8].mxu0 %v13912_v39 }
 0x467   :  { %10026 = vmatprep.mubr.f32.mxu0 %v20931_v28 }
 0x46a   :  { %10027 = vmatmul.mubr.f32.gmra.mrb[10].mxu0 %v20932_v27 }
 0x46b   :  { %10029 = vmatprep.mubr.f32.mxu0 %v20933_v45 }
 0x46e   :  { %10030 = vmatmul.mubr.f32.gmra.mrb[12].mxu0 %v20934_v35 }
 0x46f   :  { %10032 = vmatprep.mubr.f32.mxu0 %v20935_v24 }
 0x472   :  { %10033 = vmatmul.mubr.f32.gmra.mrb[14].mxu0 %v21001_v55 }
 0x473   :  { %10035 = vmatprep.mubr.f32.mxu0 %v21002_v11 }
 0x476   :  { %10036 = vmatmul.mubr.f32.gmra.mrb[16].mxu0 %v21003_v63 }
 0x477   :  { %10038 = vmatprep.mubr.f32.mxu0 %v21004_v0 }
 0x47a   :  { %10039 = vmatmul.mubr.f32.gmra.mrb[18].mxu0 %v21005_v61 }
 0x47b   :  { %10041 = vmatprep.mubr.f32.mxu0 %v21006_v12 }
 0x47e   :  { %10042 = vmatmul.mubr.f32.gmra.mrb[20].mxu0 %v21007_v6 }
 0x47f   :  { %10044 = vmatprep.mubr.f32.mxu0 %v21008_v50 }
 0x482   :  { %10045 = vmatmul.mubr.f32.gmra.mrb[22].mxu0 %v21009_v22 }
 0x483   :  { %10047 = vmatprep.mubr.f32.mxu0 %v21010_v21 }
 0x486   :  { %10048 = vmatmul.mubr.f32.gmra.mrb[24].mxu0 %v21011_v40 }
 0x487   :  { %10050 = vmatprep.mubr.f32.mxu0 %v21012_v4 }
 0x48a   :  { %10051 = vmatmul.mubr.f32.gmra.mrb[26].mxu0 %v21013_v36 }
 0x48b   :  { %10053 = vmatprep.mubr.f32.mxu0 %v21014_v34 }
 0x48e   :  { %10054 = vmatmul.mubr.f32.gmra.mrb[28].mxu0 %v21015_v47 }
 0x48f   :  { %10056 = vmatprep.mubr.f32.mxu0 %v21016_v8 }
 0x492   :  { %10057 = vmatmul.mubr.f32.gmra.mrb[30].mxu0 %v21017_v53 }
 0x493   :  { %10059 = vmatprep.mubr.f32.mxu0 %v21018_v58 }
 0x496   :  { %10060 = vmatmul.mubr.f32.gmra.mrb[32].mxu0 %v21019_v29 }
 0x497   :  { %10062 = vmatprep.mubr.f32.mxu0 %v21020_v57 }
 0x49a   :  { %10063 = vmatmul.mubr.f32.gmra.mrb[34].mxu0 %v21021_v13 }
 0x49b   :  { %10073 = vmatprep.mubr.f32.mxu0 %v20926_v18 }
 0x49e   :  { %10074 = vmatmul.mubr.f32.vlgmr.msra.gmra.mrb[0].mxu0 %v20927_v14 }
 0x49f   :  { %10076 = vmatprep.mubr.f32.mxu0 %v20928_v59 }
 0x4a2   :  { %10077 = vmatmul.mubr.f32.gmra.mrb[2].mxu0 %v20929_v44 }
 0x4a3   :  { %10079 = vmatprep.mubr.f32.mxu0 %v13813_v38  ;;  %v15035_v38 = vld [vmem:[%s19239_s2] ss:$0 sm:$0xff] }
 0x4a6   :  { %10080 = vmatmul.mubr.f32.gmra.mrb[4].mxu0 %v13846_v43 }
 0x4a7   :  { %10082 = vmatprep.mubr.f32.mxu0 %v13888_v54 }
 0x4aa   :  { %10083 = vmatmul.mubr.f32.gmra.mrb[6].mxu0 %v13904_v9 }
 0x4ab   :  { %10085 = vmatprep.mubr.f32.mxu0 %v13938_v56 }
 0x4ae   :  { %10086 = vmatmul.mubr.f32.gmra.mrb[8].mxu0 %v13912_v39 }
 0x4af   :  { %10088 = vmatprep.mubr.f32.mxu0 %v20931_v28 }
 0x4b2   :  { %10089 = vmatmul.mubr.f32.gmra.mrb[10].mxu0 %v20932_v27 }
 0x4b3   :  { %10091 = vmatprep.mubr.f32.mxu0 %v20933_v45 }
 0x4b6   :  { %10092 = vmatmul.mubr.f32.gmra.mrb[12].mxu0 %v20934_v35 }
 0x4b7   :  { %10094 = vmatprep.mubr.f32.mxu0 %v20935_v24 }
 0x4ba   :  { %10095 = vmatmul.mubr.f32.gmra.mrb[14].mxu0 %v21001_v55 }
 0x4bb   :  { %10097 = vmatprep.mubr.f32.mxu0 %v21002_v11 }
 0x4be   :  { %10098 = vmatmul.mubr.f32.gmra.mrb[16].mxu0 %v21003_v63 }
 0x4bf   :  { %10100 = vmatprep.mubr.f32.mxu0 %v21004_v0 }
 0x4c2   :  { %10101 = vmatmul.mubr.f32.gmra.mrb[18].mxu0 %v21005_v61 }
 0x4c3   :  { %10103 = vmatprep.mubr.f32.mxu0 %v21006_v12 }
 0x4c6   :  { %10104 = vmatmul.mubr.f32.gmra.mrb[20].mxu0 %v21007_v6 }
 0x4c7   :  { %10106 = vmatprep.mubr.f32.mxu0 %v21008_v50 }
 0x4ca   :  { %10107 = vmatmul.mubr.f32.gmra.mrb[22].mxu0 %v21009_v22 }
 0x4cb   :  { %10109 = vmatprep.mubr.f32.mxu0 %v21010_v21 }
 0x4ce   :  { %10110 = vmatmul.mubr.f32.gmra.mrb[24].mxu0 %v21011_v40 }
 0x4cf   :  { %10112 = vmatprep.mubr.f32.mxu0 %v21012_v4 }
 0x4d2   :  { %10113 = vmatmul.mubr.f32.gmra.mrb[26].mxu0 %v21013_v36 }
 0x4d3   :  { %10115 = vmatprep.mubr.f32.mxu0 %v21014_v34 }
 0x4d6   :  { %10116 = vmatmul.mubr.f32.gmra.mrb[28].mxu0 %v21015_v47 }
 0x4d7   :  { %10118 = vmatprep.mubr.f32.mxu0 %v21016_v8 }
 0x4da   :  { %10119 = vmatmul.mubr.f32.gmra.mrb[30].mxu0 %v21017_v53 }
 0x4db   :  { %10121 = vmatprep.mubr.f32.mxu0 %v21018_v58 }
 0x4de   :  { %10122 = vmatmul.mubr.f32.gmra.mrb[32].mxu0 %v21019_v29 }
 0x4df   :  { %10124 = vmatprep.mubr.f32.mxu0 %v21020_v57 }
 0x4e2   :  { %10125 = vmatmul.mubr.f32.gmra.mrb[34].mxu0 %v21021_v13 }
 0x571   :  { %v10075_v43 = vpop.f32.mrb[0].mxu0 }
 0x572   :  { %v10367_v54 = vadd.f32 %v10075_v43, %v15035_v38  ;;  %v4765_v9 = vpop.f32.mrb[1].mxu0 }
 0x573   :  { %v10368_v39 = vadd.f32 %v15035_v38, %v4765_v9 }
 0x574   :  { %v4980_v56 = vmax.f32 %v10367_v54, 0.0 }
 0x575   :  { %v4979_v14 = vmax.f32 %v10368_v39, 0.0  ;;  %v10078_v18 = vpop.f32.mrb[2].mxu0 }
 0x576   :  { %v10369_v59 = vadd.f32 %v10078_v18, %v15035_v38  ;;  %v4777_v44 = vpop.f32.mrb[3].mxu0  ;;  %v5052_v23 = vcombine.high %v4980_v56, %v4980_v56  ;;  %v5129_v20 = vrot.slane %v4980_v56, 1  ;;  %v5226_v31 = vrot.slane %v4980_v56, 2 }
 0x577   :  { %v5051_v28 = vcombine.high %v4979_v14, %v4979_v14  ;;  %v10370_v27 = vadd.f32 %v15035_v38, %v4777_v44  ;;  %v5323_v63 = vrot.slane %v4980_v56, 3 }
 0x578   :  { %v4982_v37 = vmax.f32 %v10369_v59, 0.0 }
 0x579   :  { %v15041_v45 = vcombine.low %v4979_v14, %v5051_v28  ;;  %v5418_v35 = vcombine.low %v5051_v28, %v4980_v56  ;;  %v4981_v24 = vmax.f32 %v10370_v27, 0.0  ;;  %v10081_v7 = vpop.f32.mrb[4].mxu0 }
 0x57a   :  { %v4789_v16 = vpop.f32.mrb[5].mxu0  ;;  %v15051_v17 = vcombine.high %v4982_v37, %v4982_v37  ;;  %v10371_v41 = vadd.f32 %v10081_v7, %v15035_v38 }
 0x57b   :  { %21022 = vst [vmem:[#allocation63_spill] sm:$0xff] %v15041_v45  ;;  %v5053_v52 = vcombine.high %v4981_v24, %v4981_v24  ;;  %v15043_v51 = vcombine.low %v5052_v23, %v4981_v24  ;;  %5434 = vrot.lane.b32.xlu0 %v5418_v35, %s10606_s18  ;;  %v5128_v49 = vrot.slane %v15041_v45, 1  ;;  %v10372_v62 = vadd.f32 %v15035_v38, %v4789_v16 }
 0x57c   :  { %21025 = vst [vmem:[#allocation48_spill] sm:$0xff] %v15051_v17  ;;  %v5225_v33 = vrot.slane %v15041_v45, 2  ;;  %v15066_v48 = vcombine.low %v4982_v37, %v15051_v17  ;;  %v5322_v3 = vrot.slane %v15041_v45, 3  ;;  %v4984_v55 = vmax.f32 %v10371_v41, 0.0 }
 0x57d   :  { %21023 = vst [vmem:[#allocation69_spill] sm:$0xff] %v15043_v51  ;;  %v15047_v5 = vcombine.low %v4981_v24, %v5053_v52  ;;  %v10084_v10 = vpop.f32.mrb[6].mxu0  ;;  %v5130_v26 = vsel %vm19957_vm15, %v5128_v49, %v5129_v20  ;;  %v5131_v25 = vrot.slane %v15043_v51, 1  ;;  %v5132_v1 = vrot.slane %v5053_v52, 1 }
 0x57e   :  { %v4801_v32 = vpop.f32.mrb[7].mxu0  ;;  %v5228_v42 = vrot.slane %v15043_v51, 2  ;;  %v5229_v60 = vrot.slane %v5053_v52, 2  ;;  %21026 = vst [vmem:[#allocation19_spill] sm:$0xff] %v15066_v48  ;;  %v15068_v46 = vmax.f32 %v10372_v62, 0.0  ;;  %v5227_v19 = vsel %vm5224_vm10, %v5225_v33, %v5226_v31 }
 0x57f   :  { %21024 = vst [vmem:[#allocation60_spill] sm:$0xff] %v15047_v5  ;;  %5176 = vrot.lane.b32.xlu0 %v5130_v26, %s10607_s19  ;;  %v15058_v30 = vsel %vm19957_vm15, %v5131_v25, %v5132_v1  ;;  %v5325_v0 = vrot.slane %v15043_v51, 3  ;;  %v5326_v61 = vrot.slane %v5053_v52, 3  ;;  %v5324_v50 = vsel %vm19984_vm4, %v5322_v3, %v5323_v63 }
 0x580   :  { %5178 = vrot.lane.b32.xlu1 %v15058_v30, %s10607_s19  ;;  %21027 = vst [vmem:[#allocation73_spill] sm:$0xff] %v15068_v46  ;;  %v15076_v11 = vsel %vm5224_vm10, %v5228_v42, %v5229_v60  ;;  %v5134_v22 = vrot.slane %v15066_v48, 1  ;;  %v5135_v21 = vrot.slane %v15068_v46, 1  ;;  %v15088_v40 = vcombine.high %v4984_v55, %v4984_v55 }
 0x581   :  { %v15063_v15 = vpop.f32.mrb[8].mxu0  ;;  %v15092_v4 = vsel %vm19984_vm4, %v5325_v0, %v5326_v61  ;;  %v5231_v8 = vrot.slane %v15066_v48, 2  ;;  %v5232_v53 = vrot.slane %v15068_v46, 2  ;;  %v10373_v58 = vadd.f32 %v10084_v10, %v15035_v38 }
 0x582   :  { %v15070_v2 = vpop.f32.mrb[9].mxu0  ;;  %21028 = vst [vmem:[#allocation62_spill] sm:$0xff] %v15088_v40  ;;  %21029 = vst [vmem:[#allocation64_spill] sm:$0xff] %v15092_v4  ;;  %v15101_v47 = vsel %vm19957_vm15, %v5134_v22, %v5135_v21  ;;  %v5138_v29 = vrot.slane %v15088_v40, 1  ;;  %v5328_v54 = vrot.slane %v15066_v48, 3  ;;  %v5329_v9 = vrot.slane %v15068_v46, 3 }
 0x583   :  { %5273 = vrot.lane.b32.xlu0 %v5227_v19, %s10608_s20  ;;  %21030 = vst [vmem:[#allocation93_spill] sm:$0xff] %v15101_v47  ;;  %v15115_v43 = vsel %vm5224_vm10, %v5231_v8, %v5232_v53  ;;  %v15120_v39 = vcombine.low %v4984_v55, %v15088_v40  ;;  %v15122_v56 = vmax.f32 %v10373_v58, 0.0  ;;  %v10374_v14 = vadd.f32 %v15035_v38, %v4801_v32 }
 0x584   :  { %5275 = vrot.lane.b32.xlu1 %v15076_v11, %s10608_s20  ;;  %21031 = vst [vmem:[#allocation16_spill] sm:$0xff] %v15115_v43  ;;  %v15134_v44 = vsel %vm19984_vm4, %v5328_v54, %v5329_v9  ;;  %v5055_v27 = vcombine.high %v15068_v46, %v15068_v46  ;;  %v5235_v23 = vrot.slane %v15088_v40, 2  ;;  %v10376_v22 = vadd.f32 %v15035_v38, %v15070_v2 }
 0x585   :  { %v15081_v12 = vpop.f32.mrb[10].mxu0  ;;  %21032 = vst [vmem:[#allocation92_spill] sm:$0xff] %v15120_v39  ;;  %21033 = vst [vmem:[#allocation99_spill] sm:$0xff] %v15122_v56  ;;  %v6460_v28 = vrot.slane %v15120_v39, 7  ;;  %v4985_v35 = vmax.f32 %v10374_v14, 0.0  ;;  %v15147_v52 = vrot.slane %v15122_v56, 2 }
 0x586   :  { %v15083_v6 = vpop.f32.mrb[11].mxu0  ;;  %21034 = vst [vmem:[#allocation47_spill] sm:$0xff] %v15134_v44  ;;  %v15149_v49 = vcombine.low %v5055_v27, %v4984_v55  ;;  %v15160_v62 = vrot.slane %v15122_v56, 1 }
 0x587   :  { %5370 = vrot.lane.b32.xlu0 %v5324_v50, %s10609_s21  ;;  %v5057_v20 = vcombine.high %v4985_v35, %v4985_v35 }
 0x588   :  { %5372 = vrot.lane.b32.xlu1 %v15092_v4, %s10609_s21  ;;  %v5137_v41 = vrot.slane %v15149_v49, 1  ;;  %v5234_v8 = vrot.slane %v15149_v49, 2 }
 0x589   :  { %v15096_v36 = vpop.f32.mrb[12].mxu0  ;;  %v15170_v31 = vcombine.low %v4985_v35, %v5057_v20  ;;  %v15193_v53 = vcombine.low %v5057_v20, %v15122_v56  ;;  %v5331_v35 = vrot.slane %v15149_v49, 3 }
 0x58a   :  { %v15098_v34 = vpop.f32.mrb[13].mxu0  ;;  %v15189_v21 = vsel %vm19957_vm15, %v5137_v41, %v5138_v29  ;;  %v15213_v27 = vsel %vm5224_vm10, %v5234_v8, %v5235_v23 }
 0x58b   :  { %5180 = vrot.lane.b32.xlu0 %v15101_v47, %s10607_s19  ;;  %21037 = vst [vmem:[#allocation67_spill] sm:$0xff] %v15170_v31  ;;  %21039 = vst [vmem:[#allocation83_spill] sm:$0xff] %v15189_v21  ;;  %v6526_v2 = vrot.slane %v15170_v31, 7  ;;  %v5334_v42 = vrot.slane %v15170_v31, 3 }
 0x58c   :  { %6320 = vrot.lane.b32.xlu1 %v5138_v29, %s10607_s19  ;;  %21040 = vst [vmem:[#allocation68_spill] sm:$0xff] %v15193_v53  ;;  %21042 = vst [vmem:[#allocation18_spill] sm:$0xff] %v15213_v27 }
 0x58d   :  { %v15110_v57 = vpop.f32.mrb[14].mxu0 }
 0x58e   :  { %v15112_v13 = vpop.f32.mrb[15].mxu0 }
 0x58f   :  { %5277 = vrot.lane.b32.xlu0 %v15115_v43, %s10608_s20 }
 0x590   :  { %6590 = vrot.lane.b32.xlu1 %v15122_v56, %s10610_s22 }
 0x591   :  { %v15129_v18 = vpop.f32.mrb[16].mxu0 }
 0x592   :  { %v15131_v59 = vpop.f32.mrb[17].mxu0 }
 0x593   :  { %5374 = vrot.lane.b32.xlu0 %v15134_v44, %s10609_s21 }
 0x594   :  { %6476 = vrot.lane.b32.xlu1 %v6460_v28, %s10609_s21 }
 0x595   :  { %v10102_v24 = vpop.f32.mrb[18].mxu0 }
 0x596   :  { %v10385_v7 = vadd.f32 %v10102_v24, %v15035_v38  ;;  %v4873_v37 = vpop.f32.mrb[19].mxu0  ;;  %v4987_v24 = vmax.f32 %v10376_v22, 0.0  ;;  %v5140_v22 = vrot.slane %v15170_v31, 1 }
 0x597   :  { %v10386_v16 = vadd.f32 %v15035_v38, %v4873_v37  ;;  %6392 = vrot.lane.b32.xlu0 %v5235_v23, %s10608_s20  ;;  %v5058_v23 = vcombine.high %v15122_v56, %v15122_v56 }
 0x598   :  { %v15151_v10 = vmax.f32 %v10385_v7, 0.0  ;;  %6394 = vrot.lane.b32.xlu1 %v15147_v52, %s10608_s20 }
 0x599   :  { %v15153_v26 = vmax.f32 %v10386_v16, 0.0  ;;  %v15157_v25 = vpop.f32.mrb[20].mxu0  ;;  %v6461_v16 = vrot.slane %v15193_v53, 7  ;;  %v15233_v41 = vcombine.low %v5058_v23, %v4987_v24 }
 0x59a   :  { %21035 = vst [vmem:[#allocation66_spill] sm:$0xff] %v15151_v10  ;;  %v4885_v32 = vpop.f32.mrb[21].mxu0  ;;  %v5070_v19 = vcombine.high %v15151_v10, %v15151_v10 }
 0x59b   :  { %v15164_v1 = vcombine.high %v15153_v26, %v15153_v26  ;;  %v10388_v33 = vadd.f32 %v15035_v38, %v4885_v32  ;;  %6322 = vrot.lane.b32.xlu0 %v15160_v62, %s10607_s19  ;;  %v5332_v32 = vrot.slane %v15088_v40, 3  ;;  %21045 = vst [vmem:[#allocation133_spill] sm:$0xff] %v15233_v41 }
 0x59c   :  { %6734 = vrot.lane.b32.xlu1 %v15147_v52, %s10611_s23 }
 0x59d   :  { %21036 = vst [vmem:[#allocation65_spill] sm:$0xff] %v15164_v1  ;;  %v4999_v60 = vmax.f32 %v10388_v33, 0.0  ;;  %v10108_v3 = vpop.f32.mrb[22].mxu0  ;;  %v15231_v33 = vsel %vm19984_vm4, %v5331_v35, %v5332_v32  ;;  %v15264_v35 = vsel %vm19957_vm15, %v5140_v22, %v15160_v62  ;;  %v5335_v22 = vrot.slane %v15122_v56, 3 }
 0x59e   :  { %v4897_v55 = vpop.f32.mrb[23].mxu0  ;;  %v10389_v61 = vadd.f32 %v10108_v3, %v15035_v38  ;;  %21044 = vst [vmem:[#allocation127_spill] sm:$0xff] %v15231_v33  ;;  %v10375_v3 = vadd.f32 %v15063_v15, %v15035_v38  ;;  %v5237_v15 = vrot.slane %v15170_v31, 2  ;;  %21047 = vst [vmem:[#allocation74_spill] sm:$0xff] %v15264_v35 }
 0x59f   :  { %v15178_v63 = vcombine.high %v4999_v60, %v4999_v60  ;;  %v15180_v0 = vcombine.low %v5070_v19, %v4999_v60  ;;  %v10390_v50 = vadd.f32 %v15035_v38, %v4897_v55  ;;  %6662 = vrot.lane.b32.xlu0 %v15160_v62, %s10612_s24  ;;  %v15245_v55 = vcombine.high %v4987_v24, %v4987_v24 }
 0x5a0   :  { %5182 = vrot.lane.b32.xlu1 %v15189_v21, %s10607_s19  ;;  %v15207_v29 = vmax.f32 %v10389_v61, 0.0  ;;  %v4988_v8 = vmax.f32 %v10375_v3, 0.0  ;;  %v15272_v23 = vsel %vm5224_vm10, %v5237_v15, %v15147_v52  ;;  %v15290_v52 = vsel %vm19984_vm4, %v5334_v42, %v5335_v22 }
 0x5a1   :  { %21038 = vst [vmem:[#allocation3_spill] sm:$0xff] %v15180_v0  ;;  %v15196_v58 = vcombine.low %v4999_v60, %v15178_v63  ;;  %v15198_v54 = vmax.f32 %v10390_v50, 0.0  ;;  %v15202_v9 = vpop.f32.mrb[24].mxu0  ;;  %21046 = vst [vmem:[#allocation172_spill] sm:$0xff] %v15245_v55  ;;  %v5144_v15 = vrot.slane %v15245_v55, 1  ;;  %v5143_v42 = vrot.slane %v15233_v41, 1 }
 0x5a2   :  { %v15205_v14 = vpop.f32.mrb[25].mxu0  ;;  %v15266_v32 = vcombine.high %v4988_v8, %v4988_v8  ;;  %21048 = vst [vmem:[#allocation70_spill] sm:$0xff] %v15272_v23  ;;  %21050 = vst [vmem:[#allocation24_spill] sm:$0xff] %v15290_v52  ;;  %v5241_v22 = vrot.slane %v15245_v55, 2  ;;  %v5338_v53 = vrot.slane %v15245_v55, 3  ;;  %v5155_v56 = vrot.slane %v15180_v0, 1 }
 0x5a3   :  { %21041 = vst [vmem:[#allocation124_spill] sm:$0xff] %v15196_v58  ;;  %v5073_v28 = vcombine.high %v15198_v54, %v15198_v54  ;;  %6542 = vrot.lane.b32.xlu0 %v6526_v2, %s10606_s18  ;;  %v6527_v58 = vrot.slane %v15233_v41, 7 }
 0x5a4   :  { %5279 = vrot.lane.b32.xlu1 %v15213_v27, %s10608_s20  ;;  %v15282_v62 = vcombine.low %v4988_v8, %v15266_v32  ;;  %v10378_v8 = vadd.f32 %v15035_v38, %v15083_v6  ;;  %v15311_v6 = vsel %vm19957_vm15, %v5143_v42, %v5144_v15  ;;  %v5156_v27 = vrot.slane %v15178_v63, 1 }
 0x5a5   :  { %v15217_v7 = vcombine.low %v5073_v28, %v15207_v29  ;;  %v15221_v37 = vpop.f32.mrb[26].mxu0  ;;  %21052 = vst [vmem:[#allocation81_spill] sm:$0xff] %v15311_v6 }
 0x5a6   :  { %v15224_v20 = vpop.f32.mrb[27].mxu0  ;;  %21049 = vst [vmem:[#allocation76_spill] sm:$0xff] %v15282_v62  ;;  %v15302_v45 = vmax.f32 %v10378_v8, 0.0  ;;  %v5337_v8 = vrot.slane %v15233_v41, 3 }
 0x5a7   :  { %21043 = vst [vmem:[#allocation130_spill] sm:$0xff] %v15217_v7  ;;  %6478 = vrot.lane.b32.xlu0 %v6461_v16, %s10609_s21 }
 0x5a8   :  { %5376 = vrot.lane.b32.xlu1 %v15231_v33, %s10609_s21  ;;  %21051 = vst [vmem:[#allocation75_spill] sm:$0xff] %v15302_v45  ;;  %v15332_v42 = vsel %vm19984_vm4, %v5337_v8, %v5338_v53  ;;  %v10377_v8 = vadd.f32 %v15081_v12, %v15035_v38  ;;  %v15444_v33 = vsel %vm19957_vm15, %v5155_v56, %v5156_v27 }
 0x5a9   :  { %v15237_v60 = vpop.f32.mrb[28].mxu0  ;;  %21055 = vst [vmem:[#allocation72_spill] sm:$0xff] %v15332_v42  ;;  %21070 = vst [vmem:[#allocation49_spill] sm:$0xff] %v15444_v33 }
 0x5aa   :  { %v15239_v19 = vpop.f32.mrb[29].mxu0 }
 0x5ab   :  { %5492 = vrot.lane.b32.xlu0 %v15233_v41, %s10610_s22 }
 0x5ac   :  { %5490 = vrot.lane.b32.xlu1 %v15170_v31, %s10610_s22  ;;  %v5252_v31 = vrot.slane %v15180_v0, 2 }
 0x5ad   :  { %v15249_v61 = vpop.f32.mrb[30].mxu0 }
 0x5ae   :  { %v15251_v50 = vpop.f32.mrb[31].mxu0 }
 0x5af   :  { %6592 = vrot.lane.b32.xlu0 %v15245_v55, %s10610_s22 }
 0x5b0   :  { %6804 = vrot.lane.b32.xlu1 %v6461_v16, %s10613_s25 }
 0x5b1   :  { %v15258_v2 = vpop.f32.mrb[32].mxu0 }
 0x5b2   :  { %v15260_v28 = vpop.f32.mrb[33].mxu0 }
 0x5b3   :  { %5184 = vrot.lane.b32.xlu0 %v15264_v35, %s10607_s19 }
 0x5b4   :  { %5598 = vrot.lane.b32.xlu1 %v15272_v23, %s10611_s23 }
 0x5b5   :  { %v15276_v16 = vpop.f32.mrb[34].mxu0 }
 0x5b6   :  { %v15278_v3 = vpop.f32.mrb[35].mxu0 }
 0x5b7   :  { %5281 = vrot.lane.b32.xlu0 %v15272_v23, %s10608_s20  ;;  %v15387_v23 = vcombine.low %v15153_v26, %v15164_v1 }
 0x5b8   :  { %5494 = vrot.lane.b32.xlu1 %v15282_v62, %s10610_s22 }
 0x5b9   :  { %21061 = vst [vmem:[#allocation77_spill] sm:$0xff] %v15387_v23  ;;  %v5249_v39 = vrot.slane %v15387_v23, 2 }
 0x5bb   :  { %5378 = vrot.lane.b32.xlu0 %v15290_v52, %s10609_s21  ;;  %v15323_v52 = vcombine.low %v4987_v24, %v15245_v55 }
 0x5bc   :  { %6324 = vrot.lane.b32.xlu1 %v5144_v15, %s10607_s19 }
 0x5bd   :  { %21054 = vst [vmem:[#allocation154_spill] sm:$0xff] %v15323_v52 }
 0x5bf   :  { %5544 = vrot.lane.b32.xlu0 %v15264_v35, %s10612_s24  ;;  %v5240_v35 = vrot.slane %v15233_v41, 2 }
 0x5c0   :  { %6664 = vrot.lane.b32.xlu1 %v5144_v15, %s10612_s24  ;;  %v10387_v15 = vadd.f32 %v15157_v25, %v15035_v38  ;;  %v5147_v25 = vrot.slane %v15302_v45, 1 }
 0x5c3   :  { %6544 = vrot.lane.b32.xlu0 %v6527_v58, %s10606_s18  ;;  %v15318_v58 = vsel %vm5224_vm10, %v5240_v35, %v5241_v22  ;;  %v5000_v35 = vmax.f32 %v10387_v15, 0.0  ;;  %v5146_v15 = vrot.slane %v15282_v62, 1 }
 0x5c4   :  { %6594 = vrot.lane.b32.xlu1 %v15302_v45, %s10610_s22  ;;  %21053 = vst [vmem:[#allocation45_spill] sm:$0xff] %v15318_v58 }
 0x5c5   :  { %v5072_v24 = vcombine.high %v5000_v35, %v5000_v35 }
 0x5c7   :  { %6396 = vrot.lane.b32.xlu0 %v5241_v22, %s10608_s20  ;;  %v15344_v53 = vcombine.low %v5072_v24, %v15198_v54 }
 0x5c8   :  { %5186 = vrot.lane.b32.xlu1 %v15311_v6, %s10607_s19 }
 0x5c9   :  { %21056 = vst [vmem:[#allocation20_spill] sm:$0xff] %v15344_v53  ;;  %v15360_v53 = vrot.slane %v15302_v45, 2 }
 0x5cb   :  { %6736 = vrot.lane.b32.xlu0 %v5241_v22, %s10611_s23  ;;  %v6462_v22 = vrot.slane %v15323_v52, 7  ;;  %v15354_v52 = vmax.f32 %v10377_v8, 0.0  ;;  %v5340_v8 = vrot.slane %v15282_v62, 3 }
 0x5cc   :  { %5283 = vrot.lane.b32.xlu1 %v15318_v58, %s10608_s20 }
 0x5cf   :  { %5600 = vrot.lane.b32.xlu0 %v15318_v58, %s10611_s23  ;;  %v6528_v58 = vrot.slane %v15282_v62, 7 }
 0x5d0   :  { %5380 = vrot.lane.b32.xlu1 %v15332_v42, %s10609_s21  ;;  %v15357_v42 = vsel %vm19957_vm15, %v5146_v15, %v5147_v25  ;;  %v5341_v15 = vrot.slane %v15302_v45, 3 }
 0x5d1   :  { %21057 = vst [vmem:[#allocation5_spill] sm:$0xff] %v15357_v42 }
 0x5d2   :  { %v15390_v41 = vsel %vm19984_vm4, %v5340_v8, %v5341_v15  ;;  %v5152_v8 = vrot.slane %v15387_v23, 1 }
 0x5d3   :  { %6806 = vrot.lane.b32.xlu0 %v6462_v22, %s10613_s25  ;;  %21062 = vst [vmem:[#allocation153_spill] sm:$0xff] %v15390_v41 }
 0x5d4   :  { %5546 = vrot.lane.b32.xlu1 %v15311_v6, %s10612_s24  ;;  %v5061_v6 = vcombine.high %v15302_v45, %v15302_v45 }
 0x5d6   :  { %v15366_v12 = vcombine.low %v5061_v6, %v15354_v52 }
 0x5d7   :  { %6326 = vrot.lane.b32.xlu0 %v5147_v25, %s10607_s19 }
 0x5d8   :  { %6546 = vrot.lane.b32.xlu1 %v6528_v58, %s10606_s18  ;;  %v5243_v58 = vrot.slane %v15282_v62, 2  ;;  %21058 = vst [vmem:[#allocation23_spill] sm:$0xff] %v15366_v12  ;;  %v5149_v6 = vrot.slane %v15366_v12, 1  ;;  %v5246_v55 = vrot.slane %v15366_v12, 2  ;;  %v5343_v1 = vrot.slane %v15366_v12, 3 }
 0x5db   :  { %6666 = vrot.lane.b32.xlu0 %v5147_v25, %s10612_s24  ;;  %v15376_v25 = vsel %vm5224_vm10, %v5243_v58, %v15360_v53 }
 0x5dc   :  { %6480 = vrot.lane.b32.xlu1 %v6462_v22, %s10609_s21  ;;  %v15372_v22 = vcombine.high %v15354_v52, %v15354_v52  ;;  %21060 = vst [vmem:[#allocation71_spill] sm:$0xff] %v15376_v25 }
 0x5de   :  { %21059 = vst [vmem:[#allocation26_spill] sm:$0xff] %v15372_v22  ;;  %v15393_v58 = vrot.slane %v15372_v22, 1  ;;  %v15405_v26 = vrot.slane %v15372_v22, 2  ;;  %v5344_v21 = vrot.slane %v15372_v22, 3 }
 0x5df   :  { %5188 = vrot.lane.b32.xlu0 %v15357_v42, %s10607_s19 }
 0x5e0   :  { %6398 = vrot.lane.b32.xlu1 %v15360_v53, %s10608_s20  ;;  %v15399_v62 = vsel %vm19957_vm15, %v5149_v6, %v15393_v58  ;;  %v15412_v15 = vsel %vm5224_vm10, %v5246_v55, %v15405_v26  ;;  %v5153_v6 = vrot.slane %v15151_v10, 1  ;;  %v15425_v55 = vsel %vm19984_vm4, %v5343_v1, %v5344_v21 }
 0x5e1   :  { %21063 = vst [vmem:[#allocation78_spill] sm:$0xff] %v15399_v62  ;;  %21064 = vst [vmem:[#allocation28_spill] sm:$0xff] %v15412_v15  ;;  %v5346_v1 = vrot.slane %v15387_v23, 3  ;;  %v10391_v23 = vadd.f32 %v15202_v9, %v15035_v38  ;;  %v10394_v9 = vadd.f32 %v15035_v38, %v15224_v20 }
 0x5e2   :  { %21066 = vst [vmem:[#allocation84_spill] sm:$0xff] %v15425_v55 }
 0x5e3   :  { %5285 = vrot.lane.b32.xlu0 %v15376_v25, %s10608_s20 }
 0x5e4   :  { %5602 = vrot.lane.b32.xlu1 %v15376_v25, %s10611_s23  ;;  %v5154_v25 = vsel %vm19957_vm15, %v5152_v8, %v5153_v6  ;;  %v15436_v6 = vcombine.low %v5000_v35, %v5072_v24  ;;  %v5159_v24 = vrot.slane %v15198_v54, 1 }
 0x5e6   :  { %21068 = vst [vmem:[#allocation96_spill] sm:$0xff] %v15436_v6  ;;  %v5158_v35 = vrot.slane %v15436_v6, 1 }
 0x5e7   :  { %5382 = vrot.lane.b32.xlu0 %v15390_v41, %s10609_s21 }
 0x5e8   :  { %5190 = vrot.lane.b32.xlu1 %v15399_v62, %s10607_s19 }
 0x5eb   :  { %5548 = vrot.lane.b32.xlu0 %v15357_v42, %s10612_s24  ;;  %v5250_v42 = vrot.slane %v15151_v10, 2 }
 0x5ec   :  { %5287 = vrot.lane.b32.xlu1 %v15412_v15, %s10608_s20 }
 0x5ed   :  { %v15418_v41 = vpop.permute.xlu0 %5434 }
 0x5ee   :  { %21065 = vst [vmem:[#allocation82_spill] sm:$0xff] %v15418_v41  ;;  %v10392_v41 = vadd.f32 %v15035_v38, %v15205_v14  ;;  %v5347_v14 = vrot.slane %v15151_v10, 3 }
 0x5ef   :  { %5192 = vrot.lane.b32.xlu0 %v5154_v25, %s10607_s19  ;;  %v5251_v25 = vsel %vm5224_vm10, %v5249_v39, %v5250_v42 }
 0x5f0   :  { %5384 = vrot.lane.b32.xlu1 %v15425_v55, %s10609_s21  ;;  %v5253_v55 = vrot.slane %v15178_v63, 2  ;;  %v5348_v42 = vsel %vm19984_vm4, %v5346_v1, %v5347_v14  ;;  %v15474_v14 = vcombine.high %v15207_v29, %v15207_v29 }
 0x5f1   :  { %v15434_v8 = vpop.permute.xlu0 %5176 }
 0x5f2   :  { %21067 = vst [vmem:[#allocation91_spill] sm:$0xff] %v15434_v8  ;;  %v15440_v21 = vpop.permute.xlu1 %5178  ;;  %v5003_v8 = vmax.f32 %v10392_v41, 0.0  ;;  %v15460_v27 = vsel %vm5224_vm10, %v5252_v31, %v5253_v55  ;;  %v5349_v41 = vrot.slane %v15180_v0, 3  ;;  %21075 = vst [vmem:[#allocation94_spill] sm:$0xff] %v15474_v14  ;;  %v15477_v31 = vsel %vm19957_vm15, %v5158_v35, %v5159_v24 }
 0x5f3   :  { %21069 = vst [vmem:[#allocation50_spill] sm:$0xff] %v15440_v21  ;;  %5289 = vrot.lane.b32.xlu0 %v5251_v25, %s10608_s20  ;;  %21073 = vst [vmem:[#allocation88_spill] sm:$0xff] %v15460_v27  ;;  %v5350_v25 = vrot.slane %v15178_v63, 3  ;;  %v5255_v55 = vrot.slane %v15436_v6, 2  ;;  %v5256_v63 = vrot.slane %v15198_v54, 2  ;;  %v5161_v0 = vrot.slane %v15217_v7, 1 }
 0x5f4   :  { %5194 = vrot.lane.b32.xlu1 %v15444_v33, %s10607_s19  ;;  %v15466_v33 = vcombine.high %v5003_v8, %v5003_v8  ;;  %21076 = vst [vmem:[#allocation52_spill] sm:$0xff] %v15477_v31  ;;  %v10393_v24 = vadd.f32 %v15221_v37, %v15035_v38 }
 0x5f5   :  { %v15451_v39 = vpop.permute.xlu0 %5273 }
 0x5f6   :  { %21071 = vst [vmem:[#allocation100_spill] sm:$0xff] %v15451_v39  ;;  %v15456_v56 = vpop.permute.xlu1 %5275  ;;  %v15494_v35 = vcombine.low %v5003_v8, %v15466_v33 }
 0x5f7   :  { %21072 = vst [vmem:[#allocation90_spill] sm:$0xff] %v15456_v56  ;;  %5386 = vrot.lane.b32.xlu0 %v5348_v42, %s10609_s21  ;;  %v15491_v56 = vmax.f32 %v10391_v23, 0.0  ;;  %v5353_v23 = vrot.slane %v15198_v54, 3 }
 0x5f8   :  { %5291 = vrot.lane.b32.xlu1 %v15460_v27, %s10608_s20  ;;  %v15488_v27 = vsel %vm19984_vm4, %v5349_v41, %v5350_v25  ;;  %21080 = vst [vmem:[#allocation109_spill] sm:$0xff] %v15494_v35  ;;  %v19721_v41 = vrot.slane %v15474_v14, 1  ;;  %v5352_v25 = vrot.slane %v15436_v6, 3 }
 0x5f9   :  { %v15470_v1 = vpop.permute.xlu0 %5370  ;;  %21078 = vst [vmem:[#allocation104_spill] sm:$0xff] %v15488_v27  ;;  %21079 = vst [vmem:[#allocation105_spill] sm:$0xff] %v15491_v56  ;;  %v5076_v54 = vcombine.high %v15491_v56, %v15491_v56 }
 0x5fa   :  { %21074 = vst [vmem:[#allocation95_spill] sm:$0xff] %v15470_v1  ;;  %v15483_v42 = vpop.permute.xlu1 %5372  ;;  %v15517_v37 = vsel %vm19957_vm15, %v5161_v0, %v19721_v41 }
 0x5fb   :  { %21077 = vst [vmem:[#allocation27_spill] sm:$0xff] %v15483_v42  ;;  %5196 = vrot.lane.b32.xlu0 %v15477_v31, %s10607_s19  ;;  %v15503_v31 = vsel %vm5224_vm10, %v5255_v55, %v5256_v63  ;;  %v15508_v42 = vmax.f32 %v10394_v9, 0.0  ;;  %21084 = vst [vmem:[#allocation106_spill] sm:$0xff] %v15517_v37  ;;  %v5258_v55 = vrot.slane %v15217_v7, 2  ;;  %v5006_v63 = vmax.f32 %v10393_v24, 0.0 }
 0x5fc   :  { %5388 = vrot.lane.b32.xlu1 %v15488_v27, %s10609_s21  ;;  %21082 = vst [vmem:[#allocation51_spill] sm:$0xff] %v15503_v31  ;;  %v15527_v9 = vsel %vm19984_vm4, %v5352_v25, %v5353_v23  ;;  %v19726_v27 = vrot.slane %v15474_v14, 2  ;;  %v15548_v23 = vrot.slane %v15491_v56, 1 }
 0x5fd   :  { %v15500_v20 = vpop.permute.xlu0 %5180  ;;  %21086 = vst [vmem:[#allocation110_spill] sm:$0xff] %v15527_v9  ;;  %v15533_v0 = vcombine.high %v15508_v42, %v15508_v42  ;;  %v15540_v41 = vcombine.low %v5076_v54, %v15508_v42  ;;  %v10396_v54 = vadd.f32 %v15035_v38, %v15239_v19 }
 0x5fe   :  { %21081 = vst [vmem:[#allocation30_spill] sm:$0xff] %v15500_v20  ;;  %v15510_v8 = vpop.permute.xlu1 %6320  ;;  %v15545_v25 = vsel %vm5224_vm10, %v5258_v55, %v19726_v27  ;;  %v5356_v55 = vrot.slane %v15474_v14, 3  ;;  %v5261_v27 = vrot.slane %v15494_v35, 2 }
 0x5ff   :  { %21083 = vst [vmem:[#allocation32_spill] sm:$0xff] %v15510_v8  ;;  %5293 = vrot.lane.b32.xlu0 %v15503_v31, %s10608_s20  ;;  %v5164_v31 = vrot.slane %v15494_v35, 1  ;;  %21087 = vst [vmem:[#allocation97_spill] sm:$0xff] %v15533_v0  ;;  %v5167_v19 = vrot.slane %v15540_v41, 1  ;;  %v15586_v1 = vmax.f32 %v10396_v54, 0.0  ;;  %v5264_v54 = vrot.slane %v15540_v41, 2 }
 0x600   :  { %5198 = vrot.lane.b32.xlu1 %v15517_v37, %s10607_s19  ;;  %21089 = vst [vmem:[#allocation98_spill] sm:$0xff] %v15540_v41  ;;  %21090 = vst [vmem:[#allocation108_spill] sm:$0xff] %v15545_v25  ;;  %v5355_v37 = vrot.slane %v15217_v7, 3  ;;  %v15573_v7 = vrot.slane %v15491_v56, 2  ;;  %v15604_v47 = vrot.slane %v15533_v0, 2 }
 0x601   :  { %v15522_v6 = vpop.permute.xlu0 %5277  ;;  %21097 = vst [vmem:[#allocation129_spill] sm:$0xff] %v15586_v1  ;;  %v15617_v17 = vrot.slane %v15586_v1, 1  ;;  %v5079_v5 = vcombine.high %v15586_v1, %v15586_v1 }
 0x602   :  { %21085 = vst [vmem:[#allocation107_spill] sm:$0xff] %v15522_v6  ;;  %v15535_v24 = vpop.permute.xlu1 %6590  ;;  %v15551_v6 = vcombine.high %v5006_v63, %v5006_v63 }
 0x603   :  { %21088 = vst [vmem:[#allocation113_spill] sm:$0xff] %v15535_v24  ;;  %5390 = vrot.lane.b32.xlu0 %v15527_v9, %s10609_s21  ;;  %v15561_v9 = vsel %vm19957_vm15, %v5164_v31, %v15548_v23  ;;  %v15577_v31 = vrot.slane %v15533_v0, 1 }
 0x604   :  { %5295 = vrot.lane.b32.xlu1 %v15545_v25, %s10608_s20  ;;  %21092 = vst [vmem:[#allocation111_spill] sm:$0xff] %v15561_v9  ;;  %v15570_v25 = vsel %vm19984_vm4, %v5355_v37, %v5356_v55  ;;  %v15584_v10 = vcombine.low %v5006_v63, %v15551_v6  ;;  %v15590_v37 = vsel %vm5224_vm10, %v5261_v27, %v15573_v7  ;;  %v5358_v55 = vrot.slane %v15494_v35, 3 }
 0x605   :  { %v15555_v20 = vpop.permute.xlu0 %5374  ;;  %21094 = vst [vmem:[#allocation29_spill] sm:$0xff] %v15570_v25  ;;  %21098 = vst [vmem:[#allocation116_spill] sm:$0xff] %v15590_v37  ;;  %v5359_v63 = vrot.slane %v15491_v56, 3 }
 0x606   :  { %21091 = vst [vmem:[#allocation34_spill] sm:$0xff] %v15555_v20  ;;  %v15565_v21 = vpop.permute.xlu1 %6476  ;;  %21096 = vst [vmem:[#allocation117_spill] sm:$0xff] %v15584_v10  ;;  %v5267_v24 = vrot.slane %v15584_v10, 2 }
 0x607   :  { %21093 = vst [vmem:[#allocation114_spill] sm:$0xff] %v15565_v21  ;;  %5200 = vrot.lane.b32.xlu0 %v15561_v9, %s10607_s19  ;;  %v15613_v48 = vsel %vm19984_vm4, %v5358_v55, %v5359_v63  ;;  %v5362_v55 = vrot.slane %v15533_v0, 3 }
 0x608   :  { %5392 = vrot.lane.b32.xlu1 %v15570_v25, %s10609_s21  ;;  %v15599_v25 = vsel %vm19957_vm15, %v5167_v19, %v15577_v31  ;;  %21102 = vst [vmem:[#allocation135_spill] sm:$0xff] %v15613_v48  ;;  %v5170_v19 = vrot.slane %v15584_v10, 1 }
 0x609   :  { %v15581_v20 = vpop.permute.xlu0 %6392  ;;  %21100 = vst [vmem:[#allocation31_spill] sm:$0xff] %v15599_v25 }
 0x60a   :  { %21095 = vst [vmem:[#allocation36_spill] sm:$0xff] %v15581_v20  ;;  %v15593_v39 = vpop.permute.xlu1 %6394  ;;  %v5364_v20 = vrot.slane %v15584_v10, 3 }
 0x60b   :  { %21099 = vst [vmem:[#allocation128_spill] sm:$0xff] %v15593_v39  ;;  %5297 = vrot.lane.b32.xlu0 %v15590_v37, %s10608_s20  ;;  %v10395_v39 = vadd.f32 %v15237_v60, %v15035_v38  ;;  %v5361_v60 = vrot.slane %v15540_v41, 3 }
 0x60c   :  { %5202 = vrot.lane.b32.xlu1 %v15599_v25, %s10607_s19 }
 0x60d   :  { %v15608_v27 = vpop.permute.xlu0 %6322 }
 0x60e   :  { %21101 = vst [vmem:[#allocation131_spill] sm:$0xff] %v15608_v27  ;;  %v15619_v46 = vpop.permute.xlu1 %6734  ;;  %v15627_v27 = vsel %vm5224_vm10, %v5264_v54, %v15604_v47  ;;  %v15643_v54 = vrot.slane %v15586_v1, 2 }
 0x60f   :  { %21103 = vst [vmem:[#allocation101_spill] sm:$0xff] %v15619_v46  ;;  %5394 = vrot.lane.b32.xlu0 %v15613_v48, %s10609_s21  ;;  %21104 = vst [vmem:[#allocation38_spill] sm:$0xff] %v15627_v27  ;;  %v15635_v46 = vmax.f32 %v10395_v39, 0.0  ;;  %v15639_v48 = vsel %vm19957_vm15, %v5170_v19, %v15617_v17  ;;  %v15653_v39 = vsel %vm19984_vm4, %v5361_v60, %v5362_v55 }
 0x610   :  { %5299 = vrot.lane.b32.xlu1 %v15627_v27, %s10608_s20  ;;  %21106 = vst [vmem:[#allocation4_spill] sm:$0xff] %v15639_v48  ;;  %21108 = vst [vmem:[#allocation139_spill] sm:$0xff] %v15653_v39  ;;  %v15665_v43 = vsel %vm5224_vm10, %v5267_v24, %v15643_v54  ;;  %v15680_v24 = vcombine.low %v15266_v32, %v15302_v45 }
 0x611   :  { %v15633_v63 = vpop.permute.xlu0 %6662  ;;  %v15650_v21 = vcombine.low %v5079_v5, %v15635_v46  ;;  %21111 = vst [vmem:[#allocation35_spill] sm:$0xff] %v15665_v43  ;;  %v5365_v5 = vrot.slane %v15586_v1, 3 }
 0x612   :  { %21105 = vst [vmem:[#allocation119_spill] sm:$0xff] %v15633_v63  ;;  %v15645_v4 = vpop.permute.xlu1 %5182  ;;  %v15661_v63 = vcombine.high %v15635_v46, %v15635_v46  ;;  %21114 = vst [vmem:[#allocation145_spill] sm:$0xff] %v15680_v24 }
 0x613   :  { %5204 = vrot.lane.b32.xlu0 %v15639_v48, %s10607_s19  ;;  %21107 = vst [vmem:[#allocation33_spill] sm:$0xff] %v15650_v21  ;;  %v5173_v60 = vrot.slane %v15650_v21, 1 }
 0x614   :  { %5396 = vrot.lane.b32.xlu1 %v15653_v39, %s10609_s21  ;;  %21110 = vst [vmem:[#allocation141_spill] sm:$0xff] %v15661_v63  ;;  %v15683_v39 = vsel %vm19984_vm4, %v5364_v20, %v5365_v5  ;;  %v6463_v20 = vrot.slane %v15680_v24, 7  ;;  %v15703_v5 = vrot.slane %v15661_v63, 2  ;;  %v6529_v24 = vrot.slane %v15366_v12, 7 }
 0x615   :  { %v15657_v19 = vpop.permute.xlu0 %6542  ;;  %21115 = vst [vmem:[#allocation142_spill] sm:$0xff] %v15683_v39 }
 0x616   :  { %21109 = vst [vmem:[#allocation125_spill] sm:$0xff] %v15657_v19  ;;  %v15669_v40 = vpop.permute.xlu1 %5279  ;;  %v15686_v19 = vrot.slane %v15661_v63, 1 }
 0x617   :  { %21112 = vst [vmem:[#allocation103_spill] sm:$0xff] %v15669_v40  ;;  %5301 = vrot.lane.b32.xlu0 %v15665_v43, %s10608_s20 }
 0x618   :  { %6738 = vrot.lane.b32.xlu1 %v15360_v53, %s10611_s23  ;;  %v15694_v53 = vsel %vm19957_vm15, %v5173_v60, %v15686_v19 }
 0x619   :  { %v15676_v55 = vpop.permute.xlu0 %6478  ;;  %21117 = vst [vmem:[#allocation115_spill] sm:$0xff] %v15694_v53 }
 0x61a   :  { %21113 = vst [vmem:[#allocation140_spill] sm:$0xff] %v15676_v55  ;;  %v15688_v40 = vpop.permute.xlu1 %5376  ;;  %v5270_v55 = vrot.slane %v15650_v21, 2 }
 0x61b   :  { %21116 = vst [vmem:[#allocation146_spill] sm:$0xff] %v15688_v40  ;;  %5398 = vrot.lane.b32.xlu0 %v15683_v39, %s10609_s21  ;;  %v5367_v39 = vrot.slane %v15650_v21, 3 }
 0x61c   :  { %5206 = vrot.lane.b32.xlu1 %v15694_v53, %s10607_s19  ;;  %v15710_v60 = vsel %vm5224_vm10, %v5270_v55, %v15703_v5 }
 0x61d   :  { %v15699_v32 = vpop.permute.xlu0 %5492  ;;  %21120 = vst [vmem:[#allocation37_spill] sm:$0xff] %v15710_v60 }
 0x61e   :  { %21118 = vst [vmem:[#allocation151_spill] sm:$0xff] %v15699_v32  ;;  %v15705_v40 = vpop.permute.xlu1 %5490  ;;  %v5368_v32 = vrot.slane %v15661_v63, 3 }
 0x61f   :  { %21119 = vst [vmem:[#allocation102_spill] sm:$0xff] %v15705_v40  ;;  %6482 = vrot.lane.b32.xlu0 %v6463_v20, %s10609_s21 }
 0x620   :  { %5303 = vrot.lane.b32.xlu1 %v15710_v60, %s10608_s20  ;;  %v15723_v40 = vsel %vm19984_vm4, %v5367_v39, %v5368_v32 }
 0x621   :  { %v15715_v45 = vpop.permute.xlu0 %6592  ;;  %21123 = vst [vmem:[#allocation155_spill] sm:$0xff] %v15723_v40 }
 0x622   :  { %21121 = vst [vmem:[#allocation150_spill] sm:$0xff] %v15715_v45  ;;  %v15719_v8 = vpop.permute.xlu1 %6804 }
 0x623   :  { %21122 = vst [vmem:[#allocation152_spill] sm:$0xff] %v15719_v8  ;;  %6548 = vrot.lane.b32.xlu0 %v6529_v24, %s10606_s18  ;;  %v10380_v24 = vadd.f32 %v15035_v38, %v15098_v34 }
 0x624   :  { %5400 = vrot.lane.b32.xlu1 %v15723_v40, %s10609_s21 }
 0x625   :  { %v15727_v55 = vpop.permute.xlu0 %5184  ;;  %v4991_v32 = vmax.f32 %v10380_v24, 0.0  ;;  %v10379_v24 = vadd.f32 %v15096_v36, %v15035_v38 }
 0x626   :  { %v15729_v44 = vpop.permute.xlu1 %5598 }
 0x627   :  { %21124 = vst [vmem:[#allocation40_spill] sm:$0xff] %v15729_v44  ;;  %5496 = vrot.lane.b32.xlu0 %v15366_v12, %s10610_s22  ;;  %v15756_v12 = vcombine.low %v15354_v52, %v15372_v22 }
 0x628   :  { %6808 = vrot.lane.b32.xlu1 %v6463_v20, %s10613_s25  ;;  %v5063_v20 = vcombine.high %v4991_v32, %v4991_v32 }
 0x629   :  { %v15734_v45 = vpop.permute.xlu0 %5281  ;;  %21129 = vst [vmem:[#allocation134_spill] sm:$0xff] %v15756_v12  ;;  %v6464_v52 = vrot.slane %v15756_v12, 7 }
 0x62a   :  { %v15738_v8 = vpop.permute.xlu1 %5494 }
 0x62b   :  { %21125 = vst [vmem:[#allocation156_spill] sm:$0xff] %v15738_v8  ;;  %6596 = vrot.lane.b32.xlu0 %v15372_v22, %s10610_s22  ;;  %v15775_v22 = vmax.f32 %v10379_v24, 0.0 }
 0x62c   :  { %6328 = vrot.lane.b32.xlu1 %v15393_v58, %s10607_s19 }
 0x62d   :  { %v15744_v39 = vpop.permute.xlu0 %5378  ;;  %21133 = vst [vmem:[#allocation121_spill] sm:$0xff] %v15775_v22 }
 0x62e   :  { %21126 = vst [vmem:[#allocation122_spill] sm:$0xff] %v15744_v39  ;;  %v15746_v40 = vpop.permute.xlu1 %6324 }
 0x62f   :  { %21127 = vst [vmem:[#allocation112_spill] sm:$0xff] %v15746_v40  ;;  %6400 = vrot.lane.b32.xlu0 %v15405_v26, %s10608_s20 }
 0x630   :  { %5550 = vrot.lane.b32.xlu1 %v15399_v62, %s10612_s24  ;;  %v15768_v62 = vcombine.low %v4991_v32, %v5063_v20 }
 0x631   :  { %v15752_v34 = vpop.permute.xlu0 %5544 }
 0x632   :  { %21128 = vst [vmem:[#allocation158_spill] sm:$0xff] %v15752_v34  ;;  %v15758_v8 = vpop.permute.xlu1 %6664  ;;  %21131 = vst [vmem:[#allocation39_spill] sm:$0xff] %v15768_v62  ;;  %v5532_v36 = vrot.slane %v15768_v62, 1  ;;  %v6530_v32 = vrot.slane %v15768_v62, 7 }
 0x633   :  { %21130 = vst [vmem:[#allocation126_spill] sm:$0xff] %v15758_v8  ;;  %5604 = vrot.lane.b32.xlu0 %v15412_v15, %s10611_s23 }
 0x634   :  { %6668 = vrot.lane.b32.xlu1 %v15393_v58, %s10612_s24 }
 0x635   :  { %v15766_v39 = vpop.permute.xlu0 %6544 }
 0x636   :  { %v15770_v40 = vpop.permute.xlu1 %6594 }
 0x637   :  { %21132 = vst [vmem:[#allocation123_spill] sm:$0xff] %v15770_v40  ;;  %6740 = vrot.lane.b32.xlu0 %v15405_v26, %s10611_s23  ;;  %v5533_v40 = vrot.slane %v15775_v22, 1 }
 0x638   :  { %6484 = vrot.lane.b32.xlu1 %v6464_v52, %s10609_s21 }
 0x639   :  { %v15778_v15 = vpop.permute.xlu0 %6396  ;;  %v15790_v24 = vsel %vm19957_vm15, %v5532_v36, %v5533_v40  ;;  %v5587_v36 = vrot.slane %v15775_v22, 2 }
 0x63a   :  { %21134 = vst [vmem:[#allocation118_spill] sm:$0xff] %v15778_v15  ;;  %v15781_v58 = vpop.permute.xlu1 %5186  ;;  %21137 = vst [vmem:[#allocation120_spill] sm:$0xff] %v15790_v24  ;;  %v5586_v15 = vrot.slane %v15768_v62, 2 }
 0x63b   :  { %21135 = vst [vmem:[#allocation149_spill] sm:$0xff] %v15781_v58  ;;  %6810 = vrot.lane.b32.xlu0 %v6464_v52, %s10613_s25 }
 0x63c   :  { %6550 = vrot.lane.b32.xlu1 %v6530_v32, %s10606_s18  ;;  %v10382_v32 = vadd.f32 %v15035_v38, %v15112_v13 }
 0x63d   :  { %v15787_v26 = vpop.permute.xlu0 %6736 }
 0x63e   :  { %21136 = vst [vmem:[#allocation144_spill] sm:$0xff] %v15787_v26  ;;  %v15792_v12 = vpop.permute.xlu1 %5283  ;;  %v15812_v26 = vsel %vm5224_vm10, %v5586_v15, %v5587_v36 }
 0x63f   :  { %21138 = vst [vmem:[#allocation136_spill] sm:$0xff] %v15792_v12  ;;  %6330 = vrot.lane.b32.xlu0 %v15790_v24, %s10607_s19  ;;  %21142 = vst [vmem:[#allocation159_spill] sm:$0xff] %v15812_v26 }
 0x640   :  { %5498 = vrot.lane.b32.xlu1 %v15768_v62, %s10610_s22  ;;  %v4993_v62 = vmax.f32 %v10382_v32, 0.0 }
 0x641   :  { %v15798_v52 = vpop.permute.xlu0 %5600 }
 0x642   :  { %21139 = vst [vmem:[#allocation132_spill] sm:$0xff] %v15798_v52  ;;  %v15801_v58 = vpop.permute.xlu1 %5380  ;;  %v15836_v32 = vcombine.high %v4993_v62, %v4993_v62 }
 0x643   :  { %21140 = vst [vmem:[#allocation147_spill] sm:$0xff] %v15801_v58  ;;  %6598 = vrot.lane.b32.xlu0 %v15775_v22, %s10610_s22  ;;  %v15819_v58 = vcombine.low %v5063_v20, %v15775_v22 }
 0x644   :  { %6332 = vrot.lane.b32.xlu1 %v5533_v40, %s10607_s19  ;;  %21149 = vst [vmem:[#allocation137_spill] sm:$0xff] %v15836_v32 }
 0x645   :  { %v15809_v12 = vpop.permute.xlu0 %6806  ;;  %21144 = vst [vmem:[#allocation6_spill] sm:$0xff] %v15819_v58  ;;  %v6465_v20 = vrot.slane %v15819_v58, 7 }
 0x646   :  { %21141 = vst [vmem:[#allocation9_spill] sm:$0xff] %v15809_v12  ;;  %v15814_v8 = vpop.permute.xlu1 %5546  ;;  %v5064_v12 = vcombine.high %v15775_v22, %v15775_v22 }
 0x647   :  { %21143 = vst [vmem:[#allocation21_spill] sm:$0xff] %v15814_v8  ;;  %6402 = vrot.lane.b32.xlu0 %v15812_v26, %s10608_s20 }
 0x648   :  { %5552 = vrot.lane.b32.xlu1 %v15790_v24, %s10612_s24  ;;  %v15830_v15 = vcombine.low %v5064_v12, %v4993_v62 }
 0x649   :  { %v15823_v13 = vpop.permute.xlu0 %6326 }
 0x64a   :  { %21145 = vst [vmem:[#allocation166_spill] sm:$0xff] %v15823_v13  ;;  %v15827_v52 = vpop.permute.xlu1 %6546  ;;  %21147 = vst [vmem:[#allocation89_spill] sm:$0xff] %v15830_v15  ;;  %v5794_v12 = vrot.slane %v15830_v15, 1  ;;  %v5795_v13 = vrot.slane %v15836_v32, 1 }
 0x64b   :  { %21146 = vst [vmem:[#allocation7_spill] sm:$0xff] %v15827_v52  ;;  %6670 = vrot.lane.b32.xlu0 %v5533_v40, %s10612_s24  ;;  %v6531_v40 = vrot.slane %v15830_v15, 7 }
 0x64c   :  { %6404 = vrot.lane.b32.xlu1 %v5587_v36, %s10608_s20  ;;  %v15855_v52 = vsel %vm19957_vm15, %v5794_v12, %v5795_v13 }
 0x64d   :  { %v15833_v8 = vpop.permute.xlu0 %6666  ;;  %21154 = vst [vmem:[#allocation143_spill] sm:$0xff] %v15855_v52 }
 0x64e   :  { %21148 = vst [vmem:[#allocation167_spill] sm:$0xff] %v15833_v8  ;;  %v15838_v24 = vpop.permute.xlu1 %6480 }
 0x64f   :  { %21150 = vst [vmem:[#allocation148_spill] sm:$0xff] %v15838_v24  ;;  %6486 = vrot.lane.b32.xlu0 %v6465_v20, %s10609_s21 }
 0x650   :  { %5606 = vrot.lane.b32.xlu1 %v15812_v26, %s10611_s23 }
 0x651   :  { %v15843_v22 = vpop.permute.xlu0 %5188 }
 0x652   :  { %21151 = vst [vmem:[#allocation42_spill] sm:$0xff] %v15843_v22  ;;  %v15848_v8 = vpop.permute.xlu1 %6398 }
 0x653   :  { %21152 = vst [vmem:[#allocation85_spill] sm:$0xff] %v15848_v8  ;;  %6552 = vrot.lane.b32.xlu0 %v6531_v40, %s10606_s18  ;;  %v5848_v8 = vrot.slane %v15830_v15, 2  ;;  %v5849_v40 = vrot.slane %v15836_v32, 2 }
 0x654   :  { %6742 = vrot.lane.b32.xlu1 %v5587_v36, %s10611_s23 }
 0x655   :  { %v15852_v58 = vpop.permute.xlu0 %5285  ;;  %v15874_v12 = vsel %vm5224_vm10, %v5848_v8, %v5849_v40 }
 0x656   :  { %21153 = vst [vmem:[#allocation138_spill] sm:$0xff] %v15852_v58  ;;  %v15857_v26 = vpop.permute.xlu1 %5602  ;;  %21158 = vst [vmem:[#allocation162_spill] sm:$0xff] %v15874_v12 }
 0x657   :  { %21155 = vst [vmem:[#allocation157_spill] sm:$0xff] %v15857_v26  ;;  %6334 = vrot.lane.b32.xlu0 %v15855_v52, %s10607_s19 }
 0x658   :  { %6812 = vrot.lane.b32.xlu1 %v6465_v20, %s10613_s25  ;;  %v10381_v20 = vadd.f32 %v15110_v57, %v15035_v38 }
 0x659   :  { %v15862_v22 = vpop.permute.xlu0 %5382 }
 0x65a   :  { %21156 = vst [vmem:[#allocation160_spill] sm:$0xff] %v15862_v22  ;;  %v15866_v24 = vpop.permute.xlu1 %5190  ;;  %v4994_v58 = vmax.f32 %v10381_v20, 0.0 }
 0x65b   :  { %21157 = vst [vmem:[#allocation8_spill] sm:$0xff] %v15866_v24  ;;  %6600 = vrot.lane.b32.xlu0 %v15830_v15, %s10610_s22  ;;  %v15883_v24 = vcombine.low %v4993_v62, %v15836_v32 }
 0x65c   :  { %6336 = vrot.lane.b32.xlu1 %v5795_v13, %s10607_s19 }
 0x65d   :  { %v15871_v36 = vpop.permute.xlu0 %5548  ;;  %21160 = vst [vmem:[#allocation165_spill] sm:$0xff] %v15883_v24  ;;  %v6466_v8 = vrot.slane %v15883_v24, 7 }
 0x65e   :  { %v15878_v22 = vpop.permute.xlu1 %5287 }
 0x65f   :  { %21159 = vst [vmem:[#allocation164_spill] sm:$0xff] %v15878_v22  ;;  %6406 = vrot.lane.b32.xlu0 %v15874_v12, %s10608_s20  ;;  %v5066_v22 = vcombine.high %v4994_v58, %v4994_v58 }
 0x660   :  { %6602 = vrot.lane.b32.xlu1 %v15836_v32, %s10610_s22 }
 0x661   :  { %v15887_v15 = vpop.permute.xlu0 %5192 }
 0x662   :  { %21161 = vst [vmem:[#allocation41_spill] sm:$0xff] %v15887_v15  ;;  %v15889_v26 = vpop.permute.xlu1 %5384  ;;  %v10384_v15 = vadd.f32 %v15035_v38, %v15131_v59 }
 0x663   :  { %21162 = vst [vmem:[#allocation44_spill] sm:$0xff] %v15889_v26  ;;  %6672 = vrot.lane.b32.xlu0 %v15855_v52, %s10612_s24  ;;  %v15905_v26 = vcombine.low %v4994_v58, %v5066_v22 }
 0x664   :  { %6408 = vrot.lane.b32.xlu1 %v5849_v40, %s10608_s20 }
 0x665   :  { %v15894_v57 = vpop.permute.xlu0 %5289  ;;  %21166 = vst [vmem:[#allocation168_spill] sm:$0xff] %v15905_v26  ;;  %v6532_v38 = vrot.slane %v15905_v26, 7  ;;  %v6314_v58 = vrot.slane %v15905_v26, 1 }
 0x666   :  { %21163 = vst [vmem:[#allocation13_spill] sm:$0xff] %v15894_v57  ;;  %v15897_v62 = vpop.permute.xlu1 %5194  ;;  %v15910_v57 = vmax.f32 %v10384_v15, 0.0 }
 0x667   :  { %21164 = vst [vmem:[#allocation11_spill] sm:$0xff] %v15897_v62  ;;  %6488 = vrot.lane.b32.xlu0 %v6466_v8, %s10609_s21 }
 0x668   :  { %6674 = vrot.lane.b32.xlu1 %v5795_v13, %s10612_s24  ;;  %21168 = vst [vmem:[#allocation53_spill] sm:$0xff] %v15910_v57  ;;  %v6315_v59 = vrot.slane %v15910_v57, 1 }
 0x669   :  { %v15903_v20 = vpop.permute.xlu0 %5386 }
 0x66a   :  { %21165 = vst [vmem:[#allocation86_spill] sm:$0xff] %v15903_v20  ;;  %v15907_v52 = vpop.permute.xlu1 %5291 }
 0x66b   :  { %21167 = vst [vmem:[#allocation15_spill] sm:$0xff] %v15907_v52  ;;  %6746 = vrot.lane.b32.xlu0 %v5849_v40, %s10611_s23  ;;  %v6316_v40 = vsel %vm19957_vm15, %v6314_v58, %v6315_v59  ;;  %v15945_v58 = vld [vmem:[%s19239_s2] ss:$0 sm:$0xff]  ;;  %s10619_s2 = smov 32  }
 0x66c   :  { %6744 = vrot.lane.b32.xlu1 %v15874_v12, %s10611_s23 }
 0x66d   :  { %v15914_v62 = vpop.permute.xlu0 %5196 }
 0x66e   :  { %21169 = vst [vmem:[#allocation56_spill] sm:$0xff] %v15914_v62  ;;  %v15916_v24 = vpop.permute.xlu1 %5388 }
 0x66f   :  { %21170 = vst [vmem:[#allocation169_spill] sm:$0xff] %v15916_v24  ;;  %6814 = vrot.lane.b32.xlu0 %v6466_v8, %s10613_s25  ;;  %v6387_v24 = vrot.slane %v15910_v57, 2 }
 0x670   :  { %6554 = vrot.lane.b32.xlu1 %v6532_v38, %s10606_s18  ;;  %v6386_v38 = vrot.slane %v15905_v26, 2 }
 0x671   :  { %v15923_v13 = vpop.permute.xlu0 %5293 }
 0x672   :  { %21171 = vst [vmem:[#allocation161_spill] sm:$0xff] %v15923_v13  ;;  %v15925_v15 = vpop.permute.xlu1 %5198  ;;  %v6388_v20 = vsel %vm5224_vm10, %v6386_v38, %v6387_v24 }
 0x673   :  { %21172 = vst [vmem:[#allocation163_spill] sm:$0xff] %v15925_v15  ;;  %6340 = vrot.lane.b32.xlu0 %v6315_v59, %s10607_s19 }
 0x674   :  { %6338 = vrot.lane.b32.xlu1 %v6316_v40, %s10607_s19 }
 0x675   :  { %v15930_v62 = vpop.permute.xlu0 %5390 }
 0x676   :  { %21173 = vst [vmem:[#allocation10_spill] sm:$0xff] %v15930_v62  ;;  %v15932_v8 = vpop.permute.xlu1 %5295  ;;  %v10383_v62 = vadd.f32 %v15945_v58, %v15129_v18  ;;  %v6458_v18 = vcombine.low %v5066_v22, %v15910_v57 }
 0x677   :  { %21174 = vst [vmem:[#allocation54_spill] sm:$0xff] %v15932_v8  ;;  %6606 = vrot.lane.b32.xlu0 %v15910_v57, %s10610_s22 }
 0x678   :  { %6604 = vrot.lane.b32.xlu1 %v15905_v26, %s10610_s22  ;;  %v4996_v15 = vmax.f32 %v10383_v62, 0.0 }
 0x679   :  { %v15940_v13 = vpop.permute.xlu0 %5200 }
 0x67a   :  { %21175 = vst [vmem:[#allocation87_spill] sm:$0xff] %v15940_v13  ;;  %v15949_v52 = vpop.permute.xlu1 %5392  ;;  %v5067_v13 = vcombine.high %v15910_v57, %v15910_v57 }
 0x67b   :  { %21176 = vst [vmem:[#allocation25_spill] sm:$0xff] %v15949_v52  ;;  %6412 = vrot.lane.b32.xlu0 %v6387_v24, %s10608_s20 }
 0x67c   :  { %6410 = vrot.lane.b32.xlu1 %v6388_v20, %s10608_s20  ;;  %v6524_v12 = vcombine.low %v5067_v13, %v4996_v15  ;;  %v21184_v13 = vrot.slane %v15474_v14, 1 }
 0x67d   :  { %v15954_v8 = vpop.permute.xlu0 %5297 }
 0x67e   :  { %21177 = vst [vmem:[#allocation43_spill] sm:$0xff] %v15954_v8  ;;  %v15958_v26 = vpop.permute.xlu1 %5202  ;;  %v6467_v8 = vrot.slane %v6458_v18, 7  ;;  %v6533_v62 = vrot.slane %v6524_v12, 7  ;;  %v6656_v18 = vrot.slane %v6524_v12, 1 }
 0x67f   :  { %21178 = vst [vmem:[#allocation12_spill] sm:$0xff] %v15958_v26  ;;  %6678 = vrot.lane.b32.xlu0 %v6315_v59, %s10612_s24 }
 0x680   :  { %6676 = vrot.lane.b32.xlu1 %v6316_v40, %s10612_s24 }
 0x681   :  { %v15963_v52 = vpop.permute.xlu0 %5394 }
 0x682   :  { %21179 = vst [vmem:[#allocation46_spill] sm:$0xff] %v15963_v52  ;;  %v15965_v38 = vpop.permute.xlu1 %5299 }
 0x683   :  { %21180 = vst [vmem:[#allocation17_spill] sm:$0xff] %v15965_v38  ;;  %6748 = vrot.lane.b32.xlu0 %v6388_v20, %s10611_s23  ;;  %v5068_v20 = vcombine.high %v4996_v15, %v4996_v15 }
 0x684   :  { %6490 = vrot.lane.b32.xlu1 %v6467_v8, %s10609_s21 }
 0x685   :  { %v15969_v32 = vpop.permute.xlu0 %5204  ;;  %v6800_v38 = vcombine.low %v4996_v15, %v5068_v20 }
 0x686   :  { %21181 = vst [vmem:[#allocation55_spill] sm:$0xff] %v15969_v32  ;;  %v15971_v26 = vpop.permute.xlu1 %5396  ;;  %v6728_v32 = vrot.slane %v6524_v12, 2 }
 0x687   :  { %21182 = vst [vmem:[#allocation79_spill] sm:$0xff] %v15971_v26  ;;  %6556 = vrot.lane.b32.xlu0 %v6533_v62, %s10606_s18  ;;  %v6657_v62 = vrot.slane %v5068_v20, 1 }
 0x688   :  { %6750 = vrot.lane.b32.xlu1 %v6387_v24, %s10611_s23  ;;  %v15990_v24 = vcombine.low %v15207_v29, %v15474_v14 }
 0x689   :  { %v15975_v22 = vpop.permute.xlu0 %5301 }
 0x68a   :  { %21183 = vst [vmem:[#allocation80_spill] sm:$0xff] %v15975_v22  ;;  %v15977_v59 = vpop.permute.xlu1 %6738  ;;  %21187 = vst [vmem:[#allocation171_spill] sm:$0xff] %v15990_v24 }
 0x68b   :  { %6342 = vrot.lane.b32.xlu0 %v21184_v13, %s10607_s19  ;;  %v6658_v13 = vsel %vm19957_vm15, %v6656_v18, %v6657_v62 }
 0x68c   :  { %6816 = vrot.lane.b32.xlu1 %v6467_v8, %s10613_s25  ;;  %v21189_v8 = vrot.slane %v15474_v14, 2  ;;  %v6802_v14 = vrot.slane %v6800_v38, 7 }
 0x68d   :  { %v15983_v40 = vpop.permute.xlu0 %5398 }
 0x68e   :  { %21185 = vst [vmem:[#allocation57_spill] sm:$0xff] %v15983_v40  ;;  %v15985_v52 = vpop.permute.xlu1 %5206 }
 0x68f   :  { %21186 = vst [vmem:[#allocation14_spill] sm:$0xff] %v15985_v52  ;;  %6610 = vrot.lane.b32.xlu0 %v5068_v20, %s10610_s22  ;;  %v6468_v52 = vrot.slane %v15990_v24, 7 }
 0x690   :  { %6608 = vrot.lane.b32.xlu1 %v6524_v12, %s10610_s22 }
 0x691   :  { %v15993_v26 = vpop.permute.xlu0 %6482 }
 0x692   :  { %v15996_v22 = vpop.permute.xlu1 %5303 }
 0x693   :  { %21188 = vst [vmem:[#allocation170_spill] sm:$0xff] %v15996_v22  ;;  %6680 = vrot.lane.b32.xlu0 %v6658_v13, %s10612_s24  ;;  %v6729_v22 = vrot.slane %v5068_v20, 2 }
 0x694   :  { %6414 = vrot.lane.b32.xlu1 %v21189_v8, %s10608_s20 }
 0x695   :  { %v16002_v40 = vpop.permute.xlu0 %6548  ;;  %v6730_v8 = vsel %vm5224_vm10, %v6728_v32, %v6729_v22 }
 0x696   :  { %v16005_v29 = vpop.permute.xlu1 %5400 }
 0x697   :  { %21190 = vst [vmem:[#allocation59_spill] sm:$0xff] %v16005_v29  ;;  %6492 = vrot.lane.b32.xlu0 %v6468_v52, %s10609_s21  ;;  %v6534_v52 = vrot.slane %v15494_v35, 7 }
 0x698   :  { %6682 = vrot.lane.b32.xlu1 %v6657_v62, %s10612_s24 }
 0x699   :  { %v16009_v18 = vpop.permute.xlu0 %5496 }
 0x69a   :  { %v16011_v13 = vpop.permute.xlu1 %6808 }
 0x69b   :  { %6754 = vrot.lane.b32.xlu0 %v6729_v22, %s10611_s23 }
 0x69c   :  { %6752 = vrot.lane.b32.xlu1 %v6730_v8, %s10611_s23 }
 0x69d   :  { %v16016_v24 = vpop.permute.xlu0 %6596 }
 0x69e   :  { %v16018_v29 = vpop.permute.xlu1 %6328 }
 0x69f   :  { %6818 = vrot.lane.b32.xlu0 %v6802_v14, %s10613_s25  ;;  %v16039_v14 = vcombine.low %v15466_v33, %v15491_v56 }
 0x6a0   :  { %6558 = vrot.lane.b32.xlu1 %v6534_v52, %s10606_s18 }
 0x6a1   :  { %v16023_v12 = vpop.permute.xlu0 %6400  ;;  %21191 = vst [vmem:[#allocation173_spill] sm:$0xff] %v16039_v14  ;;  %v6469_v8 = vrot.slane %v16039_v14, 7 }
 0x6a2   :  { %v16025_v15 = vpop.permute.xlu1 %5550 }
 0x6a3   :  { %6344 = vrot.lane.b32.xlu0 %v15548_v23, %s10607_s19 }
 0x6a4   :  { %5506 = vrot.lane.b32.xlu1 %v15494_v35, %s10610_s22 }
 0x6a5   :  { %v16031_v32 = vpop.permute.xlu0 %5604 }
 0x6a6   :  { %v16033_v38 = vpop.permute.xlu1 %6668 }
 0x6a7   :  { %5560 = vrot.lane.b32.xlu0 %v15561_v9, %s10612_s24  ;;  %v6535_v9 = vrot.slane %v15540_v41, 7 }
 0x6a8   :  { %6612 = vrot.lane.b32.xlu1 %v15491_v56, %s10610_s22 }
 0x6a9   :  { %v16043_v22 = vpop.permute.xlu0 %6740 }
 0x6aa   :  { %v16045_v20 = vpop.permute.xlu1 %6484 }
 0x6ab   :  { %6684 = vrot.lane.b32.xlu0 %v15548_v23, %s10612_s24 }
 0x6ac   :  { %6416 = vrot.lane.b32.xlu1 %v15573_v7, %s10608_s20 }
 0x6ad   :  { %v16051_v62 = vpop.permute.xlu0 %6810 }
 0x6ae   :  { %v16054_v52 = vpop.permute.xlu1 %6550 }
 0x6af   :  { %6494 = vrot.lane.b32.xlu0 %v6469_v8, %s10609_s21 }
 0x6b0   :  { %5614 = vrot.lane.b32.xlu1 %v15590_v37, %s10611_s23 }
 0x6b1   :  { %v16059_v33 = vpop.permute.xlu0 %6330 }
 0x6b2   :  { %v16062_v56 = vpop.permute.xlu1 %5498 }
 0x6b3   :  { %6560 = vrot.lane.b32.xlu0 %v6535_v9, %s10606_s18 }
 0x6b4   :  { %6756 = vrot.lane.b32.xlu1 %v15573_v7, %s10611_s23 }
 0x6b5   :  { %v16067_v23 = vpop.permute.xlu0 %6598 }
 0x6b6   :  { %v16069_v14 = vpop.permute.xlu1 %6332 }
 0x6b7   :  { %5508 = vrot.lane.b32.xlu0 %v15540_v41, %s10610_s22  ;;  %v16094_v41 = vcombine.low %v15508_v42, %v15533_v0 }
 0x6b8   :  { %6820 = vrot.lane.b32.xlu1 %v6469_v8, %s10613_s25 }
 0x6b9   :  { %v16074_v37 = vpop.permute.xlu0 %6402  ;;  %21194 = vst [vmem:[#allocation22_spill] sm:$0xff] %v16094_v41 }
 0x6ba   :  { %21192 = vst [vmem:[#allocation2_spill] sm:$0xff] %v16074_v37  ;;  %v16076_v35 = vpop.permute.xlu1 %5552 }
 0x6bb   :  { %6614 = vrot.lane.b32.xlu0 %v15533_v0, %s10610_s22 }
 0x6bc   :  { %6346 = vrot.lane.b32.xlu1 %v15577_v31, %s10607_s19 }
 0x6bd   :  { %v16082_v7 = vpop.permute.xlu0 %6670 }
 0x6be   :  { %v16084_v9 = vpop.permute.xlu1 %6404 }
 0x6bf   :  { %21193 = vst [vmem:[#allocation61_spill] sm:$0xff] %v16084_v9  ;;  %6418 = vrot.lane.b32.xlu0 %v15604_v47, %s10608_s20 }
 0x6c0   :  { %5562 = vrot.lane.b32.xlu1 %v15599_v25, %s10612_s24  ;;  %v6470_v25 = vrot.slane %v16094_v41, 7 }
 0x6c1   :  { %v16090_v8 = vpop.permute.xlu0 %6486 }
 0x6c2   :  { %v16096_v57 = vpop.permute.xlu1 %5606 }
 0x6c3   :  { %5616 = vrot.lane.b32.xlu0 %v15627_v27, %s10611_s23  ;;  %v6536_v27 = vrot.slane %v15584_v10, 7 }
 0x6c4   :  { %6686 = vrot.lane.b32.xlu1 %v15577_v31, %s10612_s24 }
 0x6c5   :  { %v16102_v9 = vpop.permute.xlu0 %6552 }
 0x6c6   :  { %21195 = vst [vmem:[#allocation58_spill] sm:$0xff] %v16102_v9  ;;  %v16104_v37 = vpop.permute.xlu1 %6742 }
 0x6c7   :  { %6758 = vrot.lane.b32.xlu0 %v15604_v47, %s10611_s23 }
 0x6c8   :  { %6496 = vrot.lane.b32.xlu1 %v6470_v25, %s10609_s21 }
 0x6c9   :  { %v16110_v42 = vpop.permute.xlu0 %6334 }
 0x6ca   :  { %21196 = vst [vmem:[#allocation174_spill] sm:$0xff] %v16110_v42  ;;  %v16112_v0 = vpop.permute.xlu1 %6812 }
 0x6cb   :  { %6822 = vrot.lane.b32.xlu0 %v6470_v25, %s10613_s25 }
 0x6cc   :  { %6562 = vrot.lane.b32.xlu1 %v6536_v27, %s10606_s18  ;;  %v16137_v27 = vcombine.low %v15551_v6, %v15586_v1 }
 0x6cd   :  { %v16117_v31 = vpop.permute.xlu0 %6600 }
 0x6ce   :  { %v16119_v9 = vpop.permute.xlu1 %6336  ;;  %21199 = vst [vmem:[#allocation177_spill] sm:$0xff] %v16137_v27 }
 0x6cf   :  { %21197 = vst [vmem:[#allocation175_spill] sm:$0xff] %v16119_v9  ;;  %6348 = vrot.lane.b32.xlu0 %v15617_v17, %s10607_s19 }
 0x6d0   :  { %5510 = vrot.lane.b32.xlu1 %v15584_v10, %s10610_s22 }
 0x6d1   :  { %v16125_v47 = vpop.permute.xlu0 %6406 }
 0x6d2   :  { %21198 = vst [vmem:[#allocation176_spill] sm:$0xff] %v16125_v47  ;;  %v16127_v41 = vpop.permute.xlu1 %6602 }
 0x6d3   :  { %5564 = vrot.lane.b32.xlu0 %v15639_v48, %s10612_s24  ;;  %v6471_v48 = vrot.slane %v16137_v27, 7 }
 0x6d4   :  { %6616 = vrot.lane.b32.xlu1 %v15586_v1, %s10610_s22  ;;  %v6537_v1 = vrot.slane %v15650_v21, 7 }
 0x6d5   :  { %v16133_v25 = vpop.permute.xlu0 %6672 }
 0x6d6   :  { %v16139_v9 = vpop.permute.xlu1 %6408 }
 0x6d7   :  { %21200 = vst [vmem:[#allocation178_spill] sm:$0xff] %v16139_v9  ;;  %6688 = vrot.lane.b32.xlu0 %v15617_v17, %s10612_s24 }
 0x6d8   :  { %6420 = vrot.lane.b32.xlu1 %v15643_v54, %s10608_s20 }
 0x6d9   :  { %v16145_v10 = vpop.permute.xlu0 %6488 }
 0x6da   :  { %21201 = vst [vmem:[#allocation179_spill] sm:$0xff] %v16145_v10  ;;  %v16148_v47 = vpop.permute.xlu1 %6674  ;;  %v10398_v10 = vadd.f32 %v15945_v58, %v15251_v50 }
 0x6db   :  { %6498 = vrot.lane.b32.xlu0 %v6471_v48, %s10609_s21 }
 0x6dc   :  { %5618 = vrot.lane.b32.xlu1 %v15665_v43, %s10611_s23 }
 0x6dd   :  { %v16153_v6 = vpop.permute.xlu0 %6746 }
 0x6de   :  { %v16156_v9 = vpop.permute.xlu1 %6744 }
 0x6df   :  { %21202 = vst [vmem:[#allocation180_spill] sm:$0xff] %v16156_v9  ;;  %6564 = vrot.lane.b32.xlu0 %v6537_v1, %s10606_s18  ;;  %v58_v9 = vld [vmem:[%s19240_s3 + $0xf0] sm:$0xff] }
 0x6e0   :  { %6760 = vrot.lane.b32.xlu1 %v15643_v54, %s10611_s23  ;;  %v5009_v54 = vmax.f32 %v10398_v10, 0.0  ;;  %v10397_v10 = vadd.f32 %v15945_v58, %v15249_v61 }
 0x6e1   :  { %v16161_v17 = vpop.permute.xlu0 %6814 }
 0x6e2   :  { %21203 = vst [vmem:[#allocation181_spill] sm:$0xff] %v16161_v17  ;;  %v16163_v27 = vpop.permute.xlu1 %6554  ;;  %v5081_v50 = vcombine.high %v5009_v54, %v5009_v54 }
 0x6e3   :  { %21204 = vst [vmem:[#allocation182_spill] sm:$0xff] %v16163_v27  ;;  %5512 = vrot.lane.b32.xlu0 %v15650_v21, %s10610_s22  ;;  %v16190_v21 = vcombine.low %v15635_v46, %v15661_v63 }
 0x6e4   :  { %6824 = vrot.lane.b32.xlu1 %v6471_v48, %s10613_s25 }
 0x6e5   :  { %v16168_v43 = vpop.permute.xlu0 %6340  ;;  %21210 = vst [vmem:[#allocation188_spill] sm:$0xff] %v16190_v21  ;;  %v6472_v46 = vrot.slane %v16190_v21, 7 }
 0x6e6   :  { %21205 = vst [vmem:[#allocation183_spill] sm:$0xff] %v16168_v43  ;;  %v16172_v42 = vpop.permute.xlu1 %6338 }
 0x6e7   :  { %21206 = vst [vmem:[#allocation184_spill] sm:$0xff] %v16172_v42  ;;  %6618 = vrot.lane.b32.xlu0 %v15661_v63, %s10610_s22  ;;  %v16209_v63 = vmax.f32 %v10397_v10, 0.0 }
 0x6e8   :  { %6350 = vrot.lane.b32.xlu1 %v15686_v19, %s10607_s19 }
 0x6e9   :  { %v16178_v1 = vpop.permute.xlu0 %6606  ;;  %21215 = vst [vmem:[#allocation193_spill] sm:$0xff] %v16209_v63 }
 0x6ea   :  { %21207 = vst [vmem:[#allocation185_spill] sm:$0xff] %v16178_v1  ;;  %v16180_v27 = vpop.permute.xlu1 %6604 }
 0x6eb   :  { %21208 = vst [vmem:[#allocation186_spill] sm:$0xff] %v16180_v27  ;;  %6422 = vrot.lane.b32.xlu0 %v15703_v5, %s10608_s20 }
 0x6ec   :  { %5566 = vrot.lane.b32.xlu1 %v15694_v53, %s10612_s24  ;;  %v16202_v53 = vcombine.low %v5009_v54, %v5081_v50 }
 0x6ed   :  { %v16186_v48 = vpop.permute.xlu0 %6412 }
 0x6ee   :  { %21209 = vst [vmem:[#allocation187_spill] sm:$0xff] %v16186_v48  ;;  %v16192_v42 = vpop.permute.xlu1 %6410  ;;  %21213 = vst [vmem:[#allocation191_spill] sm:$0xff] %v16202_v53  ;;  %v5535_v61 = vrot.slane %v16202_v53, 1  ;;  %v6538_v54 = vrot.slane %v16202_v53, 7 }
 0x6ef   :  { %21211 = vst [vmem:[#allocation189_spill] sm:$0xff] %v16192_v42  ;;  %5620 = vrot.lane.b32.xlu0 %v15710_v60, %s10611_s23  ;;  %v5536_v42 = vrot.slane %v16209_v63, 1 }
 0x6f0   :  { %6690 = vrot.lane.b32.xlu1 %v15686_v19, %s10612_s24 }
 0x6f1   :  { %v16200_v43 = vpop.permute.xlu0 %6678  ;;  %v16224_v10 = vsel %vm19957_vm15, %v5535_v61, %v5536_v42  ;;  %v5590_v61 = vrot.slane %v16209_v63, 2 }
 0x6f2   :  { %21212 = vst [vmem:[#allocation190_spill] sm:$0xff] %v16200_v43  ;;  %v16204_v48 = vpop.permute.xlu1 %6676  ;;  %21219 = vst [vmem:[#allocation197_spill] sm:$0xff] %v16224_v10 }
 0x6f3   :  { %21214 = vst [vmem:[#allocation192_spill] sm:$0xff] %v16204_v48  ;;  %6762 = vrot.lane.b32.xlu0 %v15703_v5, %s10611_s23 }
 0x6f4   :  { %6500 = vrot.lane.b32.xlu1 %v6472_v46, %s10609_s21 }
 0x6f5   :  { %v16212_v60 = vpop.permute.xlu0 %6748 }
 0x6f6   :  { %21216 = vst [vmem:[#allocation194_spill] sm:$0xff] %v16212_v60  ;;  %v16215_v19 = vpop.permute.xlu1 %6490 }
 0x6f7   :  { %21217 = vst [vmem:[#allocation195_spill] sm:$0xff] %v16215_v19  ;;  %6826 = vrot.lane.b32.xlu0 %v6472_v46, %s10613_s25  ;;  %v5589_v19 = vrot.slane %v16202_v53, 2 }
 0x6f8   :  { %6566 = vrot.lane.b32.xlu1 %v6538_v54, %s10606_s18  ;;  %v10400_v54 = vadd.f32 %v15945_v58, %v15260_v28 }
 0x6f9   :  { %v16221_v5 = vpop.permute.xlu0 %6556 }
 0x6fa   :  { %21218 = vst [vmem:[#allocation196_spill] sm:$0xff] %v16221_v5  ;;  %v16226_v21 = vpop.permute.xlu1 %6750 }
 0x6fb   :  { %21220 = vst [vmem:[#allocation198_spill] sm:$0xff] %v16226_v21  ;;  %6352 = vrot.lane.b32.xlu0 %v16224_v10, %s10607_s19  ;;  %v16246_v21 = vsel %vm5224_vm10, %v5589_v19, %v5590_v61 }
 0x6fc   :  { %5514 = vrot.lane.b32.xlu1 %v16202_v53, %s10610_s22  ;;  %21224 = vst [vmem:[#allocation202_spill] sm:$0xff] %v16246_v21  ;;  %v16253_v53 = vcombine.low %v5081_v50, %v16209_v63 }
 0x6fd   :  { %v16232_v46 = vpop.permute.xlu0 %6342 }
 0x6fe   :  { %21221 = vst [vmem:[#allocation199_spill] sm:$0xff] %v16232_v46  ;;  %v16235_v60 = vpop.permute.xlu1 %6816  ;;  %21226 = vst [vmem:[#allocation204_spill] sm:$0xff] %v16253_v53  ;;  %v6473_v50 = vrot.slane %v16253_v53, 7 }
 0x6ff   :  { %21222 = vst [vmem:[#allocation200_spill] sm:$0xff] %v16235_v60  ;;  %6620 = vrot.lane.b32.xlu0 %v16209_v63, %s10610_s22  ;;  %v5011_v60 = vmax.f32 %v10400_v54, 0.0 }
 0x700   :  { %6354 = vrot.lane.b32.xlu1 %v5536_v42, %s10607_s19 }
 0x701   :  { %v16243_v5 = vpop.permute.xlu0 %6610  ;;  %v16270_v54 = vcombine.high %v5011_v60, %v5011_v60 }
 0x702   :  { %21223 = vst [vmem:[#allocation201_spill] sm:$0xff] %v16243_v5  ;;  %v16248_v46 = vpop.permute.xlu1 %6608  ;;  %v5082_v5 = vcombine.high %v16209_v63, %v16209_v63 }
 0x703   :  { %21225 = vst [vmem:[#allocation203_spill] sm:$0xff] %v16248_v46  ;;  %6424 = vrot.lane.b32.xlu0 %v16246_v21, %s10608_s20  ;;  %21231 = vst [vmem:[#allocation209_spill] sm:$0xff] %v16270_v54 }
 0x704   :  { %5568 = vrot.lane.b32.xlu1 %v16224_v10, %s10612_s24  ;;  %v16264_v19 = vcombine.low %v5082_v5, %v5011_v60 }
 0x705   :  { %v16257_v28 = vpop.permute.xlu0 %6680 }
 0x706   :  { %21227 = vst [vmem:[#allocation205_spill] sm:$0xff] %v16257_v28  ;;  %v16261_v48 = vpop.permute.xlu1 %6414  ;;  %21229 = vst [vmem:[#allocation207_spill] sm:$0xff] %v16264_v19  ;;  %v5797_v5 = vrot.slane %v16264_v19, 1 }
 0x707   :  { %21228 = vst [vmem:[#allocation206_spill] sm:$0xff] %v16261_v48  ;;  %6692 = vrot.lane.b32.xlu0 %v5536_v42, %s10612_s24  ;;  %v6539_v42 = vrot.slane %v16264_v19, 7  ;;  %v5798_v48 = vrot.slane %v16270_v54, 1 }
 0x708   :  { %6426 = vrot.lane.b32.xlu1 %v5590_v61, %s10608_s20 }
 0x709   :  { %v16267_v46 = vpop.permute.xlu0 %6492 }
 0x70a   :  { %21230 = vst [vmem:[#allocation208_spill] sm:$0xff] %v16267_v46  ;;  %v16272_v10 = vpop.permute.xlu1 %6682 }
 0x70b   :  { %21232 = vst [vmem:[#allocation210_spill] sm:$0xff] %v16272_v10  ;;  %6502 = vrot.lane.b32.xlu0 %v6473_v50, %s10609_s21  ;;  %v16289_v10 = vsel %vm19957_vm15, %v5797_v5, %v5798_v48 }
 0x70c   :  { %5622 = vrot.lane.b32.xlu1 %v16246_v21, %s10611_s23  ;;  %21236 = vst [vmem:[#allocation214_spill] sm:$0xff] %v16289_v10 }
 0x70d   :  { %v16277_v63 = vpop.permute.xlu0 %6754 }
 0x70e   :  { %21233 = vst [vmem:[#allocation211_spill] sm:$0xff] %v16277_v63  ;;  %v16282_v46 = vpop.permute.xlu1 %6752 }
 0x70f   :  { %21234 = vst [vmem:[#allocation212_spill] sm:$0xff] %v16282_v46  ;;  %6568 = vrot.lane.b32.xlu0 %v6539_v42, %s10606_s18  ;;  %v5851_v46 = vrot.slane %v16264_v19, 2  ;;  %v5852_v42 = vrot.slane %v16270_v54, 2 }
 0x710   :  { %6764 = vrot.lane.b32.xlu1 %v5590_v61, %s10611_s23 }
 0x711   :  { %v16286_v53 = vpop.permute.xlu0 %6818  ;;  %v16308_v5 = vsel %vm5224_vm10, %v5851_v46, %v5852_v42 }
 0x712   :  { %21235 = vst [vmem:[#allocation213_spill] sm:$0xff] %v16286_v53  ;;  %v16291_v21 = vpop.permute.xlu1 %6558  ;;  %21241 = vst [vmem:[#allocation219_spill] sm:$0xff] %v16308_v5 }
 0x713   :  { %21237 = vst [vmem:[#allocation215_spill] sm:$0xff] %v16291_v21  ;;  %6356 = vrot.lane.b32.xlu0 %v16289_v10, %s10607_s19 }
 0x714   :  { %6828 = vrot.lane.b32.xlu1 %v6473_v50, %s10613_s25  ;;  %v10399_v50 = vadd.f32 %v15945_v58, %v15258_v2 }
 0x715   :  { %v16296_v63 = vpop.permute.xlu0 %6344 }
 0x716   :  { %21238 = vst [vmem:[#allocation216_spill] sm:$0xff] %v16296_v63  ;;  %v16300_v28 = vpop.permute.xlu1 %5506 }
 0x717   :  { %21239 = vst [vmem:[#allocation217_spill] sm:$0xff] %v16300_v28  ;;  %6622 = vrot.lane.b32.xlu0 %v16264_v19, %s10610_s22  ;;  %v16317_v28 = vcombine.low %v5011_v60, %v16270_v54 }
 0x718   :  { %6358 = vrot.lane.b32.xlu1 %v5798_v48, %s10607_s19 }
 0x719   :  { %v16305_v61 = vpop.permute.xlu0 %5560  ;;  %21243 = vst [vmem:[#allocation221_spill] sm:$0xff] %v16317_v28  ;;  %v6474_v46 = vrot.slane %v16317_v28, 7 }
 0x71a   :  { %21240 = vst [vmem:[#allocation218_spill] sm:$0xff] %v16305_v61  ;;  %v16312_v63 = vpop.permute.xlu1 %6612  ;;  %v5012_v61 = vmax.f32 %v10399_v50, 0.0 }
 0x71b   :  { %21242 = vst [vmem:[#allocation220_spill] sm:$0xff] %v16312_v63  ;;  %6428 = vrot.lane.b32.xlu0 %v16308_v5, %s10608_s20 }
 0x71c   :  { %6624 = vrot.lane.b32.xlu1 %v16270_v54, %s10610_s22  ;;  %v5084_v63 = vcombine.high %v5012_v61, %v5012_v61  ;;  %v10402_v54 = vadd.f32 %v15945_v58, %v15278_v3 }
 0x71d   :  { %v16321_v19 = vpop.permute.xlu0 %6684 }
 0x71e   :  { %21244 = vst [vmem:[#allocation222_spill] sm:$0xff] %v16321_v19  ;;  %v16323_v21 = vpop.permute.xlu1 %6416  ;;  %v6059_v19 = vsel %vm21278_vm8, %v15149_v49, %v15645_v4  ;;  %v47_v4 = vld [vmem:[%s19240_s3 + $0x98] sm:$0xff]  ;;  %vm21389_vm8 = vmmov %vm21286_vm5 }
 0x71f   :  { %21245 = vst [vmem:[#allocation223_spill] sm:$0xff] %v16323_v21  ;;  %6694 = vrot.lane.b32.xlu0 %v16289_v10, %s10612_s24  ;;  %v16339_v21 = vcombine.low %v5012_v61, %v5084_v63 }
 0x720   :  { %6430 = vrot.lane.b32.xlu1 %v5852_v42, %s10608_s20 }
 0x721   :  { %v16328_v2 = vpop.permute.xlu0 %6494  ;;  %21249 = vst [vmem:[#allocation227_spill] sm:$0xff] %v16339_v21  ;;  %v6540_v3 = vrot.slane %v16339_v21, 7  ;;  %v6317_v61 = vrot.slane %v16339_v21, 1 }
 0x722   :  { %21246 = vst [vmem:[#allocation224_spill] sm:$0xff] %v16328_v2  ;;  %v16331_v60 = vpop.permute.xlu1 %5614  ;;  %v16344_v2 = vmax.f32 %v10402_v54, 0.0 }
 0x723   :  { %21247 = vst [vmem:[#allocation225_spill] sm:$0xff] %v16331_v60  ;;  %6504 = vrot.lane.b32.xlu0 %v6474_v46, %s10609_s21 }
 0x724   :  { %6696 = vrot.lane.b32.xlu1 %v5798_v48, %s10612_s24  ;;  %21251 = vst [vmem:[#allocation229_spill] sm:$0xff] %v16344_v2  ;;  %v6318_v48 = vrot.slane %v16344_v2, 1 }
 0x725   :  { %v16337_v50 = vpop.permute.xlu0 %6560 }
 0x726   :  { %21248 = vst [vmem:[#allocation226_spill] sm:$0xff] %v16337_v50  ;;  %v16341_v10 = vpop.permute.xlu1 %6756  ;;  %v6390_v50 = vrot.slane %v16344_v2, 2 }
 0x727   :  { %21250 = vst [vmem:[#allocation228_spill] sm:$0xff] %v16341_v10  ;;  %6768 = vrot.lane.b32.xlu0 %v5852_v42, %s10611_s23 }
 0x728   :  { %6766 = vrot.lane.b32.xlu1 %v16308_v5, %s10611_s23  ;;  %v6319_v5 = vsel %vm19957_vm15, %v6317_v61, %v6318_v48  ;;  %v10401_v61 = vadd.f32 %v15945_v58, %v15276_v16  ;;  %v6459_v16 = vcombine.low %v5084_v63, %v16344_v2 }
 0x729   :  { %v16348_v28 = vpop.permute.xlu0 %5508 }
 0x72a   :  { %21252 = vst [vmem:[#allocation230_spill] sm:$0xff] %v16348_v28  ;;  %v16350_v60 = vpop.permute.xlu1 %6820  ;;  %v16387_v10 = vmax.f32 %v10401_v61, 0.0 }
 0x72b   :  { %21253 = vst [vmem:[#allocation231_spill] sm:$0xff] %v16350_v60  ;;  %6830 = vrot.lane.b32.xlu0 %v6474_v46, %s10613_s25  ;;  %v5085_v60 = vcombine.high %v16344_v2, %v16344_v2 }
 0x72c   :  { %6570 = vrot.lane.b32.xlu1 %v6540_v3, %s10606_s18  ;;  %v6389_v3 = vrot.slane %v16339_v21, 2 }
 0x72d   :  { %v16357_v42 = vpop.permute.xlu0 %6614 }
 0x72e   :  { %21254 = vst [vmem:[#allocation232_spill] sm:$0xff] %v16357_v42  ;;  %v16359_v54 = vpop.permute.xlu1 %6346 }
 0x72f   :  { %21255 = vst [vmem:[#allocation233_spill] sm:$0xff] %v16359_v54  ;;  %6362 = vrot.lane.b32.xlu0 %v6318_v48, %s10607_s19 }
 0x730   :  { %6360 = vrot.lane.b32.xlu1 %v6319_v5, %s10607_s19 }
 0x731   :  { %v16364_v28 = vpop.permute.xlu0 %6418 }
 0x732   :  { %21256 = vst [vmem:[#allocation234_spill] sm:$0xff] %v16364_v28  ;;  %v16366_v46 = vpop.permute.xlu1 %5562  ;;  %v6391_v28 = vsel %vm5224_vm10, %v6389_v3, %v6390_v50  ;;  %v16397_v3 = vcombine.low %v5085_v60, %v16387_v10 }
 0x733   :  { %21257 = vst [vmem:[#allocation235_spill] sm:$0xff] %v16366_v46  ;;  %6628 = vrot.lane.b32.xlu0 %v16344_v2, %s10610_s22 }
 0x734   :  { %6626 = vrot.lane.b32.xlu1 %v16339_v21, %s10610_s22 }
 0x735   :  { %v16374_v54 = vpop.permute.xlu0 %5616 }
 0x736   :  { %21258 = vst [vmem:[#allocation236_spill] sm:$0xff] %v16374_v54  ;;  %v16378_v42 = vpop.permute.xlu1 %6686 }
 0x737   :  { %21259 = vst [vmem:[#allocation237_spill] sm:$0xff] %v16378_v42  ;;  %6434 = vrot.lane.b32.xlu0 %v6390_v50, %s10608_s20 }
 0x738   :  { %6432 = vrot.lane.b32.xlu1 %v6391_v28, %s10608_s20  ;;  %s10618_s20 = smov 22  }
 0x739   :  { %v16383_v46 = vpop.permute.xlu0 %6758 }
 0x73a   :  { %21260 = vst [vmem:[#allocation238_spill] sm:$0xff] %v16383_v46  ;;  %v16389_v21 = vpop.permute.xlu1 %6496  ;;  %v6475_v46 = vrot.slane %v6459_v16, 7  ;;  %v6659_v16 = vrot.slane %v16397_v3, 1 }
 0x73b   :  { %21261 = vst [vmem:[#allocation239_spill] sm:$0xff] %v16389_v21  ;;  %6700 = vrot.lane.b32.xlu0 %v6318_v48, %s10612_s24  ;;  %v6541_v48 = vrot.slane %v16397_v3, 7 }
 0x73c   :  { %6698 = vrot.lane.b32.xlu1 %v6319_v5, %s10612_s24 }
 0x73d   :  { %v16394_v58 = vpop.permute.xlu0 %6822 }
 0x73e   :  { %21262 = vst [vmem:[#allocation240_spill] sm:$0xff] %v16394_v58  ;;  %v16399_v54 = vpop.permute.xlu1 %6562 }
 0x73f   :  { %21263 = vst [vmem:[#allocation241_spill] sm:$0xff] %v16399_v54  ;;  %6770 = vrot.lane.b32.xlu0 %v6391_v28, %s10611_s23  ;;  %v16418_v28 = vcombine.high %v16387_v10, %v16387_v10 }
 0x740   :  { %6506 = vrot.lane.b32.xlu1 %v6475_v46, %s10609_s21  ;;  %s10617_s21 = smov 90  }
 0x741   :  { %v16403_v61 = vpop.permute.xlu0 %6348 }
 0x742   :  { %21264 = vst [vmem:[#allocation242_spill] sm:$0xff] %v16403_v61  ;;  %v16406_v21 = vpop.permute.xlu1 %5510 }
 0x743   :  { %21265 = vst [vmem:[#allocation243_spill] sm:$0xff] %v16406_v21  ;;  %6572 = vrot.lane.b32.xlu0 %v6541_v48, %s10606_s18  ;;  %v6731_v21 = vrot.slane %v16397_v3, 2 }
 0x744   :  { %6772 = vrot.lane.b32.xlu1 %v6390_v50, %s10611_s23  ;;  %v6660_v50 = vrot.slane %v16418_v28, 1 }
 0x745   :  { %v16410_v63 = vpop.permute.xlu0 %5564 }
 0x746   :  { %21266 = vst [vmem:[#allocation244_spill] sm:$0xff] %v16410_v63  ;;  %v16412_v5 = vpop.permute.xlu1 %6616  ;;  %v6661_v61 = vsel %vm19957_vm15, %v6659_v16, %v6660_v50  ;;  %v45_v16 = vld [vmem:[%s19240_s3 + $0x88] sm:$0xff] }
 0x747   :  { %21267 = vst [vmem:[#allocation245_spill] sm:$0xff] %v16412_v5  ;;  %5484 = vrot.lane.b32.xlu0 %v15043_v51, %s10610_s22 }
 0x748   :  { %6832 = vrot.lane.b32.xlu1 %v6475_v46, %s10613_s25 }
 0x749   :  { %v16421_v60 = vpop.permute.xlu0 %6688 }
 0x74a   :  { %21268 = vst [vmem:[#allocation246_spill] sm:$0xff] %v16421_v60  ;;  %v16424_v48 = vpop.permute.xlu1 %6420 }
 0x74b   :  { %21269 = vst [vmem:[#allocation247_spill] sm:$0xff] %v16424_v48  ;;  %6632 = vrot.lane.b32.xlu0 %v16418_v28, %s10610_s22 }
 0x74c   :  { %6630 = vrot.lane.b32.xlu1 %v16397_v3, %s10610_s22 }
 0x74d   :  { %v16431_v2 = vpop.permute.xlu0 %6498 }
 0x74e   :  { %21270 = vst [vmem:[#allocation248_spill] sm:$0xff] %v16431_v2  ;;  %v16434_v63 = vpop.permute.xlu1 %5618  ;;  %v44_v2 = vld [vmem:[%s19240_s3 + $0x80] sm:$0xff] }
 0x74f   :  { %21271 = vst [vmem:[#allocation249_spill] sm:$0xff] %v16434_v63  ;;  %6702 = vrot.lane.b32.xlu0 %v6661_v61, %s10612_s24  ;;  %v7341_v61 = vand.u32 4294901760, %v44_v2  ;;  %v7344_v63 = vand.u32 4294901760, %v45_v16 }
 0x750   :  { %5538 = vrot.lane.b32.xlu1 %v15058_v30, %s10612_s24  ;;  %v28_v30 = vld [vmem:[%s19240_s3] sm:$0xff] }
 0x751   :  { %v16439_v46 = vpop.permute.xlu0 %6564  ;;  %v7293_v60 = vand.u32 4294901760, %v28_v30  ;;  %v16463_v54 = vpack.c.bf16 %v7344_v63, %v7341_v61  ;;  %v16465_v58 = vsub.f32 %v44_v2, %v7341_v61  ;;  %v16467_v42 = vsub.f32 %v45_v16, %v7344_v63  ;;  %v46_v2 = vld [vmem:[%s19240_s3 + $0x90] sm:$0xff]  ;;  %v21285_v16 = vld [vmem:[#allocation62_spill] sm:$0xff] }
 0x752   :  { %21272 = vst [vmem:[#allocation250_spill] sm:$0xff] %v16439_v46  ;;  %v16441_v48 = vpop.permute.xlu1 %6760  ;;  %v29_v46 = vld [vmem:[%s19240_s3 + $0x8] sm:$0xff]  ;;  %v21284_v63 = vld [vmem:[#allocation32_spill] sm:$0xff] }
 0x753   :  { %21273 = vst [vmem:[#allocation251_spill] sm:$0xff] %v16441_v48  ;;  %5592 = vrot.lane.b32.xlu0 %v15076_v11, %s10611_s23  ;;  %v6801_v11 = vcombine.low %v16387_v10, %v16418_v28  ;;  %v7296_v5 = vand.u32 4294901760, %v29_v46  ;;  %21275 = vst [vmem:[#allocation253_spill] sm:$0xff] %v16463_v54  ;;  %v16478_v53 = vsub.f32 %v28_v30, %v7293_v60  ;;  %10176 = vmatprep.subr.bf16.mxu1 %v16463_v54  ;;  %v31_v30 = vld [vmem:[%s19240_s3 + $0x18] sm:$0xff] }
 0x754   :  { %6704 = vrot.lane.b32.xlu1 %v6660_v50, %s10612_s24  ;;  %21276 = vst [vmem:[#allocation254_spill] sm:$0xff] %v16465_v58  ;;  %21277 = vst [vmem:[#allocation255_spill] sm:$0xff] %v16467_v42  ;;  %v21280_v50 = vld [vmem:[#allocation47_spill] sm:$0xff]  ;;  %v6852_v61 = vsel %vm21286_vm5, %v21285_v16, %v21284_v63  ;;  %v21290_v63 = vld [vmem:[#allocation16_spill] sm:$0xff]  ;;  %v7302_v54 = vand.u32 4294901760, %v31_v30 }
 0x755   :  { %v16460_v48 = vpop.permute.xlu0 %5512  ;;  %21282 = vst [vmem:[#allocation257_spill] sm:$0xff] %v16478_v53  ;;  %v16480_v3 = vsub.f32 %v29_v46, %v7296_v5  ;;  %v21287_v42 = vld [vmem:[#allocation103_spill] sm:$0xff]  ;;  %v30_v46 = vld [vmem:[%s19240_s3 + $0x10] sm:$0xff] }
 0x756   :  { %21274 = vst [vmem:[#allocation252_spill] sm:$0xff] %v16460_v48  ;;  %v16472_v10 = vpop.permute.xlu1 %6824  ;;  %v16476_v48 = vpack.c.bf16 %v7296_v5, %v7293_v60  ;;  %v16493_v58 = vsel %vm6072_vm11, %v6059_v19, %v21287_v42  ;;  %v7347_v5 = vand.u32 4294901760, %v46_v2  ;;  %v7350_v60 = vand.u32 4294901760, %v47_v4 }
 0x757   :  { %21279 = vst [vmem:[#allocation256_spill] sm:$0xff] %v16472_v10  ;;  %5908 = vrot.lane.b32.xlu0 %v21280_v50, %s10614_s9  ;;  %21283 = vst [vmem:[#allocation258_spill] sm:$0xff] %v16480_v3  ;;  %v21289_v3 = vld [vmem:[#allocation36_spill] sm:$0xff]  ;;  %v6732_v42 = vrot.slane %v16418_v28, 2  ;;  %v7299_v16 = vand.u32 4294901760, %v30_v46  ;;  %v21295_v28 = vld [vmem:[#allocation114_spill] sm:$0xff] }
 0x758   :  { %21281 = vst [vmem:[#allocation47_spill] sm:$0xff] %v16476_v48  ;;  %21288 = vst [vmem:[#allocation32_spill] sm:$0xff] %v16493_v58  ;;  %v6874_v53 = vsel %vm6072_vm11, %v6852_v61, %v21289_v3  ;;  %5854 = vrot.lane.b32.xlu1 %v21290_v63, %s10615_s17  ;;  %10178 = vmatpush3.bf16.msra.mxu1 %v16476_v48  ;;  %v16510_v10 = vpack.c.bf16 %v7350_v60, %v7347_v5  ;;  %v48_v3 = vld [vmem:[%s19240_s3 + $0xa0] sm:$0xff]  ;;  %v49_v61 = vld [vmem:[%s19240_s3 + $0xa8] sm:$0xff] }
 0x759   :  { %v16506_v19 = vpop.permute.xlu0 %6618  ;;  %v16512_v51 = vsub.f32 %v46_v2, %v7347_v5  ;;  %v16514_v43 = vsub.f32 %v47_v4, %v7350_v60  ;;  %v6896_v48 = vsel %vm6089_vm7, %v16493_v58, %v21295_v28  ;;  %v16528_v2 = vpack.c.bf16 %v7302_v54, %v7299_v16 }
 0x75a   :  { %21291 = vst [vmem:[#allocation62_spill] sm:$0xff] %v16506_v19  ;;  %21292 = vst [vmem:[#allocation103_spill] sm:$0xff] %v16510_v10  ;;  %v16525_v19 = vpop.permute.xlu1 %6350  ;;  %v16530_v4 = vsub.f32 %v30_v46, %v7299_v16  ;;  %v16532_v5 = vsub.f32 %v31_v30, %v7302_v54  ;;  %v6897_v60 = vsel %vm6089_vm7, %v6874_v53, %v21295_v28  ;;  %10180 = vmatprep.subr.bf16.mxu1 %v16510_v10  ;;  %v33_v46 = vld [vmem:[%s19240_s3 + $0x28] sm:$0xff]  ;;  %v21300_v54 = vld [vmem:[#allocation125_spill] sm:$0xff] }
 0x75b   :  { %21293 = vst [vmem:[#allocation36_spill] sm:$0xff] %v16512_v51  ;;  %21294 = vst [vmem:[#allocation16_spill] sm:$0xff] %v16514_v43  ;;  %6776 = vrot.lane.b32.xlu0 %v6732_v42, %s10611_s23  ;;  %v6733_v43 = vsel %vm5224_vm10, %v6731_v21, %v6732_v42  ;;  %v7353_v51 = vand.u32 4294901760, %v48_v3  ;;  %v7356_v27 = vand.u32 4294901760, %v49_v61  ;;  %v6803_v16 = vrot.slane %v6801_v11, 7  ;;  %v50_v11 = vld [vmem:[%s19240_s3 + $0xb0] sm:$0xff] }
 0x75c   :  { %21296 = vst [vmem:[#allocation114_spill] sm:$0xff] %v16525_v19  ;;  %21297 = vst [vmem:[#allocation259_spill] sm:$0xff] %v16528_v2  ;;  %v32_v19 = vld [vmem:[%s19240_s3 + $0x20] sm:$0xff]  ;;  %v6929_v30 = vsel %vm6106_vm14, %v6897_v60, %v21300_v54  ;;  %6774 = vrot.lane.b32.xlu1 %v6733_v43, %s10611_s23  ;;  %10182 = vmatpush3.bf16.msra.mxu1 %v16528_v2  ;;  %v7308_v42 = vand.u32 4294901760, %v33_v46  ;;  %v6928_v28 = vsel %vm6106_vm14, %v6896_v48, %v21300_v54  ;;  %v51_v43 = vld [vmem:[%s19240_s3 + $0xb8] sm:$0xff] }
 0x75d   :  { %21298 = vst [vmem:[#allocation260_spill] sm:$0xff] %v16530_v4  ;;  %21299 = vst [vmem:[#allocation261_spill] sm:$0xff] %v16532_v5  ;;  %v16547_v53 = vpop.permute.xlu0 %6422  ;;  %v7305_v21 = vand.u32 4294901760, %v32_v19  ;;  %v16552_v10 = vpack.c.bf16 %v7356_v27, %v7353_v51  ;;  %v16554_v5 = vsub.f32 %v48_v3, %v7353_v51  ;;  %v16556_v4 = vsub.f32 %v49_v61, %v7356_v27  ;;  %v21306_v2 = vld [vmem:[#allocation64_spill] sm:$0xff]  ;;  %v21310_v3 = vld [vmem:[#allocation113_spill] sm:$0xff] }
 0x75e   :  { %21301 = vst [vmem:[#allocation125_spill] sm:$0xff] %v16547_v53  ;;  %v16564_v60 = vpop.permute.xlu1 %5566  ;;  %v16572_v51 = vsub.f32 %v33_v46, %v7308_v42  ;;  %v7359_v27 = vand.u32 4294901760, %v50_v11  ;;  %v6961_v61 = vsel %vm6123_vm12, %v6929_v30, %v21310_v3  ;;  %v7362_v53 = vand.u32 4294901760, %v51_v43  ;;  %v21312_v30 = vld [vmem:[#allocation60_spill] sm:$0xff]  ;;  %vm21386_vm10 = vmmov %vm21286_vm5 }
 0x75f   :  { %21302 = vst [vmem:[#allocation262_spill] sm:$0xff] %v16552_v10  ;;  %21303 = vst [vmem:[#allocation263_spill] sm:$0xff] %v16554_v5  ;;  %5646 = vrot.lane.b32.xlu0 %v21306_v2, %s10613_s25  ;;  %v16568_v48 = vpack.c.bf16 %v7308_v42, %v7305_v21  ;;  %v16570_v54 = vsub.f32 %v32_v19, %v7305_v21  ;;  %10184 = vmatprep.subr.bf16.mxu1 %v16552_v10  ;;  %v34_v2 = vld [vmem:[%s19240_s3 + $0x30] sm:$0xff]  ;;  %v35_v19 = vld [vmem:[%s19240_s3 + $0x38] sm:$0xff] }
 0x760   :  { %21304 = vst [vmem:[#allocation264_spill] sm:$0xff] %v16556_v4  ;;  %21305 = vst [vmem:[#allocation265_spill] sm:$0xff] %v16564_v60  ;;  %v21311_v4 = vld [vmem:[#allocation102_spill] sm:$0xff]  ;;  %5436 = vrot.lane.b32.xlu1 %v21312_v30, %s10606_s18  ;;  %v16592_v42 = vsub.f32 %v50_v11, %v7359_v27  ;;  %v7314_v3 = vand.u32 4294901760, %v35_v19  ;;  %v21315_v10 = vld [vmem:[#allocation73_spill] sm:$0xff]  ;;  %v16598_v60 = vpack.c.bf16 %v7362_v53, %v7359_v27 }
 0x761   :  { %21307 = vst [vmem:[#allocation64_spill] sm:$0xff] %v16568_v48  ;;  %21308 = vst [vmem:[#allocation266_spill] sm:$0xff] %v16570_v54  ;;  %v6960_v5 = vsel %vm6123_vm12, %v6928_v28, %v21311_v4  ;;  %v16589_v21 = vpop.permute.xlu0 %5620  ;;  %10186 = vmatpush3.bf16.msra.mxu1 %v16568_v48  ;;  %v7311_v28 = vand.u32 4294901760, %v34_v2  ;;  %v16600_v4 = vsub.f32 %v51_v43, %v7362_v53  ;;  %v53_v27 = vld [vmem:[%s19240_s3 + $0xc8] sm:$0xff] }
 0x762   :  { %21309 = vst [vmem:[#allocation267_spill] sm:$0xff] %v16572_v51  ;;  %v6992_v46 = vsel %vm6140_vm3, %v6960_v5, %v15752_v34  ;;  %21313 = vst [vmem:[#allocation113_spill] sm:$0xff] %v16589_v21  ;;  %v21316_v51 = vld [vmem:[#allocation48_spill] sm:$0xff]  ;;  %v21319_v5 = vld [vmem:[#allocation119_spill] sm:$0xff]  ;;  %v16604_v58 = vpop.permute.xlu1 %6690  ;;  %10188 = vmatprep.subr.bf16.mxu1 %v16598_v60 }
 0x763   :  { %21314 = vst [vmem:[#allocation60_spill] sm:$0xff] %v16592_v42  ;;  %v16596_v54 = vcombine.low %v21316_v51, %v21315_v10  ;;  %21317 = vst [vmem:[#allocation73_spill] sm:$0xff] %v16598_v60  ;;  %v6993_v34 = vsel %vm6140_vm3, %v6961_v61, %v21319_v5  ;;  %6834 = vrot.lane.b32.xlu0 %v6803_v16, %s10613_s25  ;;  %v16607_v11 = vpack.c.bf16 %v7314_v3, %v7311_v28  ;;  %v21325_v16 = vld [vmem:[#allocation101_spill] sm:$0xff]  ;;  %v52_v51 = vld [vmem:[%s19240_s3 + $0xc0] sm:$0xff] }
 0x764   :  { %21318 = vst [vmem:[#allocation48_spill] sm:$0xff] %v16600_v4  ;;  %21320 = vst [vmem:[#allocation119_spill] sm:$0xff] %v16604_v58  ;;  %v16609_v48 = vsub.f32 %v34_v2, %v7311_v28  ;;  %v16611_v42 = vsub.f32 %v35_v19, %v7314_v3  ;;  %v7024_v10 = vsel %vm6157_vm2, %v6992_v46, %v15729_v44  ;;  %v36_v61 = vld [vmem:[%s19240_s3 + $0x40] sm:$0xff]  ;;  %v21326_v2 = vld [vmem:[#allocation152_spill] sm:$0xff]  ;;  %v7368_v28 = vand.u32 4294901760, %v53_v27 }
 0x765   :  { %21321 = vst [vmem:[#allocation268_spill] sm:$0xff] %v16607_v11  ;;  %5958 = vrot.lane.b32.xlu1 %v16596_v54, %s10616_s13  ;;  %v16618_v53 = vpop.permute.xlu0 %6762  ;;  %10190 = vmatpush3.bf16.msra.mxu1 %v16607_v11  ;;  %v7025_v43 = vsel %vm6157_vm2, %v6993_v34, %v21325_v16  ;;  %v7056_v19 = vsel %vm6174_vm0, %v7024_v10, %v21326_v2  ;;  %v7365_v34 = vand.u32 4294901760, %v52_v51  ;;  %v37_v3 = vld [vmem:[%s19240_s3 + $0x48] sm:$0xff]  ;;  %v7317_v5 = vand.u32 4294901760, %v36_v61 }
 0x766   :  { %21322 = vst [vmem:[#allocation269_spill] sm:$0xff] %v16609_v48  ;;  %21323 = vst [vmem:[#allocation270_spill] sm:$0xff] %v16611_v42  ;;  %v16634_v46 = vpop.permute.xlu1 %6500  ;;  %v7057_v16 = vsel %vm6174_vm0, %v7025_v43, %v21326_v2  ;;  %v7320_v11 = vand.u32 4294901760, %v37_v3  ;;  %v21328_v60 = vld [vmem:[#allocation19_spill] sm:$0xff]  ;;  %v54_v43 = vld [vmem:[%s19240_s3 + $0xd0] sm:$0xff] }
 0x767   :  { %21324 = vst [vmem:[#allocation271_spill] sm:$0xff] %v16618_v53  ;;  %21327 = vst [vmem:[#allocation101_spill] sm:$0xff] %v16634_v46  ;;  %5696 = vrot.lane.b32.xlu0 %v21312_v30, %s10617_s21  ;;  %v16647_v42 = vpack.c.bf16 %v7368_v28, %v7365_v34  ;;  %v16649_v48 = vsub.f32 %v52_v51, %v7365_v34  ;;  %v16651_v30 = vsub.f32 %v53_v27, %v7368_v28  ;;  %v55_v2 = vld [vmem:[%s19240_s3 + $0xd8] sm:$0xff]  ;;  %v38_v51 = vld [vmem:[%s19240_s3 + $0x50] sm:$0xff] }
 0x768   :  { %v16653_v4 = vsub.f32 %v36_v61, %v7317_v5  ;;  %v7120_v46 = vrot.slane %v7056_v19, 1  ;;  %v16655_v53 = vpack.c.bf16 %v7320_v11, %v7317_v5  ;;  %v16657_v21 = vsub.f32 %v37_v3, %v7320_v11  ;;  %v21337_v19 = vld [vmem:[#allocation93_spill] sm:$0xff]  ;;  %v56_v3 = vld [vmem:[%s19240_s3 + $0xe0] sm:$0xff] }
 0x769   :  { %5486 = vrot.lane.b32.xlu1 %v21328_v60, %s10610_s22  ;;  %v16645_v10 = vpop.permute.xlu0 %6826  ;;  %21330 = vst [vmem:[#allocation19_spill] sm:$0xff] %v16647_v42  ;;  %21331 = vst [vmem:[#allocation272_spill] sm:$0xff] %v16649_v48  ;;  %v7121_v27 = vrot.slane %v7057_v16, 1  ;;  %10192 = vmatprep.subr.bf16.mxu1 %v16647_v42  ;;  %v7371_v11 = vand.u32 4294901760, %v54_v43  ;;  %v7374_v34 = vand.u32 4294901760, %v55_v2  ;;  %v39_v28 = vld [vmem:[%s19240_s3 + $0x58] sm:$0xff] }
 0x76a   :  { %21329 = vst [vmem:[#allocation152_spill] sm:$0xff] %v16645_v10  ;;  %21332 = vst [vmem:[#allocation273_spill] sm:$0xff] %v16651_v30  ;;  %v16668_v61 = vpop.permute.xlu1 %6566  ;;  %10194 = vmatpush3.bf16.msra.mxu1 %v16655_v53  ;;  %v7323_v5 = vand.u32 4294901760, %v38_v51  ;;  %v7326_v16 = vand.u32 4294901760, %v39_v28  ;;  %v40_v42 = vld [vmem:[%s19240_s3 + $0x60] sm:$0xff]  ;;  %v7377_v10 = vand.u32 4294901760, %v56_v3 }
 0x76b   :  { %21333 = vst [vmem:[#allocation274_spill] sm:$0xff] %v16653_v4  ;;  %21334 = vst [vmem:[#allocation275_spill] sm:$0xff] %v16655_v53  ;;  %5540 = vrot.lane.b32.xlu0 %v21337_v19, %s10612_s24  ;;  %v41_v4 = vld [vmem:[%s19240_s3 + $0x68] sm:$0xff]  ;;  %v16693_v53 = vpack.c.bf16 %v7374_v34, %v7371_v11  ;;  %v16695_v48 = vsub.f32 %v54_v43, %v7371_v11  ;;  %v7122_v58 = vsel %vm19957_vm15, %v7120_v46, %v7121_v27 }
 0x76c   :  { %21335 = vst [vmem:[#allocation276_spill] sm:$0xff] %v16657_v21  ;;  %21336 = vst [vmem:[#allocation277_spill] sm:$0xff] %v16668_v61  ;;  %v57_v21 = vld [vmem:[%s19240_s3 + $0xe8] sm:$0xff]  ;;  %v16697_v61 = vsub.f32 %v55_v2, %v7374_v34  ;;  %v16700_v44 = vpack.c.bf16 %v7326_v16, %v7323_v5  ;;  %v16702_v1 = vsub.f32 %v38_v51, %v7323_v5  ;;  %v7329_v46 = vand.u32 4294901760, %v40_v42  ;;  %v59_v51 = vld [vmem:[%s19240_s3 + $0xf8] sm:$0x3] }
 0x76d   :  { %6008 = vrot.lane.b32.xlu1 %v15149_v49, %s10618_s20  ;;  %v16691_v30 = vpop.permute.xlu0 %6352  ;;  %21339 = vst [vmem:[#allocation278_spill] sm:$0xff] %v16693_v53  ;;  %21340 = vst [vmem:[#allocation279_spill] sm:$0xff] %v16695_v48  ;;  %v16704_v17 = vsub.f32 %v39_v28, %v7326_v16  ;;  %10196 = vmatprep.subr.bf16.mxu1 %v16693_v53  ;;  %v7380_v43 = vand.u32 4294901760, %v57_v21  ;;  %v16713_v2 = vsub.f32 %v56_v3, %v7377_v10  ;;  %v42_v34 = vld [vmem:[%s19240_s3 + $0x70] sm:$0xff] }
 0x76e   :  { %21338 = vst [vmem:[#allocation93_spill] sm:$0xff] %v16691_v30  ;;  %21341 = vst [vmem:[#allocation280_spill] sm:$0xff] %v16697_v61  ;;  %v16709_v30 = vpop.permute.xlu1 %5514  ;;  %v7332_v27 = vand.u32 4294901760, %v41_v4  ;;  %10198 = vmatpush3.bf16.msra.mxu1 %v16700_v44  ;;  %v7383_v11 = vand.u32 4294901760, %v58_v9 }
 0x76f   :  { %21342 = vst [vmem:[#allocation281_spill] sm:$0xff] %v16700_v44  ;;  %21343 = vst [vmem:[#allocation282_spill] sm:$0xff] %v16702_v1  ;;  %7168 = vrot.lane.b32.xlu0 %v7122_v58, %s10619_s2  ;;  %v43_v58 = vld [vmem:[%s19240_s3 + $0x78] sm:$0xff]  ;;  %v16729_v3 = vpack.c.bf16 %v7380_v43, %v7377_v10  ;;  %v16731_v5 = vsub.f32 %v57_v21, %v7380_v43  ;;  %v16735_v44 = vsub.f32 %v40_v42, %v7329_v46  ;;  %s10621_s3 = smov 110  }
 0x770   :  { %21344 = vst [vmem:[#allocation283_spill] sm:$0xff] %v16704_v17  ;;  %21345 = vst [vmem:[#allocation284_spill] sm:$0xff] %v16709_v30  ;;  %v16733_v16 = vpack.c.bf16 %v7332_v27, %v7329_v46  ;;  %v16737_v53 = vsub.f32 %v41_v4, %v7332_v27  ;;  %v16739_v17 = vsub.f32 %v58_v9, %v7383_v11  ;;  %v7335_v21 = vand.u32 4294901760, %v42_v34 }
 0x771   :  { %21346 = vst [vmem:[#allocation285_spill] sm:$0xff] %v16713_v2  ;;  %5746 = vrot.lane.b32.xlu1 %v21328_v60, %s10620_s8  ;;  %v16727_v28 = vpop.permute.xlu0 %6620  ;;  %21347 = vst [vmem:[#allocation286_spill] sm:$0xff] %v16729_v3  ;;  %v7290_v2 = vsel %vm7288_vm13, %v59_v51, 0  ;;  %10200 = vmatprep.subr.bf16.mxu1 %v16729_v3  ;;  %v7338_v43 = vand.u32 4294901760, %v43_v58 }
 0x772   :  { %21348 = vst [vmem:[#allocation287_spill] sm:$0xff] %v16731_v5  ;;  %21349 = vst [vmem:[#allocation288_spill] sm:$0xff] %v16733_v16  ;;  %v16741_v1 = vpop.permute.xlu1 %6354  ;;  %v7386_v10 = vand.u32 4294901760, %v7290_v2  ;;  %10202 = vmatpush3.bf16.msra.mxu1 %v16733_v16  ;;  %v16757_v27 = vsub.f32 %v42_v34, %v7335_v21 }
 0x773   :  { %21350 = vst [vmem:[#allocation289_spill] sm:$0xff] %v16735_v44  ;;  %21351 = vst [vmem:[#allocation290_spill] sm:$0xff] %v16737_v53  ;;  %5800 = vrot.lane.b32.xlu0 %v21337_v19, %s10621_s3  ;;  %v16755_v46 = vpack.c.bf16 %v7338_v43, %v7335_v21  ;;  %v21358_v19 = vld [vmem:[#allocation67_spill] sm:$0xff]  ;;  %v16762_v3 = vsub.f32 %v43_v58, %v7338_v43  ;;  %v21379_v44 = vld [vmem:[#allocation9_spill] sm:$0xff] }
 0x774   :  { %21352 = vst [vmem:[#allocation291_spill] sm:$0xff] %v16739_v17  ;;  %v16751_v9 = vpack.c.bf16 %v7386_v10, %v7383_v11  ;;  %v16753_v42 = vsub.f32 %v7290_v2, %v7386_v10  ;;  %21357 = vst [vmem:[#allocation296_spill] sm:$0xff] %v16757_v27  ;;  %v6060_v51 = vsel %vm21359_vm6, %v21358_v19, %v15727_v55  ;;  %v21362_v11 = vld [vmem:[#allocation127_spill] sm:$0xff]  ;;  %v21363_v2 = vld [vmem:[#allocation18_spill] sm:$0xff] }
 0x775   :  { %5594 = vrot.lane.b32.xlu1 %v21290_v63, %s10611_s23  ;;  %v16749_v4 = vpop.permute.xlu0 %6424  ;;  %21356 = vst [vmem:[#allocation295_spill] sm:$0xff] %v16755_v46  ;;  %21360 = vst [vmem:[#allocation67_spill] sm:$0xff] %v16762_v3  ;;  %v16766_v16 = vsel %vm6072_vm11, %v6060_v51, %v15734_v45  ;;  %v21364_v55 = vld [vmem:[#allocation131_spill] sm:$0xff]  ;;  %v21367_v45 = vld [vmem:[#allocation140_spill] sm:$0xff] }
 0x776   :  { %21353 = vst [vmem:[#allocation292_spill] sm:$0xff] %v16749_v4  ;;  %21354 = vst [vmem:[#allocation293_spill] sm:$0xff] %v16751_v9  ;;  %v16768_v63 = vpop.permute.xlu1 %5568  ;;  %10204 = vmatprep.subr.bf16.mxu1 %v16751_v9  ;;  %v21365_v58 = vld [vmem:[#allocation99_spill] sm:$0xff]  ;;  %v6898_v21 = vsel %vm6089_vm7, %v16766_v16, %v21367_v45 }
 0x777   :  { %21355 = vst [vmem:[#allocation294_spill] sm:$0xff] %v16753_v42  ;;  %21361 = vst [vmem:[#allocation297_spill] sm:$0xff] %v16768_v63  ;;  %5910 = vrot.lane.b32.xlu0 %v21362_v11, %s10614_s9  ;;  %10206 = vmatpush3.bf16.msra.mxu1 %v16755_v46  ;;  %v6853_v10 = vsel %vm21366_vm9, %v21365_v58, %v21364_v55  ;;  %v6930_v43 = vsel %vm6106_vm14, %v6898_v21, %v15766_v39  ;;  %v21369_v46 = vld [vmem:[#allocation128_spill] sm:$0xff]  ;;  %v21371_v58 = vld [vmem:[#allocation151_spill] sm:$0xff] }
 0x778   :  { %v6875_v9 = vsel %vm6072_vm11, %v6853_v10, %v21369_v46  ;;  %v6962_v27 = vsel %vm6123_vm12, %v6930_v43, %v21371_v58  ;;  %v21372_v42 = vld [vmem:[#allocation21_spill] sm:$0xff]  ;;  %v21374_v46 = vld [vmem:[#allocation92_spill] sm:$0xff]  ;;  %vm21416_vm13 = vmmov %vm21286_vm5 }
 0x779   :  { %5856 = vrot.lane.b32.xlu1 %v21363_v2, %s10615_s17  ;;  %v16776_v34 = vpop.permute.xlu0 %6692  ;;  %v6899_v55 = vsel %vm6089_vm7, %v6875_v9, %v21367_v45  ;;  %v21376_v9 = vld [vmem:[#allocation150_spill] sm:$0xff]  ;;  %v21377_v43 = vld [vmem:[#allocation132_spill] sm:$0xff]  ;;  %vm21432_vm6 = vmmov %vm21286_vm5 }
 0x77a   :  { %v16786_v51 = vpop.permute.xlu1 %6426  ;;  %v6931_v21 = vsel %vm6106_vm14, %v6899_v55, %v15766_v39  ;;  %vm21434_vm9 = vmmov %vm21286_vm5 }
 0x77b   :  { %21368 = vst [vmem:[#allocation127_spill] sm:$0xff] %v16786_v51  ;;  %5648 = vrot.lane.b32.xlu0 %v21280_v50, %s10613_s25  ;;  %v6994_v50 = vsel %vm6140_vm3, %v6962_v27, %v21372_v42  ;;  %v6963_v45 = vsel %vm6123_vm12, %v6931_v21, %v21376_v9  ;;  %v21378_v27 = vld [vmem:[#allocation126_spill] sm:$0xff]  ;;  %v21381_v21 = vld [vmem:[#allocation144_spill] sm:$0xff] }
 0x77c   :  { %v7026_v53 = vsel %vm6157_vm2, %v6994_v50, %v21377_v43  ;;  %v6995_v55 = vsel %vm6140_vm3, %v6963_v45, %v21378_v27  ;;  %v21382_v27 = vld [vmem:[#allocation83_spill] sm:$0xff]  ;;  %v21391_v51 = vld [vmem:[#allocation136_spill] sm:$0xff] }
 0x77d   :  { %5438 = vrot.lane.b32.xlu1 %v16596_v54, %s10606_s18  ;;  %v16794_v3 = vpop.permute.xlu0 %6502  ;;  %v7058_v5 = vsel %vm6174_vm0, %v7026_v53, %v21379_v44  ;;  %v7027_v9 = vsel %vm6157_vm2, %v6995_v55, %v21381_v21  ;;  %v21388_v55 = vld [vmem:[#allocation133_spill] sm:$0xff] }
 0x77e   :  { %21370 = vst [vmem:[#allocation18_spill] sm:$0xff] %v16794_v3  ;;  %v16804_v17 = vpop.permute.xlu1 %5622  ;;  %v7059_v50 = vsel %vm6174_vm0, %v7027_v9, %v21379_v44  ;;  %v7123_v45 = vrot.slane %v7058_v5, 1  ;;  %v21387_v3 = vld [vmem:[#allocation149_spill] sm:$0xff]  ;;  %v21390_v9 = vld [vmem:[#allocation118_spill] sm:$0xff] }
 0x77f   :  { %21373 = vst [vmem:[#allocation131_spill] sm:$0xff] %v16804_v17  ;;  %5488 = vrot.lane.b32.xlu0 %v15149_v49, %s10610_s22  ;;  %v6061_v21 = vsel %vm21389_vm8, %v21388_v55, %v21387_v3  ;;  %v7124_v44 = vrot.slane %v7059_v50, 1  ;;  %vm21448_vm8 = vmmov %vm21286_vm5 }
 0x781   :  { %5960 = vrot.lane.b32.xlu1 %v21374_v46, %s10616_s13  ;;  %v16810_v10 = vpop.permute.xlu0 %6568  ;;  %v7125_v50 = vsel %vm19957_vm15, %v7123_v45, %v7124_v44  ;;  %v21397_v45 = vld [vmem:[#allocation156_spill] sm:$0xff]  ;;  %v21398_v44 = vld [vmem:[#allocation123_spill] sm:$0xff] }
 0x782   :  { %21375 = vst [vmem:[#allocation99_spill] sm:$0xff] %v16810_v10  ;;  %v16816_v39 = vpop.permute.xlu1 %6764  ;;  %v21385_v10 = vld [vmem:[#allocation172_spill] sm:$0xff] }
 0x783   :  { %6010 = vrot.lane.b32.xlu0 %v21358_v19, %s10618_s20 }
 0x785   :  { %5698 = vrot.lane.b32.xlu1 %v16596_v54, %s10617_s21  ;;  %v16826_v61 = vpop.permute.xlu0 %6356  ;;  %v21384_v54 = vld [vmem:[#allocation112_spill] sm:$0xff] }
 0x786   :  { %21380 = vst [vmem:[#allocation140_spill] sm:$0xff] %v16826_v61  ;;  %v16832_v48 = vpop.permute.xlu1 %6828  ;;  %v6854_v61 = vsel %vm21386_vm10, %v21385_v10, %v21384_v54  ;;  %vm21446_vm10 = vmmov %vm21286_vm5 }
 0x787   :  { %5748 = vrot.lane.b32.xlu0 %v15149_v49, %s10620_s8  ;;  %v6876_v4 = vsel %vm6072_vm11, %v6854_v61, %v21390_v9  ;;  %v16850_v49 = vsel %vm6072_vm11, %v6061_v21, %v21391_v51  ;;  %v21395_v51 = vld [vmem:[#allocation7_spill] sm:$0xff]  ;;  %v21396_v9 = vld [vmem:[#allocation70_spill] sm:$0xff] }
 0x789   :  { %5542 = vrot.lane.b32.xlu1 %v21382_v27, %s10612_s24  ;;  %v16838_v53 = vpop.permute.xlu0 %6622 }
 0x78a   :  { %21383 = vst [vmem:[#allocation128_spill] sm:$0xff] %v16838_v53  ;;  %v16852_v5 = vpop.permute.xlu1 %6358  ;;  %v21393_v53 = vld [vmem:[#allocation148_spill] sm:$0xff] }
 0x78b   :  { %21392 = vst [vmem:[#allocation151_spill] sm:$0xff] %v16852_v5  ;;  %5596 = vrot.lane.b32.xlu0 %v21363_v2, %s10611_s23  ;;  %v6900_v10 = vsel %vm6089_vm7, %v16850_v49, %v21393_v53  ;;  %v6901_v3 = vsel %vm6089_vm7, %v6876_v4, %v21393_v53 }
 0x78c   :  { %v6932_v54 = vsel %vm6106_vm14, %v6900_v10, %v21395_v51  ;;  %v6933_v21 = vsel %vm6106_vm14, %v6901_v3, %v21395_v51  ;;  %v21400_v51 = vld [vmem:[#allocation167_spill] sm:$0xff] }
 0x78d   :  { %7170 = vrot.lane.b32.xlu1 %v7125_v50, %s10619_s2  ;;  %v16863_v61 = vpop.permute.xlu0 %6428  ;;  %v6964_v53 = vsel %vm6123_vm12, %v6932_v54, %v21397_v45  ;;  %v6965_v50 = vsel %vm6123_vm12, %v6933_v21, %v21398_v44  ;;  %v21403_v21 = vld [vmem:[#allocation157_spill] sm:$0xff] }
 0x78e   :  { %21394 = vst [vmem:[#allocation21_spill] sm:$0xff] %v16863_v61  ;;  %v16869_v2 = vpop.permute.xlu1 %6624  ;;  %v6996_v10 = vsel %vm6140_vm3, %v6964_v53, %v15871_v36 }
 0x78f   :  { %5858 = vrot.lane.b32.xlu0 %v21396_v9, %s10615_s17  ;;  %v6997_v9 = vsel %vm6140_vm3, %v6965_v50, %v21400_v51  ;;  %v7028_v44 = vsel %vm6157_vm2, %v6996_v10, %v21403_v21  ;;  %v21404_v50 = vld [vmem:[#allocation68_spill] sm:$0xff] }
 0x790   :  { %v7029_v54 = vsel %vm6157_vm2, %v6997_v9, %v15977_v59  ;;  %v7060_v53 = vsel %vm6174_vm0, %v7028_v44, %v16011_v13  ;;  %v21411_v44 = vld [vmem:[#allocation45_spill] sm:$0xff] }
 0x791   :  { %5802 = vrot.lane.b32.xlu1 %v21382_v27, %s10621_s3  ;;  %v16875_v4 = vpop.permute.xlu0 %6694  ;;  %v21401_v27 = vld [vmem:[#allocation24_spill] sm:$0xff]  ;;  %v7126_v59 = vrot.slane %v7060_v53, 1  ;;  %v21412_v53 = vld [vmem:[#allocation166_spill] sm:$0xff] }
 0x792   :  { %v16883_v3 = vpop.permute.xlu1 %6430 }
 0x793   :  { %21399 = vst [vmem:[#allocation92_spill] sm:$0xff] %v16883_v3  ;;  %5440 = vrot.lane.b32.xlu0 %v21374_v46, %s10606_s18  ;;  %v7061_v3 = vsel %vm6174_vm0, %v7029_v54, %v16011_v13 }
 0x794   :  { %v7127_v9 = vrot.slane %v7061_v3, 1 }
 0x795   :  { %5912 = vrot.lane.b32.xlu1 %v21401_v27, %s10614_s9  ;;  %v16891_v61 = vpop.permute.xlu0 %6504 }
 0x796   :  { %21402 = vst [vmem:[#allocation150_spill] sm:$0xff] %v16891_v61  ;;  %v16901_v5 = vpop.permute.xlu1 %6696  ;;  %v7128_v10 = vsel %vm19957_vm15, %v7126_v59, %v7127_v9  ;;  %v21415_v59 = vld [vmem:[#allocation76_spill] sm:$0xff] }
 0x797   :  { %5962 = vrot.lane.b32.xlu0 %v21404_v50, %s10616_s13 }
 0x799   :  { %5650 = vrot.lane.b32.xlu1 %v21362_v11, %s10613_s25  ;;  %v16907_v51 = vpop.permute.xlu0 %6768 }
 0x79a   :  { %21405 = vst [vmem:[#allocation132_spill] sm:$0xff] %v16907_v51  ;;  %v16909_v61 = vpop.permute.xlu1 %6766  ;;  %v21418_v51 = vld [vmem:[#allocation138_spill] sm:$0xff] }
 0x79b   :  { %21406 = vst [vmem:[#allocation126_spill] sm:$0xff] %v16909_v61  ;;  %6012 = vrot.lane.b32.xlu0 %v21388_v55, %s10618_s20  ;;  %v21414_v61 = vld [vmem:[#allocation42_spill] sm:$0xff] }
 0x79c   :  { %v6062_v9 = vsel %vm21416_vm13, %v21415_v59, %v21414_v61  ;;  %vm21466_vm13 = vmmov %vm21286_vm5 }
 0x79d   :  { %5700 = vrot.lane.b32.xlu1 %v21374_v46, %s10617_s21  ;;  %v16915_v13 = vpop.permute.xlu0 %6830  ;;  %v21413_v46 = vld [vmem:[#allocation75_spill] sm:$0xff] }
 0x79e   :  { %21407 = vst [vmem:[#allocation9_spill] sm:$0xff] %v16915_v13  ;;  %v16918_v54 = vpop.permute.xlu1 %6570  ;;  %v6855_v13 = vsel %vm21286_vm5, %v21413_v46, %v21412_v53 }
 0x79f   :  { %21408 = vst [vmem:[#allocation144_spill] sm:$0xff] %v16918_v54  ;;  %7172 = vrot.lane.b32.xlu0 %v7128_v10, %s10619_s2  ;;  %v21417_v54 = vld [vmem:[#allocation85_spill] sm:$0xff] }
 0x7a0   :  { %v6877_v10 = vsel %vm6072_vm11, %v6855_v13, %v21417_v54 }
 0x7a1   :  { %5750 = vrot.lane.b32.xlu1 %v21358_v19, %s10620_s8  ;;  %v16923_v11 = vpop.permute.xlu0 %6362  ;;  %v16939_v19 = vsel %vm6072_vm11, %v6062_v9, %v21418_v51  ;;  %v6903_v53 = vsel %vm6089_vm7, %v6877_v10, %v15993_v26  ;;  %v21420_v9 = vld [vmem:[#allocation72_spill] sm:$0xff] }
 0x7a2   :  { %21409 = vst [vmem:[#allocation83_spill] sm:$0xff] %v16923_v11  ;;  %v16925_v3 = vpop.permute.xlu1 %6360  ;;  %v21419_v11 = vld [vmem:[#allocation74_spill] sm:$0xff]  ;;  %v6935_v13 = vsel %vm6106_vm14, %v6903_v53, %v16002_v40 }
 0x7a3   :  { %21410 = vst [vmem:[#allocation112_spill] sm:$0xff] %v16925_v3  ;;  %5860 = vrot.lane.b32.xlu0 %v21411_v44, %s10615_s17  ;;  %v6902_v44 = vsel %vm6089_vm7, %v16939_v19, %v15993_v26 }
 0x7a4   :  { %v6934_v61 = vsel %vm6106_vm14, %v6902_v44, %v16002_v40 }
 0x7a5   :  { %5804 = vrot.lane.b32.xlu1 %v21419_v11, %s10621_s3  ;;  %v16943_v3 = vpop.permute.xlu0 %6628  ;;  %v6966_v54 = vsel %vm6123_vm12, %v6934_v61, %v16009_v18  ;;  %v6967_v11 = vsel %vm6123_vm12, %v6935_v13, %v16016_v24 }
 0x7a6   :  { %v16954_v51 = vpop.permute.xlu1 %6626  ;;  %v6998_v26 = vsel %vm6140_vm3, %v6966_v54, %v16025_v15  ;;  %v6999_v46 = vsel %vm6140_vm3, %v6967_v11, %v16033_v38  ;;  %v21423_v38 = vld [vmem:[#allocation154_spill] sm:$0xff] }
 0x7a7   :  { %5442 = vrot.lane.b32.xlu0 %v21404_v50, %s10606_s18  ;;  %v7030_v10 = vsel %vm6157_vm2, %v6998_v26, %v16031_v32  ;;  %v7031_v44 = vsel %vm6157_vm2, %v6999_v46, %v16043_v22 }
 0x7a8   :  { %v7062_v24 = vsel %vm6174_vm0, %v7030_v10, %v16051_v62  ;;  %v7063_v53 = vsel %vm6174_vm0, %v7031_v44, %v16051_v62  ;;  %v21429_v44 = vld [vmem:[#allocation71_spill] sm:$0xff] }
 0x7a9   :  { %5914 = vrot.lane.b32.xlu1 %v21420_v9, %s10614_s9  ;;  %v16968_v40 = vpop.permute.xlu0 %6434  ;;  %v7129_v54 = vrot.slane %v7062_v24, 1  ;;  %v7130_v11 = vrot.slane %v7063_v53, 1  ;;  %v21430_v24 = vld [vmem:[#allocation8_spill] sm:$0xff] }
 0x7aa   :  { %21421 = vst [vmem:[#allocation172_spill] sm:$0xff] %v16968_v40  ;;  %v16978_v61 = vpop.permute.xlu1 %6432 }
 0x7ab   :  { %21422 = vst [vmem:[#allocation149_spill] sm:$0xff] %v16978_v61  ;;  %5964 = vrot.lane.b32.xlu0 %v21423_v38, %s10616_s13  ;;  %v7131_v62 = vsel %vm19957_vm15, %v7129_v54, %v7130_v11  ;;  %v21433_v54 = vld [vmem:[#allocation26_spill] sm:$0xff] }
 0x7ac   :  { %v6856_v11 = vsel %vm21434_vm9, %v21433_v54, %v16018_v29  ;;  %vm6291_vm9 = vcmask 179200  }
 0x7ad   :  { %5652 = vrot.lane.b32.xlu1 %v21401_v27, %s10613_s25  ;;  %v16984_v13 = vpop.permute.xlu0 %6700 }
 0x7ae   :  { %v16986_v26 = vpop.permute.xlu1 %6698 }
 0x7af   :  { %21424 = vst [vmem:[#allocation133_spill] sm:$0xff] %v16986_v26  ;;  %6014 = vrot.lane.b32.xlu0 %v21415_v59, %s10618_s20  ;;  %v21514_v26 = vld [vmem:[#allocation210_spill] sm:$0xff] }
 0x7b1   :  { %5702 = vrot.lane.b32.xlu1 %v21404_v50, %s10617_s21  ;;  %v16992_v22 = vpop.permute.xlu0 %6770  ;;  %v21431_v50 = vld [vmem:[#allocation23_spill] sm:$0xff] }
 0x7b2   :  { %21425 = vst [vmem:[#allocation118_spill] sm:$0xff] %v16992_v22  ;;  %v16995_v46 = vpop.permute.xlu1 %6506  ;;  %v6063_v53 = vsel %vm21432_vm6, %v21431_v50, %v21430_v24  ;;  %vm21469_vm6 = vmmov %vm21286_vm5  ;;  %v21474_v22 = vld [vmem:[#allocation159_spill] sm:$0xff] }
 0x7b3   :  { %21426 = vst [vmem:[#allocation136_spill] sm:$0xff] %v16995_v46  ;;  %7174 = vrot.lane.b32.xlu0 %v7131_v62, %s10619_s2  ;;  %v21435_v46 = vld [vmem:[#allocation164_spill] sm:$0xff] }
 0x7b4   :  { %v17014_v62 = vsel %vm6072_vm11, %v6063_v53, %v21435_v46 }
 0x7b5   :  { %5752 = vrot.lane.b32.xlu1 %v21388_v55, %s10620_s8  ;;  %v17000_v27 = vpop.permute.xlu0 %6572  ;;  %v6878_v55 = vsel %vm6072_vm11, %v6856_v11, %v16023_v12  ;;  %v21438_v11 = vld [vmem:[#allocation153_spill] sm:$0xff] }
 0x7b6   :  { %21427 = vst [vmem:[#allocation148_spill] sm:$0xff] %v17000_v27  ;;  %v17002_v10 = vpop.permute.xlu1 %6772  ;;  %v21436_v27 = vld [vmem:[#allocation81_spill] sm:$0xff]  ;;  %v6905_v24 = vsel %vm6089_vm7, %v6878_v55, %v16045_v20 }
 0x7b7   :  { %21428 = vst [vmem:[#allocation7_spill] sm:$0xff] %v17002_v10  ;;  %5862 = vrot.lane.b32.xlu0 %v21429_v44, %s10615_s17  ;;  %v6904_v44 = vsel %vm6089_vm7, %v17014_v62, %v16045_v20  ;;  %v6937_v46 = vsel %vm6106_vm14, %v6905_v24, %v16054_v52 }
 0x7b8   :  { %v6936_v29 = vsel %vm6106_vm14, %v6904_v44, %v16054_v52 }
 0x7b9   :  { %5806 = vrot.lane.b32.xlu1 %v21436_v27, %s10621_s3  ;;  %v17020_v40 = vpop.permute.xlu0 %5484  ;;  %v6968_v12 = vsel %vm6123_vm12, %v6936_v29, %v16062_v56  ;;  %v6969_v27 = vsel %vm6123_vm12, %v6937_v46, %v16067_v23 }
 0x7ba   :  { %v17031_v53 = vpop.permute.xlu1 %6832  ;;  %v7000_v20 = vsel %vm6140_vm3, %v6968_v12, %v16076_v35  ;;  %v7001_v54 = vsel %vm6140_vm3, %v6969_v27, %v16082_v7  ;;  %v21441_v7 = vld [vmem:[#allocation145_spill] sm:$0xff] }
 0x7bb   :  { %21437 = vst [vmem:[#allocation70_spill] sm:$0xff] %v17031_v53  ;;  %5444 = vrot.lane.b32.xlu0 %v21423_v38, %s10606_s18  ;;  %v7032_v55 = vsel %vm6157_vm2, %v7000_v20, %v16096_v57  ;;  %v7033_v44 = vsel %vm6157_vm2, %v7001_v54, %v16104_v37 }
 0x7bc   :  { %v7064_v23 = vsel %vm6174_vm0, %v7032_v55, %v16112_v0  ;;  %v7065_v24 = vsel %vm6174_vm0, %v7033_v44, %v16112_v0  ;;  %v21444_v44 = vld [vmem:[#allocation28_spill] sm:$0xff] }
 0x7bd   :  { %5916 = vrot.lane.b32.xlu1 %v21438_v11, %s10614_s9  ;;  %v17045_v52 = vpop.permute.xlu0 %6632  ;;  %v7132_v12 = vrot.slane %v7064_v23, 1  ;;  %v7133_v27 = vrot.slane %v7065_v24, 1  ;;  %v21445_v23 = vld [vmem:[#allocation39_spill] sm:$0xff]  ;;  %v21447_v24 = vld [vmem:[#allocation121_spill] sm:$0xff] }
 0x7be   :  { %21439 = vst [vmem:[#allocation156_spill] sm:$0xff] %v17045_v52  ;;  %v17055_v29 = vpop.permute.xlu1 %6630  ;;  %v21453_v52 = vld [vmem:[#allocation58_spill] sm:$0xff] }
 0x7bf   :  { %21440 = vst [vmem:[#allocation123_spill] sm:$0xff] %v17055_v29  ;;  %5966 = vrot.lane.b32.xlu0 %v21441_v7, %s10616_s13  ;;  %v7134_v37 = vsel %vm19957_vm15, %v7132_v12, %v7133_v27  ;;  %v6858_v12 = vsel %vm21448_vm8, %v21447_v24, %v16069_v14  ;;  %v21449_v27 = vld [vmem:[#allocation2_spill] sm:$0xff]  ;;  %vm21475_vm8 = vcmask 97280  }
 0x7c1   :  { %5654 = vrot.lane.b32.xlu1 %v21420_v9, %s10613_s25  ;;  %v17061_v46 = vpop.permute.xlu0 %6702 }
 0x7c2   :  { %21442 = vst [vmem:[#allocation167_spill] sm:$0xff] %v17061_v46  ;;  %v17063_v20 = vpop.permute.xlu1 %5538  ;;  %v21451_v46 = vld [vmem:[#allocation5_spill] sm:$0xff] }
 0x7c3   :  { %6016 = vrot.lane.b32.xlu0 %v21431_v50, %s10618_s20 }
 0x7c5   :  { %5704 = vrot.lane.b32.xlu1 %v21423_v38, %s10617_s21  ;;  %v17069_v0 = vpop.permute.xlu0 %5592  ;;  %v6857_v38 = vsel %vm21446_vm10, %v21445_v23, %v16059_v33  ;;  %vm19956_vm10 = vcmask 261120  }
 0x7c6   :  { %v17072_v54 = vpop.permute.xlu1 %6704 }
 0x7c7   :  { %21443 = vst [vmem:[#allocation24_spill] sm:$0xff] %v17072_v54  ;;  %7176 = vrot.lane.b32.xlu0 %v7134_v37, %s10619_s2  ;;  %v6879_v37 = vsel %vm6072_vm11, %v6857_v38, %v21449_v27  ;;  %v21450_v54 = vld [vmem:[#allocation61_spill] sm:$0xff] }
 0x7c9   :  { %5754 = vrot.lane.b32.xlu1 %v21415_v59, %s10620_s8  ;;  %v5909_v9 = vpop.permute.xlu0 %5908  ;;  %v6880_v59 = vsel %vm6072_vm11, %v6858_v12, %v21450_v54 }
 0x7ca   :  { %v17077_v55 = vpop.permute.xlu1 %5854  ;;  %v6907_v33 = vsel %vm6089_vm7, %v6880_v59, %v16090_v8 }
 0x7cb   :  { %5864 = vrot.lane.b32.xlu0 %v21444_v44, %s10615_s17  ;;  %v6906_v44 = vsel %vm6089_vm7, %v6879_v37, %v16090_v8  ;;  %v6939_v38 = vsel %vm6106_vm14, %v6907_v33, %v21453_v52  ;;  %v21455_v37 = vld [vmem:[#allocation84_spill] sm:$0xff] }
 0x7cc   :  { %v6938_v14 = vsel %vm6106_vm14, %v6906_v44, %v21453_v52  ;;  %v6971_v54 = vsel %vm6123_vm12, %v6939_v38, %v16127_v41  ;;  %v21456_v44 = vld [vmem:[#allocation180_spill] sm:$0xff] }
 0x7cd   :  { %5808 = vrot.lane.b32.xlu1 %v21451_v46, %s10621_s3  ;;  %v17093_v29 = vpop.permute.xlu0 %6776  ;;  %v6970_v46 = vsel %vm6123_vm12, %v6938_v14, %v16117_v31  ;;  %v7003_v12 = vsel %vm6140_vm3, %v6971_v54, %v16148_v47  ;;  %v21457_v31 = vld [vmem:[#allocation181_spill] sm:$0xff]  ;;  %v21458_v47 = vld [vmem:[#allocation134_spill] sm:$0xff] }
 0x7ce   :  { %21452 = vst [vmem:[#allocation157_spill] sm:$0xff] %v17093_v29  ;;  %v17103_v27 = vpop.permute.xlu1 %6774  ;;  %v7002_v8 = vsel %vm6140_vm3, %v6970_v46, %v16133_v25  ;;  %v7035_v59 = vsel %vm6157_vm2, %v7003_v12, %v16153_v6  ;;  %v21461_v12 = vld [vmem:[#allocation63_spill] sm:$0xff]  ;;  %v21465_v29 = vld [vmem:[#allocation89_spill] sm:$0xff] }
 0x7cf   :  { %21454 = vst [vmem:[#allocation68_spill] sm:$0xff] %v17103_v27  ;;  %5446 = vrot.lane.b32.xlu0 %v21441_v7, %s10606_s18  ;;  %v7034_v33 = vsel %vm6157_vm2, %v7002_v8, %v21456_v44  ;;  %v7067_v41 = vsel %vm6174_vm0, %v7035_v59, %v21457_v31  ;;  %v21460_v8 = vld [vmem:[#allocation91_spill] sm:$0xff] }
 0x7d0   :  { %v7066_v14 = vsel %vm6174_vm0, %v7034_v33, %v21457_v31  ;;  %v7136_v46 = vrot.slane %v7067_v41, 1  ;;  %v6056_v59 = vsel %vm21286_vm5, %v21461_v12, %v21460_v8  ;;  %v5640_v33 = vrot.slane %v21445_v23, 3  ;;  %v21462_v31 = vld [vmem:[#allocation100_spill] sm:$0xff]  ;;  %v21463_v41 = vld [vmem:[#allocation95_spill] sm:$0xff]  ;;  %v21464_v12 = vld [vmem:[#allocation174_spill] sm:$0xff] }
 0x7d1   :  { %5918 = vrot.lane.b32.xlu1 %v21455_v37, %s10614_s9  ;;  %v5647_v52 = vpop.permute.xlu0 %5646  ;;  %v7135_v6 = vrot.slane %v7066_v14, 1  ;;  %v5641_v8 = vrot.slane %v21447_v24, 3  ;;  %v21471_v24 = vld [vmem:[#allocation82_spill] sm:$0xff]  ;;  %vm7239_vm5 = vcmask 998400  }
 0x7d2   :  { %v17125_v25 = vpop.permute.xlu1 %5436 }
 0x7d3   :  { %5968 = vrot.lane.b32.xlu0 %v21458_v47, %s10616_s13  ;;  %v7137_v14 = vsel %vm19957_vm15, %v7135_v6, %v7136_v46  ;;  %v17158_v6 = vsel %vm19984_vm4, %v5640_v33, %v5641_v8  ;;  %v21467_v46 = vld [vmem:[#allocation175_spill] sm:$0xff]  ;;  %v6259_v33 = vsel %vm1487_vm1, %v17077_v55, %v5909_v9 }
 0x7d5   :  { %5656 = vrot.lane.b32.xlu1 %v21438_v11, %s10613_s25  ;;  %v17131_v38 = vpop.permute.xlu0 %6834  ;;  %v6073_v11 = vsel %vm6072_vm11, %v6056_v59, %v21462_v31  ;;  %v21468_v59 = vld [vmem:[#allocation137_spill] sm:$0xff] }
 0x7d6   :  { %21459 = vst [vmem:[#allocation45_spill] sm:$0xff] %v17131_v38  ;;  %v6090_v38 = vsel %vm6089_vm7, %v6073_v11, %v21463_v41  ;;  %v6860_v31 = vsel %vm21469_vm6, %v21468_v59, %v21467_v46  ;;  %v21470_v11 = vld [vmem:[#allocation176_spill] sm:$0xff]  ;;  %vm6208_vm6 = vcmask 818176  }
 0x7d7   :  { %v5959_v54 = vpop.permute.xlu1 %5958  ;;  %6018 = vrot.lane.b32.xlu0 %v21445_v23, %s10618_s20  ;;  %v6107_v41 = vsel %vm6106_vm14, %v6090_v38, %v21471_v24 }
 0x7d8   :  { %v6124_v38 = vsel %vm6123_vm12, %v6107_v41, %v17020_v40  ;;  %v6275_v46 = vsel %vm21475_vm8, %v6259_v33, %v5959_v54  ;;  %vm19967_vm8 = vcmask 900096   ;;  %v21479_v33 = vld [vmem:[#allocation186_spill] sm:$0xff] }
 0x7d9   :  { %5706 = vrot.lane.b32.xlu1 %v21441_v7, %s10617_s21  ;;  %v5697_v44 = vpop.permute.xlu0 %5696  ;;  %v6859_v7 = vsel %vm21466_vm13, %v21465_v29, %v21464_v12  ;;  %v21472_v12 = vld [vmem:[#allocation178_spill] sm:$0xff]  ;;  %v6141_v9 = vsel %vm6140_vm3, %v6124_v38, %v17063_v20  ;;  %vm6191_vm13 = vcmask 736256  }
 0x7da   :  { %v6882_v53 = vsel %vm6072_vm11, %v6860_v31, %v21472_v12  ;;  %v21476_v31 = vld [vmem:[#allocation182_spill] sm:$0xff]  ;;  %v6158_v40 = vsel %vm6157_vm2, %v6141_v9, %v17069_v0 }
 0x7db   :  { %v17146_v27 = vpop.permute.xlu1 %5486  ;;  %7178 = vrot.lane.b32.xlu0 %v7137_v14, %s10619_s2  ;;  %v6881_v14 = vsel %vm6072_vm11, %v6859_v7, %v21470_v11  ;;  %v6175_v20 = vsel %vm6174_vm0, %v6158_v40, %v5647_v52  ;;  %v21481_v38 = vld [vmem:[#allocation190_spill] sm:$0xff] }
 0x7dc   :  { %v6192_v0 = vsel %vm6191_vm13, %v6175_v20, %v5697_v44 }
 0x7dd   :  { %5756 = vrot.lane.b32.xlu1 %v21431_v50, %s10620_s8  ;;  %v17155_v61 = vpop.permute.xlu0 %5540  ;;  %v21473_v50 = vld [vmem:[#allocation179_spill] sm:$0xff] }
 0x7de   :  { %v6908_v10 = vsel %vm6089_vm7, %v6881_v14, %v21473_v50  ;;  %v6909_v7 = vsel %vm6089_vm7, %v6882_v53, %v21473_v50 }
 0x7df   :  { %v6009_v8 = vpop.permute.xlu1 %6008  ;;  %5866 = vrot.lane.b32.xlu0 %v21474_v22, %s10615_s17  ;;  %v6940_v11 = vsel %vm6106_vm14, %v6908_v10, %v21476_v31  ;;  %v21477_v22 = vld [vmem:[#allocation78_spill] sm:$0xff]  ;;  %v6941_v53 = vsel %vm6106_vm14, %v6909_v7, %v21476_v31  ;;  %v21478_v10 = vld [vmem:[#allocation185_spill] sm:$0xff]  ;;  %v21482_v31 = vld [vmem:[#allocation192_spill] sm:$0xff] }
 0x7e0   :  { %v6292_v14 = vsel %vm6291_vm9, %v6275_v46, %v6009_v8  ;;  %v6973_v41 = vsel %vm6123_vm12, %v6941_v53, %v21478_v10  ;;  %v6972_v8 = vsel %vm6123_vm12, %v6940_v11, %v21479_v33  ;;  %v21487_v33 = vld [vmem:[#allocation6_spill] sm:$0xff] }
 0x7e1   :  { %5810 = vrot.lane.b32.xlu1 %v21477_v22, %s10621_s3  ;;  %v7169_v24 = vpop.permute.xlu0 %7168  ;;  %v7005_v46 = vsel %vm6140_vm3, %v6973_v41, %v21481_v38  ;;  %v7004_v52 = vsel %vm6140_vm3, %v6972_v8, %v21482_v31  ;;  %v21483_v22 = vld [vmem:[#allocation194_spill] sm:$0xff] }
 0x7e2   :  { %v7217_v54 = vsel %vm19956_vm10, %v6292_v14, %v7169_v24  ;;  %vm19959_vm10 = vcmask 982016   ;;  %v7036_v11 = vsel %vm6157_vm2, %v7004_v52, %v21483_v22  ;;  %v21484_v24 = vld [vmem:[#allocation198_spill] sm:$0xff] }
 0x7e3   :  { %v7241_v12 = vsel %vm7239_vm5, %v7217_v54, 0  ;;  %v5747_v50 = vpop.permute.xlu1 %5746  ;;  %5448 = vrot.lane.b32.xlu0 %v21458_v47, %s10606_s18  ;;  %v7037_v44 = vsel %vm6157_vm2, %v7005_v46, %v21484_v24  ;;  %v21486_v54 = vld [vmem:[#allocation200_spill] sm:$0xff] }
 0x7e4   :  { %v17201_v7 = vand.u32 4294901760, %v7241_v12  ;;  %v6209_v9 = vsel %vm6208_vm6, %v6192_v0, %v5747_v50  ;;  %v7068_v10 = vsel %vm6174_vm0, %v7036_v11, %v21486_v54  ;;  %v7069_v41 = vsel %vm6174_vm0, %v7037_v44, %v21486_v54  ;;  %v21490_v54 = vld [vmem:[#allocation162_spill] sm:$0xff] }
 0x7e5   :  { %5920 = vrot.lane.b32.xlu1 %v17158_v6, %s10614_s9  ;;  %v5801_v14 = vpop.permute.xlu0 %5800  ;;  %v7138_v38 = vrot.slane %v7068_v10, 1  ;;  %v7139_v46 = vrot.slane %v7069_v41, 1  ;;  %v5902_v10 = vrot.slane %v21465_v29, 3  ;;  %v5903_v41 = vrot.slane %v21468_v59, 3 }
 0x7e6   :  { %21480 = vst [vmem:[#allocation166_spill] sm:$0xff] %v17201_v7  ;;  %v17215_v53 = vsub.f32 %v7241_v12, %v17201_v7  ;;  %v6226_v40 = vsel %vm19967_vm8, %v6209_v9, %v5801_v14 }
 0x7e7   :  { %v6243_v20 = vsel %vm19959_vm10, %v6226_v40, %v17077_v55  ;;  %v17224_v50 = vpop.permute.xlu1 %5594  ;;  %5970 = vrot.lane.b32.xlu0 %v21487_v33, %s10616_s13  ;;  %v7140_v22 = vsel %vm19957_vm15, %v7138_v38, %v7139_v46  ;;  %vm21497_vm15 = vcmask 80896   ;;  %v5904_v59 = vsel %vm19984_vm4, %v5902_v10, %v5903_v41  ;;  %v21507_v10 = vld [vmem:[#allocation90_spill] sm:$0xff] }
 0x7e8   :  { %21485 = vst [vmem:[#allocation75_spill] sm:$0xff] %v17215_v53  ;;  %v17228_v8 = vand.u32 4294901760, %v6243_v20  ;;  %v19960_v12 = vand.u32 4294901760, %v17215_v53  ;;  %vm21500_vm10 = vmmov %vm21497_vm15  ;;  %vm21587_vm4 = vcmask 982016  }
 0x7e9   :  { %5658 = vrot.lane.b32.xlu1 %v21455_v37, %s10613_s25  ;;  %v5911_v0 = vpop.permute.xlu0 %5910  ;;  %vm21505_vm8 = vmmov %vm21500_vm10 }
 0x7ea   :  { %21488 = vst [vmem:[#allocation42_spill] sm:$0xff] %v17228_v8  ;;  %v17234_v31 = vsub.f32 %v6243_v20, %v17228_v8  ;;  %v7391_v55 = vsub.f32 %v17215_v53, %v19960_v12  ;;  %v21491_v20 = vld [vmem:[#allocation120_spill] sm:$0xff]  ;;  %v21502_v53 = vld [vmem:[#allocation189_spill] sm:$0xff] }
 0x7eb   :  { %v17239_v52 = vpop.permute.xlu1 %5856  ;;  %6020 = vrot.lane.b32.xlu0 %v21465_v29, %s10618_s20 }
 0x7ec   :  { %21489 = vst [vmem:[#allocation76_spill] sm:$0xff] %v17234_v31  ;;  %v7392_v9 = vand.u32 4294901760, %v7391_v55  ;;  %v19958_v14 = vand.u32 4294901760, %v17234_v31  ;;  %v21492_v55 = vld [vmem:[#allocation65_spill] sm:$0xff] }
 0x7ed   :  { %5708 = vrot.lane.b32.xlu1 %v21458_v47, %s10617_s21  ;;  %v5649_v37 = vpop.permute.xlu0 %5648 }
 0x7ee   :  { %7393 = vmatprep.mubr.f32.mxu1 %v7392_v9  ;;  %v7397_v11 = vsub.f32 %v17234_v31, %v19958_v14  ;;  %v21493_v9 = vld [vmem:[#allocation66_spill] sm:$0xff]  ;;  %v21498_v14 = vld [vmem:[#allocation184_spill] sm:$0xff]  ;;  %v21501_v31 = vld [vmem:[#allocation187_spill] sm:$0xff] }
 0x7ef   :  { %v17250_v24 = vpop.permute.xlu1 %5438  ;;  %7180 = vrot.lane.b32.xlu0 %v7140_v22, %s10619_s2  ;;  %v21495_v22 = vld [vmem:[#allocation183_spill] sm:$0xff] }
 0x7f0   :  { %v7398_v44 = vand.u32 4294901760, %v7397_v11  ;;  %v21496_v11 = vld [vmem:[#allocation53_spill] sm:$0xff] }
 0x7f1   :  { %5758 = vrot.lane.b32.xlu1 %v21445_v23, %s10620_s8  ;;  %v17255_v40 = vpop.permute.xlu0 %5488  ;;  %v21494_v23 = vcombine.low %v21492_v55, %v21493_v9  ;;  %v21503_v9 = vld [vmem:[#allocation50_spill] sm:$0xff] }
 0x7f2   :  { %7399 = vmatmul.mubr.f32.vlgmr.msra.gmra.mrb[0].mxu1 %v7398_v44  ;;  %v6862_v44 = vsel %vm21497_vm15, %v21496_v11, %v21495_v22  ;;  %v21506_v22 = vld [vmem:[#allocation195_spill] sm:$0xff]  ;;  %vm21517_vm15 = vcmask 97280  }
 0x7f3   :  { %v5961_v47 = vpop.permute.xlu1 %5960  ;;  %5868 = vrot.lane.b32.xlu0 %v21490_v54, %s10615_s17  ;;  %v21499_v54 = vld [vmem:[#allocation168_spill] sm:$0xff] }
 0x7f4   :  { %v6861_v12 = vsel %vm21500_vm10, %v21499_v54, %v21498_v14  ;;  %vm21519_vm10 = vcmask 261120  }
 0x7f5   :  { %5812 = vrot.lane.b32.xlu1 %v21491_v20, %s10621_s3  ;;  %v6011_v38 = vpop.permute.xlu0 %6010  ;;  %v6884_v20 = vsel %vm6072_vm11, %v6862_v44, %v21501_v31  ;;  %v6883_v8 = vsel %vm6072_vm11, %v6861_v12, %v21502_v53  ;;  %v21508_v31 = vld [vmem:[#allocation196_spill] sm:$0xff] }
 0x7f6   :  { %v6910_v11 = vsel %vm6089_vm7, %v6883_v8, %v21506_v22  ;;  %v6911_v14 = vsel %vm6089_vm7, %v6884_v20, %v21506_v22  ;;  %v21512_v22 = vld [vmem:[#allocation203_spill] sm:$0xff] }
 0x7f7   :  { %v5699_v46 = vpop.permute.xlu1 %5698  ;;  %5450 = vrot.lane.b32.xlu0 %v21494_v23, %s10606_s18  ;;  %v21504_v23 = vld [vmem:[#allocation69_spill] sm:$0xff]  ;;  %v6942_v44 = vsel %vm6106_vm14, %v6910_v11, %v21508_v31  ;;  %v6943_v53 = vsel %vm6106_vm14, %v6911_v14, %v21508_v31 }
 0x7f8   :  { %v6057_v7 = vsel %vm21505_vm8, %v21504_v23, %v21503_v9  ;;  %v21510_v9 = vld [vmem:[#allocation27_spill] sm:$0xff]  ;;  %v21511_v23 = vld [vmem:[#allocation201_spill] sm:$0xff]  ;;  %vm21524_vm8 = vcmask 900096  }
 0x7f9   :  { %5922 = vrot.lane.b32.xlu1 %v5904_v59, %s10614_s9  ;;  %v5749_v55 = vpop.permute.xlu0 %5748  ;;  %v6074_v41 = vsel %vm6072_vm11, %v6057_v7, %v21507_v10  ;;  %v21509_v59 = vld [vmem:[#allocation165_spill] sm:$0xff]  ;;  %v6975_v20 = vsel %vm6123_vm12, %v6943_v53, %v21511_v23  ;;  %v6974_v7 = vsel %vm6123_vm12, %v6942_v44, %v21512_v22  ;;  %v21515_v53 = vld [vmem:[#allocation211_spill] sm:$0xff] }
 0x7fa   :  { %v6091_v8 = vsel %vm6089_vm7, %v6074_v41, %v21510_v9  ;;  %v21513_v10 = vld [vmem:[#allocation205_spill] sm:$0xff]  ;;  %v7007_v14 = vsel %vm6140_vm3, %v6975_v20, %v21514_v26  ;;  %v21516_v9 = vld [vmem:[#allocation212_spill] sm:$0xff] }
 0x7fb   :  { %v17292_v12 = vpop.permute.xlu1 %5542  ;;  %5972 = vrot.lane.b32.xlu0 %v21509_v59, %s10616_s13  ;;  %v7006_v11 = vsel %vm6140_vm3, %v6974_v7, %v21513_v10  ;;  %v6108_v31 = vsel %vm6106_vm14, %v6091_v8, %v17125_v25  ;;  %v6260_v59 = vsel %vm1487_vm1, %v17239_v52, %v5911_v0  ;;  %v7039_v44 = vsel %vm6157_vm2, %v7007_v14, %v21515_v53  ;;  %v21518_v25 = vld [vmem:[#allocation213_spill] sm:$0xff]  ;;  %v21520_v14 = vld [vmem:[#allocation3_spill] sm:$0xff] }
 0x7fc   :  { %v7038_v23 = vsel %vm6157_vm2, %v7006_v11, %v21516_v9  ;;  %v6125_v26 = vsel %vm6123_vm12, %v6108_v31, %v17146_v27  ;;  %v6276_v20 = vsel %vm21517_vm15, %v6260_v59, %v5961_v47  ;;  %v7071_v0 = vsel %vm6174_vm0, %v7039_v44, %v21518_v25  ;;  %v21522_v44 = vld [vmem:[#allocation49_spill] sm:$0xff] }
 0x7fd   :  { %5660 = vrot.lane.b32.xlu1 %v17158_v6, %s10613_s25  ;;  %v17312_v41 = vpop.permute.xlu0 %5596  ;;  %v7070_v8 = vsel %vm6174_vm0, %v7038_v23, %v21518_v25  ;;  %v6142_v6 = vsel %vm6140_vm3, %v6125_v26, %v17155_v61  ;;  %v6293_v22 = vsel %vm6291_vm9, %v6276_v20, %v6011_v38  ;;  %v7142_v38 = vrot.slane %v7071_v0, 1 }
 0x7fe   :  { %v6159_v27 = vsel %vm6157_vm2, %v6142_v6, %v17224_v50  ;;  %v7141_v61 = vrot.slane %v7070_v8, 1  ;;  %vm21525_vm15 = vcmask 982016  }
 0x7ff   :  { %v7171_v7 = vpop.permute.xlu1 %7170  ;;  %5710 = vrot.lane.b32.xlu0 %v21487_v33, %s10617_s21  ;;  %v6176_v10 = vsel %vm6174_vm0, %v6159_v27, %v5649_v37 }
 0x800   :  { %v7218_v47 = vsel %vm21519_vm10, %v6293_v22, %v7171_v7  ;;  %v6193_v59 = vsel %vm6191_vm13, %v6176_v10, %v5699_v46  ;;  %vm21527_vm10 = vcmask 1046528   ;;  %v21529_v7 = vld [vmem:[#allocation143_spill] sm:$0xff] }
 0x801   :  { %v7244_v11 = vsel %vm7239_vm5, %v7218_v47, 0  ;;  %5500 = vrot.lane.b32.xlu1 %v21520_v14, %s10610_s22  ;;  %v17337_v31 = vpop.permute.xlu0 %5858  ;;  %v6210_v33 = vsel %vm6208_vm6, %v6193_v59, %v5749_v55  ;;  %v7143_v55 = vsel %vm21527_vm10, %v7141_v61, %v7142_v38  ;;  %v21530_v47 = vld [vmem:[#allocation88_spill] sm:$0xff]  ;;  %v21533_v38 = vld [vmem:[#allocation107_spill] sm:$0xff]  ;;  %vm21538_vm10 = vcmask 261120  }
 0x802   :  { %v17340_v53 = vand.u32 4294901760, %v7244_v11 }
 0x803   :  { %v5803_v50 = vpop.permute.xlu1 %5802  ;;  %5554 = vrot.lane.b32.xlu0 %v21522_v44, %s10612_s24  ;;  %v21534_v44 = vld [vmem:[#allocation110_spill] sm:$0xff] }
 0x804   :  { %21521 = vst [vmem:[#allocation85_spill] sm:$0xff] %v17340_v53  ;;  %v17346_v37 = vsub.f32 %v7244_v11, %v17340_v53  ;;  %v6227_v9 = vsel %vm21524_vm8, %v6210_v33, %v5803_v50  ;;  %v21531_v11 = vld [vmem:[#allocation30_spill] sm:$0xff]  ;;  %vm21532_vm8 = vcmask 80896   ;;  %v21597_v53 = vld [vmem:[#allocation237_spill] sm:$0xff] }
 0x805   :  { %v6244_v23 = vsel %vm21525_vm15, %v6227_v9, %v17239_v52  ;;  %6022 = vrot.lane.b32.xlu1 %v21499_v54, %s10618_s20  ;;  %v17353_v46 = vpop.permute.xlu0 %5440  ;;  %v21535_v9 = vld [vmem:[#allocation34_spill] sm:$0xff]  ;;  %vm21536_vm15 = vcmask 97280  }
 0x806   :  { %21523 = vst [vmem:[#allocation138_spill] sm:$0xff] %v17346_v37  ;;  %v17355_v26 = vand.u32 4294901760, %v6244_v23  ;;  %v19971_v20 = vand.u32 4294901760, %v17346_v37 }
 0x807   :  { %v5913_v25 = vpop.permute.xlu1 %5912  ;;  %7182 = vrot.lane.b32.xlu0 %v7143_v55, %s10619_s2 }
 0x808   :  { %21526 = vst [vmem:[#allocation74_spill] sm:$0xff] %v17355_v26  ;;  %v17361_v8 = vsub.f32 %v6244_v23, %v17355_v26  ;;  %v7406_v52 = vsub.f32 %v17346_v37, %v19971_v20  ;;  %v6261_v33 = vsel %vm1487_vm1, %v17337_v31, %v5913_v25  ;;  %v21566_v37 = vld [vmem:[#allocation32_spill] sm:$0xff] }
 0x809   :  { %5760 = vrot.lane.b32.xlu1 %v21465_v29, %s10620_s8  ;;  %v5963_v54 = vpop.permute.xlu0 %5962  ;;  %v6058_v29 = vsel %vm21532_vm8, %v21328_v60, %v21531_v11 }
 0x80a   :  { %21528 = vst [vmem:[#allocation72_spill] sm:$0xff] %v17361_v8  ;;  %v7407_v0 = vand.u32 4294901760, %v7406_v52  ;;  %v19970_v6 = vand.u32 4294901760, %v17361_v8  ;;  %v6075_v59 = vsel %vm6072_vm11, %v6058_v29, %v21533_v38  ;;  %v6277_v55 = vsel %vm21536_vm15, %v6261_v33, %v5963_v54  ;;  %v21539_v29 = vld [vmem:[#allocation104_spill] sm:$0xff]  ;;  %vm21546_vm15 = vmmov %vm21532_vm8 }
 0x80b   :  { %v5651_v22 = vpop.permute.xlu1 %5650  ;;  %5814 = vrot.lane.b32.xlu0 %v21529_v7, %s10621_s3  ;;  %v6092_v23 = vsel %vm6089_vm7, %v6075_v59, %v21535_v9  ;;  %v21542_v59 = vld [vmem:[#allocation163_spill] sm:$0xff] }
 0x80c   :  { %7408 = vmatprep.mubr.f32.mxu1 %v7407_v0  ;;  %v7412_v27 = vsub.f32 %v17361_v8, %v19970_v6  ;;  %v6109_v60 = vsel %vm6106_vm14, %v6092_v23, %v17250_v24  ;;  %v21537_v0 = vld [vmem:[#allocation51_spill] sm:$0xff]  ;;  %v21545_v23 = vld [vmem:[#allocation94_spill] sm:$0xff] }
 0x80d   :  { %5608 = vrot.lane.b32.xlu1 %v21530_v47, %s10611_s23  ;;  %v6013_v10 = vpop.permute.xlu0 %6012  ;;  %v6126_v25 = vsel %vm6123_vm12, %v6109_v60, %v17255_v40  ;;  %v21541_v40 = vld [vmem:[#allocation124_spill] sm:$0xff]  ;;  %v21544_v9 = vld [vmem:[#allocation199_spill] sm:$0xff]  ;;  %v21565_v8 = vld [vmem:[#allocation146_spill] sm:$0xff] }
 0x80e   :  { %v7413_v61 = vand.u32 4294901760, %v7412_v27  ;;  %v6294_v52 = vsel %vm6291_vm9, %v6277_v55, %v6013_v10  ;;  %v6143_v47 = vsel %vm6140_vm3, %v6126_v25, %v17292_v12  ;;  %v21543_v12 = vld [vmem:[#allocation130_spill] sm:$0xff]  ;;  %v6863_v55 = vsel %vm21546_vm15, %v21545_v23, %v21544_v9 }
 0x80f   :  { %v5701_v50 = vpop.permute.xlu1 %5700  ;;  %5924 = vrot.lane.b32.xlu0 %v21534_v44, %s10614_s9  ;;  %v6160_v24 = vsel %vm6157_vm2, %v6143_v47, %v17312_v41  ;;  %v6067_v33 = vsel %vm21532_vm8, %v21543_v12, %v21542_v59  ;;  %vm21554_vm8 = vcmask 982016   ;;  %vm21569_vm15 = vcmask 97280  }
 0x810   :  { %7414 = vmatmul.mubr.f32.gmra.mrb[2].mxu1 %v7413_v61  ;;  %v6177_v61 = vsel %vm6174_vm0, %v6160_v24, %v5651_v22  ;;  %v21551_v24 = vld [vmem:[#allocation208_spill] sm:$0xff] }
 0x811   :  { %5870 = vrot.lane.b32.xlu1 %v21537_v0, %s10615_s17  ;;  %v7173_v7 = vpop.permute.xlu0 %7172  ;;  %v6194_v60 = vsel %vm6191_vm13, %v6177_v61, %v5701_v50 }
 0x812   :  { %v7219_v27 = vsel %vm21538_vm10, %v6294_v52, %v7173_v7  ;;  %v21548_v52 = vld [vmem:[#allocation54_spill] sm:$0xff]  ;;  %vm21552_vm10 = vcmask 900096  }
 0x813   :  { %v7247_v54 = vsel %vm7239_vm5, %v7219_v27, 0  ;;  %v5751_v11 = vpop.permute.xlu1 %5750  ;;  %5662 = vrot.lane.b32.xlu0 %v21539_v29, %s10613_s25  ;;  %v17422_v22 = vsel %vm6072_vm11, %v6067_v33, %v21548_v52  ;;  %v21549_v7 = vld [vmem:[#allocation206_spill] sm:$0xff]  ;;  %v21550_v29 = vld [vmem:[#allocation96_spill] sm:$0xff]  ;;  %v21553_v33 = vld [vmem:[#allocation215_spill] sm:$0xff] }
 0x814   :  { %v17403_v10 = vand.u32 4294901760, %v7247_v54  ;;  %v6885_v25 = vsel %vm6072_vm11, %v6863_v55, %v21549_v7  ;;  %v6211_v27 = vsel %vm6208_vm6, %v6194_v60, %v5751_v11  ;;  %v6912_v50 = vsel %vm6089_vm7, %v17422_v22, %v21551_v24  ;;  %v21555_v55 = vld [vmem:[#allocation20_spill] sm:$0xff]  ;;  %v21556_v52 = vld [vmem:[#allocation217_spill] sm:$0xff] }
 0x815   :  { %5452 = vrot.lane.b32.xlu1 %v21541_v40, %s10606_s18  ;;  %v17408_v38 = vpop.permute.xlu0 %5860  ;;  %v6944_v9 = vsel %vm6106_vm14, %v6912_v50, %v21553_v33  ;;  %v21559_v50 = vld [vmem:[#allocation218_spill] sm:$0xff] }
 0x816   :  { %21540 = vst [vmem:[#allocation154_spill] sm:$0xff] %v17403_v10  ;;  %v17418_v41 = vsub.f32 %v7247_v54, %v17403_v10  ;;  %v6913_v54 = vsel %vm6089_vm7, %v6885_v25, %v21551_v24  ;;  %v6976_v7 = vsel %vm6123_vm12, %v6944_v9, %v21556_v52  ;;  %v21557_v25 = vld [vmem:[#allocation220_spill] sm:$0xff]  ;;  %v21561_v9 = vld [vmem:[#allocation225_spill] sm:$0xff] }
 0x817   :  { %v5805_v47 = vpop.permute.xlu1 %5804  ;;  %5502 = vrot.lane.b32.xlu0 %v21550_v29, %s10610_s22  ;;  %v6945_v11 = vsel %vm6106_vm14, %v6913_v54, %v21553_v33  ;;  %v21560_v54 = vld [vmem:[#allocation222_spill] sm:$0xff] }
 0x818   :  { %21547 = vst [vmem:[#allocation71_spill] sm:$0xff] %v17418_v41  ;;  %v6228_v61 = vsel %vm21552_vm10, %v6211_v27, %v5805_v47  ;;  %v19972_v59 = vand.u32 4294901760, %v17418_v41  ;;  %v6977_v27 = vsel %vm6123_vm12, %v6945_v11, %v21557_v25  ;;  %v21562_v11 = vld [vmem:[#allocation228_spill] sm:$0xff]  ;;  %vm21570_vm10 = vcmask 1046528  }
 0x819   :  { %v6245_v23 = vsel %vm21554_vm8, %v6228_v61, %v17337_v31  ;;  %5974 = vrot.lane.b32.xlu1 %v21555_v55, %s10616_s13  ;;  %v17444_v60 = vpop.permute.xlu0 %5442  ;;  %v7008_v31 = vsel %vm6140_vm3, %v6976_v7, %v21559_v50  ;;  %v7009_v61 = vsel %vm6140_vm3, %v6977_v27, %v21560_v54  ;;  %vm21572_vm8 = vcmask 261120  }
 0x81a   :  { %v17450_v47 = vand.u32 4294901760, %v6245_v23  ;;  %v7421_v24 = vsub.f32 %v17418_v41, %v19972_v59  ;;  %v7040_v6 = vsel %vm6157_vm2, %v7008_v31, %v21561_v9  ;;  %v7041_v25 = vsel %vm6157_vm2, %v7009_v61, %v21562_v11  ;;  %v21564_v41 = vld [vmem:[#allocation231_spill] sm:$0xff]  ;;  %v21567_v11 = vld [vmem:[#allocation52_spill] sm:$0xff] }
 0x81b   :  { %v5915_v33 = vpop.permute.xlu1 %5914  ;;  %6024 = vrot.lane.b32.xlu0 %v21543_v12, %s10618_s20  ;;  %v7072_v7 = vsel %vm6174_vm0, %v7040_v6, %v21564_v41  ;;  %v7073_v27 = vsel %vm6174_vm0, %v7041_v25, %v21564_v41  ;;  %v6093_v31 = vsel %vm6089_vm7, %v21566_v37, %v21565_v8  ;;  %v21568_v8 = vld [vmem:[#allocation102_spill] sm:$0xff] }
 0x81c   :  { %21558 = vst [vmem:[#allocation8_spill] sm:$0xff] %v17450_v47  ;;  %v17466_v20 = vsub.f32 %v6245_v23, %v17450_v47  ;;  %v7422_v59 = vand.u32 4294901760, %v7421_v24  ;;  %v6110_v23 = vsel %vm6106_vm14, %v6093_v31, %v17353_v46  ;;  %v7144_v6 = vrot.slane %v7072_v7, 1 }
 0x81d   :  { %5712 = vrot.lane.b32.xlu1 %v21541_v40, %s10617_s21  ;;  %v5965_v54 = vpop.permute.xlu0 %5964  ;;  %v7145_v41 = vrot.slane %v7073_v27, 1  ;;  %v6262_v46 = vsel %vm1487_vm1, %v17408_v38, %v5915_v33 }
 0x81e   :  { %21563 = vst [vmem:[#allocation23_spill] sm:$0xff] %v17466_v20  ;;  %7423 = vmatprep.mubr.f32.mxu1 %v7422_v59  ;;  %v19979_v61 = vand.u32 4294901760, %v17466_v20  ;;  %v6127_v59 = vsel %vm6123_vm12, %v6110_v23, %v21568_v8  ;;  %v6278_v7 = vsel %vm21569_vm15, %v6262_v46, %v5965_v54  ;;  %v21574_v54 = vld [vmem:[#allocation40_spill] sm:$0xff]  ;;  %vm21579_vm15 = vcmask 80896  }
 0x81f   :  { %v5653_v24 = vpop.permute.xlu1 %5652  ;;  %5762 = vrot.lane.b32.xlu0 %v21550_v29, %s10620_s8  ;;  %v7146_v27 = vsel %vm21570_vm10, %v7144_v6, %v7145_v41  ;;  %vm21582_vm10 = vmmov %vm21579_vm15 }
 0x820   :  { %v7427_v40 = vsub.f32 %v17466_v20, %v19979_v61  ;;  %v21571_v61 = vld [vmem:[#allocation158_spill] sm:$0xff] }
 0x821   :  { %5556 = vrot.lane.b32.xlu1 %v21567_v11, %s10612_s24  ;;  %v6015_v37 = vpop.permute.xlu0 %6014  ;;  %v6144_v20 = vsel %vm6140_vm3, %v6127_v59, %v21571_v61 }
 0x822   :  { %v7428_v25 = vand.u32 4294901760, %v7427_v40  ;;  %v6295_v47 = vsel %vm6291_vm9, %v6278_v7, %v6015_v37  ;;  %v21578_v7 = vld [vmem:[#allocation109_spill] sm:$0xff] }
 0x823   :  { %v5703_v31 = vpop.permute.xlu1 %5702  ;;  %5610 = vrot.lane.b32.xlu0 %v21537_v0, %s10611_s23  ;;  %v21573_v0 = vld [vmem:[#allocation108_spill] sm:$0xff] }
 0x824   :  { %7429 = vmatmul.mubr.f32.gmra.mrb[4].mxu1 %v7428_v25  ;;  %v6161_v25 = vsel %vm6157_vm2, %v6144_v20, %v21574_v54  ;;  %v21577_v20 = vld [vmem:[#allocation87_spill] sm:$0xff] }
 0x825   :  { %7184 = vrot.lane.b32.xlu1 %v7146_v27, %s10619_s2  ;;  %v7175_v23 = vpop.permute.xlu0 %7174  ;;  %v6178_v61 = vsel %vm6174_vm0, %v6161_v25, %v5653_v24  ;;  %v6068_v24 = vsel %vm21579_vm15, %v21578_v7, %v21577_v20  ;;  %v21580_v27 = vld [vmem:[#allocation216_spill] sm:$0xff]  ;;  %vm21604_vm15 = vcmask 261120  }
 0x826   :  { %v7220_v40 = vsel %vm21572_vm8, %v6295_v47, %v7175_v23  ;;  %v6195_v47 = vsel %vm6191_vm13, %v6178_v61, %v5703_v31  ;;  %v21581_v23 = vld [vmem:[#allocation105_spill] sm:$0xff]  ;;  %vm21583_vm8 = vcmask 900096  }
 0x827   :  { %v7250_v33 = vsel %vm7239_vm5, %v7220_v40, 0  ;;  %v5753_v8 = vpop.permute.xlu1 %5752  ;;  %5872 = vrot.lane.b32.xlu0 %v21573_v0, %s10615_s17 }
 0x828   :  { %v17505_v6 = vand.u32 4294901760, %v7250_v33  ;;  %v6212_v59 = vsel %vm6208_vm6, %v6195_v47, %v5753_v8  ;;  %v21586_v8 = vld [vmem:[#allocation223_spill] sm:$0xff]  ;;  %v21588_v47 = vld [vmem:[#allocation29_spill] sm:$0xff] }
 0x829   :  { %5816 = vrot.lane.b32.xlu1 %v21567_v11, %s10621_s3  ;;  %v17510_v41 = vpop.permute.xlu0 %5862  ;;  %v6864_v11 = vsel %vm21582_vm10, %v21581_v23, %v21580_v27  ;;  %v21589_v27 = vld [vmem:[#allocation224_spill] sm:$0xff]  ;;  %vm21605_vm10 = vcmask 1046528  }
 0x82a   :  { %21575 = vst [vmem:[#allocation26_spill] sm:$0xff] %v17505_v6  ;;  %v17514_v37 = vsub.f32 %v7250_v33, %v17505_v6  ;;  %v21584_v33 = vld [vmem:[#allocation43_spill] sm:$0xff]  ;;  %v6886_v25 = vsel %vm6072_vm11, %v6864_v11, %v21586_v8  ;;  %v21591_v11 = vld [vmem:[#allocation226_spill] sm:$0xff] }
 0x82b   :  { %v5807_v46 = vpop.permute.xlu1 %5806  ;;  %5454 = vrot.lane.b32.xlu0 %v21555_v55, %s10606_s18  ;;  %v17529_v54 = vsel %vm6072_vm11, %v6068_v24, %v21584_v33  ;;  %v21592_v8 = vld [vmem:[#allocation171_spill] sm:$0xff]  ;;  %v21593_v6 = vld [vmem:[#allocation230_spill] sm:$0xff] }
 0x82c   :  { %21576 = vst [vmem:[#allocation164_spill] sm:$0xff] %v17514_v37  ;;  %v6229_v40 = vsel %vm21583_vm8, %v6212_v59, %v5807_v46  ;;  %v19991_v31 = vand.u32 4294901760, %v17514_v37  ;;  %21585 = vst [vmem:[#allocation81_spill] sm:$0xff] %v17529_v54  ;;  %v6914_v59 = vsel %vm6089_vm7, %v17529_v54, %v21589_v27  ;;  %v6915_v46 = vsel %vm6089_vm7, %v6886_v25, %v21589_v27  ;;  %v21594_v25 = vld [vmem:[#allocation232_spill] sm:$0xff]  ;;  %v21598_v54 = vld [vmem:[#allocation122_spill] sm:$0xff] }
 0x82d   :  { %v6246_v61 = vsel %vm21587_vm4, %v6229_v40, %v17408_v38  ;;  %5926 = vrot.lane.b32.xlu1 %v21588_v47, %s10614_s9  ;;  %v17537_v20 = vpop.permute.xlu0 %5444  ;;  %v6946_v38 = vsel %vm6106_vm14, %v6914_v59, %v21591_v11  ;;  %v6947_v40 = vsel %vm6106_vm14, %v6915_v46, %v21591_v11  ;;  %vm21603_vm4 = vcmask 97280  }
 0x82e   :  { %v17544_v24 = vand.u32 4294901760, %v6246_v61  ;;  %v7436_v23 = vsub.f32 %v17514_v37, %v19991_v31  ;;  %v6978_v10 = vsel %vm6123_vm12, %v6946_v38, %v21593_v6  ;;  %v6979_v27 = vsel %vm6123_vm12, %v6947_v40, %v21594_v25  ;;  %v21596_v37 = vld [vmem:[#allocation235_spill] sm:$0xff]  ;;  %v21599_v6 = vld [vmem:[#allocation236_spill] sm:$0xff] }
 0x82f   :  { %v5917_v33 = vpop.permute.xlu1 %5916  ;;  %5976 = vrot.lane.b32.xlu0 %v21592_v8, %s10616_s13  ;;  %v7010_v59 = vsel %vm6140_vm3, %v6978_v10, %v21596_v37  ;;  %v7011_v46 = vsel %vm6140_vm3, %v6979_v27, %v21597_v53  ;;  %v6094_v38 = vsel %vm6089_vm7, %v16766_v16, %v21598_v54  ;;  %v21601_v25 = vld [vmem:[#allocation240_spill] sm:$0xff] }
 0x830   :  { %21590 = vst [vmem:[#allocation153_spill] sm:$0xff] %v17544_v24  ;;  %v17560_v26 = vsub.f32 %v6246_v61, %v17544_v24  ;;  %v7437_v31 = vand.u32 4294901760, %v7436_v23  ;;  %v7042_v40 = vsel %vm6157_vm2, %v7010_v59, %v21599_v6  ;;  %v21600_v61 = vld [vmem:[#allocation238_spill] sm:$0xff]  ;;  %v6111_v27 = vsel %vm6106_vm14, %v6094_v38, %v17444_v60 }
 0x831   :  { %5664 = vrot.lane.b32.xlu1 %v21534_v44, %s10613_s25  ;;  %v5967_v11 = vpop.permute.xlu0 %5966  ;;  %v7043_v23 = vsel %vm6157_vm2, %v7011_v46, %v21600_v61  ;;  %v7074_v53 = vsel %vm6174_vm0, %v7042_v40, %v21601_v25  ;;  %v6128_v46 = vsel %vm6123_vm12, %v6111_v27, %v21371_v58  ;;  %v6263_v60 = vsel %vm1487_vm1, %v17510_v41, %v5917_v33 }
 0x832   :  { %21595 = vst [vmem:[#allocation145_spill] sm:$0xff] %v17560_v26  ;;  %7438 = vmatprep.mubr.f32.mxu1 %v7437_v31  ;;  %v20001_v10 = vand.u32 4294901760, %v17560_v26  ;;  %v7075_v44 = vsel %vm6174_vm0, %v7043_v23, %v21601_v25  ;;  %v7147_v54 = vrot.slane %v7074_v53, 1  ;;  %v6279_v61 = vsel %vm21603_vm4, %v6263_v60, %v5967_v11 }
 0x833   :  { %v5655_v24 = vpop.permute.xlu1 %5654  ;;  %5714 = vrot.lane.b32.xlu0 %v21555_v55, %s10617_s21  ;;  %v7148_v59 = vrot.slane %v7075_v44, 1  ;;  %v21602_v55 = vld [vmem:[#allocation106_spill] sm:$0xff]  ;;  %v6145_v23 = vsel %vm6140_vm3, %v6128_v46, %v21372_v42  ;;  %vm21608_vm4 = vcmask 982016  }
 0x834   :  { %v7442_v16 = vsub.f32 %v17560_v26, %v20001_v10  ;;  %v6162_v11 = vsel %vm6157_vm2, %v6145_v23, %v21377_v43  ;;  %v21628_v10 = vld [vmem:[#allocation246_spill] sm:$0xff] }
 0x835   :  { %5504 = vrot.lane.b32.xlu1 %v21543_v12, %s10610_s22  ;;  %v6017_v31 = vpop.permute.xlu0 %6016  ;;  %v7149_v33 = vsel %vm21605_vm10, %v7147_v54, %v7148_v59  ;;  %v6179_v42 = vsel %vm6174_vm0, %v6162_v11, %v5655_v24 }
 0x836   :  { %v7443_v40 = vand.u32 4294901760, %v7442_v16  ;;  %v6296_v25 = vsel %vm6291_vm9, %v6279_v61, %v6017_v31 }
 0x837   :  { %v5705_v38 = vpop.permute.xlu1 %5704  ;;  %5558 = vrot.lane.b32.xlu0 %v21602_v55, %s10612_s24 }
 0x838   :  { %7444 = vmatmul.mubr.f32.gmra.mrb[6].mxu1 %v7443_v40  ;;  %v6196_v46 = vsel %vm6191_vm13, %v6179_v42, %v5705_v38  ;;  %v21617_v42 = vld [vmem:[#allocation233_spill] sm:$0xff] }
 0x839   :  { %6026 = vrot.lane.b32.xlu1 %v21578_v7, %s10618_s20  ;;  %v7177_v58 = vpop.permute.xlu0 %7176 }
 0x83a   :  { %v7221_v53 = vsel %vm21604_vm15, %v6296_v25, %v7177_v58  ;;  %vm21616_vm15 = vcmask 80896  }
 0x83b   :  { %v7253_v44 = vsel %vm7239_vm5, %v7221_v53, 0  ;;  %v5755_v27 = vpop.permute.xlu1 %5754  ;;  %7186 = vrot.lane.b32.xlu0 %v7149_v33, %s10619_s2  ;;  %v21613_v53 = vld [vmem:[#allocation147_spill] sm:$0xff]  ;;  %vm21619_vm10 = vmmov %vm21616_vm15 }
 0x83c   :  { %v17607_v16 = vand.u32 4294901760, %v7253_v44  ;;  %v6213_v59 = vsel %vm6208_vm6, %v6196_v46, %v5755_v27  ;;  %v6095_v33 = vsel %vm6089_vm7, %v16850_v49, %v21613_v53  ;;  %v21615_v27 = vld [vmem:[#allocation98_spill] sm:$0xff]  ;;  %v21618_v46 = vld [vmem:[#allocation97_spill] sm:$0xff] }
 0x83d   :  { %5764 = vrot.lane.b32.xlu1 %v21543_v12, %s10620_s8  ;;  %v17612_v31 = vpop.permute.xlu0 %5864  ;;  %v6112_v49 = vsel %vm6106_vm14, %v6095_v33, %v17537_v20  ;;  %v21625_v33 = vld [vmem:[#allocation243_spill] sm:$0xff] }
 0x83e   :  { %21606 = vst [vmem:[#allocation28_spill] sm:$0xff] %v17607_v16  ;;  %v17616_v54 = vsub.f32 %v7253_v44, %v17607_v16  ;;  %v21614_v44 = vld [vmem:[#allocation12_spill] sm:$0xff]  ;;  %v21715_v16 = vld [vmem:[#allocation18_spill] sm:$0xff] }
 0x83f   :  { %v5809_v40 = vpop.permute.xlu1 %5808  ;;  %5818 = vrot.lane.b32.xlu0 %v21602_v55, %s10621_s3  ;;  %v21610_v55 = vld [vmem:[#allocation135_spill] sm:$0xff]  ;;  %v6069_v11 = vsel %vm21616_vm15, %v21615_v27, %v21614_v44  ;;  %vm21638_vm15 = vcmask 900096  }
 0x840   :  { %21607 = vst [vmem:[#allocation39_spill] sm:$0xff] %v17616_v54  ;;  %v6230_v43 = vsel %vm21583_vm8, %v6213_v59, %v5809_v40  ;;  %v20000_v24 = vand.u32 4294901760, %v17616_v54  ;;  %v6865_v59 = vsel %vm21619_vm10, %v21618_v46, %v21617_v42  ;;  %v21623_v44 = vld [vmem:[#allocation239_spill] sm:$0xff]  ;;  %v21624_v46 = vld [vmem:[#allocation241_spill] sm:$0xff]  ;;  %vm21631_vm8 = vcmask 97280  }
 0x841   :  { %v6247_v12 = vsel %vm21608_vm4, %v6230_v43, %v17510_v41  ;;  %5612 = vrot.lane.b32.xlu1 %v21573_v0, %s10611_s23  ;;  %v17627_v60 = vpop.permute.xlu0 %5446  ;;  %v21612_v41 = vld [vmem:[#allocation116_spill] sm:$0xff]  ;;  %v21620_v43 = vld [vmem:[#allocation17_spill] sm:$0xff]  ;;  %vm21634_vm4 = vcmask 261120   ;;  %vm21639_vm10 = vcmask 1046528  }
 0x842   :  { %v17629_v38 = vand.u32 4294901760, %v6247_v12  ;;  %v7451_v61 = vsub.f32 %v17616_v54, %v20000_v24  ;;  %v21627_v24 = vld [vmem:[#allocation244_spill] sm:$0xff]  ;;  %v21660_v54 = vld [vmem:[#allocation119_spill] sm:$0xff] }
 0x843   :  { %v5919_v23 = vpop.permute.xlu1 %5918  ;;  %5928 = vrot.lane.b32.xlu0 %v21610_v55, %s10614_s9 }
 0x844   :  { %21609 = vst [vmem:[#allocation121_spill] sm:$0xff] %v17629_v38  ;;  %v17637_v25 = vsub.f32 %v6247_v12, %v17629_v38  ;;  %v7452_v58 = vand.u32 4294901760, %v7451_v61  ;;  %v17653_v12 = vsel %vm6072_vm11, %v6069_v11, %v21620_v43  ;;  %v21622_v61 = vld [vmem:[#allocation234_spill] sm:$0xff] }
 0x845   :  { %5874 = vrot.lane.b32.xlu1 %v21612_v41, %s10615_s17  ;;  %v5969_v0 = vpop.permute.xlu0 %5968  ;;  %21621 = vst [vmem:[#allocation61_spill] sm:$0xff] %v17653_v12  ;;  %v6887_v41 = vsel %vm6072_vm11, %v6865_v59, %v21622_v61  ;;  %v21626_v61 = vld [vmem:[#allocation245_spill] sm:$0xff] }
 0x846   :  { %21611 = vst [vmem:[#allocation2_spill] sm:$0xff] %v17637_v25  ;;  %7453 = vmatprep.mubr.f32.mxu1 %v7452_v58  ;;  %v19999_v40 = vand.u32 4294901760, %v17637_v25  ;;  %v6916_v58 = vsel %vm6089_vm7, %v17653_v12, %v21623_v44  ;;  %v6917_v42 = vsel %vm6089_vm7, %v6887_v41, %v21623_v44  ;;  %v6129_v44 = vsel %vm6123_vm12, %v6112_v49, %v21397_v45 }
 0x847   :  { %v5657_v53 = vpop.permute.xlu1 %5656  ;;  %5666 = vrot.lane.b32.xlu0 %v21588_v47, %s10613_s25  ;;  %v6948_v59 = vsel %vm6106_vm14, %v6916_v58, %v21624_v46  ;;  %v6949_v20 = vsel %vm6106_vm14, %v6917_v42, %v21624_v46  ;;  %v6264_v46 = vsel %vm1487_vm1, %v17612_v31, %v5919_v23  ;;  %v6146_v23 = vsel %vm6140_vm3, %v6129_v44, %v15871_v36 }
 0x848   :  { %v7457_v11 = vsub.f32 %v17637_v25, %v19999_v40  ;;  %v6980_v43 = vsel %vm6123_vm12, %v6948_v59, %v21625_v33  ;;  %v6981_v41 = vsel %vm6123_vm12, %v6949_v20, %v21626_v61  ;;  %v21629_v59 = vld [vmem:[#allocation249_spill] sm:$0xff]  ;;  %v21630_v61 = vld [vmem:[#allocation251_spill] sm:$0xff]  ;;  %v6280_v49 = vsel %vm21631_vm8, %v6264_v46, %v5969_v0  ;;  %v21784_v33 = vld [vmem:[#allocation136_spill] sm:$0xff] }
 0x849   :  { %5456 = vrot.lane.b32.xlu1 %v21592_v8, %s10606_s18  ;;  %v6019_v47 = vpop.permute.xlu0 %6018  ;;  %v7012_v58 = vsel %vm6140_vm3, %v6980_v43, %v21627_v24  ;;  %v7013_v42 = vsel %vm6140_vm3, %v6981_v41, %v21628_v10  ;;  %v21633_v41 = vld [vmem:[#allocation173_spill] sm:$0xff]  ;;  %vm21640_vm8 = vcmask 982016  }
 0x84a   :  { %v7458_v40 = vand.u32 4294901760, %v7457_v11  ;;  %v7044_v20 = vsel %vm6157_vm2, %v7012_v58, %v21629_v59  ;;  %v7045_v45 = vsel %vm6157_vm2, %v7013_v42, %v21630_v61  ;;  %v21632_v11 = vld [vmem:[#allocation256_spill] sm:$0xff]  ;;  %v6163_v61 = vsel %vm6157_vm2, %v6146_v23, %v21403_v21 }
 0x84b   :  { %v5707_v25 = vpop.permute.xlu1 %5706  ;;  %5716 = vrot.lane.b32.xlu0 %v21592_v8, %s10617_s21  ;;  %v7076_v43 = vsel %vm6174_vm0, %v7044_v20, %v21632_v11  ;;  %v7077_v10 = vsel %vm6174_vm0, %v7045_v45, %v21632_v11  ;;  %v6297_v8 = vsel %vm6291_vm9, %v6280_v49, %v6019_v47  ;;  %v6180_v47 = vsel %vm6174_vm0, %v6163_v61, %v5657_v53  ;;  %v21645_v61 = vld [vmem:[#allocation160_spill] sm:$0xff] }
 0x84c   :  { %7459 = vmatmul.mubr.f32.gmra.mrb[8].mxu1 %v7458_v40  ;;  %v7150_v46 = vrot.slane %v7076_v43, 1  ;;  %v7151_v20 = vrot.slane %v7077_v10, 1  ;;  %v6197_v45 = vsel %vm6191_vm13, %v6180_v47, %v5707_v25  ;;  %v21637_v43 = vld [vmem:[#allocation111_spill] sm:$0xff]  ;;  %v6096_v47 = vsel %vm6089_vm7, %v16939_v19, %v21645_v61 }
 0x84d   :  { %5978 = vrot.lane.b32.xlu1 %v21633_v41, %s10616_s13  ;;  %v7179_v58 = vpop.permute.xlu0 %7178  ;;  %v6113_v19 = vsel %vm6106_vm14, %v6096_v47, %v17627_v60  ;;  %v21657_v47 = vld [vmem:[#allocation252_spill] sm:$0xff] }
 0x84e   :  { %v7222_v42 = vsel %vm21634_vm4, %v6297_v8, %v7179_v58  ;;  %v7152_v53 = vsel %vm21639_vm10, %v7150_v46, %v7151_v20  ;;  %vm21648_vm4 = vcmask 80896   ;;  %vm21663_vm10 = vcmask 97280  }
 0x84f   :  { %v7256_v0 = vsel %vm7239_vm5, %v7222_v42, 0  ;;  %v5757_v40 = vpop.permute.xlu1 %5756  ;;  %5766 = vrot.lane.b32.xlu0 %v21578_v7, %s10620_s8 }
 0x850   :  { %v17709_v36 = vand.u32 4294901760, %v7256_v0  ;;  %v6214_v7 = vsel %vm6208_vm6, %v6197_v45, %v5757_v40  ;;  %v21646_v45 = vld [vmem:[#allocation55_spill] sm:$0xff] }
 0x851   :  { %6028 = vrot.lane.b32.xlu1 %v21615_v27, %s10618_s20  ;;  %v17714_v44 = vpop.permute.xlu0 %5866 }
 0x852   :  { %21635 = vst [vmem:[#allocation5_spill] sm:$0xff] %v17709_v36  ;;  %v17718_v49 = vsub.f32 %v7256_v0, %v17709_v36  ;;  %v21642_v0 = vld [vmem:[#allocation139_spill] sm:$0xff] }
 0x853   :  { %v5811_v11 = vpop.permute.xlu1 %5810  ;;  %5820 = vrot.lane.b32.xlu0 %v21637_v43, %s10621_s3  ;;  %v21649_v43 = vld [vmem:[#allocation242_spill] sm:$0xff] }
 0x854   :  { %21636 = vst [vmem:[#allocation58_spill] sm:$0xff] %v17718_v49  ;;  %v6231_v21 = vsel %vm21638_vm15, %v6214_v7, %v5811_v11  ;;  %v20004_v10 = vand.u32 4294901760, %v17718_v49  ;;  %v21647_v7 = vld [vmem:[#allocation117_spill] sm:$0xff]  ;;  %vm21651_vm15 = vmmov %vm21648_vm4 }
 0x855   :  { %v6248_v23 = vsel %vm21640_vm8, %v6231_v21, %v17612_v31  ;;  %7188 = vrot.lane.b32.xlu1 %v7152_v53, %s10619_s2  ;;  %v17729_v25 = vpop.permute.xlu0 %5448  ;;  %v21644_v31 = vld [vmem:[#allocation38_spill] sm:$0xff]  ;;  %v6070_v11 = vsel %vm21648_vm4, %v21647_v7, %v21646_v45  ;;  %v21650_v21 = vld [vmem:[#allocation129_spill] sm:$0xff]  ;;  %v21655_v45 = vld [vmem:[#allocation248_spill] sm:$0xff]  ;;  %vm21666_vm8 = vcmask 261120   ;;  %vm21670_vm4 = vcmask 900096  }
 0x856   :  { %v17731_v8 = vand.u32 4294901760, %v6248_v23  ;;  %v7466_v58 = vsub.f32 %v17718_v49, %v20004_v10  ;;  %v6866_v53 = vsel %vm21651_vm15, %v21650_v21, %v21649_v43  ;;  %v21656_v21 = vld [vmem:[#allocation250_spill] sm:$0xff]  ;;  %vm21671_vm15 = vcmask 1046528  }
 0x857   :  { %v5921_v42 = vpop.permute.xlu1 %5920  ;;  %5930 = vrot.lane.b32.xlu0 %v21642_v0, %s10614_s9 }
 0x858   :  { %21641 = vst [vmem:[#allocation84_spill] sm:$0xff] %v17731_v8  ;;  %v17739_v40 = vsub.f32 %v6248_v23, %v17731_v8  ;;  %v7467_v46 = vand.u32 4294901760, %v7466_v58  ;;  %v21652_v58 = vld [vmem:[#allocation80_spill] sm:$0xff]  ;;  %v21711_v8 = vld [vmem:[#allocation127_spill] sm:$0xff] }
 0x859   :  { %5876 = vrot.lane.b32.xlu1 %v21644_v31, %s10615_s17  ;;  %v5971_v20 = vpop.permute.xlu0 %5970  ;;  %v17755_v10 = vsel %vm6072_vm11, %v6070_v11, %v21652_v58  ;;  %v21654_v31 = vld [vmem:[#allocation247_spill] sm:$0xff] }
 0x85a   :  { %21643 = vst [vmem:[#allocation180_spill] sm:$0xff] %v17739_v40  ;;  %7468 = vmatprep.mubr.f32.mxu1 %v7467_v46  ;;  %v20007_v23 = vand.u32 4294901760, %v17739_v40  ;;  %21653 = vst [vmem:[#allocation181_spill] sm:$0xff] %v17755_v10  ;;  %v6888_v49 = vsel %vm6072_vm11, %v6866_v53, %v21654_v31  ;;  %v6918_v46 = vsel %vm6089_vm7, %v17755_v10, %v21655_v45  ;;  %v21658_v31 = vld [vmem:[#allocation62_spill] sm:$0xff] }
 0x85b   :  { %v5659_v61 = vpop.permute.xlu1 %5658  ;;  %5668 = vrot.lane.b32.xlu0 %v21610_v55, %s10613_s25  ;;  %v6919_v43 = vsel %vm6089_vm7, %v6888_v49, %v21655_v45  ;;  %v6950_v53 = vsel %vm6106_vm14, %v6918_v46, %v21656_v21  ;;  %v6130_v45 = vsel %vm6123_vm12, %v6113_v19, %v16009_v18 }
 0x85c   :  { %v7472_v11 = vsub.f32 %v17739_v40, %v20007_v23  ;;  %v6951_v60 = vsel %vm6106_vm14, %v6919_v43, %v21656_v21  ;;  %v6982_v58 = vsel %vm6123_vm12, %v6950_v53, %v21657_v47  ;;  %v21659_v40 = vld [vmem:[#allocation265_spill] sm:$0xff]  ;;  %v6265_v21 = vsel %vm1487_vm1, %v17714_v44, %v5921_v42 }
 0x85d   :  { %5458 = vrot.lane.b32.xlu1 %v21633_v41, %s10606_s18  ;;  %v6021_v55 = vpop.permute.xlu0 %6020  ;;  %v6983_v49 = vsel %vm6123_vm12, %v6951_v60, %v21658_v31  ;;  %v7014_v46 = vsel %vm6140_vm3, %v6982_v58, %v21659_v40  ;;  %v21661_v53 = vld [vmem:[#allocation113_spill] sm:$0xff]  ;;  %v21662_v31 = vld [vmem:[#allocation271_spill] sm:$0xff]  ;;  %v6281_v19 = vsel %vm21663_vm10, %v6265_v21, %v5971_v20  ;;  %v6147_v42 = vsel %vm6140_vm3, %v6130_v45, %v16025_v15 }
 0x85e   :  { %v7473_v23 = vand.u32 4294901760, %v7472_v11  ;;  %v7015_v43 = vsel %vm6140_vm3, %v6983_v49, %v21660_v54  ;;  %v7046_v60 = vsel %vm6157_vm2, %v7014_v46, %v21661_v53  ;;  %v21664_v11 = vld [vmem:[#allocation152_spill] sm:$0xff]  ;;  %v21665_v49 = vld [vmem:[#allocation22_spill] sm:$0xff]  ;;  %vm21672_vm10 = vcmask 982016   ;;  %v21742_v40 = vld [vmem:[#allocation11_spill] sm:$0xff] }
 0x85f   :  { %v5709_v26 = vpop.permute.xlu1 %5708  ;;  %5718 = vrot.lane.b32.xlu0 %v21633_v41, %s10617_s21  ;;  %v7047_v18 = vsel %vm6157_vm2, %v7015_v43, %v21662_v31  ;;  %v7078_v58 = vsel %vm6174_vm0, %v7046_v60, %v21664_v11  ;;  %v6298_v41 = vsel %vm6291_vm9, %v6281_v19, %v6021_v55  ;;  %v6164_v31 = vsel %vm6157_vm2, %v6147_v42, %v16031_v32 }
 0x860   :  { %7474 = vmatmul.mubr.f32.gmra.mrb[10].mxu1 %v7473_v23  ;;  %v7079_v54 = vsel %vm6174_vm0, %v7047_v18, %v21664_v11  ;;  %v7153_v21 = vrot.slane %v7078_v58, 1  ;;  %v6181_v55 = vsel %vm6174_vm0, %v6164_v31, %v5659_v61  ;;  %v21669_v58 = vld [vmem:[#allocation31_spill] sm:$0xff]  ;;  %v21678_v31 = vld [vmem:[#allocation114_spill] sm:$0xff] }
 0x861   :  { %5980 = vrot.lane.b32.xlu1 %v21665_v49, %s10616_s13  ;;  %v7181_v46 = vpop.permute.xlu0 %7180  ;;  %v7154_v60 = vrot.slane %v7079_v54, 1  ;;  %v6198_v18 = vsel %vm6191_vm13, %v6181_v55, %v5709_v26 }
 0x862   :  { %v7223_v43 = vsel %vm21666_vm8, %v6298_v41, %v7181_v46  ;;  %vm21677_vm8 = vcmask 80896  }
 0x863   :  { %v7259_v20 = vsel %vm7239_vm5, %v7223_v43, 0  ;;  %v5759_v23 = vpop.permute.xlu1 %5758  ;;  %5768 = vrot.lane.b32.xlu0 %v21615_v27, %s10620_s8  ;;  %v7155_v61 = vsel %vm21671_vm15, %v7153_v21, %v7154_v60  ;;  %v21676_v21 = vld [vmem:[#allocation33_spill] sm:$0xff]  ;;  %vm21690_vm15 = vcmask 97280  }
 0x864   :  { %v17811_v15 = vand.u32 4294901760, %v7259_v20  ;;  %v6215_v27 = vsel %vm6208_vm6, %v6198_v18, %v5759_v23  ;;  %v21675_v23 = vld [vmem:[#allocation14_spill] sm:$0xff] }
 0x865   :  { %6030 = vrot.lane.b32.xlu1 %v21647_v7, %s10618_s20  ;;  %v17816_v45 = vpop.permute.xlu0 %5868  ;;  %v6071_v60 = vsel %vm21677_vm8, %v21676_v21, %v21675_v23  ;;  %v21686_v23 = vld [vmem:[#allocation101_spill] sm:$0xff] }
 0x866   :  { %21667 = vst [vmem:[#allocation134_spill] sm:$0xff] %v17811_v15  ;;  %v17820_v19 = vsub.f32 %v7259_v20, %v17811_v15  ;;  %v21674_v20 = vld [vmem:[#allocation142_spill] sm:$0xff] }
 0x867   :  { %v5813_v11 = vpop.permute.xlu1 %5812  ;;  %5822 = vrot.lane.b32.xlu0 %v21669_v58, %s10621_s3 }
 0x868   :  { %21668 = vst [vmem:[#allocation91_spill] sm:$0xff] %v17820_v19  ;;  %v6232_v32 = vsel %vm21670_vm4, %v6215_v27, %v5813_v11  ;;  %v20014_v54 = vand.u32 4294901760, %v17820_v19  ;;  %vm21680_vm4 = vmmov %vm21677_vm8  ;;  %v21682_v11 = vld [vmem:[#allocation170_spill] sm:$0xff]  ;;  %vm21692_vm8 = vcmask 1046528  }
 0x869   :  { %v6249_v42 = vsel %vm21672_vm10, %v6232_v32, %v17714_v44  ;;  %7190 = vrot.lane.b32.xlu1 %v7155_v61, %s10619_s2  ;;  %v17831_v26 = vpop.permute.xlu0 %5450  ;;  %v21679_v44 = vld [vmem:[#allocation141_spill] sm:$0xff]  ;;  %v17851_v58 = vsel %vm6072_vm11, %v6071_v60, %v21682_v11  ;;  %vm21691_vm10 = vcmask 261120  }
 0x86a   :  { %v17833_v41 = vand.u32 4294901760, %v6249_v42  ;;  %v7481_v46 = vsub.f32 %v17820_v19, %v20014_v54  ;;  %v6867_v55 = vsel %vm21680_vm4, %v21679_v44, %v21678_v31  ;;  %21683 = vst [vmem:[#allocation95_spill] sm:$0xff] %v17851_v58  ;;  %v21684_v32 = vld [vmem:[#allocation125_spill] sm:$0xff]  ;;  %v21685_v54 = vld [vmem:[#allocation35_spill] sm:$0xff]  ;;  %v6920_v15 = vsel %vm6089_vm7, %v17851_v58, %v21686_v23  ;;  %v21741_v58 = vld [vmem:[#allocation264_spill] sm:$0xff] }
 0x86b   :  { %v5923_v43 = vpop.permute.xlu1 %5922  ;;  %5932 = vrot.lane.b32.xlu0 %v21674_v20, %s10614_s9  ;;  %v6889_v61 = vsel %vm6072_vm11, %v6867_v55, %v21684_v32  ;;  %v21687_v31 = vld [vmem:[#allocation277_spill] sm:$0xff]  ;;  %vm21700_vm4 = vcmask 900096   ;;  %v21747_v10 = vand.u32 4294901760, %v21741_v58 }
 0x86c   :  { %21673 = vst [vmem:[#allocation63_spill] sm:$0xff] %v17833_v41  ;;  %v17847_v18 = vsub.f32 %v6249_v42, %v17833_v41  ;;  %v7482_v27 = vand.u32 4294901760, %v7481_v46  ;;  %v6921_v42 = vsel %vm6089_vm7, %v6889_v61, %v21686_v23  ;;  %v6952_v60 = vsel %vm6106_vm14, %v6920_v15, %v21687_v31  ;;  %v21709_v41 = vld [vmem:[#allocation93_spill] sm:$0xff] }
 0x86d   :  { %5878 = vrot.lane.b32.xlu1 %v21685_v54, %s10615_s17  ;;  %v5973_v19 = vpop.permute.xlu0 %5972  ;;  %v6953_v44 = vsel %vm6106_vm14, %v6921_v42, %v21687_v31  ;;  %v21688_v54 = vld [vmem:[#allocation44_spill] sm:$0xff]  ;;  %v6984_v32 = vsel %vm6123_vm12, %v6952_v60, %v16709_v30 }
 0x86e   :  { %21681 = vst [vmem:[#allocation100_spill] sm:$0xff] %v17847_v18  ;;  %7483 = vmatprep.mubr.f32.mxu1 %v7482_v27  ;;  %v20019_v46 = vand.u32 4294901760, %v17847_v18  ;;  %v6097_v11 = vsel %vm6089_vm7, %v17014_v62, %v21688_v54  ;;  %v6985_v27 = vsel %vm6123_vm12, %v6953_v44, %v16727_v28  ;;  %v7016_v61 = vsel %vm6140_vm3, %v6984_v32, %v16768_v63  ;;  %v21689_v54 = vld [vmem:[#allocation177_spill] sm:$0xff] }
 0x86f   :  { %v5661_v55 = vpop.permute.xlu1 %5660  ;;  %5670 = vrot.lane.b32.xlu0 %v21642_v0, %s10613_s25  ;;  %v7017_v0 = vsel %vm6140_vm3, %v6985_v27, %v16776_v34  ;;  %v6114_v23 = vsel %vm6106_vm14, %v6097_v11, %v17729_v25  ;;  %v7048_v28 = vsel %vm6157_vm2, %v7016_v61, %v16804_v17  ;;  %v6266_v27 = vsel %vm1487_vm1, %v17816_v45, %v5923_v43 }
 0x870   :  { %v7487_v15 = vsub.f32 %v17847_v18, %v20019_v46  ;;  %v7049_v42 = vsel %vm6157_vm2, %v7017_v0, %v16816_v39  ;;  %v7080_v60 = vsel %vm6174_vm0, %v7048_v28, %v16832_v48  ;;  %v6131_v25 = vsel %vm6123_vm12, %v6114_v23, %v16062_v56  ;;  %v21708_v18 = vld [vmem:[#allocation207_spill] sm:$0xff] }
 0x871   :  { %5460 = vrot.lane.b32.xlu1 %v21665_v49, %s10606_s18  ;;  %v5711_v62 = vpop.permute.xlu0 %5710  ;;  %v7081_v34 = vsel %vm6174_vm0, %v7049_v42, %v16832_v48  ;;  %v7156_v11 = vrot.slane %v7080_v60, 1  ;;  %v6148_v48 = vsel %vm6140_vm3, %v6131_v25, %v16076_v35  ;;  %v6282_v56 = vsel %vm21690_vm15, %v6266_v27, %v5973_v19  ;;  %v21693_v19 = vld [vmem:[#allocation4_spill] sm:$0xff]  ;;  %v21694_v42 = vld [vmem:[#allocation254_spill] sm:$0xff]  ;;  %v21695_v60 = vld [vmem:[#allocation255_spill] sm:$0xff] }
 0x872   :  { %v7488_v31 = vand.u32 4294901760, %v7487_v15  ;;  %v7157_v32 = vrot.slane %v7081_v34, 1  ;;  %v6165_v0 = vsel %vm6157_vm2, %v6148_v48, %v16096_v57  ;;  %v20021_v34 = vand.u32 4294901760, %v21695_v60  ;;  %v21697_v57 = vld [vmem:[#allocation257_spill] sm:$0xff] }
 0x873   :  { %v17895_v44 = vpop.permute.xlu1 %5500  ;;  %5720 = vrot.lane.b32.xlu0 %v21665_v49, %s10617_s21  ;;  %v6182_v35 = vsel %vm6174_vm0, %v6165_v0, %v5661_v55  ;;  %v20020_v48 = vand.u32 4294901760, %v21697_v57  ;;  %vm21701_vm15 = vcmask 982016  }
 0x874   :  { %7489 = vmatmul.mubr.f32.gmra.mrb[12].mxu1 %v7488_v31  ;;  %v7158_v23 = vsel %vm21692_vm8, %v7156_v11, %v7157_v32  ;;  %v20022_v31 = vand.u32 4294901760, %v21694_v42  ;;  %v6199_v25 = vsel %vm6191_vm13, %v6182_v35, %v5711_v62 }
 0x875   :  { %5982 = vrot.lane.b32.xlu1 %v21689_v54, %s10616_s13  ;;  %v17903_v39 = vpop.permute.xlu0 %5554  ;;  %v7633_v0 = vsub.f32 %v21697_v57, %v20020_v48  ;;  %v21705_v48 = vld [vmem:[#allocation193_spill] sm:$0xff] }
 0x877   :  { %v6023_v15 = vpop.permute.xlu1 %6022  ;;  %5770 = vrot.lane.b32.xlu0 %v21647_v7, %s10620_s8 }
 0x878   :  { %v6299_v49 = vsel %vm6291_vm9, %v6282_v56, %v6023_v15  ;;  %v21698_v15 = vld [vmem:[#allocation258_spill] sm:$0xff]  ;;  %v7745_v56 = vsub.f32 %v21694_v42, %v20022_v31  ;;  %v7634_v31 = vand.u32 4294901760, %v7633_v0 }
 0x879   :  { %6032 = vrot.lane.b32.xlu1 %v21676_v21, %s10618_s20  ;;  %v7183_v61 = vpop.permute.xlu0 %7182  ;;  %v20023_v11 = vand.u32 4294901760, %v21698_v15 }
 0x87a   :  { %v7224_v43 = vsel %vm21691_vm10, %v6299_v49, %v7183_v61  ;;  %v7752_v49 = vsub.f32 %v21695_v60, %v20021_v34  ;;  %v5644_v34 = vrot.slane %v21705_v48, 3  ;;  %vm21706_vm10 = vcmask 80896  }
 0x87b   :  { %v7262_v28 = vsel %vm7239_vm5, %v7224_v43, 0  ;;  %v5761_v7 = vpop.permute.xlu1 %5760  ;;  %5824 = vrot.lane.b32.xlu0 %v21693_v19, %s10621_s3  ;;  %v7640_v43 = vsub.f32 %v21698_v15, %v20023_v11  ;;  %vm21710_vm8 = vmmov %vm21706_vm10 }
 0x87c   :  { %v17926_v27 = vand.u32 4294901760, %v7262_v28  ;;  %v6216_v55 = vsel %vm6208_vm6, %v6199_v25, %v5761_v7  ;;  %v21702_v7 = vld [vmem:[#allocation155_spill] sm:$0xff]  ;;  %v7746_v25 = vand.u32 4294901760, %v7745_v56 }
 0x87d   :  { %7192 = vrot.lane.b32.xlu1 %v7158_v23, %s10619_s2  ;;  %v5815_v32 = vpop.permute.xlu0 %5814 }
 0x87e   :  { %21696 = vst [vmem:[#allocation174_spill] sm:$0xff] %v17926_v27  ;;  %v17939_v62 = vsub.f32 %v7262_v28, %v17926_v27  ;;  %v6233_v61 = vsel %vm21700_vm4, %v6216_v55, %v5815_v32  ;;  %v21703_v28 = vld [vmem:[#allocation191_spill] sm:$0xff]  ;;  %v7753_v55 = vand.u32 4294901760, %v7752_v49  ;;  %v5905_v27 = vrot.slane %v21708_v18, 3 }
 0x87f   :  { %v6250_v23 = vsel %vm21701_vm15, %v6233_v61, %v17816_v45  ;;  %v17950_v35 = vpop.permute.xlu1 %5608  ;;  %5934 = vrot.lane.b32.xlu0 %v21702_v7, %s10614_s9  ;;  %v5643_v19 = vrot.slane %v21703_v28, 3  ;;  %v6869_v45 = vsel %vm21706_vm10, %v21705_v48, %v16741_v1  ;;  %v21707_v61 = vld [vmem:[#allocation37_spill] sm:$0xff]  ;;  %v7641_v49 = vand.u32 4294901760, %v7640_v43  ;;  %vm21722_vm15 = vmmov %vm21710_vm8 }
 0x880   :  { %21699 = vst [vmem:[#allocation89_spill] sm:$0xff] %v17939_v62  ;;  %v17955_v32 = vand.u32 4294901760, %v6250_v23  ;;  %v10207_v56 = vpack.c.bf16 %v7753_v55, %v7746_v25  ;;  %v6868_v46 = vsel %vm21710_vm8, %v21703_v28, %v21709_v41  ;;  %v6891_v0 = vsel %vm6072_vm11, %v6869_v45, %v21711_v8  ;;  %v21716_v41 = vld [vmem:[#allocation209_spill] sm:$0xff]  ;;  %v21717_v45 = vld [vmem:[#allocation99_spill] sm:$0xff] }
 0x881   :  { %5880 = vrot.lane.b32.xlu1 %v21707_v61, %s10615_s17  ;;  %v17964_v11 = vpop.permute.xlu0 %5924  ;;  %v21713_v1 = vand.u32 4294901760, %v17939_v62  ;;  %v21714_v61 = vld [vmem:[#allocation292_spill] sm:$0xff]  ;;  %v6923_v43 = vsel %vm6089_vm7, %v6891_v0, %v21715_v16  ;;  %v5906_v8 = vrot.slane %v21716_v41, 3  ;;  %vm21719_vm4 = vcmask 1044480  }
 0x882   :  { %21704 = vst [vmem:[#allocation175_spill] sm:$0xff] %v17955_v32  ;;  %v17973_v36 = vsub.f32 %v6250_v23, %v17955_v32  ;;  %v6890_v38 = vsel %vm6072_vm11, %v6868_v46, %v21714_v61  ;;  %10208 = vmatprep.subr.bf16.mxu1 %v10207_v56  ;;  %v10209_v23 = vpack.c.bf16 %v7641_v49, %v7634_v31  ;;  %v21718_v31 = vld [vmem:[#allocation128_spill] sm:$0xff]  ;;  %vm21724_vm10 = vmmov %vm21719_vm4 }
 0x883   :  { %v7496_v48 = vsub.f32 %v17939_v62, %v21713_v1  ;;  %v17982_v25 = vpop.permute.xlu1 %5870  ;;  %5672 = vrot.lane.b32.xlu0 %v21674_v20, %s10613_s25  ;;  %v6922_v55 = vsel %vm6089_vm7, %v6890_v38, %v21715_v16  ;;  %v6955_v1 = vsel %vm6106_vm14, %v6923_v43, %v21717_v45  ;;  %v18008_v49 = vsel %vm21719_vm4, %v5643_v19, %v5644_v34  ;;  %v21725_v34 = vld [vmem:[#allocation126_spill] sm:$0xff]  ;;  %vm21736_vm4 = vmmov %vm21710_vm8 }
 0x884   :  { %21712 = vst [vmem:[#allocation137_spill] sm:$0xff] %v17973_v36  ;;  %v20040_v46 = vand.u32 4294901760, %v17973_v36  ;;  %v6954_v0 = vsel %vm6106_vm14, %v6922_v55, %v21717_v45  ;;  %v6987_v61 = vsel %vm6123_vm12, %v6955_v1, %v16869_v2  ;;  %10210 = vmatpush3.bf16.msra.mxu1 %v10209_v23  ;;  %v21720_v2 = vld [vmem:[#allocation41_spill] sm:$0xff]  ;;  %v21723_v55 = vld [vmem:[#allocation132_spill] sm:$0xff] }
 0x885   :  { %v7497_v62 = vand.u32 4294901760, %v7496_v48  ;;  %5462 = vrot.lane.b32.xlu1 %v21689_v54, %s10606_s18  ;;  %v17998_v20 = vpop.permute.xlu0 %5662  ;;  %v6986_v16 = vsel %vm6123_vm12, %v6954_v0, %v21718_v31  ;;  %v7019_v38 = vsel %vm6140_vm3, %v6987_v61, %v16901_v5  ;;  %v21721_v48 = vld [vmem:[#allocation77_spill] sm:$0xff]  ;;  %v18022_v5 = vsel %vm21724_vm10, %v5905_v27, %v5906_v8  ;;  %v21726_v0 = vld [vmem:[#allocation36_spill] sm:$0xff] }
 0x886   :  { %v7502_v56 = vsub.f32 %v17973_v36, %v20040_v46  ;;  %v6064_v43 = vsel %vm21722_vm15, %v21721_v48, %v21720_v2  ;;  %v7018_v23 = vsel %vm6140_vm3, %v6986_v16, %v16875_v4  ;;  %v7051_v45 = vsel %vm6157_vm2, %v7019_v38, %v21723_v55  ;;  %v21727_v31 = vld [vmem:[#allocation16_spill] sm:$0xff]  ;;  %v21728_v4 = vld [vmem:[#allocation9_spill] sm:$0xff]  ;;  %v21735_v36 = vld [vmem:[#allocation151_spill] sm:$0xff] }
 0x887   :  { %7498 = vmatprep.mubr.f32.mxu1 %v7497_v62  ;;  %v18017_v1 = vpop.permute.xlu1 %5452  ;;  %5722 = vrot.lane.b32.xlu0 %v21689_v54, %s10617_s21  ;;  %v7050_v62 = vsel %vm6157_vm2, %v7018_v23, %v21725_v34  ;;  %v20043_v61 = vand.u32 4294901760, %v21726_v0  ;;  %v7083_v38 = vsel %vm6174_vm0, %v7051_v45, %v21728_v4  ;;  %v21729_v48 = vld [vmem:[#allocation188_spill] sm:$0xff]  ;;  %v21731_v55 = vld [vmem:[#allocation261_spill] sm:$0xff]  ;;  %v6871_v23 = vsel %vm21736_vm4, %v21716_v41, %v21735_v36  ;;  %vm21743_vm15 = vmmov %vm21736_vm4 }
 0x888   :  { %v7503_v19 = vand.u32 4294901760, %v7502_v56  ;;  %v7082_v16 = vsel %vm6174_vm0, %v7050_v62, %v21728_v4  ;;  %v21730_v27 = vld [vmem:[#allocation260_spill] sm:$0xff]  ;;  %v21732_v56 = vld [vmem:[#allocation13_spill] sm:$0xff]  ;;  %v21734_v62 = vand.u32 4294901760, %v21727_v31  ;;  %v7160_v17 = vrot.slane %v7083_v38, 1  ;;  %v21745_v38 = vld [vmem:[#allocation150_spill] sm:$0xff] }
 0x889   :  { %5984 = vrot.lane.b32.xlu1 %v21729_v48, %s10616_s13  ;;  %v18034_v54 = vpop.permute.xlu0 %5502  ;;  %v6081_v34 = vsel %vm6072_vm11, %v6064_v43, %v21732_v56  ;;  %v21733_v46 = vld [vmem:[#allocation140_spill] sm:$0xff]  ;;  %v7759_v45 = vsub.f32 %v21726_v0, %v20043_v61  ;;  %v21737_v8 = vld [vmem:[#allocation21_spill] sm:$0xff]  ;;  %v21739_v61 = vand.u32 4294901760, %v21731_v55  ;;  %vm21750_vm10 = vcmask 1046528  }
 0x88a   :  { %v6870_v2 = vsel %vm21710_vm8, %v21708_v18, %v21733_v46  ;;  %7504 = vmatmul.mubr.f32.gmra.mrb[14].mxu1 %v7503_v19  ;;  %v7766_v4 = vsub.f32 %v21727_v31, %v21734_v62  ;;  %v21738_v46 = vand.u32 4294901760, %v21730_v27  ;;  %v7159_v62 = vrot.slane %v7082_v16, 1 }
 0x88b   :  { %v6892_v43 = vsel %vm6072_vm11, %v6870_v2, %v21737_v8  ;;  %v5975_v56 = vpop.permute.xlu1 %5974  ;;  %5772 = vrot.lane.b32.xlu0 %v21676_v21, %s10620_s8  ;;  %v7654_v32 = vsub.f32 %v21731_v55, %v21739_v61  ;;  %v7760_v63 = vand.u32 4294901760, %v7759_v45  ;;  %v21740_v8 = vld [vmem:[#allocation263_spill] sm:$0xff]  ;;  %v21744_v61 = vld [vmem:[#allocation92_spill] sm:$0xff]  ;;  %vm21759_vm8 = vcmask 97280  }
 0x88c   :  { %v7647_v19 = vsub.f32 %v21730_v27, %v21738_v46  ;;  %v7767_v30 = vand.u32 4294901760, %v7766_v4  ;;  %v20051_v21 = vand.u32 4294901760, %v21740_v8  ;;  %v18069_v46 = vsel %vm21743_vm15, %v21520_v14, %v21742_v40  ;;  %v21748_v40 = vld [vmem:[#allocation266_spill] sm:$0xff] }
 0x88d   :  { %6034 = vrot.lane.b32.xlu1 %v21703_v28, %s10618_s20  ;;  %v6025_v36 = vpop.permute.xlu0 %6024  ;;  %v7655_v2 = vand.u32 4294901760, %v7654_v32  ;;  %v6893_v16 = vsel %vm6072_vm11, %v6871_v23, %v21744_v61  ;;  %v6924_v45 = vsel %vm6089_vm7, %v6892_v43, %v21745_v38  ;;  %v7780_v14 = vsub.f32 %v21741_v58, %v21747_v10  ;;  %v21749_v43 = vld [vmem:[#allocation144_spill] sm:$0xff] }
 0x88e   :  { %v7648_v41 = vand.u32 4294901760, %v7647_v19  ;;  %v10211_v4 = vpack.c.bf16 %v7767_v30, %v7760_v63  ;;  %v21746_v19 = vld [vmem:[#allocation115_spill] sm:$0xff]  ;;  %v7773_v53 = vsub.f32 %v21740_v8, %v20051_v21  ;;  %v20060_v59 = vand.u32 4294901760, %v21748_v40 }
 0x88f   :  { %v5713_v47 = vpop.permute.xlu1 %5712  ;;  %5826 = vrot.lane.b32.xlu0 %v21746_v19, %s10621_s3  ;;  %v6925_v23 = vsel %vm6089_vm7, %v6893_v16, %v21745_v38  ;;  %v6956_v30 = vsel %vm6106_vm14, %v6924_v45, %v21749_v43  ;;  %v7161_v63 = vsel %vm21750_vm10, %v7159_v62, %v7160_v17  ;;  %v7781_v21 = vand.u32 4294901760, %v7780_v14  ;;  %v21752_v38 = vld [vmem:[#allocation86_spill] sm:$0xff] }
 0x890   :  { %v10213_v32 = vpack.c.bf16 %v7655_v2, %v7648_v41  ;;  %10212 = vmatprep.subr.bf16.mxu1 %v10211_v4  ;;  %v21751_v41 = vld [vmem:[#allocation267_spill] sm:$0xff]  ;;  %v6957_v61 = vsel %vm6106_vm14, %v6925_v23, %v21749_v43  ;;  %v7774_v10 = vand.u32 4294901760, %v7773_v53  ;;  %v7661_v16 = vsub.f32 %v21748_v40, %v20060_v59 }
 0x891   :  { %v20059_v2 = vand.u32 4294901760, %v21751_v41  ;;  %7194 = vrot.lane.b32.xlu1 %v7161_v63, %s10619_s2  ;;  %v5763_v19 = vpop.permute.xlu0 %5762  ;;  %v6098_v45 = vsel %vm6089_vm7, %v6081_v34, %v21752_v38  ;;  %v6989_v17 = vsel %vm6123_vm12, %v6957_v61, %v16943_v3  ;;  %v6988_v62 = vsel %vm6123_vm12, %v6956_v30, %v16954_v51  ;;  %v21754_v30 = vld [vmem:[#allocation60_spill] sm:$0xff] }
 0x892   :  { %10214 = vmatpush3.bf16.msra.mxu1 %v10213_v32  ;;  %v7021_v53 = vsel %vm6140_vm3, %v6989_v17, %v16984_v13  ;;  %v21753_v32 = vld [vmem:[#allocation133_spill] sm:$0xff]  ;;  %v10215_v34 = vpack.c.bf16 %v7781_v21, %v7774_v10  ;;  %v7662_v3 = vand.u32 4294901760, %v7661_v16  ;;  %v6115_v51 = vsel %vm6106_vm14, %v6098_v45, %v17831_v26  ;;  %v21755_v61 = vld [vmem:[#allocation48_spill] sm:$0xff]  ;;  %v21758_v16 = vld [vmem:[#allocation270_spill] sm:$0xff] }
 0x893   :  { %v7668_v4 = vsub.f32 %v21751_v41, %v20059_v2  ;;  %v7020_v14 = vsel %vm6140_vm3, %v6988_v62, %v21753_v32  ;;  %v18109_v23 = vpop.permute.xlu1 %5556  ;;  %5936 = vrot.lane.b32.xlu0 %v18008_v49, %s10614_s9  ;;  %v20056_v63 = vand.u32 4294901760, %v21754_v30  ;;  %v20054_v38 = vand.u32 4294901760, %v21755_v61  ;;  %v21756_v62 = vld [vmem:[#allocation202_spill] sm:$0xff]  ;;  %v21757_v10 = vld [vmem:[#allocation269_spill] sm:$0xff] }
 0x894   :  { %v6132_v13 = vsel %vm6123_vm12, %v6115_v51, %v17895_v44  ;;  %v6267_v17 = vsel %vm1487_vm1, %v17982_v25, %v17964_v11  ;;  %10216 = vmatprep.subr.bf16.mxu1 %v10215_v34  ;;  %v20052_v26 = vand.u32 4294901760, %v21757_v10  ;;  %v20053_v45 = vand.u32 4294901760, %v21758_v16 }
 0x895   :  { %v7669_v43 = vand.u32 4294901760, %v7668_v4  ;;  %5882 = vrot.lane.b32.xlu1 %v21756_v62, %s10615_s17  ;;  %v18124_v21 = vpop.permute.xlu0 %5610  ;;  %v6283_v4 = vsel %vm21759_vm8, %v6267_v17, %v5975_v56  ;;  %v7787_v44 = vsub.f32 %v21754_v30, %v20056_v63  ;;  %v7794_v11 = vsub.f32 %v21755_v61, %v20054_v38  ;;  %v21761_v38 = vld [vmem:[#allocation118_spill] sm:$0xff]  ;;  %v21777_v63 = vld [vmem:[#allocation227_spill] sm:$0xff] }
 0x896   :  { %v6149_v51 = vsel %vm6140_vm3, %v6132_v13, %v17903_v39  ;;  %v6300_v34 = vsel %vm6291_vm9, %v6283_v4, %v6025_v36  ;;  %v7675_v56 = vsub.f32 %v21757_v10, %v20052_v26  ;;  %vm21760_vm4 = vcmask 261120  }
 0x897   :  { %v10217_v32 = vpack.c.bf16 %v7669_v43, %v7662_v3  ;;  %v7185_v62 = vpop.permute.xlu1 %7184  ;;  %5674 = vrot.lane.b32.xlu0 %v21702_v7, %s10613_s25  ;;  %v7682_v3 = vsub.f32 %v21758_v16, %v20053_v45  ;;  %v6166_v43 = vsel %vm6157_vm2, %v6149_v51, %v17950_v35  ;;  %v7788_v39 = vand.u32 4294901760, %v7787_v44 }
 0x898   :  { %v7225_v17 = vsel %vm21760_vm4, %v6300_v34, %v7185_v62  ;;  %v7795_v36 = vand.u32 4294901760, %v7794_v11  ;;  %v6183_v13 = vsel %vm6174_vm0, %v6166_v43, %v17998_v20  ;;  %v7676_v26 = vand.u32 4294901760, %v7675_v56  ;;  %v21763_v11 = vld [vmem:[#allocation7_spill] sm:$0xff]  ;;  %v21764_v34 = vld [vmem:[#allocation70_spill] sm:$0xff] }
 0x899   :  { %10218 = vmatpush3.bf16.msra.mxu1 %v10217_v32  ;;  %v7265_v7 = vsel %vm7239_vm5, %v7225_v17, 0  ;;  %5464 = vrot.lane.b32.xlu1 %v21729_v48, %s10606_s18  ;;  %v18154_v4 = vpop.permute.xlu0 %5872  ;;  %v7683_v45 = vand.u32 4294901760, %v7682_v3  ;;  %v7052_v35 = vsel %vm6157_vm2, %v7020_v14, %v21761_v38  ;;  %v6200_v51 = vsel %vm6191_vm13, %v6183_v13, %v5713_v47  ;;  %v21767_v38 = vld [vmem:[#allocation272_spill] sm:$0xff] }
 0x89a   :  { %v18159_v32 = vand.u32 4294901760, %v7265_v7  ;;  %v10219_v44 = vpack.c.bf16 %v7795_v36, %v7788_v39  ;;  %v7053_v20 = vsel %vm6157_vm2, %v7021_v53, %v21763_v11  ;;  %v7084_v62 = vsel %vm6174_vm0, %v7052_v35, %v21764_v34  ;;  %v21768_v39 = vld [vmem:[#allocation273_spill] sm:$0xff]  ;;  %v21770_v13 = vld [vmem:[#allocation204_spill] sm:$0xff] }
 0x89b   :  { %v6217_v43 = vsel %vm6208_vm6, %v6200_v51, %v5763_v19  ;;  %v5817_v17 = vpop.permute.xlu1 %5816  ;;  %5724 = vrot.lane.b32.xlu0 %v21729_v48, %s10617_s21  ;;  %v10221_v56 = vpack.c.bf16 %v7683_v45, %v7676_v26  ;;  %vm21766_vm15 = vcmask 900096   ;;  %v20055_v3 = vand.u32 4294901760, %v21767_v38  ;;  %v21771_v26 = vld [vmem:[#allocation274_spill] sm:$0xff]  ;;  %v21773_v51 = vld [vmem:[#allocation15_spill] sm:$0xff] }
 0x89c   :  { %21762 = vst [vmem:[#allocation176_spill] sm:$0xff] %v18159_v32  ;;  %v18169_v14 = vsub.f32 %v7265_v7, %v18159_v32  ;;  %v6234_v47 = vsel %vm21766_vm15, %v6217_v43, %v5817_v17  ;;  %10220 = vmatprep.subr.bf16.mxu1 %v10219_v44  ;;  %v20057_v53 = vand.u32 4294901760, %v21768_v39  ;;  %v7085_v36 = vsel %vm6174_vm0, %v7053_v20, %v21764_v34  ;;  %v21772_v7 = vld [vmem:[#allocation276_spill] sm:$0xff]  ;;  %v21780_v32 = vld [vmem:[#allocation229_spill] sm:$0xff] }
 0x89d   :  { %vm21769_vm10 = vcmask 982016   ;;  %5986 = vrot.lane.b32.xlu1 %v21770_v13, %s10616_s13  ;;  %v18180_v48 = vpop.permute.xlu0 %5454  ;;  %10222 = vmatpush3.bf16.msra.mxu1 %v10221_v56  ;;  %v20058_v45 = vand.u32 4294901760, %v21771_v26  ;;  %v20061_v35 = vand.u32 4294901760, %v21772_v7  ;;  %v18187_v44 = vsel %vm6072_vm11, %v18069_v46, %v21773_v51 }
 0x89e   :  { %21765 = vst [vmem:[#allocation82_spill] sm:$0xff] %v18169_v14  ;;  %v6251_v19 = vsel %vm21769_vm10, %v6234_v47, %v17982_v25  ;;  %v20066_v20 = vand.u32 4294901760, %v18169_v14  ;;  %v7801_v25 = vsub.f32 %v21767_v38, %v20055_v3  ;;  %v7162_v34 = vrot.slane %v7084_v62, 1  ;;  %v21776_v3 = vld [vmem:[#allocation112_spill] sm:$0xff] }
 0x89f   :  { %v18189_v11 = vand.u32 4294901760, %v6251_v19  ;;  %v18195_v43 = vpop.permute.xlu1 %5926  ;;  %5774 = vrot.lane.b32.xlu0 %v21703_v28, %s10620_s8  ;;  %v7808_v17 = vsub.f32 %v21768_v39, %v20057_v53  ;;  %v7689_v46 = vsub.f32 %v21771_v26, %v20058_v45  ;;  %v7696_v56 = vsub.f32 %v21772_v7, %v20061_v35 }
 0x8a0   :  { %v7163_v47 = vrot.slane %v7085_v36, 1  ;;  %v7511_v28 = vsub.f32 %v18169_v14, %v20066_v20  ;;  %v7802_v51 = vand.u32 4294901760, %v7801_v25  ;;  %vm21778_vm8 = vcmask 80896   ;;  %v21779_v36 = vld [vmem:[#allocation83_spill] sm:$0xff]  ;;  %v21783_v14 = vld [vmem:[#allocation172_spill] sm:$0xff] }
 0x8a1   :  { %21774 = vst [vmem:[#allocation178_spill] sm:$0xff] %v18189_v11  ;;  %v18209_v62 = vsub.f32 %v6251_v19, %v18189_v11  ;;  %v6872_v53 = vsel %vm21778_vm8, %v21777_v63, %v21776_v3  ;;  %6036 = vrot.lane.b32.xlu1 %v21708_v18, %s10618_s20  ;;  %v5977_v45 = vpop.permute.xlu0 %5976  ;;  %v7809_v2 = vand.u32 4294901760, %v7808_v17  ;;  %v7690_v59 = vand.u32 4294901760, %v7689_v46  ;;  %vm21781_vm4 = vmmov %vm21778_vm8  ;;  %v21782_v11 = vld [vmem:[#allocation149_spill] sm:$0xff] }
 0x8a2   :  { %v7697_v35 = vand.u32 4294901760, %v7696_v56  ;;  %v6873_v19 = vsel %vm21781_vm4, %v21780_v32, %v21779_v36  ;;  %v6894_v24 = vsel %vm6072_vm11, %v6872_v53, %v21782_v11  ;;  %v7512_v20 = vand.u32 4294901760, %v7511_v28  ;;  %v21785_v17 = vld [vmem:[#allocation197_spill] sm:$0xff]  ;;  %v21787_v11 = vld [vmem:[#allocation279_spill] sm:$0xff]  ;;  %v21788_v36 = vld [vmem:[#allocation280_spill] sm:$0xff] }
 0x8a3   :  { %21775 = vst [vmem:[#allocation179_spill] sm:$0xff] %v18209_v62  ;;  %v20070_v25 = vand.u32 4294901760, %v18209_v62  ;;  %v6895_v3 = vsel %vm6072_vm11, %v6873_v19, %v21783_v14  ;;  %v6926_v12 = vsel %vm6089_vm7, %v6894_v24, %v21784_v33  ;;  %v5665_v6 = vpop.permute.xlu1 %5664  ;;  %5828 = vrot.lane.b32.xlu0 %v21785_v17, %s10621_s3  ;;  %v10223_v46 = vpack.c.bf16 %v7809_v2, %v7802_v51  ;;  %v21789_v19 = vld [vmem:[#allocation148_spill] sm:$0xff]  ;;  %v21790_v2 = vld [vmem:[#allocation282_spill] sm:$0xff] }
 0x8a4   :  { %v10225_v56 = vpack.c.bf16 %v7697_v35, %v7690_v59  ;;  %7513 = vmatprep.mubr.f32.mxu1 %v7512_v20  ;;  %vm21786_vm15 = vcmask 1046528   ;;  %v20072_v28 = vand.u32 4294901760, %v21787_v11  ;;  %v20071_v14 = vand.u32 4294901760, %v21788_v36  ;;  %v21791_v20 = vld [vmem:[#allocation283_spill] sm:$0xff] }
 0x8a5   :  { %v7164_v32 = vsel %vm21786_vm15, %v7162_v34, %v7163_v47  ;;  %v7517_v53 = vsub.f32 %v18209_v62, %v20070_v25  ;;  %v6927_v24 = vsel %vm6089_vm7, %v6895_v3, %v21784_v33  ;;  %v6958_v37 = vsel %vm6106_vm14, %v6926_v12, %v21789_v19  ;;  %v5715_v59 = vpop.permute.xlu0 %5714  ;;  %10224 = vmatprep.subr.bf16.mxu1 %v10223_v46  ;;  %v21792_v3 = vld [vmem:[#allocation156_spill] sm:$0xff]  ;;  %v21793_v46 = vld [vmem:[#allocation123_spill] sm:$0xff]  ;;  %vm21807_vm4 = vmmov %vm21786_vm15 }
 0x8a6   :  { %7196 = vrot.lane.b32.xlu1 %v7164_v32, %s10619_s2  ;;  %v20075_v35 = vand.u32 4294901760, %v21790_v2  ;;  %v20077_v34 = vand.u32 4294901760, %v21791_v20  ;;  %v6959_v47 = vsel %vm6106_vm14, %v6927_v24, %v21789_v19  ;;  %10226 = vmatpush3.bf16.msra.mxu1 %v10225_v56  ;;  %v7815_v33 = vsub.f32 %v21787_v11, %v20072_v28  ;;  %v21794_v24 = vld [vmem:[#allocation167_spill] sm:$0xff]  ;;  %v21797_v28 = vld [vmem:[#allocation68_spill] sm:$0xff] }
 0x8a7   :  { %v7518_v51 = vand.u32 4294901760, %v7517_v53  ;;  %v7822_v12 = vsub.f32 %v21788_v36, %v20071_v14  ;;  %v6991_v17 = vsel %vm6123_vm12, %v6959_v47, %v21792_v3  ;;  %v6990_v32 = vsel %vm6123_vm12, %v6958_v37, %v21793_v46  ;;  %v18256_v25 = vpop.permute.xlu1 %5504  ;;  %5938 = vrot.lane.b32.xlu0 %v18022_v5, %s10614_s9  ;;  %v21795_v47 = vld [vmem:[#allocation24_spill] sm:$0xff]  ;;  %v21796_v14 = vld [vmem:[#allocation157_spill] sm:$0xff] }
 0x8a8   :  { %v7703_v56 = vsub.f32 %v21790_v2, %v20075_v35  ;;  %v7710_v53 = vsub.f32 %v21791_v20, %v20077_v34  ;;  %v7022_v19 = vsel %vm6140_vm3, %v6990_v32, %v21794_v24  ;;  %v7023_v3 = vsel %vm6140_vm3, %v6991_v17, %v21795_v47  ;;  %v21798_v35 = vld [vmem:[#allocation219_spill] sm:$0xff]  ;;  %v21799_v32 = vld [vmem:[#allocation169_spill] sm:$0xff] }
 0x8a9   :  { %7519 = vmatmul.mubr.f32.gmra.mrb[16].mxu1 %v7518_v51  ;;  %v7816_v37 = vand.u32 4294901760, %v7815_v33  ;;  %v7823_v46 = vand.u32 4294901760, %v7822_v12  ;;  %v7055_v5 = vsel %vm6157_vm2, %v7023_v3, %v21796_v14  ;;  %v7054_v62 = vsel %vm6157_vm2, %v7022_v19, %v21797_v28  ;;  %v18276_v2 = vpop.permute.xlu0 %5558  ;;  %v21800_v51 = vld [vmem:[#allocation45_spill] sm:$0xff] }
 0x8aa   :  { %5884 = vrot.lane.b32.xlu1 %v21798_v35, %s10615_s17  ;;  %v7704_v34 = vand.u32 4294901760, %v7703_v56  ;;  %v7711_v20 = vand.u32 4294901760, %v7710_v53  ;;  %v6099_v17 = vsel %vm6089_vm7, %v18187_v44, %v21799_v32  ;;  %v7086_v33 = vsel %vm6174_vm0, %v7054_v62, %v21800_v51  ;;  %v21801_v53 = vld [vmem:[#allocation221_spill] sm:$0xff]  ;;  %v21806_v32 = vld [vmem:[#allocation287_spill] sm:$0xff] }
 0x8ab   :  { %v7087_v14 = vsel %vm6174_vm0, %v7055_v5, %v21800_v51  ;;  %v10227_v12 = vpack.c.bf16 %v7823_v46, %v7816_v37  ;;  %v6116_v28 = vsel %vm6106_vm14, %v6099_v17, %v18017_v1  ;;  %v6268_v35 = vsel %vm1487_vm1, %v18154_v4, %v18195_v43  ;;  %v6027_v56 = vpop.permute.xlu1 %6026  ;;  %5988 = vrot.lane.b32.xlu0 %v21801_v53, %s10616_s13 }
 0x8ac   :  { %v10229_v24 = vpack.c.bf16 %v7711_v20, %v7704_v34  ;;  %v6133_v44 = vsel %vm6123_vm12, %v6116_v28, %v18034_v54  ;;  %vm21802_vm10 = vcmask 97280   ;;  %v7165_v19 = vrot.slane %v7086_v33, 1  ;;  %v21808_v33 = vld [vmem:[#allocation289_spill] sm:$0xff] }
 0x8ad   :  { %v6284_v62 = vsel %vm21802_vm10, %v6268_v35, %v5977_v45  ;;  %10228 = vmatprep.subr.bf16.mxu1 %v10227_v12  ;;  %v7166_v47 = vrot.slane %v7087_v14, 1  ;;  %v6150_v1 = vsel %vm6140_vm3, %v6133_v44, %v18109_v23  ;;  %v7187_v43 = vpop.permute.xlu0 %7186  ;;  %vm21803_vm8 = vcmask 261120   ;;  %v21809_v12 = vld [vmem:[#allocation290_spill] sm:$0xff] }
 0x8ae   :  { %v6301_v3 = vsel %vm6291_vm9, %v6284_v62, %v6027_v56  ;;  %5676 = vrot.lane.b32.xlu1 %v18008_v49, %s10613_s25  ;;  %10230 = vmatpush3.bf16.msra.mxu1 %v10229_v24  ;;  %v6167_v20 = vsel %vm6157_vm2, %v6150_v1, %v18124_v21  ;;  %v21805_v49 = vld [vmem:[#allocation285_spill] sm:$0xff]  ;;  %v20085_v17 = vand.u32 4294901760, %v21806_v32  ;;  %v20084_v14 = vand.u32 4294901760, %v21808_v33  ;;  %v21813_v62 = vld [vmem:[#allocation291_spill] sm:$0xff] }
 0x8af   :  { %v7226_v54 = vsel %vm21803_vm8, %v6301_v3, %v7187_v43  ;;  %v6184_v45 = vsel %vm6174_vm0, %v6167_v20, %v5665_v6  ;;  %v5765_v37 = vpop.permute.xlu1 %5764  ;;  %6038 = vrot.lane.b32.xlu0 %v21777_v63, %s10618_s20  ;;  %v20086_v5 = vand.u32 4294901760, %v21805_v49  ;;  %v7167_v51 = vsel %vm21807_vm4, %v7165_v19, %v7166_v47 }
 0x8b0   :  { %v7268_v34 = vsel %vm7239_vm5, %v7226_v54, 0  ;;  %v6201_v23 = vsel %vm6191_vm13, %v6184_v45, %v5715_v59  ;;  %v20080_v63 = vand.u32 4294901760, %v21809_v12  ;;  %vm21811_vm15 = vcmask 900096  }
 0x8b1   :  { %v18308_v46 = vand.u32 4294901760, %v7268_v34  ;;  %v6218_v21 = vsel %vm6208_vm6, %v6201_v23, %v5765_v37  ;;  %v5819_v6 = vpop.permute.xlu0 %5818  ;;  %v7829_v35 = vsub.f32 %v21805_v49, %v20086_v5  ;;  %vm21812_vm10 = vcmask 982016   ;;  %v21816_v23 = vld [vmem:[#allocation294_spill] sm:$0xff]  ;;  %v21822_v5 = vld [vmem:[#allocation161_spill] sm:$0xff]  ;;  %vm21825_vm4 = vmmov %vm21811_vm15 }
 0x8b2   :  { %5726 = vrot.lane.b32.xlu1 %v21770_v13, %s10617_s21  ;;  %v6235_v28 = vsel %vm21811_vm15, %v6218_v21, %v5819_v6  ;;  %v7836_v13 = vsub.f32 %v21806_v32, %v20085_v17  ;;  %v7717_v24 = vsub.f32 %v21808_v33, %v20084_v14  ;;  %v7724_v44 = vsub.f32 %v21809_v12, %v20080_v63  ;;  %vm21826_vm15 = vmmov %vm21812_vm10 }
 0x8b3   :  { %21804 = vst [vmem:[#allocation159_spill] sm:$0xff] %v18308_v46  ;;  %v18319_v59 = vsub.f32 %v7268_v34, %v18308_v46  ;;  %v6252_v56 = vsel %vm21812_vm10, %v6235_v28, %v18154_v4  ;;  %v5613_v53 = vpop.permute.xlu1 %5612  ;;  %7198 = vrot.lane.b32.xlu0 %v7167_v51, %s10619_s2  ;;  %v20079_v19 = vand.u32 4294901760, %v21813_v62  ;;  %v7830_v3 = vand.u32 4294901760, %v7829_v35  ;;  %v21817_v28 = vld [vmem:[#allocation296_spill] sm:$0xff] }
 0x8b4   :  { %v18338_v47 = vand.u32 4294901760, %v6252_v56  ;;  %v7837_v43 = vand.u32 4294901760, %v7836_v13  ;;  %v7718_v20 = vand.u32 4294901760, %v7717_v24  ;;  %v7725_v54 = vand.u32 4294901760, %v7724_v44 }
 0x8b5   :  { %21810 = vst [vmem:[#allocation182_spill] sm:$0xff] %v18319_v59  ;;  %v20081_v1 = vand.u32 4294901760, %v18319_v59  ;;  %v5929_v4 = vpop.permute.xlu0 %5928  ;;  %v7843_v45 = vsub.f32 %v21813_v62, %v20079_v19  ;;  %v20082_v21 = vand.u32 4294901760, %v21816_v23  ;;  %v20083_v35 = vand.u32 4294901760, %v21817_v28  ;;  %v21818_v19 = vld [vmem:[#allocation214_spill] sm:$0xff] }
 0x8b6   :  { %21814 = vst [vmem:[#allocation78_spill] sm:$0xff] %v18338_v47  ;;  %5776 = vrot.lane.b32.xlu1 %v21708_v18, %s10620_s8  ;;  %v18347_v34 = vsub.f32 %v6252_v56, %v18338_v47  ;;  %v10231_v51 = vpack.c.bf16 %v7837_v43, %v7830_v3  ;;  %v10233_v18 = vpack.c.bf16 %v7725_v54, %v7718_v20  ;;  %v21819_v43 = vld [vmem:[#allocation67_spill] sm:$0xff]  ;;  %vm21821_vm8 = vcmask 80896  }
 0x8b7   :  { %v7526_v37 = vsub.f32 %v18319_v59, %v20081_v1  ;;  %v5875_v6 = vpop.permute.xlu1 %5874  ;;  %v7844_v44 = vand.u32 4294901760, %v7843_v45  ;;  %v7850_v56 = vsub.f32 %v21816_v23, %v20082_v21  ;;  %v7731_v3 = vsub.f32 %v21817_v28, %v20083_v35  ;;  %v21820_v21 = vld [vmem:[#allocation56_spill] sm:$0xff] }
 0x8b8   :  { %21815 = vst [vmem:[#allocation185_spill] sm:$0xff] %v18347_v34  ;;  %v20087_v24 = vand.u32 4294901760, %v18347_v34  ;;  %10232 = vmatprep.subr.bf16.mxu1 %v10231_v51  ;;  %v20090_v20 = vand.u32 4294901760, %v21819_v43  ;;  %v10239_v54 = vpack.c.bf16 %v21695_v60, %v21694_v42  ;;  %v6066_v35 = vsel %vm21821_vm8, %v21550_v29, %v21820_v21 }
 0x8b9   :  { %v7527_v13 = vand.u32 4294901760, %v7526_v37  ;;  %v5667_v63 = vpop.permute.xlu0 %5666  ;;  %10234 = vmatpush3.bf16.msra.mxu1 %v10233_v18  ;;  %v7851_v37 = vand.u32 4294901760, %v7850_v56  ;;  %vm21829_vm10 = vcmask 261120  }
 0x8ba   :  { %5830 = vrot.lane.b32.xlu1 %v21818_v19, %s10621_s3  ;;  %v7532_v45 = vsub.f32 %v18347_v34, %v20087_v24  ;;  %v7732_v19 = vand.u32 4294901760, %v7731_v3  ;;  %v7738_v51 = vsub.f32 %v21819_v43, %v20090_v20  ;;  %v6083_v24 = vsel %vm6072_vm11, %v6066_v35, %v21822_v5  ;;  %v21823_v34 = vld [vmem:[#allocation10_spill] sm:$0xff] }
 0x8bb   :  { %7528 = vmatprep.mubr.f32.mxu1 %v7527_v13  ;;  %v5457_v1 = vpop.permute.xlu1 %5456  ;;  %v10235_v17 = vpack.c.bf16 %v7851_v37, %v7844_v44  ;;  %v6100_v3 = vsel %vm6089_vm7, %v6083_v24, %v21823_v34  ;;  %vm21824_vm11 = vcmask 97280   ;;  %v21849_v13 = vld [vmem:[#allocation236_spill] sm:$0xff] }
 0x8bc   :  { %v7533_v14 = vand.u32 4294901760, %v7532_v45  ;;  %v7739_v56 = vand.u32 4294901760, %v7738_v51  ;;  %v6117_v20 = vsel %vm6106_vm14, %v6100_v3, %v18180_v48  ;;  %vm21834_vm8 = vmmov %vm21824_vm11 }
 0x8bd   :  { %v5717_v18 = vpop.permute.xlu0 %5716  ;;  %10236 = vmatprep.subr.bf16.mxu1 %v10235_v17  ;;  %v6134_v21 = vsel %vm6123_vm12, %v6117_v20, %v18256_v25  ;;  %v6269_v25 = vsel %vm1487_vm1, %v5875_v6, %v5929_v4 }
 0x8be   :  { %7534 = vmatmul.mubr.f32.gmra.mrb[18].mxu1 %v7533_v14  ;;  %v10237_v29 = vpack.c.bf16 %v7739_v56, %v7732_v19  ;;  %v6151_v44 = vsel %vm6140_vm3, %v6134_v21, %v18276_v2 }
 0x8bf   :  { %v5979_v59 = vpop.permute.xlu1 %5978  ;;  %v6168_v34 = vsel %vm6157_vm2, %v6151_v44, %v5613_v53 }
 0x8c0   :  { %10238 = vmatpush3.bf16.msra.mxu1 %v10237_v29  ;;  %v6185_v17 = vsel %vm6174_vm0, %v6168_v34, %v5667_v63  ;;  %v6285_v37 = vsel %vm21824_vm11, %v6269_v25, %v5979_v59  ;;  %vm21835_vm11 = vmmov %vm21825_vm4 }
 0x8c1   :  { %v5767_v45 = vpop.permute.xlu0 %5766  ;;  %10240 = vmatprep.subr.bf16.mxu1 %v10239_v54  ;;  %v6202_v48 = vsel %vm6191_vm13, %v6185_v17, %v5717_v18 }
 0x8c2   :  { %v6219_v2 = vsel %vm6208_vm6, %v6202_v48, %v5767_v45  ;;  %v21848_v45 = vld [vmem:[#allocation235_spill] sm:$0xff] }
 0x8c3   :  { %v6029_v14 = vpop.permute.xlu1 %6028 }
 0x8c4   :  { %v6302_v54 = vsel %vm6291_vm9, %v6285_v37, %v6029_v14 }
 0x8c5   :  { %v9307_v24 = vpop.f32.mrb[0].mxu1  ;;  %v5821_v20 = vpop.permute.xlu0 %5820 }
 0x8c6   :  { %v6236_v19 = vsel %vm21825_vm4, %v6219_v2, %v5821_v20  ;;  %v9308_v53 = vpop.f32.mrb[1].mxu1  ;;  %vm21836_vm4 = vmmov %vm21826_vm15 }
 0x8c7   :  { %v6253_v63 = vsel %vm21826_vm15, %v6236_v19, %v5875_v6  ;;  %v7189_v51 = vpop.permute.xlu1 %7188  ;;  %v18400_v18 = vadd.f32 %v9308_v53, %v9307_v24  ;;  %v21832_v6 = vld [vmem:[#allocation25_spill] sm:$0xff]  ;;  %vm21838_vm15 = vmmov %vm21829_vm10 }
 0x8c8   :  { %v18402_v56 = vand.u32 4294901760, %v6253_v63  ;;  %v7227_v4 = vsel %vm21829_vm10, %v6302_v54, %v7189_v51  ;;  %v6101_v34 = vsel %vm6089_vm7, %v17422_v22, %v21832_v6  ;;  %vm21850_vm10 = vmmov %vm21834_vm8 }
 0x8c9   :  { %21827 = vst [vmem:[#allocation186_spill] sm:$0xff] %v18400_v18  ;;  %v7271_v3 = vsel %vm7239_vm5, %v7227_v4, 0  ;;  %v5931_v29 = vpop.permute.xlu0 %5930  ;;  %v6118_v25 = vsel %vm6106_vm14, %v6101_v34, %v5457_v1 }
 0x8ca   :  { %21828 = vst [vmem:[#allocation190_spill] sm:$0xff] %v18402_v56  ;;  %v18407_v21 = vsub.f32 %v6253_v63, %v18402_v56  ;;  %v18409_v59 = vand.u32 4294901760, %v7271_v3  ;;  %v6135_v22 = vsel %vm6123_vm12, %v6118_v25, %v21556_v52 }
 0x8cb   :  { %v5877_v44 = vpop.permute.xlu1 %5876  ;;  %v6152_v63 = vsel %vm6140_vm3, %v6135_v22, %v21559_v50 }
 0x8cc   :  { %21830 = vst [vmem:[#allocation192_spill] sm:$0xff] %v18407_v21  ;;  %21831 = vst [vmem:[#allocation194_spill] sm:$0xff] %v18409_v59  ;;  %v18417_v17 = vsub.f32 %v7271_v3, %v18409_v59  ;;  %v20093_v14 = vand.u32 4294901760, %v18407_v21  ;;  %v6169_v6 = vsel %vm6157_vm2, %v6152_v63, %v21561_v9 }
 0x8cd   :  { %v5669_v2 = vpop.permute.xlu0 %5668 }
 0x8ce   :  { %21833 = vst [vmem:[#allocation198_spill] sm:$0xff] %v18417_v17  ;;  %v20094_v24 = vand.u32 4294901760, %v18417_v17  ;;  %v7547_v37 = vsub.f32 %v18407_v21, %v20093_v14  ;;  %v6186_v34 = vsel %vm6174_vm0, %v6169_v6, %v5669_v2 }
 0x8cf   :  { %v5459_v20 = vpop.permute.xlu1 %5458 }
 0x8d0   :  { %v7541_v19 = vsub.f32 %v18417_v17, %v20094_v24  ;;  %v7548_v4 = vand.u32 4294901760, %v7547_v37  ;;  %v21846_v37 = vld [vmem:[#allocation283_spill] sm:$0xff] }
 0x8d1   :  { %v5719_v53 = vpop.permute.xlu0 %5718 }
 0x8d2   :  { %v7542_v1 = vand.u32 4294901760, %v7541_v19  ;;  %v6203_v14 = vsel %vm6191_vm13, %v6186_v34, %v5719_v53  ;;  %v6270_v19 = vsel %vm1487_vm1, %v5877_v44, %v5931_v29 }
 0x8d3   :  { %v5981_v51 = vpop.permute.xlu1 %5980 }
 0x8d4   :  { %7543 = vmatprep.mubr.f32.mxu1 %v7542_v1  ;;  %v6286_v1 = vsel %vm21834_vm8, %v6270_v19, %v5981_v51  ;;  %v21842_v19 = vld [vmem:[#allocation81_spill] sm:$0xff]  ;;  %vm21851_vm8 = vmmov %vm21835_vm11 }
 0x8d5   :  { %7549 = vmatmul.mubr.f32.gmra.mrb[20].mxu1 %v7548_v4  ;;  %v5769_v52 = vpop.permute.xlu0 %5768 }
 0x8d6   :  { %v6220_v50 = vsel %vm6208_vm6, %v6203_v14, %v5769_v52 }
 0x8d7   :  { %v6031_v25 = vpop.permute.xlu1 %6030 }
 0x8d8   :  { %v6303_v24 = vsel %vm6291_vm9, %v6286_v1, %v6031_v25  ;;  %v21841_v25 = vld [vmem:[#allocation46_spill] sm:$0xff] }
 0x8d9   :  { %v5823_v22 = vpop.permute.xlu0 %5822 }
 0x8da   :  { %v6237_v4 = vsel %vm21835_vm11, %v6220_v50, %v5823_v22  ;;  %vm21852_vm11 = vmmov %vm21836_vm4 }
 0x8db   :  { %v6254_v9 = vsel %vm21836_vm4, %v6237_v4, %v5877_v44  ;;  %v7191_v2 = vpop.permute.xlu1 %7190  ;;  %v6102_v44 = vsel %vm6089_vm7, %v21842_v19, %v21841_v25  ;;  %v21844_v25 = vld [vmem:[#allocation230_spill] sm:$0xff]  ;;  %vm21854_vm4 = vmmov %vm21838_vm15 }
 0x8dc   :  { %v18450_v63 = vand.u32 4294901760, %v6254_v9  ;;  %v7228_v53 = vsel %vm21838_vm15, %v6303_v24, %v7191_v2  ;;  %v6119_v22 = vsel %vm6106_vm14, %v6102_v44, %v5459_v20  ;;  %v21845_v44 = vld [vmem:[#allocation282_spill] sm:$0xff]  ;;  %vm21864_vm15 = vmmov %vm21850_vm10 }
 0x8dd   :  { %v7274_v14 = vsel %vm7239_vm5, %v7228_v53, 0  ;;  %v5933_v52 = vpop.permute.xlu0 %5932 }
 0x8de   :  { %21837 = vst [vmem:[#allocation200_spill] sm:$0xff] %v18450_v63  ;;  %v18457_v6 = vsub.f32 %v6254_v9, %v18450_v63  ;;  %v18459_v51 = vand.u32 4294901760, %v7274_v14 }
 0x8df   :  { %v5879_v34 = vpop.permute.xlu1 %5878 }
 0x8e0   :  { %21839 = vst [vmem:[#allocation6_spill] sm:$0xff] %v18457_v6  ;;  %21840 = vst [vmem:[#allocation162_spill] sm:$0xff] %v18459_v51  ;;  %v18465_v50 = vsub.f32 %v7274_v14, %v18459_v51  ;;  %v20095_v24 = vand.u32 4294901760, %v18457_v6  ;;  %v6136_v14 = vsel %vm6123_vm12, %v6119_v22, %v21844_v25 }
 0x8e1   :  { %v5671_v1 = vpop.permute.xlu0 %5670  ;;  %v6153_v35 = vsel %vm6140_vm3, %v6136_v14, %v21848_v45  ;;  %v6271_v45 = vsel %vm1487_vm1, %v5879_v34, %v5933_v52 }
 0x8e2   :  { %21843 = vst [vmem:[#allocation120_spill] sm:$0xff] %v18465_v50  ;;  %v20096_v9 = vand.u32 4294901760, %v18465_v50  ;;  %v7562_v29 = vsub.f32 %v18457_v6, %v20095_v24 }
 0x8e3   :  { %v5461_v2 = vpop.permute.xlu1 %5460  ;;  %v9310_v53 = vpop.f32.mrb[2].mxu1 }
 0x8e4   :  { %v9311_v19 = vpop.f32.mrb[3].mxu1  ;;  %v7556_v20 = vsub.f32 %v18465_v50, %v20096_v9  ;;  %v7563_v24 = vand.u32 4294901760, %v7562_v29  ;;  %v6170_v9 = vsel %vm6157_vm2, %v6153_v35, %v21849_v13 }
 0x8e5   :  { %v18482_v4 = vadd.f32 %v9311_v19, %v9310_v53  ;;  %v5721_v54 = vpop.permute.xlu0 %5720  ;;  %v6187_v3 = vsel %vm6174_vm0, %v6170_v9, %v5671_v1 }
 0x8e6   :  { %v7557_v48 = vand.u32 4294901760, %v7556_v20  ;;  %v6204_v19 = vsel %vm6191_vm13, %v6187_v3, %v5721_v54 }
 0x8e7   :  { %21847 = vst [vmem:[#allocation65_spill] sm:$0xff] %v18482_v4  ;;  %v5983_v5 = vpop.permute.xlu1 %5982  ;;  %v21862_v4 = vld [vmem:[#allocation244_spill] sm:$0xff] }
 0x8e8   :  { %7558 = vmatprep.mubr.f32.mxu1 %v7557_v48 }
 0x8e9   :  { %7564 = vmatmul.mubr.f32.gmra.mrb[22].mxu1 %v7563_v24  ;;  %v5771_v22 = vpop.permute.xlu0 %5770  ;;  %v6287_v24 = vsel %vm21850_vm10, %v6271_v45, %v5983_v5  ;;  %v21858_v45 = vld [vmem:[#allocation61_spill] sm:$0xff]  ;;  %vm21865_vm10 = vmmov %vm21851_vm8 }
 0x8ea   :  { %v6221_v48 = vsel %vm6208_vm6, %v6204_v19, %v5771_v22 }
 0x8eb   :  { %v6033_v53 = vpop.permute.xlu1 %6032 }
 0x8ec   :  { %v6304_v25 = vsel %vm6291_vm9, %v6287_v24, %v6033_v53  ;;  %v21857_v53 = vld [vmem:[#allocation79_spill] sm:$0xff] }
 0x8ed   :  { %v5825_v29 = vpop.permute.xlu0 %5824 }
 0x8ee   :  { %v6238_v14 = vsel %vm21851_vm8, %v6221_v48, %v5825_v29  ;;  %vm21866_vm8 = vmmov %vm21852_vm11 }
 0x8ef   :  { %v6255_v13 = vsel %vm21852_vm11, %v6238_v14, %v5879_v34  ;;  %v7193_v35 = vpop.permute.xlu1 %7192  ;;  %v6103_v34 = vsel %vm6089_vm7, %v21858_v45, %v21857_v53  ;;  %v21860_v53 = vld [vmem:[#allocation243_spill] sm:$0xff]  ;;  %vm21868_vm11 = vmmov %vm21854_vm4 }
 0x8f0   :  { %v18500_v1 = vand.u32 4294901760, %v6255_v13  ;;  %v7229_v54 = vsel %vm21854_vm4, %v6304_v25, %v7193_v35  ;;  %v6120_v24 = vsel %vm6106_vm14, %v6103_v34, %v5461_v2  ;;  %vm21878_vm4 = vmmov %vm21864_vm15 }
 0x8f1   :  { %v7277_v3 = vsel %vm7239_vm5, %v7229_v54, 0  ;;  %v5935_v9 = vpop.permute.xlu0 %5934 }
 0x8f2   :  { %21853 = vst [vmem:[#allocation66_spill] sm:$0xff] %v18500_v1  ;;  %v18507_v22 = vsub.f32 %v6255_v13, %v18500_v1  ;;  %v18509_v5 = vand.u32 4294901760, %v7277_v3 }
 0x8f3   :  { %v5881_v19 = vpop.permute.xlu1 %5880 }
 0x8f4   :  { %21855 = vst [vmem:[#allocation183_spill] sm:$0xff] %v18507_v22  ;;  %21856 = vst [vmem:[#allocation53_spill] sm:$0xff] %v18509_v5  ;;  %v18515_v48 = vsub.f32 %v7277_v3, %v18509_v5  ;;  %v20101_v25 = vand.u32 4294901760, %v18507_v22  ;;  %v6137_v3 = vsel %vm6123_vm12, %v6120_v24, %v21860_v53 }
 0x8f5   :  { %v5673_v14 = vpop.permute.xlu0 %5672  ;;  %v6154_v18 = vsel %vm6140_vm3, %v6137_v3, %v21862_v4 }
 0x8f6   :  { %21859 = vst [vmem:[#allocation184_spill] sm:$0xff] %v18515_v48  ;;  %v20106_v13 = vand.u32 4294901760, %v18515_v48  ;;  %v7577_v52 = vsub.f32 %v18507_v22, %v20101_v25  ;;  %v21863_v22 = vld [vmem:[#allocation249_spill] sm:$0xff] }
 0x8f7   :  { %v5463_v35 = vpop.permute.xlu1 %5462  ;;  %v9313_v54 = vpop.f32.mrb[4].mxu1  ;;  %v6171_v24 = vsel %vm6157_vm2, %v6154_v18, %v21863_v22 }
 0x8f8   :  { %v9314_v45 = vpop.f32.mrb[5].mxu1  ;;  %v7571_v20 = vsub.f32 %v18515_v48, %v20106_v13  ;;  %v7578_v50 = vand.u32 4294901760, %v7577_v52  ;;  %v6188_v53 = vsel %vm6174_vm0, %v6171_v24, %v5673_v14  ;;  %v21872_v24 = vld [vmem:[#allocation181_spill] sm:$0xff] }
 0x8f9   :  { %v18530_v29 = vadd.f32 %v9314_v45, %v9313_v54  ;;  %v5723_v2 = vpop.permute.xlu0 %5722  ;;  %v6272_v54 = vsel %vm1487_vm1, %v5881_v19, %v5935_v9 }
 0x8fa   :  { %v7572_v34 = vand.u32 4294901760, %v7571_v20  ;;  %v6205_v13 = vsel %vm6191_vm13, %v6188_v53, %v5723_v2 }
 0x8fb   :  { %21861 = vst [vmem:[#allocation168_spill] sm:$0xff] %v18530_v29  ;;  %v5985_v6 = vpop.permute.xlu1 %5984 }
 0x8fc   :  { %7573 = vmatprep.mubr.f32.mxu1 %v7572_v34  ;;  %v6288_v4 = vsel %vm21864_vm15, %v6272_v54, %v5985_v6  ;;  %vm21879_vm15 = vmmov %vm21865_vm10 }
 0x8fd   :  { %7579 = vmatmul.mubr.f32.gmra.mrb[24].mxu1 %v7578_v50  ;;  %v5773_v25 = vpop.permute.xlu0 %5772 }
 0x8fe   :  { %v6222_v20 = vsel %vm6208_vm6, %v6205_v13, %v5773_v25  ;;  %v21871_v13 = vld [vmem:[#allocation57_spill] sm:$0xff] }
 0x8ff   :  { %v6035_v21 = vpop.permute.xlu1 %6034 }
 0x900   :  { %v6305_v50 = vsel %vm6291_vm9, %v6288_v4, %v6035_v21  ;;  %v6104_v21 = vsel %vm6089_vm7, %v21872_v24, %v21871_v13 }
 0x901   :  { %v5827_v45 = vpop.permute.xlu0 %5826  ;;  %v6121_v54 = vsel %vm6106_vm14, %v6104_v21, %v5463_v35  ;;  %v21876_v21 = vld [vmem:[#allocation265_spill] sm:$0xff] }
 0x902   :  { %v6239_v52 = vsel %vm21865_vm10, %v6222_v20, %v5827_v45  ;;  %vm21880_vm10 = vmmov %vm21866_vm8 }
 0x903   :  { %v6256_v3 = vsel %vm21866_vm8, %v6239_v52, %v5881_v19  ;;  %v7195_v34 = vpop.permute.xlu1 %7194  ;;  %vm21882_vm8 = vmmov %vm21868_vm11 }
 0x904   :  { %v18544_v18 = vand.u32 4294901760, %v6256_v3  ;;  %v7230_v22 = vsel %vm21868_vm11, %v6305_v50, %v7195_v34 }
 0x905   :  { %v7280_v14 = vsel %vm7239_vm5, %v7230_v22, 0  ;;  %v5937_v2 = vpop.permute.xlu0 %5936 }
 0x906   :  { %21867 = vst [vmem:[#allocation187_spill] sm:$0xff] %v18544_v18  ;;  %v18549_v9 = vsub.f32 %v6256_v3, %v18544_v18  ;;  %v18551_v25 = vand.u32 4294901760, %v7280_v14  ;;  %v21874_v3 = vld [vmem:[#allocation252_spill] sm:$0xff] }
 0x907   :  { %v5883_v6 = vpop.permute.xlu1 %5882  ;;  %v6138_v34 = vsel %vm6123_vm12, %v6121_v54, %v21874_v3 }
 0x908   :  { %21869 = vst [vmem:[#allocation189_spill] sm:$0xff] %v18549_v9  ;;  %21870 = vst [vmem:[#allocation50_spill] sm:$0xff] %v18551_v25  ;;  %v18557_v19 = vsub.f32 %v7280_v14, %v18551_v25  ;;  %v20111_v53 = vand.u32 4294901760, %v18549_v9  ;;  %v6155_v29 = vsel %vm6140_vm3, %v6138_v34, %v21876_v21 }
 0x909   :  { %v5675_v20 = vpop.permute.xlu0 %5674 }
 0x90a   :  { %21873 = vst [vmem:[#allocation69_spill] sm:$0xff] %v18557_v19  ;;  %v20115_v45 = vand.u32 4294901760, %v18557_v19  ;;  %v7592_v50 = vsub.f32 %v18549_v9, %v20111_v53  ;;  %v21877_v9 = vld [vmem:[#allocation113_spill] sm:$0xff] }
 0x90b   :  { %v5465_v4 = vpop.permute.xlu1 %5464  ;;  %v9316_v52 = vpop.f32.mrb[6].mxu1  ;;  %v6172_v54 = vsel %vm6157_vm2, %v6155_v29, %v21877_v9 }
 0x90c   :  { %v9317_v22 = vpop.f32.mrb[7].mxu1  ;;  %v7586_v14 = vsub.f32 %v18557_v19, %v20115_v45  ;;  %v7593_v17 = vand.u32 4294901760, %v7592_v50  ;;  %v6189_v3 = vsel %vm6174_vm0, %v6172_v54, %v5675_v20  ;;  %v21886_v54 = vld [vmem:[#allocation59_spill] sm:$0xff] }
 0x90d   :  { %v18570_v13 = vadd.f32 %v9317_v22, %v9316_v52  ;;  %v5725_v35 = vpop.permute.xlu0 %5724  ;;  %v6273_v52 = vsel %vm1487_vm1, %v5883_v6, %v5937_v2 }
 0x90e   :  { %v7587_v24 = vand.u32 4294901760, %v7586_v14  ;;  %v6206_v45 = vsel %vm6191_vm13, %v6189_v3, %v5725_v35  ;;  %v21887_v3 = vld [vmem:[#allocation95_spill] sm:$0xff] }
 0x90f   :  { %21875 = vst [vmem:[#allocation195_spill] sm:$0xff] %v18570_v13  ;;  %v5987_v48 = vpop.permute.xlu1 %5986  ;;  %v21889_v13 = vld [vmem:[#allocation284_spill] sm:$0xff] }
 0x910   :  { %7588 = vmatprep.mubr.f32.mxu1 %v7587_v24  ;;  %v6289_v34 = vsel %vm21878_vm4, %v6273_v52, %v5987_v48  ;;  %v6105_v52 = vsel %vm6089_vm7, %v21887_v3, %v21886_v54  ;;  %vm21890_vm7 = vmmov %vm21878_vm4 }
 0x911   :  { %7594 = vmatmul.mubr.f32.gmra.mrb[26].mxu1 %v7593_v17  ;;  %v5775_v53 = vpop.permute.xlu0 %5774 }
 0x912   :  { %v6223_v22 = vsel %vm6208_vm6, %v6206_v45, %v5775_v53 }
 0x913   :  { %v6037_v60 = vpop.permute.xlu1 %6036 }
 0x914   :  { %v6306_v17 = vsel %vm6291_vm9, %v6289_v34, %v6037_v60 }
 0x915   :  { %v5829_v14 = vpop.permute.xlu0 %5828 }
 0x916   :  { %v6240_v50 = vsel %vm21879_vm15, %v6223_v22, %v5829_v14  ;;  %v6122_v14 = vsel %vm6106_vm14, %v6105_v52, %v5465_v4  ;;  %vm21892_vm14 = vmmov %vm21882_vm8 }
 0x917   :  { %v6257_v24 = vsel %vm21880_vm10, %v6240_v50, %v5883_v6  ;;  %v6139_v54 = vsel %vm6123_vm12, %v6122_v14, %v21889_v13  ;;  %v21893_v14 = vld [vmem:[#allocation131_spill] sm:$0xff]  ;;  %vm21897_vm12 = vmmov %vm21880_vm10 }
 0x918   :  { %v7197_v21 = vpop.permute.xlu1 %7196  ;;  %v18584_v29 = vand.u32 4294901760, %v6257_v24 }
 0x919   :  { %v7231_v9 = vsel %vm21882_vm8, %v6306_v17, %v7197_v21  ;;  %v5939_v35 = vpop.permute.xlu0 %5938 }
 0x91a   :  { %21881 = vst [vmem:[#allocation90_spill] sm:$0xff] %v18584_v29  ;;  %v7283_v20 = vsel %vm7239_vm5, %v7231_v9, 0  ;;  %v18589_v2 = vsub.f32 %v6257_v24, %v18584_v29 }
 0x91b   :  { %v18591_v53 = vand.u32 4294901760, %v7283_v20 }
 0x91c   :  { %21883 = vst [vmem:[#allocation196_spill] sm:$0xff] %v18589_v2  ;;  %v5885_v48 = vpop.permute.xlu1 %5884  ;;  %v20119_v60 = vand.u32 4294901760, %v18589_v2 }
 0x91d   :  { %21884 = vst [vmem:[#allocation165_spill] sm:$0xff] %v18591_v53  ;;  %v18594_v45 = vsub.f32 %v7283_v20, %v18591_v53  ;;  %v5989_v6 = vpop.permute.xlu0 %5988  ;;  %v6274_v4 = vsel %vm1487_vm1, %v5885_v48, %v5939_v35  ;;  %vm21896_vm1 = vmmov %vm21879_vm15 }
 0x91e   :  { %v7607_v17 = vsub.f32 %v18589_v2, %v20119_v60  ;;  %v6290_v42 = vsel %vm21890_vm7, %v6274_v4, %v5989_v6  ;;  %v21891_v60 = vld [vmem:[#allocation297_spill] sm:$0xff] }
 0x91f   :  { %21885 = vst [vmem:[#allocation27_spill] sm:$0xff] %v18594_v45  ;;  %v20124_v22 = vand.u32 4294901760, %v18594_v45  ;;  %v9319_v50 = vpop.f32.mrb[8].mxu1  ;;  %v6156_v2 = vsel %vm6140_vm3, %v6139_v54, %v21891_v60 }
 0x920   :  { %v5677_v34 = vpop.permute.xlu1 %5676  ;;  %v9320_v24 = vpop.f32.mrb[9].mxu1  ;;  %v7608_v19 = vand.u32 4294901760, %v7607_v17  ;;  %v6173_v35 = vsel %vm6157_vm2, %v6156_v2, %v21893_v14  ;;  %v21901_v14 = vld [vmem:[#allocation166_spill] sm:$0xff] }
 0x921   :  { %v7601_v21 = vsub.f32 %v18594_v45, %v20124_v22  ;;  %v18608_v9 = vadd.f32 %v9320_v24, %v9319_v50  ;;  %v6039_v20 = vpop.permute.xlu0 %6038  ;;  %v6190_v6 = vsel %vm6174_vm0, %v6173_v35, %v5677_v34  ;;  %v21902_v35 = vld [vmem:[#allocation42_spill] sm:$0xff] }
 0x922   :  { %v6307_v29 = vsel %vm6291_vm9, %v6290_v42, %v6039_v20 }
 0x923   :  { %21888 = vst [vmem:[#allocation201_spill] sm:$0xff] %v18608_v9  ;;  %v7602_v3 = vand.u32 4294901760, %v7601_v21  ;;  %v21927_v9 = vld [vmem:[#allocation63_spill] sm:$0xff] }
 0x924   :  { %v5727_v52 = vpop.permute.xlu1 %5726 }
 0x925   :  { %7603 = vmatprep.mubr.f32.mxu1 %v7602_v3  ;;  %v7199_v50 = vpop.permute.xlu0 %7198  ;;  %v6207_v17 = vsel %vm6191_vm13, %v6190_v6, %v5727_v52  ;;  %v21903_v6 = vpack.c.bf16 %v21698_v15, %v21697_v57 }
 0x926   :  { %7609 = vmatmul.mubr.f32.gmra.mrb[28].mxu1 %v7608_v19  ;;  %v7232_v24 = vsel %vm21892_vm14, %v6307_v29, %v7199_v50 }
 0x927   :  { %v7286_v22 = vsel %vm7239_vm5, %v7232_v24, 0 }
 0x928   :  { %v5777_v13 = vpop.permute.xlu1 %5776  ;;  %v18621_v21 = vand.u32 4294901760, %v7286_v22 }
 0x929   :  { %v6224_v42 = vsel %vm6208_vm6, %v6207_v17, %v5777_v13  ;;  %v21904_v17 = vld [vmem:[#allocation85_spill] sm:$0xff] }
 0x92a   :  { %21894 = vst [vmem:[#allocation203_spill] sm:$0xff] %v18621_v21  ;;  %v18626_v60 = vsub.f32 %v7286_v22, %v18621_v21 }
 0x92c   :  { %21895 = vst [vmem:[#allocation205_spill] sm:$0xff] %v18626_v60  ;;  %v5831_v19 = vpop.permute.xlu1 %5830  ;;  %v20126_v20 = vand.u32 4294901760, %v18626_v60 }
 0x92d   :  { %v6241_v29 = vsel %vm21896_vm1, %v6224_v42, %v5831_v19  ;;  %v21905_v42 = vpack.c.bf16 %v21727_v31, %v21726_v0  ;;  %v21906_v19 = vld [vmem:[#allocation74_spill] sm:$0xff] }
 0x92e   :  { %v6258_v54 = vsel %vm21897_vm12, %v6241_v29, %v5885_v48  ;;  %v7616_v2 = vsub.f32 %v18626_v60, %v20126_v20  ;;  %v21907_v29 = vld [vmem:[#allocation154_spill] sm:$0xff]  ;;  %v21918_v20 = vpack.c.bf16 %v21768_v39, %v21767_v38 }
 0x92f   :  { %v18632_v3 = vand.u32 4294901760, %v6258_v54 }
 0x930   :  { %v7617_v22 = vand.u32 4294901760, %v7616_v2  ;;  %v21909_v2 = vpack.c.bf16 %v21741_v58, %v21740_v8 }
 0x931   :  { %21898 = vst [vmem:[#allocation210_spill] sm:$0xff] %v18632_v3  ;;  %v18638_v34 = vsub.f32 %v6258_v54, %v18632_v3  ;;  %v21908_v54 = vpack.c.bf16 %v21731_v55, %v21730_v27 }
 0x932   :  { %7618 = vmatprep.mubr.f32.mxu1 %v7617_v22  ;;  %v21910_v22 = vld [vmem:[#allocation8_spill] sm:$0xff] }
 0x933   :  { %21899 = vst [vmem:[#allocation211_spill] sm:$0xff] %v18638_v34  ;;  %v20125_v4 = vand.u32 4294901760, %v18638_v34  ;;  %v9322_v52 = vpop.f32.mrb[10].mxu1 }
 0x934   :  { %v9323_v50 = vpop.f32.mrb[11].mxu1 }
 0x935   :  { %v7622_v24 = vsub.f32 %v18638_v34, %v20125_v4  ;;  %v18644_v48 = vadd.f32 %v9323_v50, %v9322_v52  ;;  %v21911_v52 = vld [vmem:[#allocation26_spill] sm:$0xff]  ;;  %v21912_v50 = vpack.c.bf16 %v21751_v41, %v21748_v40  ;;  %v21916_v4 = vld [vmem:[#allocation28_spill] sm:$0xff] }
 0x937   :  { %21900 = vst [vmem:[#allocation212_spill] sm:$0xff] %v18644_v48  ;;  %v7623_v13 = vand.u32 4294901760, %v7622_v24  ;;  %v21913_v24 = vpack.c.bf16 %v21755_v61, %v21754_v30  ;;  %v21920_v48 = vld [vmem:[#allocation5_spill] sm:$0xff] }
 0x939   :  { %7624 = vmatmul.mubr.f32.gmra.mrb[30].mxu1 %v7623_v13 }
 0x93a   :  { %7854 = vmatprep.mubr.f32.mxu1 %v21901_v14  ;;  %v21986_v14 = vld [vmem:[#allocation69_spill] sm:$0xff] }
 0x93d   :  { %7856 = vmatmul.mubr.f32.vlgmr.msra.gmra.mrb[32].mxu1 %v21902_v35  ;;  %v21983_v35 = vld [vmem:[#allocation184_spill] sm:$0xff] }
 0x93e   :  { %10242 = vmatpush3.bf16.msra.mxu1 %v21903_v6  ;;  %7861 = vmatprep.mubr.f32.mxu1 %v21904_v17 }
 0x93f   :  { %10244 = vmatprep.subr.bf16.mxu1 %v21905_v42  ;;  %v21914_v42 = vld [vmem:[#allocation153_spill] sm:$0xff] }
 0x941   :  { %7863 = vmatmul.mubr.f32.gmra.mrb[34].mxu1 %v21906_v19  ;;  %v21971_v19 = vld [vmem:[#allocation255_spill] sm:$0xff] }
 0x942   :  { %7868 = vmatprep.mubr.f32.mxu1 %v21907_v29  ;;  %10246 = vmatpush3.bf16.msra.mxu1 %v21908_v54 }
 0x943   :  { %10248 = vmatprep.subr.bf16.mxu1 %v21909_v2  ;;  %v21917_v2 = vpack.c.bf16 %v21758_v16, %v21757_v10 }
 0x945   :  { %7870 = vmatmul.mubr.f32.gmra.mrb[36].mxu1 %v21910_v22  ;;  %v21963_v22 = vld [vmem:[#allocation286_spill] sm:$0xff] }
 0x946   :  { %7875 = vmatprep.mubr.f32.mxu1 %v21911_v52  ;;  %10250 = vmatpush3.bf16.msra.mxu1 %v21912_v50  ;;  %v21919_v50 = vld [vmem:[#allocation121_spill] sm:$0xff] }
 0x947   :  { %10252 = vmatprep.subr.bf16.mxu1 %v21913_v24  ;;  %v9325_v13 = vpop.f32.mrb[12].mxu1  ;;  %v21921_v24 = vpack.c.bf16 %v21772_v7, %v21771_v26 }
 0x948   :  { %v9326_v6 = vpop.f32.mrb[13].mxu1 }
 0x949   :  { %7877 = vmatmul.mubr.f32.gmra.mrb[38].mxu1 %v21914_v42  ;;  %v18672_v54 = vadd.f32 %v9326_v6, %v9325_v13  ;;  %v21922_v13 = vpack.c.bf16 %v21788_v36, %v21787_v11  ;;  %v21923_v6 = vld [vmem:[#allocation84_spill] sm:$0xff]  ;;  %v21961_v42 = vld [vmem:[#allocation91_spill] sm:$0xff] }
 0x94a   :  { %7882 = vmatprep.mubr.f32.mxu1 %v21916_v4  ;;  %10254 = vmatpush3.bf16.msra.mxu1 %v21917_v2  ;;  %v21925_v2 = vpack.c.bf16 %v21846_v37, %v21845_v44  ;;  %v21960_v4 = vld [vmem:[#allocation180_spill] sm:$0xff] }
 0x94b   :  { %21915 = vst [vmem:[#allocation213_spill] sm:$0xff] %v18672_v54  ;;  %10256 = vmatprep.subr.bf16.mxu1 %v21918_v20  ;;  %v21924_v54 = vld [vmem:[#allocation134_spill] sm:$0xff]  ;;  %v21926_v20 = vpack.c.bf16 %v21806_v32, %v21805_v49 }
 0x94d   :  { %7884 = vmatmul.mubr.f32.gmra.mrb[40].mxu1 %v21919_v50 }
 0x94e   :  { %7889 = vmatprep.mubr.f32.mxu1 %v21920_v48  ;;  %10258 = vmatpush3.bf16.msra.mxu1 %v21921_v24  ;;  %v21928_v48 = vld [vmem:[#allocation174_spill] sm:$0xff]  ;;  %v21929_v24 = vpack.c.bf16 %v21809_v12, %v21808_v33 }
 0x94f   :  { %10260 = vmatprep.subr.bf16.mxu1 %v21922_v13  ;;  %v21930_v13 = vpack.c.bf16 %v21816_v23, %v21813_v62 }
 0x951   :  { %7891 = vmatmul.mubr.f32.gmra.mrb[42].mxu1 %v21923_v6  ;;  %v21932_v6 = vld [vmem:[#allocation176_spill] sm:$0xff] }
 0x952   :  { %7896 = vmatprep.mubr.f32.mxu1 %v21924_v54  ;;  %10262 = vmatpush3.bf16.msra.mxu1 %v21925_v2  ;;  %v21931_v54 = vld [vmem:[#allocation175_spill] sm:$0xff]  ;;  %v21933_v2 = vpack.c.bf16 %v21819_v43, %v21817_v28 }
 0x953   :  { %10264 = vmatprep.subr.bf16.mxu1 %v21926_v20  ;;  %v21934_v20 = vld [vmem:[#allocation253_spill] sm:$0xff] }
 0x955   :  { %7898 = vmatmul.mubr.f32.gmra.mrb[44].mxu1 %v21927_v9  ;;  %v21935_v9 = vld [vmem:[#allocation178_spill] sm:$0xff] }
 0x956   :  { %7903 = vmatprep.mubr.f32.mxu1 %v21928_v48  ;;  %10266 = vmatpush3.bf16.msra.mxu1 %v21929_v24 }
 0x957   :  { %10268 = vmatprep.subr.bf16.mxu1 %v21930_v13  ;;  %v21938_v13 = vld [vmem:[#allocation75_spill] sm:$0xff] }
 0x959   :  { %7905 = vmatmul.mubr.f32.gmra.mrb[46].mxu1 %v21931_v54  ;;  %v21959_v54 = vld [vmem:[#allocation278_spill] sm:$0xff] }
 0x95a   :  { %7910 = vmatprep.mubr.f32.mxu1 %v21932_v6  ;;  %10270 = vmatpush3.bf16.msra.mxu1 %v21933_v2  ;;  %v21958_v6 = vld [vmem:[#allocation275_spill] sm:$0xff] }
 0x95b   :  { %10272 = vmatprep.subr.bf16.mxu1 %v21934_v20 }
 0x95d   :  { %7912 = vmatmul.mubr.f32.gmra.mrb[48].mxu1 %v21935_v9  ;;  %v9328_v48 = vpop.f32.mrb[14].mxu1  ;;  %v21957_v9 = vld [vmem:[#allocation58_spill] sm:$0xff] }
 0x95e   :  { %7917 = vmatprep.mubr.f32.mxu1 %v18308_v46  ;;  %v9329_v24 = vpop.f32.mrb[15].mxu1  ;;  %v21956_v46 = vld [vmem:[#allocation2_spill] sm:$0xff] }
 0x95f   :  { %v18713_v50 = vadd.f32 %v9329_v24, %v9328_v48  ;;  %v21937_v48 = vld [vmem:[#allocation90_spill] sm:$0xff] }
 0x961   :  { %21936 = vst [vmem:[#allocation3_spill] sm:$0xff] %v18713_v50  ;;  %7919 = vmatmul.mubr.f32.gmra.mrb[50].mxu1 %v18338_v47  ;;  %v21939_v50 = vld [vmem:[#allocation76_spill] sm:$0xff]  ;;  %v21955_v47 = vld [vmem:[#allocation19_spill] sm:$0xff] }
 0x962   :  { %7924 = vmatprep.mubr.f32.mxu1 %v18409_v59  ;;  %v21954_v59 = vld [vmem:[#allocation268_spill] sm:$0xff] }
 0x965   :  { %7926 = vmatmul.mubr.f32.gmra.mrb[52].mxu1 %v18402_v56  ;;  %v21953_v56 = vld [vmem:[#allocation39_spill] sm:$0xff] }
 0x966   :  { %7931 = vmatprep.mubr.f32.mxu1 %v18459_v51  ;;  %v21949_v51 = vld [vmem:[#allocation164_spill] sm:$0xff] }
 0x969   :  { %7933 = vmatmul.mubr.f32.gmra.mrb[54].mxu1 %v18450_v63  ;;  %v21948_v63 = vld [vmem:[#allocation23_spill] sm:$0xff] }
 0x96a   :  { %7938 = vmatprep.mubr.f32.mxu1 %v18509_v5 }
 0x96d   :  { %7940 = vmatmul.mubr.f32.gmra.mrb[56].mxu1 %v18500_v1  ;;  %v21941_v1 = vld [vmem:[#allocation47_spill] sm:$0xff] }
 0x96e   :  { %7945 = vmatprep.mubr.f32.mxu1 %v18551_v25  ;;  %v21942_v25 = vld [vmem:[#allocation138_spill] sm:$0xff] }
 0x971   :  { %7947 = vmatmul.mubr.f32.gmra.mrb[58].mxu1 %v18544_v18  ;;  %v21943_v18 = vld [vmem:[#allocation103_spill] sm:$0xff] }
 0x972   :  { %7952 = vmatprep.mubr.f32.mxu1 %v18591_v53  ;;  %v21944_v53 = vld [vmem:[#allocation72_spill] sm:$0xff] }
 0x975   :  { %7954 = vmatmul.mubr.f32.gmra.mrb[60].mxu1 %v21937_v48  ;;  %v21945_v48 = vld [vmem:[#allocation71_spill] sm:$0xff] }
 0x976   :  { %7959 = vmatprep.mubr.f32.mxu1 %v18621_v21  ;;  %v21946_v21 = vld [vmem:[#allocation259_spill] sm:$0xff] }
 0x979   :  { %7961 = vmatmul.mubr.f32.gmra.mrb[62].mxu1 %v18632_v3  ;;  %v21947_v3 = vld [vmem:[#allocation262_spill] sm:$0xff] }
 0x97a   :  { %8096 = vmatprep.mubr.f32.mxu1 %v21938_v13 }
 0x97c   :  { %v9331_v2 = vpop.f32.mrb[16].mxu1 }
 0x97d   :  { %v9332_v24 = vpop.f32.mrb[17].mxu1  ;;  %8099 = vmatmul.mubr.f32.vlgmr.msra.gmra.mrb[64].mxu1 %v21939_v50 }
 0x97e   :  { %v18730_v5 = vadd.f32 %v9332_v24, %v9331_v2  ;;  %10274 = vmatpush3.bf16.msra.mxu1 %v21941_v1  ;;  %8105 = vmatprep.mubr.f32.mxu1 %v21942_v25  ;;  %v21950_v2 = vld [vmem:[#allocation64_spill] sm:$0xff]  ;;  %v21951_v24 = vld [vmem:[#allocation73_spill] sm:$0xff] }
 0x97f   :  { %10276 = vmatprep.subr.bf16.mxu1 %v21943_v18  ;;  %v21972_v18 = vand.u32 4294901760, %v21971_v19  ;;  %v21973_v1 = vld [vmem:[#allocation137_spill] sm:$0xff]  ;;  %v21982_v19 = vld [vmem:[#allocation6_spill] sm:$0xff] }
 0x980   :  { %21940 = vst [vmem:[#allocation49_spill] sm:$0xff] %v18730_v5  ;;  %v21952_v5 = vld [vmem:[#allocation145_spill] sm:$0xff] }
 0x981   :  { %8108 = vmatmul.mubr.f32.gmra.mrb[66].mxu1 %v21944_v53 }
 0x982   :  { %8114 = vmatprep.mubr.f32.mxu1 %v21945_v48  ;;  %10278 = vmatpush3.bf16.msra.mxu1 %v21946_v21  ;;  %v21967_v21 = vld [vmem:[#allocation288_spill] sm:$0xff] }
 0x983   :  { %10280 = vmatprep.subr.bf16.mxu1 %v21947_v3  ;;  %v21966_v3 = vld [vmem:[#allocation89_spill] sm:$0xff] }
 0x985   :  { %8117 = vmatmul.mubr.f32.gmra.mrb[68].mxu1 %v21948_v63 }
 0x986   :  { %8123 = vmatprep.mubr.f32.mxu1 %v21949_v51  ;;  %10282 = vmatpush3.bf16.msra.mxu1 %v21950_v2  ;;  %v21962_v2 = vld [vmem:[#allocation281_spill] sm:$0xff] }
 0x987   :  { %10284 = vmatprep.subr.bf16.mxu1 %v21951_v24 }
 0x989   :  { %8126 = vmatmul.mubr.f32.gmra.mrb[70].mxu1 %v21952_v5 }
 0x98a   :  { %8132 = vmatprep.mubr.f32.mxu1 %v21953_v56  ;;  %10286 = vmatpush3.bf16.msra.mxu1 %v21954_v59 }
 0x98b   :  { %10288 = vmatprep.subr.bf16.mxu1 %v21955_v47  ;;  %v21965_v47 = vld [vmem:[#allocation100_spill] sm:$0xff] }
 0x98d   :  { %8135 = vmatmul.mubr.f32.gmra.mrb[72].mxu1 %v21956_v46 }
 0x98e   :  { %8141 = vmatprep.mubr.f32.mxu1 %v21957_v9  ;;  %10290 = vmatpush3.bf16.msra.mxu1 %v21958_v6  ;;  %v21968_v6 = vld [vmem:[#allocation293_spill] sm:$0xff] }
 0x98f   :  { %10292 = vmatprep.subr.bf16.mxu1 %v21959_v54  ;;  %v21969_v54 = vld [vmem:[#allocation254_spill] sm:$0xff] }
 0x990   :  { %v21970_v29 = vand.u32 4294901760, %v21969_v54  ;;  %v21981_v54 = vld [vmem:[#allocation120_spill] sm:$0xff] }
 0x991   :  { %8144 = vmatmul.mubr.f32.gmra.mrb[74].mxu1 %v21960_v4  ;;  %v9334_v24 = vpop.f32.mrb[18].mxu1 }
 0x992   :  { %8150 = vmatprep.mubr.f32.mxu1 %v21961_v42  ;;  %10294 = vmatpush3.bf16.msra.mxu1 %v21962_v2  ;;  %v9335_v52 = vpop.f32.mrb[19].mxu1  ;;  %v10303_v17 = vpack.c.bf16 %v21972_v18, %v21970_v29  ;;  %v21974_v2 = vld [vmem:[#allocation82_spill] sm:$0xff] }
 0x993   :  { %10296 = vmatprep.subr.bf16.mxu1 %v21963_v22  ;;  %v18755_v59 = vadd.f32 %v9335_v52, %v9334_v24  ;;  %v21975_v22 = vld [vmem:[#allocation295_spill] sm:$0xff]  ;;  %v21977_v24 = vld [vmem:[#allocation182_spill] sm:$0xff] }
 0x994   :  { %v21976_v52 = vld [vmem:[#allocation179_spill] sm:$0xff] }
 0x995   :  { %21964 = vst [vmem:[#allocation143_spill] sm:$0xff] %v18755_v59  ;;  %8153 = vmatmul.mubr.f32.gmra.mrb[76].mxu1 %v21965_v47  ;;  %v21978_v59 = vld [vmem:[#allocation185_spill] sm:$0xff] }
 0x996   :  { %8159 = vmatprep.mubr.f32.mxu1 %v21966_v3  ;;  %10298 = vmatpush3.bf16.msra.mxu1 %v21967_v21  ;;  %v21979_v21 = vld [vmem:[#allocation198_spill] sm:$0xff] }
 0x997   :  { %10300 = vmatprep.subr.bf16.mxu1 %v21968_v6  ;;  %v21980_v6 = vld [vmem:[#allocation192_spill] sm:$0xff] }
 0x999   :  { %8162 = vmatmul.mubr.f32.gmra.mrb[78].mxu1 %v21973_v1 }
 0x99a   :  { %8168 = vmatprep.mubr.f32.mxu1 %v21974_v2  ;;  %10302 = vmatpush3.bf16.msra.mxu1 %v21975_v22 }
 0x99b   :  { %10304 = vmatprep.subr.bf16.mxu1 %v10303_v17  ;;  %v21985_v17 = vld [vmem:[#allocation183_spill] sm:$0xff] }
 0x99d   :  { %8171 = vmatmul.mubr.f32.gmra.mrb[80].mxu1 %v21976_v52 }
 0x99e   :  { %8177 = vmatprep.mubr.f32.mxu1 %v21977_v24  ;;  %v21987_v24 = vld [vmem:[#allocation189_spill] sm:$0xff] }
 0x9a1   :  { %8180 = vmatmul.mubr.f32.gmra.mrb[82].mxu1 %v21978_v59 }
 0x9a2   :  { %8186 = vmatprep.mubr.f32.mxu1 %v21979_v21  ;;  %v21988_v21 = vld [vmem:[#allocation196_spill] sm:$0xff] }
 0x9a5   :  { %8189 = vmatmul.mubr.f32.gmra.mrb[84].mxu1 %v21980_v6 }
 0x9a6   :  { %8195 = vmatprep.mubr.f32.mxu1 %v21981_v54 }
 0x9a8   :  { %v9337_v18 = vpop.f32.mrb[20].mxu1 }
 0x9a9   :  { %8198 = vmatmul.mubr.f32.gmra.mrb[86].mxu1 %v21982_v19  ;;  %v9338_v29 = vpop.f32.mrb[21].mxu1  ;;  %v21989_v19 = vand.u32 4294901760, %v21938_v13  ;;  %v21996_v13 = vand.u32 4294901760, %v21730_v27  ;;  %v22002_v27 = vand.u32 4294901760, %v21748_v40  ;;  %v22009_v40 = vand.u32 4294901760, %v21758_v16 }
 0x9aa   :  { %8204 = vmatprep.mubr.f32.mxu1 %v21983_v35  ;;  %v18776_v22 = vadd.f32 %v9338_v29, %v9337_v18  ;;  %v21990_v18 = vand.u32 4294901760, %v21697_v57  ;;  %v21991_v29 = vand.u32 4294901760, %v21698_v15  ;;  %v21997_v57 = vand.u32 4294901760, %v21731_v55 }
 0x9ab   :  { %v22003_v55 = vand.u32 4294901760, %v21751_v41  ;;  %v22010_v41 = vand.u32 4294901760, %v21767_v38  ;;  %v22016_v16 = vand.u32 4294901760, %v21787_v11  ;;  %v22017_v38 = vand.u32 4294901760, %v21788_v36 }
 0x9ac   :  { %21984 = vst [vmem:[#allocation88_spill] sm:$0xff] %v18776_v22  ;;  %v10305_v22 = vpack.c.bf16 %v21991_v29, %v21990_v18  ;;  %v10309_v15 = vpack.c.bf16 %v21997_v57, %v21996_v13  ;;  %v22023_v11 = vand.u32 4294901760, %v21806_v32  ;;  %v22024_v13 = vand.u32 4294901760, %v21960_v4 }
 0x9ad   :  { %8207 = vmatmul.mubr.f32.gmra.mrb[88].mxu1 %v21985_v17  ;;  %v22029_v32 = vand.u32 4294901760, %v21816_v23  ;;  %v22030_v4 = vand.u32 4294901760, %v21965_v47  ;;  %v22036_v47 = vand.u32 4294901760, %v21976_v52  ;;  %v22037_v23 = vld [vmem:[#allocation182_spill] sm:$0xff] }
 0x9ae   :  { %8213 = vmatprep.mubr.f32.mxu1 %v21986_v14  ;;  %v21992_v14 = vand.u32 4294901760, %v21726_v0  ;;  %v21998_v0 = vand.u32 4294901760, %v21740_v8  ;;  %v22005_v8 = vand.u32 4294901760, %v21755_v61  ;;  %v22012_v61 = vand.u32 4294901760, %v21952_v5  ;;  %v22044_v52 = vld [vmem:[#allocation6_spill] sm:$0xff] }
 0x9af   :  { %v22019_v5 = vand.u32 4294901760, %v21957_v9  ;;  %v22025_v9 = vand.u32 4294901760, %v21961_v42  ;;  %v22031_v42 = vand.u32 4294901760, %v21966_v3  ;;  %v22038_v3 = vand.u32 4294901760, %v22037_v23  ;;  %v22085_v23 = vld [vmem:[#allocation281_spill] sm:$0xff] }
 0x9b1   :  { %8216 = vmatmul.mubr.f32.gmra.mrb[90].mxu1 %v21987_v24  ;;  %v21993_v24 = vand.u32 4294901760, %v21727_v31  ;;  %v21999_v31 = vand.u32 4294901760, %v21741_v58  ;;  %v22006_v58 = vand.u32 4294901760, %v21948_v63  ;;  %v22013_v63 = vand.u32 4294901760, %v21953_v56 }
 0x9b2   :  { %8222 = vmatprep.mubr.f32.mxu1 %v18594_v45  ;;  %v22020_v56 = vand.u32 4294901760, %v21845_v44  ;;  %v22026_v44 = vand.u32 4294901760, %v21808_v33  ;;  %v22032_v33 = vand.u32 4294901760, %v21817_v28  ;;  %v22039_v28 = vand.u32 4294901760, %v21978_v59  ;;  %v22047_v59 = vld [vmem:[#allocation183_spill] sm:$0xff] }
 0x9b3   :  { %v10307_v17 = vpack.c.bf16 %v21993_v24, %v21992_v14  ;;  %v10311_v14 = vpack.c.bf16 %v21999_v31, %v21998_v0 }
 0x9b5   :  { %8225 = vmatmul.mubr.f32.gmra.mrb[92].mxu1 %v21988_v21  ;;  %v21994_v21 = vand.u32 4294901760, %v21939_v50 }
 0x9b6   :  { %8231 = vmatprep.mubr.f32.mxu1 %v18626_v60 }
 0x9b9   :  { %8234 = vmatmul.mubr.f32.gmra.mrb[94].mxu1 %v18638_v34  ;;  %v21995_v34 = vand.u32 4294901760, %v21942_v25  ;;  %v10313_v25 = vpack.c.bf16 %v22003_v55, %v22002_v27  ;;  %v22043_v27 = vand.u32 4294901760, %v21981_v54  ;;  %v22045_v55 = vand.u32 4294901760, %v22044_v52  ;;  %v22089_v52 = vld [vmem:[#allocation174_spill] sm:$0xff] }
 0x9ba   :  { %8338 = vmatprep.mubr.f32.mxu1 %v21989_v19 }
 0x9bc   :  { %v9340_v45 = vpop.f32.mrb[22].mxu1 }
 0x9bd   :  { %8342 = vmatmul.mubr.f32.vlgmr.msra.gmra.mrb[96].mxu1 %v21994_v21  ;;  %v9341_v60 = vpop.f32.mrb[23].mxu1  ;;  %v22000_v21 = vand.u32 4294901760, %v21944_v53  ;;  %v22007_v53 = vand.u32 4294901760, %v21949_v51  ;;  %v22014_v51 = vand.u32 4294901760, %v21771_v26  ;;  %v22021_v26 = vand.u32 4294901760, %v21846_v37 }
 0x9be   :  { %10306 = vmatpush3.bf16.msra.mxu1 %v10305_v22  ;;  %8349 = vmatprep.mubr.f32.mxu1 %v21995_v34  ;;  %v18803_v19 = vadd.f32 %v9341_v60, %v9340_v45  ;;  %v22001_v22 = vand.u32 4294901760, %v21945_v48  ;;  %v22004_v45 = vand.u32 4294901760, %v21754_v30  ;;  %v22008_v34 = vand.u32 4294901760, %v21757_v10 }
 0x9bf   :  { %10308 = vmatprep.subr.bf16.mxu1 %v10307_v17  ;;  %v22011_v30 = vand.u32 4294901760, %v21768_v39  ;;  %v22015_v10 = vand.u32 4294901760, %v21772_v7  ;;  %v10323_v17 = vpack.c.bf16 %v22017_v38, %v22016_v16  ;;  %v22018_v39 = vand.u32 4294901760, %v21956_v46  ;;  %v22064_v16 = vld [vmem:[#allocation85_spill] sm:$0xff]  ;;  %v22065_v38 = vld [vmem:[#allocation103_spill] sm:$0xff] }
 0x9c0   :  { %v10315_v60 = vpack.c.bf16 %v22005_v8, %v22004_v45  ;;  %v10317_v50 = vpack.c.bf16 %v22009_v40, %v22008_v34  ;;  %v10325_v18 = vpack.c.bf16 %v22021_v26, %v22020_v56  ;;  %v22022_v7 = vand.u32 4294901760, %v21805_v49  ;;  %v22049_v8 = vld [vmem:[#allocation69_spill] sm:$0xff]  ;;  %v22055_v34 = vld [vmem:[#allocation196_spill] sm:$0xff]  ;;  %v22069_v56 = vld [vmem:[#allocation262_spill] sm:$0xff] }
 0x9c1   :  { %8353 = vmatmul.mubr.f32.gmra.mrb[98].mxu1 %v22000_v21  ;;  %v10319_v48 = vpack.c.bf16 %v22011_v30, %v22010_v41  ;;  %v10321_v24 = vpack.c.bf16 %v22015_v10, %v22014_v51  ;;  %v22027_v37 = vand.u32 4294901760, %v21809_v12  ;;  %v22028_v49 = vand.u32 4294901760, %v21813_v62  ;;  %v22059_v30 = vld [vmem:[#allocation211_spill] sm:$0xff]  ;;  %v22062_v10 = vld [vmem:[#allocation42_spill] sm:$0xff]  ;;  %v22070_v26 = vld [vmem:[#allocation8_spill] sm:$0xff] }
 0x9c2   :  { %8360 = vmatprep.mubr.f32.mxu1 %v22001_v22  ;;  %10310 = vmatpush3.bf16.msra.mxu1 %v10309_v15  ;;  %v10327_v29 = vpack.c.bf16 %v22023_v11, %v22022_v7  ;;  %v22033_v12 = vand.u32 4294901760, %v21819_v43  ;;  %v22035_v62 = vand.u32 4294901760, %v21974_v2  ;;  %v22040_v43 = vld [vmem:[#allocation198_spill] sm:$0xff]  ;;  %v22042_v22 = vand.u32 4294901760, %v21980_v6  ;;  %v22051_v6 = vld [vmem:[#allocation189_spill] sm:$0xff]  ;;  %v22072_v7 = vld [vmem:[#allocation64_spill] sm:$0xff] }
 0x9c3   :  { %10312 = vmatprep.subr.bf16.mxu1 %v10311_v14  ;;  %v10329_v57 = vpack.c.bf16 %v22027_v37, %v22026_v44  ;;  %v10331_v0 = vpack.c.bf16 %v22029_v32, %v22028_v49  ;;  %v22034_v14 = vand.u32 4294901760, %v21973_v1  ;;  %v22041_v21 = vand.u32 4294901760, %v22040_v43  ;;  %v22073_v11 = vld [vmem:[#allocation73_spill] sm:$0xff]  ;;  %v22080_v32 = vld [vmem:[#allocation275_spill] sm:$0xff] }
 0x9c4   :  { %v10333_v31 = vpack.c.bf16 %v22033_v12, %v22032_v33  ;;  %v22048_v45 = vand.u32 4294901760, %v22047_v59  ;;  %v22056_v40 = vand.u32 4294901760, %v22055_v34  ;;  %v22078_v37 = vld [vmem:[#allocation121_spill] sm:$0xff]  ;;  %v22082_v12 = vld [vmem:[#allocation84_spill] sm:$0xff]  ;;  %v22095_v34 = vld [vmem:[#allocation295_spill] sm:$0xff] }
 0x9c5   :  { %8364 = vmatmul.mubr.f32.gmra.mrb[100].mxu1 %v22006_v58  ;;  %v22052_v58 = vand.u32 4294901760, %v22051_v6  ;;  %v22079_v49 = vld [vmem:[#allocation5_spill] sm:$0xff]  ;;  %v22093_v6 = vld [vmem:[#allocation168_spill] sm:$0xff] }
 0x9c6   :  { %8371 = vmatprep.mubr.f32.mxu1 %v22007_v53  ;;  %10314 = vmatpush3.bf16.msra.mxu1 %v10313_v25  ;;  %v22046_v25 = vand.u32 4294901760, %v21983_v35  ;;  %v22053_v53 = vld [vmem:[#allocation27_spill] sm:$0xff] }
 0x9c7   :  { %10316 = vmatprep.subr.bf16.mxu1 %v10315_v60  ;;  %v22050_v60 = vand.u32 4294901760, %v22049_v8  ;;  %v22054_v54 = vand.u32 4294901760, %v22053_v53 }
 0x9c9   :  { %8375 = vmatmul.mubr.f32.gmra.mrb[102].mxu1 %v22012_v61 }
 0x9ca   :  { %8382 = vmatprep.mubr.f32.mxu1 %v22013_v63  ;;  %10318 = vmatpush3.bf16.msra.mxu1 %v10317_v50  ;;  %v22057_v50 = vld [vmem:[#allocation205_spill] sm:$0xff]  ;;  %v22061_v63 = vld [vmem:[#allocation166_spill] sm:$0xff] }
 0x9cb   :  { %10320 = vmatprep.subr.bf16.mxu1 %v10319_v48  ;;  %v22058_v41 = vand.u32 4294901760, %v22057_v50  ;;  %v22060_v48 = vand.u32 4294901760, %v22059_v30  ;;  %v22097_v30 = vld [vmem:[#allocation195_spill] sm:$0xff] }
 0x9cd   :  { %8386 = vmatmul.mubr.f32.gmra.mrb[104].mxu1 %v22018_v39  ;;  %v22067_v39 = vld [vmem:[#allocation154_spill] sm:$0xff] }
 0x9ce   :  { %8393 = vmatprep.mubr.f32.mxu1 %v22019_v5  ;;  %10322 = vmatpush3.bf16.msra.mxu1 %v10321_v24  ;;  %v22063_v24 = vld [vmem:[#allocation47_spill] sm:$0xff] }
 0x9cf   :  { %10324 = vmatprep.subr.bf16.mxu1 %v10323_v17  ;;  %v22066_v17 = vld [vmem:[#allocation74_spill] sm:$0xff]  ;;  %v22068_v5 = vld [vmem:[#allocation259_spill] sm:$0xff] }
 0x9d0   :  { %v9343_v36 = vpop.f32.mrb[24].mxu1 }
 0x9d1   :  { %8397 = vmatmul.mubr.f32.gmra.mrb[106].mxu1 %v22024_v13  ;;  %v9344_v46 = vpop.f32.mrb[25].mxu1  ;;  %v22076_v13 = vld [vmem:[#allocation268_spill] sm:$0xff] }
 0x9d2   :  { %8404 = vmatprep.mubr.f32.mxu1 %v22025_v9  ;;  %10326 = vmatpush3.bf16.msra.mxu1 %v10325_v18  ;;  %v18865_v15 = vadd.f32 %v9344_v46, %v9343_v36  ;;  %v22071_v18 = vld [vmem:[#allocation26_spill] sm:$0xff]  ;;  %v22075_v36 = vld [vmem:[#allocation28_spill] sm:$0xff]  ;;  %v22077_v46 = vld [vmem:[#allocation19_spill] sm:$0xff] }
 0x9d3   :  { %10328 = vmatprep.subr.bf16.mxu1 %v10327_v29  ;;  %v22074_v29 = vld [vmem:[#allocation153_spill] sm:$0xff] }
 0x9d5   :  { %8408 = vmatmul.mubr.f32.gmra.mrb[108].mxu1 %v22030_v4  ;;  %v22081_v4 = vld [vmem:[#allocation278_spill] sm:$0xff] }
 0x9d6   :  { %8415 = vmatprep.mubr.f32.mxu1 %v22031_v42  ;;  %10330 = vmatpush3.bf16.msra.mxu1 %v10329_v57 }
 0x9d7   :  { %10332 = vmatprep.subr.bf16.mxu1 %v10331_v0  ;;  %v18943_v0 = vld [vmem:[%s19241_s4] ss:$0 sm:$0xff] }
 0x9d9   :  { %8419 = vmatmul.mubr.f32.gmra.mrb[110].mxu1 %v22034_v14 }
 0x9da   :  { %8426 = vmatprep.mubr.f32.mxu1 %v22035_v62  ;;  %10334 = vmatpush3.bf16.msra.mxu1 %v10333_v31  ;;  %v22083_v31 = vld [vmem:[#allocation186_spill] sm:$0xff] }
 0x9db   :  { %10336 = vmatprep.subr.bf16.mxu1 %v21934_v20  ;;  %v7401_v14 = vadd.f32 %v22083_v31, %v18943_v0 }
 0x9dd   :  { %8430 = vmatmul.mubr.f32.gmra.mrb[112].mxu1 %v22036_v47  ;;  %v22084_v47 = vld [vmem:[#allocation134_spill] sm:$0xff] }
 0x9de   :  { %8437 = vmatprep.mubr.f32.mxu1 %v22038_v3  ;;  %v22086_v3 = vld [vmem:[#allocation286_spill] sm:$0xff] }
 0x9e1   :  { %8441 = vmatmul.mubr.f32.gmra.mrb[114].mxu1 %v22039_v28 }
 0x9e2   :  { %8448 = vmatprep.mubr.f32.mxu1 %v22041_v21 }
 0x9e4   :  { %v9346_v1 = vpop.f32.mrb[26].mxu1 }
 0x9e5   :  { %8452 = vmatmul.mubr.f32.gmra.mrb[116].mxu1 %v22042_v22  ;;  %v9347_v2 = vpop.f32.mrb[27].mxu1  ;;  %v22088_v22 = vld [vmem:[#allocation65_spill] sm:$0xff] }
 0x9e6   :  { %8459 = vmatprep.mubr.f32.mxu1 %v22043_v27  ;;  %v18896_v20 = vadd.f32 %v9347_v2, %v9346_v1  ;;  %v22087_v1 = vld [vmem:[#allocation63_spill] sm:$0xff]  ;;  %v7416_v2 = vadd.f32 %v22088_v22, %v18943_v0  ;;  %v22106_v22 = vld [vmem:[#allocation213_spill] sm:$0xff] }
 0x9e9   :  { %8463 = vmatmul.mubr.f32.gmra.mrb[118].mxu1 %v22045_v55  ;;  %v22090_v55 = vld [vmem:[#allocation288_spill] sm:$0xff] }
 0x9ea   :  { %8470 = vmatprep.mubr.f32.mxu1 %v22046_v25  ;;  %v22091_v25 = vld [vmem:[#allocation293_spill] sm:$0xff] }
 0x9ed   :  { %8474 = vmatmul.mubr.f32.gmra.mrb[120].mxu1 %v22048_v45 }
 0x9ee   :  { %8481 = vmatprep.mubr.f32.mxu1 %v22050_v60  ;;  %v22092_v60 = vld [vmem:[#allocation175_spill] sm:$0xff] }
 0x9f1   :  { %8485 = vmatmul.mubr.f32.gmra.mrb[122].mxu1 %v22052_v58  ;;  %v7431_v58 = vadd.f32 %v22093_v6, %v18943_v0  ;;  %v22108_v6 = vld [vmem:[#allocation66_spill] sm:$0xff] }
 0x9f2   :  { %8492 = vmatprep.mubr.f32.mxu1 %v22054_v54  ;;  %v22094_v54 = vld [vmem:[#allocation176_spill] sm:$0xff] }
 0x9f5   :  { %8496 = vmatmul.mubr.f32.gmra.mrb[124].mxu1 %v22056_v40 }
 0x9f6   :  { %8503 = vmatprep.mubr.f32.mxu1 %v22058_v41 }
 0x9f9   :  { %v9349_v35 = vpop.f32.mrb[28].mxu1  ;;  %8507 = vmatmul.mubr.f32.gmra.mrb[126].mxu1 %v22060_v48  ;;  %v7446_v48 = vadd.f32 %v22097_v30, %v18943_v0 }
 0x9fa   :  { %v9350_v61 = vpop.f32.mrb[29].mxu1  ;;  %8673 = vmatprep.mubr.f32.mxu1 %v22061_v63 }
 0x9fb   :  { %v18917_v51 = vadd.f32 %v9350_v61, %v9349_v35  ;;  %v22096_v35 = vld [vmem:[#allocation178_spill] sm:$0xff] }
 0x9fd   :  { %8675 = vmatmul.mubr.f32.vlgmr.msra.gmra.mrb[128].mxu1 %v22062_v10 }
 0x9fe   :  { %10338 = vmatpush3.bf16.msra.mxu1 %v22063_v24  ;;  %8680 = vmatprep.mubr.f32.mxu1 %v22064_v16  ;;  %v22098_v24 = vld [vmem:[#allocation159_spill] sm:$0xff] }
 0x9ff   :  { %10340 = vmatprep.subr.bf16.mxu1 %v22065_v38 }
 0xa01   :  { %8682 = vmatmul.mubr.f32.gmra.mrb[130].mxu1 %v22066_v17 }
 0xa02   :  { %8687 = vmatprep.mubr.f32.mxu1 %v22067_v39  ;;  %10342 = vmatpush3.bf16.msra.mxu1 %v22068_v5 }
 0xa03   :  { %10344 = vmatprep.subr.bf16.mxu1 %v22069_v56 }
 0xa05   :  { %8689 = vmatmul.mubr.f32.gmra.mrb[132].mxu1 %v22070_v26 }
 0xa06   :  { %8694 = vmatprep.mubr.f32.mxu1 %v22071_v18  ;;  %10346 = vmatpush3.bf16.msra.mxu1 %v22072_v7  ;;  %v22099_v7 = vld [vmem:[#allocation78_spill] sm:$0xff] }
 0xa07   :  { %10348 = vmatprep.subr.bf16.mxu1 %v22073_v11  ;;  %v22100_v11 = vld [vmem:[#allocation201_spill] sm:$0xff] }
 0xa09   :  { %8696 = vmatmul.mubr.f32.gmra.mrb[134].mxu1 %v22074_v29 }
 0xa0a   :  { %8701 = vmatprep.mubr.f32.mxu1 %v22075_v36  ;;  %10350 = vmatpush3.bf16.msra.mxu1 %v22076_v13  ;;  %v7461_v13 = vadd.f32 %v22100_v11, %v18943_v0 }
 0xa0b   :  { %10352 = vmatprep.subr.bf16.mxu1 %v22077_v46 }
 0xa0c   :  { %v9352_v9 = vpop.f32.mrb[30].mxu1 }
 0xa0d   :  { %v9353_v44 = vpop.f32.mrb[31].mxu1  ;;  %8703 = vmatmul.mubr.f32.gmra.mrb[136].mxu1 %v22078_v37 }
 0xa0e   :  { %v18936_v57 = vadd.f32 %v9353_v44, %v9352_v9  ;;  %8708 = vmatprep.mubr.f32.mxu1 %v22079_v49  ;;  %10354 = vmatpush3.bf16.msra.mxu1 %v22080_v32  ;;  %v22101_v9 = vld [vmem:[#allocation194_spill] sm:$0xff] }
 0xa0f   :  { %10356 = vmatprep.subr.bf16.mxu1 %v22081_v4 }
 0xa10   :  { %v9387_v42 = vpop.f32.mrb[32].mxu1 }
 0xa11   :  { %v9388_v33 = vpop.f32.mrb[33].mxu1  ;;  %8710 = vmatmul.mubr.f32.gmra.mrb[138].mxu1 %v22082_v12 }
 0xa12   :  { %v9389_v62 = vadd.f32 %v9388_v33, %v9387_v42  ;;  %8715 = vmatprep.mubr.f32.mxu1 %v22084_v47  ;;  %10358 = vmatpush3.bf16.msra.mxu1 %v22085_v23  ;;  %v22102_v42 = vld [vmem:[#allocation190_spill] sm:$0xff]  ;;  %v22103_v33 = vld [vmem:[#allocation212_spill] sm:$0xff] }
 0xa13   :  { %10360 = vmatprep.subr.bf16.mxu1 %v22086_v3  ;;  %v7476_v31 = vadd.f32 %v22103_v33, %v18943_v0  ;;  %v22114_v33 = vld [vmem:[#allocation90_spill] sm:$0xff] }
 0xa14   :  { %v18952_v28 = vadd.f32 %v9389_v62, %v7401_v14  ;;  %v9390_v43 = vpop.f32.mrb[34].mxu1  ;;  %v22104_v62 = vld [vmem:[#allocation162_spill] sm:$0xff] }
 0xa15   :  { %v9391_v21 = vpop.f32.mrb[35].mxu1  ;;  %8717 = vmatmul.mubr.f32.gmra.mrb[140].mxu1 %v22087_v1 }
 0xa16   :  { %v9392_v27 = vadd.f32 %v9391_v21, %v9390_v43  ;;  %8722 = vmatprep.mubr.f32.mxu1 %v22089_v52  ;;  %10362 = vmatpush3.bf16.msra.mxu1 %v22090_v55  ;;  %v22105_v21 = vld [vmem:[#allocation200_spill] sm:$0xff]  ;;  %v22107_v55 = vld [vmem:[#allocation53_spill] sm:$0xff] }
 0xa17   :  { %10364 = vmatprep.subr.bf16.mxu1 %v22091_v25 }
 0xa18   :  { %v18960_v59 = vadd.f32 %v9392_v27, %v7416_v2  ;;  %v9393_v45 = vpop.f32.mrb[36].mxu1  ;;  %v7491_v2 = vadd.f32 %v22106_v22, %v18943_v0 }
 0xa19   :  { %v9394_v8 = vpop.f32.mrb[37].mxu1  ;;  %8724 = vmatmul.mubr.f32.gmra.mrb[142].mxu1 %v22092_v60 }
 0xa1a   :  { %v9395_v53 = vadd.f32 %v9394_v8, %v9393_v45  ;;  %8729 = vmatprep.mubr.f32.mxu1 %v22094_v54  ;;  %10366 = vmatpush3.bf16.msra.mxu1 %v22095_v34 }
 0xa1c   :  { %v18967_v40 = vadd.f32 %v9395_v53, %v7431_v58  ;;  %v9396_v50 = vpop.f32.mrb[38].mxu1  ;;  %v22109_v58 = vld [vmem:[#allocation3_spill] sm:$0xff] }
 0xa1d   :  { %v9397_v41 = vpop.f32.mrb[39].mxu1  ;;  %8731 = vmatmul.mubr.f32.gmra.mrb[144].mxu1 %v22096_v35  ;;  %v7506_v53 = vadd.f32 %v22109_v58, %v18943_v0 }
 0xa1e   :  { %v9398_v61 = vadd.f32 %v9397_v41, %v9396_v50  ;;  %8736 = vmatprep.mubr.f32.mxu1 %v22098_v24  ;;  %v22110_v50 = vld [vmem:[#allocation50_spill] sm:$0xff] }
 0xa20   :  { %v18973_v38 = vadd.f32 %v9398_v61, %v7446_v48  ;;  %v9399_v5 = vpop.f32.mrb[40].mxu1  ;;  %v22111_v61 = vld [vmem:[#allocation187_spill] sm:$0xff] }
 0xa21   :  { %v9400_v56 = vpop.f32.mrb[41].mxu1  ;;  %8738 = vmatmul.mubr.f32.gmra.mrb[146].mxu1 %v22099_v7 }
 0xa22   :  { %v9401_v46 = vadd.f32 %v9400_v56, %v9399_v5  ;;  %8743 = vmatprep.mubr.f32.mxu1 %v22101_v9  ;;  %v22112_v5 = vld [vmem:[#allocation49_spill] sm:$0xff] }
 0xa23   :  { %v7521_v56 = vadd.f32 %v22112_v5, %v18943_v0  ;;  %v7566_v5 = vadd.f32 %v18803_v19, %v18943_v0  ;;  %v7596_v19 = vadd.f32 %v18896_v20, %v18943_v0  ;;  %v7626_v20 = vadd.f32 %v18936_v57, %v18943_v0 }
 0xa24   :  { %v18979_v44 = vadd.f32 %v9401_v46, %v7461_v13  ;;  %v9402_v32 = vpop.f32.mrb[42].mxu1  ;;  %v22113_v13 = vld [vmem:[#allocation165_spill] sm:$0xff] }
 0xa25   :  { %v9403_v4 = vpop.f32.mrb[43].mxu1  ;;  %8745 = vmatmul.mubr.f32.gmra.mrb[148].mxu1 %v22102_v42 }
 0xa26   :  { %v9404_v14 = vadd.f32 %v9403_v4, %v9402_v32  ;;  %8750 = vmatprep.mubr.f32.mxu1 %v22104_v62 }
 0xa28   :  { %v18985_v23 = vadd.f32 %v9404_v14, %v7476_v31  ;;  %v9405_v3 = vpop.f32.mrb[44].mxu1  ;;  %v22115_v31 = vld [vmem:[#allocation143_spill] sm:$0xff] }
 0xa29   :  { %v9406_v43 = vpop.f32.mrb[45].mxu1  ;;  %8752 = vmatmul.mubr.f32.gmra.mrb[150].mxu1 %v22105_v21  ;;  %v7536_v14 = vadd.f32 %v22115_v31, %v18943_v0 }
 0xa2a   :  { %v9407_v27 = vadd.f32 %v9406_v43, %v9405_v3  ;;  %8757 = vmatprep.mubr.f32.mxu1 %v22107_v55  ;;  %v22116_v43 = vld [vmem:[#allocation203_spill] sm:$0xff] }
 0xa2c   :  { %v18991_v25 = vadd.f32 %v9407_v27, %v7491_v2  ;;  %v9408_v45 = vpop.f32.mrb[46].mxu1 }
 0xa2d   :  { %v9409_v8 = vpop.f32.mrb[47].mxu1  ;;  %8759 = vmatmul.mubr.f32.gmra.mrb[152].mxu1 %v22108_v6 }
 0xa2e   :  { %v9410_v34 = vadd.f32 %v9409_v8, %v9408_v45  ;;  %8764 = vmatprep.mubr.f32.mxu1 %v22110_v50  ;;  %v22117_v45 = vld [vmem:[#allocation210_spill] sm:$0xff]  ;;  %v22118_v8 = vld [vmem:[#allocation88_spill] sm:$0xff] }
 0xa2f   :  { %v7551_v58 = vadd.f32 %v22118_v8, %v18943_v0 }
 0xa30   :  { %v18997_v41 = vadd.f32 %v9410_v34, %v7506_v53  ;;  %v9411_v30 = vpop.f32.mrb[48].mxu1 }
 0xa31   :  { %v9412_v48 = vpop.f32.mrb[49].mxu1  ;;  %8766 = vmatmul.mubr.f32.gmra.mrb[154].mxu1 %v22111_v61 }
 0xa32   :  { %v9413_v11 = vadd.f32 %v9412_v48, %v9411_v30  ;;  %8771 = vmatprep.mubr.f32.mxu1 %v22113_v13 }
 0xa34   :  { %v19003_v46 = vadd.f32 %v9413_v11, %v7521_v56  ;;  %v9414_v32 = vpop.f32.mrb[50].mxu1 }
 0xa35   :  { %v9415_v4 = vpop.f32.mrb[51].mxu1  ;;  %8773 = vmatmul.mubr.f32.gmra.mrb[156].mxu1 %v22114_v33 }
 0xa36   :  { %v9416_v3 = vadd.f32 %v9415_v4, %v9414_v32  ;;  %8778 = vmatprep.mubr.f32.mxu1 %v22116_v43 }
 0xa38   :  { %v19009_v22 = vadd.f32 %v9416_v3, %v7536_v14  ;;  %v9417_v2 = vpop.f32.mrb[52].mxu1 }
 0xa39   :  { %v9418_v27 = vpop.f32.mrb[53].mxu1  ;;  %8780 = vmatmul.mubr.f32.gmra.mrb[158].mxu1 %v22117_v45 }
 0xa3a   :  { %v9419_v53 = vadd.f32 %v9418_v27, %v9417_v2  ;;  %8882 = vmatprep.mubr.f32.mxu1 %v22061_v63  ;;  %v7581_v63 = vadd.f32 %v18865_v15, %v18943_v0  ;;  %v7611_v15 = vadd.f32 %v18917_v51, %v18943_v0 }
 0xa3c   :  { %v19015_v34 = vadd.f32 %v9419_v53, %v7551_v58  ;;  %v9420_v30 = vpop.f32.mrb[54].mxu1 }
 0xa3d   :  { %v9421_v48 = vpop.f32.mrb[55].mxu1  ;;  %8884 = vmatmul.mubr.f32.vlgmr.msra.gmra.mrb[160].mxu1 %v22062_v10 }
 0xa3e   :  { %v9422_v56 = vadd.f32 %v9421_v48, %v9420_v30  ;;  %8889 = vmatprep.mubr.f32.mxu1 %v22064_v16 }
 0xa40   :  { %v19021_v11 = vadd.f32 %v9422_v56, %v7566_v5  ;;  %v9423_v32 = vpop.f32.mrb[56].mxu1 }
 0xa41   :  { %v9424_v4 = vpop.f32.mrb[57].mxu1  ;;  %8891 = vmatmul.mubr.f32.gmra.mrb[162].mxu1 %v22066_v17 }
 0xa42   :  { %v9425_v31 = vadd.f32 %v9424_v4, %v9423_v32  ;;  %8896 = vmatprep.mubr.f32.mxu1 %v22067_v39 }
 0xa44   :  { %v19027_v14 = vadd.f32 %v9425_v31, %v7581_v63  ;;  %v9426_v10 = vpop.f32.mrb[58].mxu1 }
 0xa45   :  { %v9427_v3 = vpop.f32.mrb[59].mxu1  ;;  %8898 = vmatmul.mubr.f32.gmra.mrb[164].mxu1 %v22070_v26 }
 0xa46   :  { %v9428_v16 = vadd.f32 %v9427_v3, %v9426_v10  ;;  %8903 = vmatprep.mubr.f32.mxu1 %v22071_v18 }
 0xa48   :  { %v19033_v2 = vadd.f32 %v9428_v16, %v7596_v19  ;;  %v9429_v17 = vpop.f32.mrb[60].mxu1 }
 0xa49   :  { %v9430_v27 = vpop.f32.mrb[61].mxu1  ;;  %8905 = vmatmul.mubr.f32.gmra.mrb[166].mxu1 %v22074_v29 }
 0xa4a   :  { %v9431_v39 = vadd.f32 %v9430_v27, %v9429_v17  ;;  %8910 = vmatprep.mubr.f32.mxu1 %v22075_v36 }
 0xa4c   :  { %v19039_v8 = vadd.f32 %v9431_v39, %v7611_v15  ;;  %v9432_v26 = vpop.f32.mrb[62].mxu1 }
 0xa4d   :  { %v9433_v58 = vpop.f32.mrb[63].mxu1  ;;  %8912 = vmatmul.mubr.f32.gmra.mrb[168].mxu1 %v22078_v37 }
 0xa4e   :  { %v9434_v18 = vadd.f32 %v9433_v58, %v9432_v26  ;;  %8917 = vmatprep.mubr.f32.mxu1 %v22079_v49 }
 0xa50   :  { %v19045_v53 = vadd.f32 %v9434_v18, %v7626_v20  ;;  %v9467_v29 = vpop.f32.mrb[64].mxu1 }
 0xa51   :  { %v9468_v30 = vpop.f32.mrb[65].mxu1  ;;  %8919 = vmatmul.mubr.f32.gmra.mrb[170].mxu1 %v22082_v12 }
 0xa52   :  { %v9469_v51 = vadd.f32 %v9468_v30, %v9467_v29  ;;  %8924 = vmatprep.mubr.f32.mxu1 %v22084_v47 }
 0xa54   :  { %v19050_v36 = vadd.f32 %v9469_v51, %v18952_v28  ;;  %v9470_v48 = vpop.f32.mrb[66].mxu1 }
 0xa55   :  { %v9471_v37 = vpop.f32.mrb[67].mxu1  ;;  %8926 = vmatmul.mubr.f32.gmra.mrb[172].mxu1 %v22087_v1 }
 0xa56   :  { %v9472_v57 = vadd.f32 %v9471_v37, %v9470_v48  ;;  %8931 = vmatprep.mubr.f32.mxu1 %v22089_v52 }
 0xa58   :  { %v19055_v49 = vadd.f32 %v9472_v57, %v18960_v59  ;;  %v9473_v0 = vpop.f32.mrb[68].mxu1 }
 0xa59   :  { %v9474_v5 = vpop.f32.mrb[69].mxu1  ;;  %8933 = vmatmul.mubr.f32.gmra.mrb[174].mxu1 %v22092_v60 }
 0xa5a   :  { %v9475_v12 = vadd.f32 %v9474_v5, %v9473_v0  ;;  %8938 = vmatprep.mubr.f32.mxu1 %v22094_v54 }
 0xa5c   :  { %v19060_v47 = vadd.f32 %v9475_v12, %v18967_v40  ;;  %v9476_v28 = vpop.f32.mrb[70].mxu1 }
 0xa5d   :  { %v9477_v56 = vpop.f32.mrb[71].mxu1  ;;  %8940 = vmatmul.mubr.f32.gmra.mrb[176].mxu1 %v22096_v35 }
 0xa5e   :  { %v9478_v1 = vadd.f32 %v9477_v56, %v9476_v28  ;;  %8945 = vmatprep.mubr.f32.mxu1 %v22098_v24 }
 0xa60   :  { %v19065_v52 = vadd.f32 %v9478_v1, %v18973_v38  ;;  %v9479_v59 = vpop.f32.mrb[72].mxu1 }
 0xa61   :  { %v9480_v32 = vpop.f32.mrb[73].mxu1  ;;  %8947 = vmatmul.mubr.f32.gmra.mrb[178].mxu1 %v22099_v7 }
 0xa62   :  { %v9481_v60 = vadd.f32 %v9480_v32, %v9479_v59  ;;  %8952 = vmatprep.mubr.f32.mxu1 %v22101_v9 }
 0xa64   :  { %v19070_v54 = vadd.f32 %v9481_v60, %v18979_v44  ;;  %v9482_v40 = vpop.f32.mrb[74].mxu1 }
 0xa65   :  { %v9483_v4 = vpop.f32.mrb[75].mxu1  ;;  %8954 = vmatmul.mubr.f32.gmra.mrb[180].mxu1 %v22102_v42 }
 0xa66   :  { %v9484_v35 = vadd.f32 %v9483_v4, %v9482_v40  ;;  %8959 = vmatprep.mubr.f32.mxu1 %v22104_v62 }
 0xa68   :  { %v19075_v24 = vadd.f32 %v9484_v35, %v18985_v23  ;;  %v9485_v38 = vpop.f32.mrb[76].mxu1 }
 0xa69   :  { %v9486_v63 = vpop.f32.mrb[77].mxu1  ;;  %8961 = vmatmul.mubr.f32.gmra.mrb[182].mxu1 %v22105_v21 }
 0xa6a   :  { %v9487_v7 = vadd.f32 %v9486_v63, %v9485_v38  ;;  %8966 = vmatprep.mubr.f32.mxu1 %v22107_v55 }
 0xa6c   :  { %v19080_v9 = vadd.f32 %v9487_v7, %v18991_v25  ;;  %v9488_v44 = vpop.f32.mrb[78].mxu1 }
 0xa6d   :  { %v9489_v31 = vpop.f32.mrb[79].mxu1  ;;  %8968 = vmatmul.mubr.f32.gmra.mrb[184].mxu1 %v22108_v6 }
 0xa6e   :  { %v9490_v42 = vadd.f32 %v9489_v31, %v9488_v44  ;;  %8973 = vmatprep.mubr.f32.mxu1 %v22110_v50 }
 0xa70   :  { %v19085_v62 = vadd.f32 %v9490_v42, %v18997_v41  ;;  %v9491_v23 = vpop.f32.mrb[80].mxu1 }
 0xa71   :  { %v9492_v10 = vpop.f32.mrb[81].mxu1  ;;  %8975 = vmatmul.mubr.f32.gmra.mrb[186].mxu1 %v22111_v61 }
 0xa72   :  { %v9493_v21 = vadd.f32 %v9492_v10, %v9491_v23  ;;  %8980 = vmatprep.mubr.f32.mxu1 %v22113_v13 }
 0xa74   :  { %v19090_v55 = vadd.f32 %v9493_v21, %v19003_v46  ;;  %v9494_v25 = vpop.f32.mrb[82].mxu1 }
 0xa75   :  { %v9495_v3 = vpop.f32.mrb[83].mxu1  ;;  %8982 = vmatmul.mubr.f32.gmra.mrb[188].mxu1 %v22114_v33 }
 0xa76   :  { %v9496_v6 = vadd.f32 %v9495_v3, %v9494_v25  ;;  %8987 = vmatprep.mubr.f32.mxu1 %v22116_v43 }
 0xa78   :  { %v19095_v50 = vadd.f32 %v9496_v6, %v19009_v22  ;;  %v9497_v41 = vpop.f32.mrb[84].mxu1 }
 0xa79   :  { %v9498_v19 = vpop.f32.mrb[85].mxu1  ;;  %8989 = vmatmul.mubr.f32.gmra.mrb[190].mxu1 %v22117_v45 }
 0xa7a   :  { %v9499_v61 = vadd.f32 %v9498_v19, %v9497_v41 }
 0xa7c   :  { %v19099_v13 = vadd.f32 %v9499_v61, %v19015_v34  ;;  %v9500_v46 = vpop.f32.mrb[86].mxu1 }
 0xa7d   :  { %v9501_v16 = vpop.f32.mrb[87].mxu1 }
 0xa7e   :  { %v9502_v17 = vadd.f32 %v9501_v16, %v9500_v46 }
 0xa80   :  { %v19102_v27 = vadd.f32 %v9502_v17, %v19021_v11  ;;  %v9503_v33 = vpop.f32.mrb[88].mxu1 }
 0xa81   :  { %v9504_v15 = vpop.f32.mrb[89].mxu1 }
 0xa82   :  { %v9505_v43 = vadd.f32 %v9504_v15, %v9503_v33 }
 0xa84   :  { %v19105_v22 = vadd.f32 %v9505_v43, %v19027_v14  ;;  %v9506_v39 = vpop.f32.mrb[90].mxu1 }
 0xa85   :  { %v9507_v26 = vpop.f32.mrb[91].mxu1 }
 0xa86   :  { %v9508_v58 = vadd.f32 %v9507_v26, %v9506_v39 }
 0xa88   :  { %v19108_v45 = vadd.f32 %v9508_v58, %v19033_v2  ;;  %v9509_v34 = vpop.f32.mrb[92].mxu1 }
 0xa89   :  { %v9510_v20 = vpop.f32.mrb[93].mxu1 }
 0xa8a   :  { %v9511_v18 = vadd.f32 %v9510_v20, %v9509_v34 }
 0xa8c   :  { %v19111_v29 = vadd.f32 %v9511_v18, %v19039_v8  ;;  %v9512_v11 = vpop.f32.mrb[94].mxu1 }
 0xa8d   :  { %v9513_v30 = vpop.f32.mrb[95].mxu1 }
 0xa8e   :  { %v9514_v51 = vadd.f32 %v9513_v30, %v9512_v11 }
 0xa90   :  { %v19114_v48 = vadd.f32 %v9514_v51, %v19045_v53  ;;  %v9547_v14 = vpop.f32.mrb[96].mxu1 }
 0xa91   :  { %v9548_v37 = vpop.f32.mrb[97].mxu1 }
 0xa92   :  { %v9549_v57 = vadd.f32 %v9548_v37, %v9547_v14 }
 0xa94   :  { %v19117_v0 = vadd.f32 %v9549_v57, %v19050_v36  ;;  %v9550_v2 = vpop.f32.mrb[98].mxu1 }
 0xa95   :  { %v9551_v5 = vpop.f32.mrb[99].mxu1 }
 0xa96   :  { %v9552_v12 = vadd.f32 %v9551_v5, %v9550_v2 }
 0xa98   :  { %v19120_v28 = vadd.f32 %v9552_v12, %v19055_v49  ;;  %v9553_v8 = vpop.f32.mrb[100].mxu1 }
 0xa99   :  { %v9554_v56 = vpop.f32.mrb[101].mxu1 }
 0xa9a   :  { %v9555_v1 = vadd.f32 %v9554_v56, %v9553_v8 }
 0xa9c   :  { %v19123_v59 = vadd.f32 %v9555_v1, %v19060_v47  ;;  %v9556_v53 = vpop.f32.mrb[102].mxu1 }
 0xa9d   :  { %v9557_v32 = vpop.f32.mrb[103].mxu1 }
 0xa9e   :  { %v9558_v60 = vadd.f32 %v9557_v32, %v9556_v53 }
 0xaa0   :  { %v19126_v40 = vadd.f32 %v9558_v60, %v19065_v52  ;;  %v9559_v36 = vpop.f32.mrb[104].mxu1 }
 0xaa1   :  { %v9560_v4 = vpop.f32.mrb[105].mxu1 }
 0xaa2   :  { %v9561_v35 = vadd.f32 %v9560_v4, %v9559_v36 }
 0xaa4   :  { %v19129_v38 = vadd.f32 %v9561_v35, %v19070_v54  ;;  %v9562_v49 = vpop.f32.mrb[106].mxu1 }
 0xaa5   :  { %v9563_v63 = vpop.f32.mrb[107].mxu1 }
 0xaa6   :  { %v9564_v7 = vadd.f32 %v9563_v63, %v9562_v49 }
 0xaa8   :  { %v19132_v44 = vadd.f32 %v9564_v7, %v19075_v24  ;;  %v9565_v47 = vpop.f32.mrb[108].mxu1 }
 0xaa9   :  { %v9566_v31 = vpop.f32.mrb[109].mxu1 }
 0xaaa   :  { %v9567_v42 = vadd.f32 %v9566_v31, %v9565_v47 }
 0xaac   :  { %v19135_v23 = vadd.f32 %v9567_v42, %v19080_v9  ;;  %v9568_v52 = vpop.f32.mrb[110].mxu1 }
 0xaad   :  { %v9569_v10 = vpop.f32.mrb[111].mxu1 }
 0xaae   :  { %v9570_v21 = vadd.f32 %v9569_v10, %v9568_v52 }
 0xab0   :  { %v19138_v25 = vadd.f32 %v9570_v21, %v19085_v62  ;;  %v9571_v54 = vpop.f32.mrb[112].mxu1 }
 0xab1   :  { %v9572_v3 = vpop.f32.mrb[113].mxu1 }
 0xab2   :  { %v9573_v6 = vadd.f32 %v9572_v3, %v9571_v54 }
 0xab4   :  { %v19141_v41 = vadd.f32 %v9573_v6, %v19090_v55  ;;  %v9574_v24 = vpop.f32.mrb[114].mxu1 }
 0xab5   :  { %v9575_v19 = vpop.f32.mrb[115].mxu1 }
 0xab6   :  { %v9576_v61 = vadd.f32 %v9575_v19, %v9574_v24 }
 0xab8   :  { %v19144_v46 = vadd.f32 %v9576_v61, %v19095_v50  ;;  %v9577_v9 = vpop.f32.mrb[116].mxu1 }
 0xab9   :  { %v9578_v16 = vpop.f32.mrb[117].mxu1 }
 0xaba   :  { %v9579_v17 = vadd.f32 %v9578_v16, %v9577_v9 }
 0xabc   :  { %v19147_v33 = vadd.f32 %v9579_v17, %v19099_v13  ;;  %v9580_v62 = vpop.f32.mrb[118].mxu1 }
 0xabd   :  { %v9581_v15 = vpop.f32.mrb[119].mxu1 }
 0xabe   :  { %v9582_v43 = vadd.f32 %v9581_v15, %v9580_v62 }
 0xac0   :  { %v19150_v39 = vadd.f32 %v9582_v43, %v19102_v27  ;;  %v9583_v55 = vpop.f32.mrb[120].mxu1 }
 0xac1   :  { %v9584_v26 = vpop.f32.mrb[121].mxu1 }
 0xac2   :  { %v9585_v58 = vadd.f32 %v9584_v26, %v9583_v55 }
 0xac4   :  { %v19153_v34 = vadd.f32 %v9585_v58, %v19105_v22  ;;  %v9586_v50 = vpop.f32.mrb[122].mxu1 }
 0xac5   :  { %v9587_v20 = vpop.f32.mrb[123].mxu1 }
 0xac6   :  { %v9588_v18 = vadd.f32 %v9587_v20, %v9586_v50 }
 0xac8   :  { %v19156_v11 = vadd.f32 %v9588_v18, %v19108_v45  ;;  %v9589_v13 = vpop.f32.mrb[124].mxu1 }
 0xac9   :  { %v9590_v30 = vpop.f32.mrb[125].mxu1 }
 0xaca   :  { %v9591_v51 = vadd.f32 %v9590_v30, %v9589_v13 }
 0xacc   :  { %v19159_v14 = vadd.f32 %v9591_v51, %v19111_v29  ;;  %v9592_v27 = vpop.f32.mrb[126].mxu1 }
 0xacd   :  { %v9593_v37 = vpop.f32.mrb[127].mxu1 }
 0xace   :  { %v9594_v57 = vadd.f32 %v9593_v37, %v9592_v27 }
 0xad0   :  { %v19162_v2 = vadd.f32 %v9594_v57, %v19114_v48  ;;  %v9627_v22 = vpop.f32.mrb[128].mxu1 }
 0xad1   :  { %v9628_v5 = vpop.f32.mrb[129].mxu1 }
 0xad2   :  { %v9629_v12 = vadd.f32 %v9628_v5, %v9627_v22 }
 0xad4   :  { %v19165_v8 = vadd.f32 %v9629_v12, %v19117_v0  ;;  %v9630_v45 = vpop.f32.mrb[130].mxu1 }
 0xad5   :  { %v9631_v56 = vpop.f32.mrb[131].mxu1 }
 0xad6   :  { %v9632_v1 = vadd.f32 %v9631_v56, %v9630_v45 }
 0xad8   :  { %v19168_v53 = vadd.f32 %v9632_v1, %v19120_v28  ;;  %v9633_v29 = vpop.f32.mrb[132].mxu1 }
 0xad9   :  { %v9634_v32 = vpop.f32.mrb[133].mxu1 }
 0xada   :  { %v9635_v60 = vadd.f32 %v9634_v32, %v9633_v29 }
 0xadc   :  { %v19171_v36 = vadd.f32 %v9635_v60, %v19123_v59  ;;  %v9636_v48 = vpop.f32.mrb[134].mxu1 }
 0xadd   :  { %v9637_v4 = vpop.f32.mrb[135].mxu1 }
 0xade   :  { %v9638_v35 = vadd.f32 %v9637_v4, %v9636_v48 }
 0xae0   :  { %v19174_v49 = vadd.f32 %v9638_v35, %v19126_v40  ;;  %v9639_v0 = vpop.f32.mrb[136].mxu1 }
 0xae1   :  { %v9640_v63 = vpop.f32.mrb[137].mxu1 }
 0xae2   :  { %v9641_v7 = vadd.f32 %v9640_v63, %v9639_v0 }
 0xae4   :  { %v19177_v47 = vadd.f32 %v9641_v7, %v19129_v38  ;;  %v9642_v28 = vpop.f32.mrb[138].mxu1 }
 0xae5   :  { %v9643_v31 = vpop.f32.mrb[139].mxu1 }
 0xae6   :  { %v9644_v42 = vadd.f32 %v9643_v31, %v9642_v28 }
 0xae8   :  { %v19180_v52 = vadd.f32 %v9644_v42, %v19132_v44  ;;  %v9645_v59 = vpop.f32.mrb[140].mxu1 }
 0xae9   :  { %v9646_v10 = vpop.f32.mrb[141].mxu1 }
 0xaea   :  { %v9647_v21 = vadd.f32 %v9646_v10, %v9645_v59 }
 0xaec   :  { %v19183_v54 = vadd.f32 %v9647_v21, %v19135_v23  ;;  %v9648_v40 = vpop.f32.mrb[142].mxu1 }
 0xaed   :  { %v9649_v3 = vpop.f32.mrb[143].mxu1 }
 0xaee   :  { %v9650_v6 = vadd.f32 %v9649_v3, %v9648_v40 }
 0xaf0   :  { %v19186_v24 = vadd.f32 %v9650_v6, %v19138_v25  ;;  %v9651_v38 = vpop.f32.mrb[144].mxu1 }
 0xaf1   :  { %v9652_v19 = vpop.f32.mrb[145].mxu1 }
 0xaf2   :  { %v9653_v61 = vadd.f32 %v9652_v19, %v9651_v38 }
 0xaf4   :  { %v19189_v9 = vadd.f32 %v9653_v61, %v19141_v41  ;;  %v9654_v44 = vpop.f32.mrb[146].mxu1 }
 0xaf5   :  { %v9655_v16 = vpop.f32.mrb[147].mxu1 }
 0xaf6   :  { %v9656_v17 = vadd.f32 %v9655_v16, %v9654_v44 }
 0xaf8   :  { %v19192_v62 = vadd.f32 %v9656_v17, %v19144_v46  ;;  %v9657_v23 = vpop.f32.mrb[148].mxu1 }
 0xaf9   :  { %v9658_v15 = vpop.f32.mrb[149].mxu1 }
 0xafa   :  { %v9659_v43 = vadd.f32 %v9658_v15, %v9657_v23 }
 0xafc   :  { %v19195_v55 = vadd.f32 %v9659_v43, %v19147_v33  ;;  %v9660_v25 = vpop.f32.mrb[150].mxu1 }
 0xafd   :  { %v9661_v26 = vpop.f32.mrb[151].mxu1 }
 0xafe   :  { %v9662_v58 = vadd.f32 %v9661_v26, %v9660_v25 }
 0xb00   :  { %v19198_v50 = vadd.f32 %v9662_v58, %v19150_v39  ;;  %v9663_v41 = vpop.f32.mrb[152].mxu1 }
 0xb01   :  { %v9664_v20 = vpop.f32.mrb[153].mxu1 }
 0xb02   :  { %v9665_v18 = vadd.f32 %v9664_v20, %v9663_v41 }
 0xb04   :  { %v19201_v13 = vadd.f32 %v9665_v18, %v19153_v34  ;;  %v9666_v46 = vpop.f32.mrb[154].mxu1 }
 0xb05   :  { %v9667_v30 = vpop.f32.mrb[155].mxu1 }
 0xb06   :  { %v9668_v51 = vadd.f32 %v9667_v30, %v9666_v46 }
 0xb08   :  { %v19204_v27 = vadd.f32 %v9668_v51, %v19156_v11  ;;  %v9669_v33 = vpop.f32.mrb[156].mxu1 }
 0xb09   :  { %v9670_v37 = vpop.f32.mrb[157].mxu1 }
 0xb0a   :  { %v9671_v57 = vadd.f32 %v9670_v37, %v9669_v33 }
 0xb0c   :  { %v19207_v22 = vadd.f32 %v9671_v57, %v19159_v14  ;;  %v9672_v39 = vpop.f32.mrb[158].mxu1 }
 0xb0d   :  { %v9673_v5 = vpop.f32.mrb[159].mxu1 }
 0xb0e   :  { %v9674_v12 = vadd.f32 %v9673_v5, %v9672_v39 }
 0xb10   :  { %v19210_v45 = vadd.f32 %v9674_v12, %v19162_v2  ;;  %v9707_v34 = vpop.f32.mrb[160].mxu1 }
 0xb11   :  { %v9708_v56 = vpop.f32.mrb[161].mxu1 }
 0xb12   :  { %v9709_v1 = vadd.f32 %v9708_v56, %v9707_v34 }
 0xb14   :  { %v8886_v29 = vadd.f32 %v9709_v1, %v19165_v8  ;;  %v9710_v32 = vpop.f32.mrb[162].mxu1 }
 0xb15   :  { %v9711_v11 = vpop.f32.mrb[163].mxu1 }
 0xb16   :  { %v9712_v60 = vadd.f32 %v9711_v11, %v9710_v32  ;;  %8994 = vxpose.xlu0.b32.start [1/16] (narrow) %v8886_v29, 24 }
 0xb18   :  { %v8893_v48 = vadd.f32 %v9712_v60, %v19168_v53  ;;  %v9713_v4 = vpop.f32.mrb[164].mxu1 }
 0xb19   :  { %v9714_v14 = vpop.f32.mrb[165].mxu1 }
 0xb1a   :  { %v9715_v35 = vadd.f32 %v9714_v14, %v9713_v4  ;;  %8995 = vxpose.xlu0.b32.cont [2/16] (narrow) %v8893_v48, 24 }
 0xb1c   :  { %v8900_v0 = vadd.f32 %v9715_v35, %v19171_v36  ;;  %v9716_v63 = vpop.f32.mrb[166].mxu1 }
 0xb1d   :  { %v9717_v2 = vpop.f32.mrb[167].mxu1 }
 0xb1e   :  { %v9718_v7 = vadd.f32 %v9717_v2, %v9716_v63  ;;  %8996 = vxpose.xlu0.b32.cont [3/16] (narrow) %v8900_v0, 24 }
 0xb20   :  { %v8907_v28 = vadd.f32 %v9718_v7, %v19174_v49  ;;  %v9719_v31 = vpop.f32.mrb[168].mxu1 }
 0xb21   :  { %v9720_v8 = vpop.f32.mrb[169].mxu1 }
 0xb22   :  { %v9721_v42 = vadd.f32 %v9720_v8, %v9719_v31  ;;  %8997 = vxpose.xlu0.b32.cont [4/16] (narrow) %v8907_v28, 24 }
 0xb24   :  { %v8914_v59 = vadd.f32 %v9721_v42, %v19177_v47  ;;  %v9722_v10 = vpop.f32.mrb[170].mxu1 }
 0xb25   :  { %v9723_v53 = vpop.f32.mrb[171].mxu1 }
 0xb26   :  { %v9724_v21 = vadd.f32 %v9723_v53, %v9722_v10  ;;  %8998 = vxpose.xlu0.b32.cont [5/16] (narrow) %v8914_v59, 24 }
 0xb28   :  { %v8921_v40 = vadd.f32 %v9724_v21, %v19180_v52  ;;  %v9725_v3 = vpop.f32.mrb[172].mxu1 }
 0xb29   :  { %v9726_v36 = vpop.f32.mrb[173].mxu1 }
 0xb2a   :  { %v9727_v6 = vadd.f32 %v9726_v36, %v9725_v3  ;;  %8999 = vxpose.xlu0.b32.cont [6/16] (narrow) %v8921_v40, 24 }
 0xb2c   :  { %v8928_v38 = vadd.f32 %v9727_v6, %v19183_v54  ;;  %v9728_v19 = vpop.f32.mrb[174].mxu1 }
 0xb2d   :  { %v9729_v49 = vpop.f32.mrb[175].mxu1 }
 0xb2e   :  { %v9730_v61 = vadd.f32 %v9729_v49, %v9728_v19  ;;  %9000 = vxpose.xlu0.b32.cont [7/16] (narrow) %v8928_v38, 24 }
 0xb30   :  { %v8935_v44 = vadd.f32 %v9730_v61, %v19186_v24  ;;  %v9731_v16 = vpop.f32.mrb[176].mxu1 }
 0xb31   :  { %v9732_v47 = vpop.f32.mrb[177].mxu1 }
 0xb32   :  { %v9733_v17 = vadd.f32 %v9732_v47, %v9731_v16  ;;  %9001 = vxpose.xlu0.b32.cont [8/16] (narrow) %v8935_v44, 24 }
 0xb34   :  { %v8942_v23 = vadd.f32 %v9733_v17, %v19189_v9  ;;  %v9734_v15 = vpop.f32.mrb[178].mxu1 }
 0xb35   :  { %v9735_v52 = vpop.f32.mrb[179].mxu1 }
 0xb36   :  { %v9736_v43 = vadd.f32 %v9735_v52, %v9734_v15  ;;  %9002 = vxpose.xlu0.b32.cont [9/16] (narrow) %v8942_v23, 24 }
 0xb38   :  { %v8949_v25 = vadd.f32 %v9736_v43, %v19192_v62  ;;  %v9737_v26 = vpop.f32.mrb[180].mxu1 }
 0xb39   :  { %v9738_v54 = vpop.f32.mrb[181].mxu1 }
 0xb3a   :  { %v9739_v58 = vadd.f32 %v9738_v54, %v9737_v26  ;;  %9003 = vxpose.xlu0.b32.cont [10/16] (narrow) %v8949_v25, 24 }
 0xb3c   :  { %v8956_v41 = vadd.f32 %v9739_v58, %v19195_v55  ;;  %v9740_v20 = vpop.f32.mrb[182].mxu1 }
 0xb3d   :  { %v9741_v24 = vpop.f32.mrb[183].mxu1 }
 0xb3e   :  { %v9742_v18 = vadd.f32 %v9741_v24, %v9740_v20  ;;  %9004 = vxpose.xlu0.b32.cont [11/16] (narrow) %v8956_v41, 24 }
 0xb40   :  { %v8963_v46 = vadd.f32 %v9742_v18, %v19198_v50  ;;  %v9743_v30 = vpop.f32.mrb[184].mxu1 }
 0xb41   :  { %v9744_v9 = vpop.f32.mrb[185].mxu1 }
 0xb42   :  { %v9745_v51 = vadd.f32 %v9744_v9, %v9743_v30  ;;  %9005 = vxpose.xlu0.b32.cont [12/16] (narrow) %v8963_v46, 24 }
 0xb44   :  { %v8970_v33 = vadd.f32 %v9745_v51, %v19201_v13  ;;  %v9746_v37 = vpop.f32.mrb[186].mxu1 }
 0xb45   :  { %v9747_v62 = vpop.f32.mrb[187].mxu1 }
 0xb46   :  { %v9748_v57 = vadd.f32 %v9747_v62, %v9746_v37  ;;  %9006 = vxpose.xlu0.b32.cont [13/16] (narrow) %v8970_v33, 24 }
 0xb48   :  { %v8977_v39 = vadd.f32 %v9748_v57, %v19204_v27  ;;  %v9749_v5 = vpop.f32.mrb[188].mxu1 }
 0xb49   :  { %v9750_v55 = vpop.f32.mrb[189].mxu1 }
 0xb4a   :  { %v9751_v12 = vadd.f32 %v9750_v55, %v9749_v5  ;;  %9007 = vxpose.xlu0.b32.cont [14/16] (narrow) %v8977_v39, 24 }
 0xb4c   :  { %v8984_v34 = vadd.f32 %v9751_v12, %v19207_v22  ;;  %v9752_v56 = vpop.f32.mrb[190].mxu1 }
 0xb4d   :  { %v9753_v50 = vpop.f32.mrb[191].mxu1 }
 0xb4e   :  { %v9754_v1 = vadd.f32 %v9753_v50, %v9752_v56  ;;  %9008 = vxpose.xlu0.b32.cont [15/16] (narrow) %v8984_v34, 24 }
 0xb50   :  { %v8991_v29 = vadd.f32 %v9754_v1, %v19210_v45 }
 0xb52   :  { %9009 = vxpose.xlu0.b32.end [16/16] (narrow) %v8991_v29, 24 }
 0xb96   :  { %v9010_v13 = vpop.trf.xlu0 }
 0xb97   :  { %9026 = vst [vmem:[%s19242_s5] sm:$0xff] %v9010_v13 }
 0xb9a   :  { %v9011_v32 = vpop.trf.xlu0 }
 0xb9b   :  { %9027 = vst [vmem:[%s19242_s5 + $0x8] sm:$0xff] %v9011_v32 }
 0xb9e   :  { %v9012_v27 = vpop.trf.xlu0 }
 0xb9f   :  { %9028 = vst [vmem:[%s19242_s5 + $0x10] sm:$0xf] %v9012_v27 }

</bundles_post_ra>
